<compile_context>
chip_gen: v7x
topology: tpu7x:2x2x1
jax: 0.10.0
libtpu: 0.0.40
codegen_flags: <defaults>
</compile_context>

<pallas_src>
import functools

import jax
import jax.numpy as jnp
from jax import lax
from jax.experimental import pallas as pl
from jax.experimental.pallas import tpu as pltpu


# ---------------------------------------------------------------------------
# Static layout constants for the 84x84 Atari input
# (conv outputs: 20x20x32 -> 9x9x64 -> 7x7x64).
# ---------------------------------------------------------------------------
_PBLK = 104          # rows per conv1 output-parity block (100 valid + 4 pad)
_ROWS2 = 90          # conv2 output slab rows (9 rows x width 10, col 9 junk)
_ROWS3 = 67          # conv3 output slab rows (covers valid 7x7 at width 10)
_TAPS2 = (0, 1, 10, 11)                       # 2x2 quasi-conv taps, width 10
_TAPS3 = (0, 1, 2, 10, 11, 12, 20, 21, 22)    # 3x3 conv taps, width 10


# ---------------------------------------------------------------------------
# Kernel A: fused conv1 -> conv2 -> conv3, one image per grid step.
# ---------------------------------------------------------------------------
def _convnet_kernel(x_ref, w1_ref, b1_ref, w2_ref, b2_ref, w3_ref, b3_ref,
                    o_ref, h1_s, x2_s, lhs2_s, h2_s, lhs3_s, h3_s):
    # conv1: four output-parity planes share one deep-K matmul (K=256).
    h1_s[...] = jnp.maximum(
        jnp.dot(x_ref[...], w1_ref[...], preferred_element_type=jnp.float32)
        + b1_ref[...], 0.0)                                        # (416, 32)

    # conv1 -> conv2 space-to-depth: parity row-blocks -> lane groups, so
    # conv2's input is lane-dense (128 lanes) with purely contiguous reads.
    for p in range(4):
        x2_s[:, p * 32:(p + 1) * 32] = h1_s[p * _PBLK: p * _PBLK + _PBLK, :]

    # conv2 (4x4 stride 2 == 2x2 quasi-conv on the s2d slab): concatenate the
    # 4 taps along K and issue a single K=512 matmul.
    for k, t in enumerate(_TAPS2):
        lhs2_s[:, k * 128:(k + 1) * 128] = x2_s[t: t + _ROWS2, :]
    h2_s[...] = jnp.maximum(
        jnp.dot(lhs2_s[...], w2_ref[...], preferred_element_type=jnp.float32)
        + b2_ref[...], 0.0)                                        # (90, 64)

    # conv3 (3x3 stride 1): 9 taps concatenated along K -> one K=576 matmul.
    for k, t in enumerate(_TAPS3):
        lhs3_s[:, k * 64:(k + 1) * 64] = h2_s[t: t + _ROWS3, :]
    h3_s[...] = jnp.maximum(
        jnp.dot(lhs3_s[...], w3_ref[...], preferred_element_type=jnp.float32)
        + b3_ref[...], 0.0)                                        # (67, 64)

    # Keep only the valid 7x7 pixels, flattened in (y, x, c) order.
    for qy in range(7):
        o_ref[qy * 7:(qy + 1) * 7, :] = h3_s[qy * 10: qy * 10 + 7, :]


def _conv_chain(x_all, w1m, b1m, w2m, b2m, w3m, b3m):
    n = x_all.shape[0]
    return pl.pallas_call(
        _convnet_kernel,
        out_shape=jax.ShapeDtypeStruct((n, 49, 64), jnp.float32),
        grid_spec=pltpu.PrefetchScalarGridSpec(
            num_scalar_prefetch=0,
            grid=(n,),
            in_specs=[
                pl.BlockSpec((None, 4 * _PBLK, 256), lambda i: (i, 0, 0)),
                pl.BlockSpec((256, 32), lambda i: (0, 0)),
                pl.BlockSpec((1, 32), lambda i: (0, 0)),
                pl.BlockSpec((512, 64), lambda i: (0, 0)),
                pl.BlockSpec((1, 64), lambda i: (0, 0)),
                pl.BlockSpec((576, 64), lambda i: (0, 0)),
                pl.BlockSpec((1, 64), lambda i: (0, 0)),
            ],
            out_specs=pl.BlockSpec((None, 49, 64), lambda i: (i, 0, 0)),
            scratch_shapes=[
                pltpu.VMEM((4 * _PBLK, 32), jnp.float32),    # h1 (parity slab)
                pltpu.VMEM((_PBLK, 128), jnp.float32),       # conv2 s2d input
                pltpu.VMEM((_ROWS2, 512), jnp.float32),      # conv2 tap-concat
                pltpu.VMEM((_ROWS2, 64), jnp.float32),       # conv2 output
                pltpu.VMEM((_ROWS3, 576), jnp.float32),      # conv3 tap-concat
                pltpu.VMEM((_ROWS3, 64), jnp.float32),       # conv3 output
            ],
        ),
        compiler_params=pltpu.CompilerParams(dimension_semantics=("parallel",)),
    )(x_all, w1m, b1m, w2m, b2m, w3m, b3m)


# ---------------------------------------------------------------------------
# Kernel B: fused FC1(+ReLU) -> FC2, FC1's N axis pipelined as FC2's K axis.
# ---------------------------------------------------------------------------
def _fc_kernel(h_ref, w4_ref, b4_ref, w5_ref, b5_ref, o_ref):
    j = pl.program_id(0)
    z = jnp.dot(h_ref[...], w4_ref[...], preferred_element_type=jnp.float32)
    z = jnp.maximum(z + b4_ref[...], 0.0)
    contrib = jnp.dot(z, w5_ref[...], preferred_element_type=jnp.float32)

    @pl.when(j == 0)
    def _():
        o_ref[...] = contrib + b5_ref[...]

    @pl.when(j > 0)
    def _():
        o_ref[...] = o_ref[...] + contrib


def _fc_head(h, w4p, b4m, w5p, b5m, *, tn=128):
    m, k = h.shape          # (batch, 3136)
    k2, n1 = w4p.shape      # (3136, 512)
    assert k == k2 and n1 % tn == 0
    return pl.pallas_call(
        _fc_kernel,
        out_shape=jax.ShapeDtypeStruct((m, 128), jnp.float32),
        grid_spec=pltpu.PrefetchScalarGridSpec(
            num_scalar_prefetch=0,
            grid=(n1 // tn,),
            in_specs=[
                pl.BlockSpec((m, k), lambda j: (0, 0)),
                pl.BlockSpec((k, tn), lambda j: (0, j)),
                pl.BlockSpec((1, tn), lambda j: (0, j)),
                pl.BlockSpec((tn, 128), lambda j: (j, 0)),
                pl.BlockSpec((1, 128), lambda j: (0, 0)),
            ],
            out_specs=pl.BlockSpec((m, 128), lambda j: (0, 0)),
        ),
        compiler_params=pltpu.CompilerParams(dimension_semantics=("arbitrary",)),
    )(h, w4p, b4m, w5p, b5m)


# ---------------------------------------------------------------------------
# Trace-time input / one-time weight re-layout
# ---------------------------------------------------------------------------
def _build_conv1_input(x):
    """x: (N, 4, 84, 84) f32 -> (N, 416, 256) per-parity im2col blocks.

    For a fixed conv1 output parity (oy%2, ox%2) the 8x8 stride-4 windows are
    non-overlapping, so a crop + reshape (no gather) yields each block.
    """
    n = x.shape[0]
    blocks = []
    for sy in range(2):
        for sx in range(2):
            sub = x[:, :, 4 * sy:4 * sy + 80, 4 * sx:4 * sx + 80]   # (N,4,80,80)
            sub = sub.reshape(n, 4, 10, 8, 10, 8)                   # (n,c,a,ky,b,kx)
            sub = sub.transpose(0, 2, 4, 3, 5, 1)                   # (n,a,b,ky,kx,c)
            sub = sub.reshape(n, 100, 256)
            sub = jnp.pad(sub, ((0, 0), (0, _PBLK - 100), (0, 0)))  # (N,104,256)
            blocks.append(sub)
    return jnp.concatenate(blocks, axis=1)                          # (N,416,256)


def prepare_params(params):
    """One-time weight re-layouts (run outside the per-step jitted forward)."""
    w1 = jnp.asarray(params["w1"], jnp.float32)   # (32, 4, 8, 8)  OIHW
    w2 = jnp.asarray(params["w2"], jnp.float32)   # (64, 32, 4, 4)
    w3 = jnp.asarray(params["w3"], jnp.float32)   # (64, 64, 3, 3)
    w4 = jnp.asarray(params["w4"], jnp.float32)   # (3136, 512)  (in, out)
    w5 = jnp.asarray(params["w5"], jnp.float32)   # (512, n_actions)
    n_actions = w5.shape[1]

    # conv1: window flattened as (ky, kx, c); /255 folded into the weights.
    w1m = w1.transpose(2, 3, 1, 0).reshape(256, 32) / 255.0
    # conv2: K index = (2*di+dj)*128 + (2*sy+sx)*32 + c   (tap, parity, chan)
    w2m = (w2.reshape(64, 32, 2, 2, 2, 2)        # (o, c, di, sy, dj, sx)
             .transpose(2, 4, 3, 5, 1, 0)        # (di, dj, sy, sx, c, o)
             .reshape(512, 64))
    # conv3: K index = (di*3+dj)*64 + c
    w3m = w3.transpose(2, 3, 1, 0).reshape(576, 64)
    # fc1: permute rows from torch's (c, y, x) flatten to our (y, x, c) flatten
    w4p = w4.reshape(64, 7, 7, 512).transpose(1, 2, 0, 3).reshape(3136, 512)
    # fc2: zero-pad to 128 output lanes (unmasked stores); slice afterwards.
    w5p = jnp.zeros((512, 128), jnp.float32).at[:, :n_actions].set(w5)
    b5p = jnp.zeros((1, 128), jnp.float32).at[:, :n_actions].set(
        jnp.asarray(params["b5"], jnp.float32).reshape(1, n_actions))

    return {
        "w1": w1m, "b1": jnp.asarray(params["b1"], jnp.float32).reshape(1, 32),
        "w2": w2m, "b2": jnp.asarray(params["b2"], jnp.float32).reshape(1, 64),
        "w3": w3m, "b3": jnp.asarray(params["b3"], jnp.float32).reshape(1, 64),
        "w4": w4p, "b4": jnp.asarray(params["b4"], jnp.float32).reshape(1, 512),
        "w5": w5p, "b5": b5p,
    }


# ---------------------------------------------------------------------------
# Full forward
# ---------------------------------------------------------------------------
def visual_q_forward(x_nchw, prep, *, n_actions):
    n = x_nchw.shape[0]
    x_all = _build_conv1_input(x_nchw.astype(jnp.float32))          # (N,416,256)
    h3 = _conv_chain(x_all, prep["w1"], prep["b1"], prep["w2"], prep["b2"],
                     prep["w3"], prep["b3"])                        # (N, 49, 64)
    h = h3.reshape(n, 49 * 64)                                      # (N, 3136)
    q_pad = _fc_head(h, prep["w4"], prep["b4"], prep["w5"], prep["b5"])
    return q_pad[:, :n_actions]


# ---------------------------------------------------------------------------
# Parameter init (PyTorch-style layouts) and pure-JAX reference
# ---------------------------------------------------------------------------
def init_params(key, n_actions):
    ks = jax.random.split(key, 10)

    def u(k, shape, fan_in):
        bound = float(fan_in) ** -0.5
        return jax.random.uniform(k, shape, jnp.float32, -bound, bound)

    return {
        "w1": u(ks[0], (32, 4, 8, 8), 4 * 8 * 8),
        "b1": u(ks[1], (32,), 4 * 8 * 8),
        "w2": u(ks[2], (64, 32, 4, 4), 32 * 4 * 4),
        "b2": u(ks[3], (64,), 32 * 4 * 4),
        "w3": u(ks[4], (64, 64, 3, 3), 64 * 3 * 3),
        "b3": u(ks[5], (64,), 64 * 3 * 3),
        "w4": u(ks[6], (3136, 512), 3136),
        "b4": u(ks[7], (512,), 3136),
        "w5": u(ks[8], (512, n_actions), 512),
        "b5": u(ks[9], (n_actions,), 512),
    }


def reference_forward(x_nchw, params):
    x = x_nchw.astype(jnp.float32) / 255.0

    def conv(x, w, b, stride):
        y = lax.conv_general_dilated(
            x, w, (stride, stride), "VALID",
            dimension_numbers=("NCHW", "OIHW", "NCHW"))
        return jax.nn.relu(y + b[None, :, None, None])

    h = conv(x, params["w1"], params["b1"], 4)
    h = conv(h, params["w2"], params["b2"], 2)
    h = conv(h, params["w3"], params["b3"], 1)
    h = h.reshape(h.shape[0], -1)
    h = jax.nn.relu(h @ params["w4"] + params["b4"])
    return h @ params["w5"] + params["b5"]


if __name__ == "__main__":
    key = jax.random.PRNGKey(0)
    k_param, k_x = jax.random.split(key)

    n_actions = 6
    batch = 2
    # 84x84 input is fixed by Linear(3136, 512) = 64 * 7 * 7 in the module.
    x = jax.random.uniform(k_x, (batch, 4, 84, 84), jnp.float32, 0.0, 255.0)
    params = init_params(k_param, n_actions)

    prep = prepare_params(params)      # one-time weight re-layout
    fwd = jax.jit(functools.partial(visual_q_forward, n_actions=n_actions))
    q = jax.block_until_ready(fwd(x, prep))
    assert q.shape == (batch, n_actions)

    q_ref = jax.block_until_ready(reference_forward(x, params))
    assert jnp.allclose(q, q_ref, rtol=1e-3, atol=1e-3), "mismatch vs JAX reference"

    print("KERNEL_OK")
</pallas_src>

<mosaic_0001>
module attributes {stable_mosaic.version = 11 : i64} {
  func.func @_convnet_kernel(%arg0: i32, %arg1: memref<1x416x256xf32, #tpu.memory_space<vmem>>, %arg2: memref<256x32xf32, #tpu.memory_space<vmem>>, %arg3: memref<1x32xf32, #tpu.memory_space<vmem>>, %arg4: memref<512x64xf32, #tpu.memory_space<vmem>>, %arg5: memref<1x64xf32, #tpu.memory_space<vmem>>, %arg6: memref<576x64xf32, #tpu.memory_space<vmem>>, %arg7: memref<1x64xf32, #tpu.memory_space<vmem>>, %arg8: memref<1x49x64xf32, #tpu.memory_space<vmem>>, %arg9: memref<416x32xf32, #tpu.memory_space<vmem>>, %arg10: memref<104x128xf32, #tpu.memory_space<vmem>>, %arg11: memref<90x512xf32, #tpu.memory_space<vmem>>, %arg12: memref<90x64xf32, #tpu.memory_space<vmem>>, %arg13: memref<67x576xf32, #tpu.memory_space<vmem>>, %arg14: memref<67x64xf32, #tpu.memory_space<vmem>>) attributes {dimension_semantics = [#tpu.dimension_semantics<parallel>], iteration_bounds = array<i64: 2>, scalar_prefetch = 0 : i64, scratch_operands = 6 : i64, tpu.core_type = #tpu.core_type<tc>, window_params = [{transform_indices = @transform_0, window_bounds = array<i64: 1, 416, 256>}, {pipeline_mode = #tpu.pipeline_mode<synchronous>, transform_indices = @transform_1, window_bounds = array<i64: 256, 32>}, {pipeline_mode = #tpu.pipeline_mode<synchronous>, transform_indices = @transform_2, window_bounds = array<i64: 1, 32>}, {pipeline_mode = #tpu.pipeline_mode<synchronous>, transform_indices = @transform_3, window_bounds = array<i64: 512, 64>}, {pipeline_mode = #tpu.pipeline_mode<synchronous>, transform_indices = @transform_4, window_bounds = array<i64: 1, 64>}, {pipeline_mode = #tpu.pipeline_mode<synchronous>, transform_indices = @transform_5, window_bounds = array<i64: 576, 64>}, {pipeline_mode = #tpu.pipeline_mode<synchronous>, transform_indices = @transform_6, window_bounds = array<i64: 1, 64>}, {transform_indices = @transform_7, window_bounds = array<i64: 1, 49, 64>}]} {
    %c0 = arith.constant 0 : index
    %c0_0 = arith.constant 0 : index
    %c0_1 = arith.constant 0 : index
    %0 = vector.load %arg1[%c0, %c0_0, %c0_1] : memref<1x416x256xf32, #tpu.memory_space<vmem>>, vector<1x416x256xf32>
    %1 = vector.shape_cast %0 : vector<1x416x256xf32> to vector<416x256xf32>
    %c0_2 = arith.constant 0 : index
    %c0_3 = arith.constant 0 : index
    %2 = vector.load %arg2[%c0_2, %c0_3] : memref<256x32xf32, #tpu.memory_space<vmem>>, vector<256x32xf32>
    %cst = arith.constant dense<0.000000e+00> : vector<416x32xf32>
    %3 = tpu.matmul %1, %2, %cst {dimension_numbers = #tpu.dot_dimension_numbers<[1], [0], [0], [1], [0, 0, 1, 1], [], []>} : vector<416x256xf32>, vector<256x32xf32>, vector<416x32xf32> -> vector<416x32xf32>
    %c0_4 = arith.constant 0 : index
    %c0_5 = arith.constant 0 : index
    %4 = vector.load %arg3[%c0_4, %c0_5] : memref<1x32xf32, #tpu.memory_space<vmem>>, vector<1x32xf32>
    %5 = vector.broadcast %4 : vector<1x32xf32> to vector<416x32xf32>
    %6 = arith.addf %3, %5 : vector<416x32xf32>
    %cst_6 = arith.constant 0.000000e+00 : f32
    %7 = vector.broadcast %cst_6 : f32 to vector<416x32xf32>
    %8 = arith.maximumf %6, %7 : vector<416x32xf32>
    %c0_7 = arith.constant 0 : index
    %c0_8 = arith.constant 0 : index
    %9 = vector.load %arg9[%c0_7, %c0_8] : memref<416x32xf32, #tpu.memory_space<vmem>>, vector<416x32xf32>
    tpu.vector_store %arg9[%c0_7, %c0_8], %8 {strides = array<i32>} : memref<416x32xf32, #tpu.memory_space<vmem>>, vector<416x32xf32>,
    %c0_9 = arith.constant 0 : index
    %c0_10 = arith.constant 0 : index
    %10 = vector.load %arg9[%c0_9, %c0_10] : memref<416x32xf32, #tpu.memory_space<vmem>>, vector<104x32xf32>
    %c0_11 = arith.constant 0 : index
    %c0_12 = arith.constant 0 : index
    %11 = vector.load %arg10[%c0_11, %c0_12] : memref<104x128xf32, #tpu.memory_space<vmem>>, vector<104x32xf32>
    tpu.vector_store %arg10[%c0_11, %c0_12], %10 {strides = array<i32>} : memref<104x128xf32, #tpu.memory_space<vmem>>, vector<104x32xf32>,
    %c104 = arith.constant 104 : index
    %c0_13 = arith.constant 0 : index
    %12 = vector.load %arg9[%c104, %c0_13] : memref<416x32xf32, #tpu.memory_space<vmem>>, vector<104x32xf32>
    %c0_14 = arith.constant 0 : index
    %c32 = arith.constant 32 : index
    %13 = vector.load %arg10[%c0_14, %c32] : memref<104x128xf32, #tpu.memory_space<vmem>>, vector<104x32xf32>
    tpu.vector_store %arg10[%c0_14, %c32], %12 {strides = array<i32>} : memref<104x128xf32, #tpu.memory_space<vmem>>, vector<104x32xf32>,
    %c208 = arith.constant 208 : index
    %c0_15 = arith.constant 0 : index
    %14 = vector.load %arg9[%c208, %c0_15] : memref<416x32xf32, #tpu.memory_space<vmem>>, vector<104x32xf32>
    %c0_16 = arith.constant 0 : index
    %c64 = arith.constant 64 : index
    %15 = vector.load %arg10[%c0_16, %c64] : memref<104x128xf32, #tpu.memory_space<vmem>>, vector<104x32xf32>
    tpu.vector_store %arg10[%c0_16, %c64], %14 {strides = array<i32>} : memref<104x128xf32, #tpu.memory_space<vmem>>, vector<104x32xf32>,
    %c312 = arith.constant 312 : index
    %c0_17 = arith.constant 0 : index
    %16 = vector.load %arg9[%c312, %c0_17] : memref<416x32xf32, #tpu.memory_space<vmem>>, vector<104x32xf32>
    %c0_18 = arith.constant 0 : index
    %c96 = arith.constant 96 : index
    %17 = vector.load %arg10[%c0_18, %c96] : memref<104x128xf32, #tpu.memory_space<vmem>>, vector<104x32xf32>
    tpu.vector_store %arg10[%c0_18, %c96], %16 {strides = array<i32>} : memref<104x128xf32, #tpu.memory_space<vmem>>, vector<104x32xf32>,
    %c0_19 = arith.constant 0 : index
    %c0_20 = arith.constant 0 : index
    %18 = vector.load %arg10[%c0_19, %c0_20] : memref<104x128xf32, #tpu.memory_space<vmem>>, vector<90x128xf32>
    %c0_21 = arith.constant 0 : index
    %c0_22 = arith.constant 0 : index
    %19 = vector.load %arg11[%c0_21, %c0_22] : memref<90x512xf32, #tpu.memory_space<vmem>>, vector<90x128xf32>
    tpu.vector_store %arg11[%c0_21, %c0_22], %18 {strides = array<i32>} : memref<90x512xf32, #tpu.memory_space<vmem>>, vector<90x128xf32>,
    %c1 = arith.constant 1 : index
    %c0_23 = arith.constant 0 : index
    %20 = vector.load %arg10[%c1, %c0_23] : memref<104x128xf32, #tpu.memory_space<vmem>>, vector<90x128xf32>
    %c0_24 = arith.constant 0 : index
    %c128 = arith.constant 128 : index
    %21 = vector.load %arg11[%c0_24, %c128] : memref<90x512xf32, #tpu.memory_space<vmem>>, vector<90x128xf32>
    tpu.vector_store %arg11[%c0_24, %c128], %20 {strides = array<i32>} : memref<90x512xf32, #tpu.memory_space<vmem>>, vector<90x128xf32>,
    %c10 = arith.constant 10 : index
    %c0_25 = arith.constant 0 : index
    %22 = vector.load %arg10[%c10, %c0_25] : memref<104x128xf32, #tpu.memory_space<vmem>>, vector<90x128xf32>
    %c0_26 = arith.constant 0 : index
    %c256 = arith.constant 256 : index
    %23 = vector.load %arg11[%c0_26, %c256] : memref<90x512xf32, #tpu.memory_space<vmem>>, vector<90x128xf32>
    tpu.vector_store %arg11[%c0_26, %c256], %22 {strides = array<i32>} : memref<90x512xf32, #tpu.memory_space<vmem>>, vector<90x128xf32>,
    %c11 = arith.constant 11 : index
    %c0_27 = arith.constant 0 : index
    %24 = vector.load %arg10[%c11, %c0_27] : memref<104x128xf32, #tpu.memory_space<vmem>>, vector<90x128xf32>
    %c0_28 = arith.constant 0 : index
    %c384 = arith.constant 384 : index
    %25 = vector.load %arg11[%c0_28, %c384] : memref<90x512xf32, #tpu.memory_space<vmem>>, vector<90x128xf32>
    tpu.vector_store %arg11[%c0_28, %c384], %24 {strides = array<i32>} : memref<90x512xf32, #tpu.memory_space<vmem>>, vector<90x128xf32>,
    %c0_29 = arith.constant 0 : index
    %c0_30 = arith.constant 0 : index
    %26 = vector.load %arg11[%c0_29, %c0_30] : memref<90x512xf32, #tpu.memory_space<vmem>>, vector<90x512xf32>
    %c0_31 = arith.constant 0 : index
    %c0_32 = arith.constant 0 : index
    %27 = vector.load %arg4[%c0_31, %c0_32] : memref<512x64xf32, #tpu.memory_space<vmem>>, vector<512x64xf32>
    %cst_33 = arith.constant dense<0.000000e+00> : vector<90x64xf32>
    %28 = tpu.matmul %26, %27, %cst_33 {dimension_numbers = #tpu.dot_dimension_numbers<[1], [0], [0], [1], [0, 0, 1, 1], [], []>} : vector<90x512xf32>, vector<512x64xf32>, vector<90x64xf32> -> vector<90x64xf32>
    %c0_34 = arith.constant 0 : index
    %c0_35 = arith.constant 0 : index
    %29 = vector.load %arg5[%c0_34, %c0_35] : memref<1x64xf32, #tpu.memory_space<vmem>>, vector<1x64xf32>
    %30 = vector.broadcast %29 : vector<1x64xf32> to vector<90x64xf32>
    %31 = arith.addf %28, %30 : vector<90x64xf32>
    %cst_36 = arith.constant 0.000000e+00 : f32
    %32 = vector.broadcast %cst_36 : f32 to vector<90x64xf32>
    %33 = arith.maximumf %31, %32 : vector<90x64xf32>
    %c0_37 = arith.constant 0 : index
    %c0_38 = arith.constant 0 : index
    %34 = vector.load %arg12[%c0_37, %c0_38] : memref<90x64xf32, #tpu.memory_space<vmem>>, vector<90x64xf32>
    tpu.vector_store %arg12[%c0_37, %c0_38], %33 {strides = array<i32>} : memref<90x64xf32, #tpu.memory_space<vmem>>, vector<90x64xf32>,
    %c0_39 = arith.constant 0 : index
    %c0_40 = arith.constant 0 : index
    %35 = vector.load %arg12[%c0_39, %c0_40] : memref<90x64xf32, #tpu.memory_space<vmem>>, vector<67x64xf32>
    %c0_41 = arith.constant 0 : index
    %c0_42 = arith.constant 0 : index
    %36 = vector.load %arg13[%c0_41, %c0_42] : memref<67x576xf32, #tpu.memory_space<vmem>>, vector<67x64xf32>
    tpu.vector_store %arg13[%c0_41, %c0_42], %35 {strides = array<i32>} : memref<67x576xf32, #tpu.memory_space<vmem>>, vector<67x64xf32>,
    %c1_43 = arith.constant 1 : index
    %c0_44 = arith.constant 0 : index
    %37 = vector.load %arg12[%c1_43, %c0_44] : memref<90x64xf32, #tpu.memory_space<vmem>>, vector<67x64xf32>
    %c0_45 = arith.constant 0 : index
    %c64_46 = arith.constant 64 : index
    %38 = vector.load %arg13[%c0_45, %c64_46] : memref<67x576xf32, #tpu.memory_space<vmem>>, vector<67x64xf32>
    tpu.vector_store %arg13[%c0_45, %c64_46], %37 {strides = array<i32>} : memref<67x576xf32, #tpu.memory_space<vmem>>, vector<67x64xf32>,
    %c2 = arith.constant 2 : index
    %c0_47 = arith.constant 0 : index
    %39 = vector.load %arg12[%c2, %c0_47] : memref<90x64xf32, #tpu.memory_space<vmem>>, vector<67x64xf32>
    %c0_48 = arith.constant 0 : index
    %c128_49 = arith.constant 128 : index
    %40 = vector.load %arg13[%c0_48, %c128_49] : memref<67x576xf32, #tpu.memory_space<vmem>>, vector<67x64xf32>
    tpu.vector_store %arg13[%c0_48, %c128_49], %39 {strides = array<i32>} : memref<67x576xf32, #tpu.memory_space<vmem>>, vector<67x64xf32>,
    %c10_50 = arith.constant 10 : index
    %c0_51 = arith.constant 0 : index
    %41 = vector.load %arg12[%c10_50, %c0_51] : memref<90x64xf32, #tpu.memory_space<vmem>>, vector<67x64xf32>
    %c0_52 = arith.constant 0 : index
    %c192 = arith.constant 192 : index
    %42 = vector.load %arg13[%c0_52, %c192] : memref<67x576xf32, #tpu.memory_space<vmem>>, vector<67x64xf32>
    tpu.vector_store %arg13[%c0_52, %c192], %41 {strides = array<i32>} : memref<67x576xf32, #tpu.memory_space<vmem>>, vector<67x64xf32>,
    %c11_53 = arith.constant 11 : index
    %c0_54 = arith.constant 0 : index
    %43 = vector.load %arg12[%c11_53, %c0_54] : memref<90x64xf32, #tpu.memory_space<vmem>>, vector<67x64xf32>
    %c0_55 = arith.constant 0 : index
    %c256_56 = arith.constant 256 : index
    %44 = vector.load %arg13[%c0_55, %c256_56] : memref<67x576xf32, #tpu.memory_space<vmem>>, vector<67x64xf32>
    tpu.vector_store %arg13[%c0_55, %c256_56], %43 {strides = array<i32>} : memref<67x576xf32, #tpu.memory_space<vmem>>, vector<67x64xf32>,
    %c12 = arith.constant 12 : index
    %c0_57 = arith.constant 0 : index
    %45 = vector.load %arg12[%c12, %c0_57] : memref<90x64xf32, #tpu.memory_space<vmem>>, vector<67x64xf32>
    %c0_58 = arith.constant 0 : index
    %c320 = arith.constant 320 : index
    %46 = vector.load %arg13[%c0_58, %c320] : memref<67x576xf32, #tpu.memory_space<vmem>>, vector<67x64xf32>
    tpu.vector_store %arg13[%c0_58, %c320], %45 {strides = array<i32>} : memref<67x576xf32, #tpu.memory_space<vmem>>, vector<67x64xf32>,
    %c20 = arith.constant 20 : index
    %c0_59 = arith.constant 0 : index
    %47 = vector.load %arg12[%c20, %c0_59] : memref<90x64xf32, #tpu.memory_space<vmem>>, vector<67x64xf32>
    %c0_60 = arith.constant 0 : index
    %c384_61 = arith.constant 384 : index
    %48 = vector.load %arg13[%c0_60, %c384_61] : memref<67x576xf32, #tpu.memory_space<vmem>>, vector<67x64xf32>
    tpu.vector_store %arg13[%c0_60, %c384_61], %47 {strides = array<i32>} : memref<67x576xf32, #tpu.memory_space<vmem>>, vector<67x64xf32>,
    %c21 = arith.constant 21 : index
    %c0_62 = arith.constant 0 : index
    %49 = vector.load %arg12[%c21, %c0_62] : memref<90x64xf32, #tpu.memory_space<vmem>>, vector<67x64xf32>
    %c0_63 = arith.constant 0 : index
    %c448 = arith.constant 448 : index
    %50 = vector.load %arg13[%c0_63, %c448] : memref<67x576xf32, #tpu.memory_space<vmem>>, vector<67x64xf32>
    tpu.vector_store %arg13[%c0_63, %c448], %49 {strides = array<i32>} : memref<67x576xf32, #tpu.memory_space<vmem>>, vector<67x64xf32>,
    %c22 = arith.constant 22 : index
    %c0_64 = arith.constant 0 : index
    %51 = vector.load %arg12[%c22, %c0_64] : memref<90x64xf32, #tpu.memory_space<vmem>>, vector<67x64xf32>
    %c0_65 = arith.constant 0 : index
    %c512 = arith.constant 512 : index
    %52 = vector.load %arg13[%c0_65, %c512] : memref<67x576xf32, #tpu.memory_space<vmem>>, vector<67x64xf32>
    tpu.vector_store %arg13[%c0_65, %c512], %51 {strides = array<i32>} : memref<67x576xf32, #tpu.memory_space<vmem>>, vector<67x64xf32>,
    %c0_66 = arith.constant 0 : index
    %c0_67 = arith.constant 0 : index
    %53 = vector.load %arg13[%c0_66, %c0_67] : memref<67x576xf32, #tpu.memory_space<vmem>>, vector<67x576xf32>
    %c0_68 = arith.constant 0 : index
    %c0_69 = arith.constant 0 : index
    %54 = vector.load %arg6[%c0_68, %c0_69] : memref<576x64xf32, #tpu.memory_space<vmem>>, vector<576x64xf32>
    %cst_70 = arith.constant dense<0.000000e+00> : vector<67x64xf32>
    %55 = tpu.matmul %53, %54, %cst_70 {dimension_numbers = #tpu.dot_dimension_numbers<[1], [0], [0], [1], [0, 0, 1, 1], [], []>} : vector<67x576xf32>, vector<576x64xf32>, vector<67x64xf32> -> vector<67x64xf32>
    %c0_71 = arith.constant 0 : index
    %c0_72 = arith.constant 0 : index
    %56 = vector.load %arg7[%c0_71, %c0_72] : memref<1x64xf32, #tpu.memory_space<vmem>>, vector<1x64xf32>
    %57 = vector.broadcast %56 : vector<1x64xf32> to vector<67x64xf32>
    %58 = arith.addf %55, %57 : vector<67x64xf32>
    %cst_73 = arith.constant 0.000000e+00 : f32
    %59 = vector.broadcast %cst_73 : f32 to vector<67x64xf32>
    %60 = arith.maximumf %58, %59 : vector<67x64xf32>
    %c0_74 = arith.constant 0 : index
    %c0_75 = arith.constant 0 : index
    %61 = vector.load %arg14[%c0_74, %c0_75] : memref<67x64xf32, #tpu.memory_space<vmem>>, vector<67x64xf32>
    tpu.vector_store %arg14[%c0_74, %c0_75], %60 {strides = array<i32>} : memref<67x64xf32, #tpu.memory_space<vmem>>, vector<67x64xf32>,
    %c0_76 = arith.constant 0 : index
    %c0_77 = arith.constant 0 : index
    %62 = vector.load %arg14[%c0_76, %c0_77] : memref<67x64xf32, #tpu.memory_space<vmem>>, vector<7x64xf32>
    %c0_78 = arith.constant 0 : index
    %c0_79 = arith.constant 0 : index
    %c0_80 = arith.constant 0 : index
    %63 = vector.load %arg8[%c0_78, %c0_79, %c0_80] : memref<1x49x64xf32, #tpu.memory_space<vmem>>, vector<1x7x64xf32>
    %64 = vector.shape_cast %63 : vector<1x7x64xf32> to vector<7x64xf32>
    %65 = vector.shape_cast %62 : vector<7x64xf32> to vector<1x7x64xf32>
    tpu.vector_store %arg8[%c0_78, %c0_79, %c0_80], %65 {strides = array<i32>} : memref<1x49x64xf32, #tpu.memory_space<vmem>>, vector<1x7x64xf32>,
    %c10_81 = arith.constant 10 : index
    %c0_82 = arith.constant 0 : index
    %66 = vector.load %arg14[%c10_81, %c0_82] : memref<67x64xf32, #tpu.memory_space<vmem>>, vector<7x64xf32>
    %c0_83 = arith.constant 0 : index
    %c7 = arith.constant 7 : index
    %c0_84 = arith.constant 0 : index
    %67 = vector.load %arg8[%c0_83, %c7, %c0_84] : memref<1x49x64xf32, #tpu.memory_space<vmem>>, vector<1x7x64xf32>
    %68 = vector.shape_cast %67 : vector<1x7x64xf32> to vector<7x64xf32>
    %69 = vector.shape_cast %66 : vector<7x64xf32> to vector<1x7x64xf32>
    tpu.vector_store %arg8[%c0_83, %c7, %c0_84], %69 {strides = array<i32>} : memref<1x49x64xf32, #tpu.memory_space<vmem>>, vector<1x7x64xf32>,
    %c20_85 = arith.constant 20 : index
    %c0_86 = arith.constant 0 : index
    %70 = vector.load %arg14[%c20_85, %c0_86] : memref<67x64xf32, #tpu.memory_space<vmem>>, vector<7x64xf32>
    %c0_87 = arith.constant 0 : index
    %c14 = arith.constant 14 : index
    %c0_88 = arith.constant 0 : index
    %71 = vector.load %arg8[%c0_87, %c14, %c0_88] : memref<1x49x64xf32, #tpu.memory_space<vmem>>, vector<1x7x64xf32>
    %72 = vector.shape_cast %71 : vector<1x7x64xf32> to vector<7x64xf32>
    %73 = vector.shape_cast %70 : vector<7x64xf32> to vector<1x7x64xf32>
    tpu.vector_store %arg8[%c0_87, %c14, %c0_88], %73 {strides = array<i32>} : memref<1x49x64xf32, #tpu.memory_space<vmem>>, vector<1x7x64xf32>,
    %c30 = arith.constant 30 : index
    %c0_89 = arith.constant 0 : index
    %74 = vector.load %arg14[%c30, %c0_89] : memref<67x64xf32, #tpu.memory_space<vmem>>, vector<7x64xf32>
    %c0_90 = arith.constant 0 : index
    %c21_91 = arith.constant 21 : index
    %c0_92 = arith.constant 0 : index
    %75 = vector.load %arg8[%c0_90, %c21_91, %c0_92] : memref<1x49x64xf32, #tpu.memory_space<vmem>>, vector<1x7x64xf32>
    %76 = vector.shape_cast %75 : vector<1x7x64xf32> to vector<7x64xf32>
    %77 = vector.shape_cast %74 : vector<7x64xf32> to vector<1x7x64xf32>
    tpu.vector_store %arg8[%c0_90, %c21_91, %c0_92], %77 {strides = array<i32>} : memref<1x49x64xf32, #tpu.memory_space<vmem>>, vector<1x7x64xf32>,
    %c40 = arith.constant 40 : index
    %c0_93 = arith.constant 0 : index
    %78 = vector.load %arg14[%c40, %c0_93] : memref<67x64xf32, #tpu.memory_space<vmem>>, vector<7x64xf32>
    %c0_94 = arith.constant 0 : index
    %c28 = arith.constant 28 : index
    %c0_95 = arith.constant 0 : index
    %79 = vector.load %arg8[%c0_94, %c28, %c0_95] : memref<1x49x64xf32, #tpu.memory_space<vmem>>, vector<1x7x64xf32>
    %80 = vector.shape_cast %79 : vector<1x7x64xf32> to vector<7x64xf32>
    %81 = vector.shape_cast %78 : vector<7x64xf32> to vector<1x7x64xf32>
    tpu.vector_store %arg8[%c0_94, %c28, %c0_95], %81 {strides = array<i32>} : memref<1x49x64xf32, #tpu.memory_space<vmem>>, vector<1x7x64xf32>,
    %c50 = arith.constant 50 : index
    %c0_96 = arith.constant 0 : index
    %82 = vector.load %arg14[%c50, %c0_96] : memref<67x64xf32, #tpu.memory_space<vmem>>, vector<7x64xf32>
    %c0_97 = arith.constant 0 : index
    %c35 = arith.constant 35 : index
    %c0_98 = arith.constant 0 : index
    %83 = vector.load %arg8[%c0_97, %c35, %c0_98] : memref<1x49x64xf32, #tpu.memory_space<vmem>>, vector<1x7x64xf32>
    %84 = vector.shape_cast %83 : vector<1x7x64xf32> to vector<7x64xf32>
    %85 = vector.shape_cast %82 : vector<7x64xf32> to vector<1x7x64xf32>
    tpu.vector_store %arg8[%c0_97, %c35, %c0_98], %85 {strides = array<i32>} : memref<1x49x64xf32, #tpu.memory_space<vmem>>, vector<1x7x64xf32>,
    %c60 = arith.constant 60 : index
    %c0_99 = arith.constant 0 : index
    %86 = vector.load %arg14[%c60, %c0_99] : memref<67x64xf32, #tpu.memory_space<vmem>>, vector<7x64xf32>
    %c0_100 = arith.constant 0 : index
    %c42 = arith.constant 42 : index
    %c0_101 = arith.constant 0 : index
    %87 = vector.load %arg8[%c0_100, %c42, %c0_101] : memref<1x49x64xf32, #tpu.memory_space<vmem>>, vector<1x7x64xf32>
    %88 = vector.shape_cast %87 : vector<1x7x64xf32> to vector<7x64xf32>
    %89 = vector.shape_cast %86 : vector<7x64xf32> to vector<1x7x64xf32>
    tpu.vector_store %arg8[%c0_100, %c42, %c0_101], %89 {strides = array<i32>} : memref<1x49x64xf32, #tpu.memory_space<vmem>>, vector<1x7x64xf32>,
    return
  }
  func.func @transform_0(%arg0: i32) -> (i32, i32, i32) {
    %c0_i32 = arith.constant 0 : i32
    %c0_i32_0 = arith.constant 0 : i32
    %c0_i32_1 = arith.constant 0 : i32
    return %arg0, %c0_i32, %c0_i32_0 : i32, i32, i32
  }
  func.func @transform_1(%arg0: i32) -> (i32, i32) {
    %c0_i32 = arith.constant 0 : i32
    %c0_i32_0 = arith.constant 0 : i32
    %c0_i32_1 = arith.constant 0 : i32
    return %c0_i32, %c0_i32_0 : i32, i32
  }
  func.func @transform_2(%arg0: i32) -> (i32, i32) {
    %c0_i32 = arith.constant 0 : i32
    %c0_i32_0 = arith.constant 0 : i32
    %c0_i32_1 = arith.constant 0 : i32
    return %c0_i32, %c0_i32_0 : i32, i32
  }
  func.func @transform_3(%arg0: i32) -> (i32, i32) {
    %c0_i32 = arith.constant 0 : i32
    %c0_i32_0 = arith.constant 0 : i32
    %c0_i32_1 = arith.constant 0 : i32
    return %c0_i32, %c0_i32_0 : i32, i32
  }
  func.func @transform_4(%arg0: i32) -> (i32, i32) {
    %c0_i32 = arith.constant 0 : i32
    %c0_i32_0 = arith.constant 0 : i32
    %c0_i32_1 = arith.constant 0 : i32
    return %c0_i32, %c0_i32_0 : i32, i32
  }
  func.func @transform_5(%arg0: i32) -> (i32, i32) {
    %c0_i32 = arith.constant 0 : i32
    %c0_i32_0 = arith.constant 0 : i32
    %c0_i32_1 = arith.constant 0 : i32
    return %c0_i32, %c0_i32_0 : i32, i32
  }
  func.func @transform_6(%arg0: i32) -> (i32, i32) {
    %c0_i32 = arith.constant 0 : i32
    %c0_i32_0 = arith.constant 0 : i32
    %c0_i32_1 = arith.constant 0 : i32
    return %c0_i32, %c0_i32_0 : i32, i32
  }
  func.func @transform_7(%arg0: i32) -> (i32, i32, i32) {
    %c0_i32 = arith.constant 0 : i32
    %c0_i32_0 = arith.constant 0 : i32
    %c0_i32_1 = arith.constant 0 : i32
    return %arg0, %c0_i32, %c0_i32_0 : i32, i32, i32
  }
}

module attributes {stable_mosaic.version = 11 : i64} {
  func.func @_fc_kernel(%arg0: i32, %arg1: memref<2x3136xf32, #tpu.memory_space<vmem>>, %arg2: memref<3136x128xf32, #tpu.memory_space<vmem>>, %arg3: memref<1x128xf32, #tpu.memory_space<vmem>>, %arg4: memref<128x128xf32, #tpu.memory_space<vmem>>, %arg5: memref<1x128xf32, #tpu.memory_space<vmem>>, %arg6: memref<2x128xf32, #tpu.memory_space<vmem>>) attributes {dimension_semantics = [#tpu.dimension_semantics<arbitrary>], iteration_bounds = array<i64: 4>, scalar_prefetch = 0 : i64, scratch_operands = 0 : i64, tpu.core_type = #tpu.core_type<tc>, window_params = [{pipeline_mode = #tpu.pipeline_mode<synchronous>, transform_indices = @transform_0, window_bounds = array<i64: 2, 3136>}, {transform_indices = @transform_1, window_bounds = array<i64: 3136, 128>}, {transform_indices = @transform_2, window_bounds = array<i64: 1, 128>}, {transform_indices = @transform_3, window_bounds = array<i64: 128, 128>}, {pipeline_mode = #tpu.pipeline_mode<synchronous>, transform_indices = @transform_4, window_bounds = array<i64: 1, 128>}, {pipeline_mode = #tpu.pipeline_mode<synchronous>, transform_indices = @transform_5, window_bounds = array<i64: 2, 128>}]} {
    %c0 = arith.constant 0 : index
    %c0_0 = arith.constant 0 : index
    %0 = vector.load %arg1[%c0, %c0_0] : memref<2x3136xf32, #tpu.memory_space<vmem>>, vector<2x3136xf32>
    %c0_1 = arith.constant 0 : index
    %c0_2 = arith.constant 0 : index
    %1 = vector.load %arg2[%c0_1, %c0_2] : memref<3136x128xf32, #tpu.memory_space<vmem>>, vector<3136x128xf32>
    %cst = arith.constant dense<0.000000e+00> : vector<2x128xf32>
    %2 = tpu.matmul %0, %1, %cst {dimension_numbers = #tpu.dot_dimension_numbers<[1], [0], [0], [1], [0, 0, 1, 1], [], []>} : vector<2x3136xf32>, vector<3136x128xf32>, vector<2x128xf32> -> vector<2x128xf32>
    %c0_3 = arith.constant 0 : index
    %c0_4 = arith.constant 0 : index
    %3 = vector.load %arg3[%c0_3, %c0_4] : memref<1x128xf32, #tpu.memory_space<vmem>>, vector<1x128xf32>
    %4 = vector.broadcast %3 : vector<1x128xf32> to vector<2x128xf32>
    %5 = arith.addf %2, %4 : vector<2x128xf32>
    %cst_5 = arith.constant 0.000000e+00 : f32
    %6 = vector.broadcast %cst_5 : f32 to vector<2x128xf32>
    %7 = arith.maximumf %5, %6 : vector<2x128xf32>
    %c0_6 = arith.constant 0 : index
    %c0_7 = arith.constant 0 : index
    %8 = vector.load %arg4[%c0_6, %c0_7] : memref<128x128xf32, #tpu.memory_space<vmem>>, vector<128x128xf32>
    %cst_8 = arith.constant dense<0.000000e+00> : vector<2x128xf32>
    %9 = tpu.matmul %7, %8, %cst_8 {dimension_numbers = #tpu.dot_dimension_numbers<[1], [0], [0], [1], [0, 0, 1, 1], [], []>} : vector<2x128xf32>, vector<128x128xf32>, vector<2x128xf32> -> vector<2x128xf32>
    %c0_i32 = arith.constant 0 : i32
    %10 = arith.cmpi eq, %arg0, %c0_i32 : i32
    %11 = arith.extui %10 : i1 to i32
    %c0_i32_9 = arith.constant 0 : i32
    %12 = arith.cmpi ne, %11, %c0_i32_9 : i32
    scf.if %12 {
      %c0_12 = arith.constant 0 : index
      %c0_13 = arith.constant 0 : index
      %16 = vector.load %arg5[%c0_12, %c0_13] : memref<1x128xf32, #tpu.memory_space<vmem>>, vector<1x128xf32>
      %17 = vector.broadcast %16 : vector<1x128xf32> to vector<2x128xf32>
      %18 = arith.addf %9, %17 : vector<2x128xf32>
      %c0_14 = arith.constant 0 : index
      %c0_15 = arith.constant 0 : index
      %19 = vector.load %arg6[%c0_14, %c0_15] : memref<2x128xf32, #tpu.memory_space<vmem>>, vector<2x128xf32>
      tpu.vector_store %arg6[%c0_14, %c0_15], %18 {strides = array<i32>} : memref<2x128xf32, #tpu.memory_space<vmem>>, vector<2x128xf32>,
    } else {
    }
    %c0_i32_10 = arith.constant 0 : i32
    %13 = arith.cmpi sgt, %arg0, %c0_i32_10 : i32
    %14 = arith.extui %13 : i1 to i32
    %c0_i32_11 = arith.constant 0 : i32
    %15 = arith.cmpi ne, %14, %c0_i32_11 : i32
    scf.if %15 {
      %c0_12 = arith.constant 0 : index
      %c0_13 = arith.constant 0 : index
      %16 = vector.load %arg6[%c0_12, %c0_13] : memref<2x128xf32, #tpu.memory_space<vmem>>, vector<2x128xf32>
      %17 = arith.addf %16, %9 : vector<2x128xf32>
      %c0_14 = arith.constant 0 : index
      %c0_15 = arith.constant 0 : index
      %18 = vector.load %arg6[%c0_14, %c0_15] : memref<2x128xf32, #tpu.memory_space<vmem>>, vector<2x128xf32>
      tpu.vector_store %arg6[%c0_14, %c0_15], %17 {strides = array<i32>} : memref<2x128xf32, #tpu.memory_space<vmem>>, vector<2x128xf32>,
    } else {
    }
    return
  }
  func.func @transform_0(%arg0: i32) -> (i32, i32) {
    %c0_i32 = arith.constant 0 : i32
    %c0_i32_0 = arith.constant 0 : i32
    %c0_i32_1 = arith.constant 0 : i32
    return %c0_i32, %c0_i32_0 : i32, i32
  }
  func.func @transform_1(%arg0: i32) -> (i32, i32) {
    %c0_i32 = arith.constant 0 : i32
    %c0_i32_0 = arith.constant 0 : i32
    return %c0_i32, %arg0 : i32, i32
  }
  func.func @transform_2(%arg0: i32) -> (i32, i32) {
    %c0_i32 = arith.constant 0 : i32
    %c0_i32_0 = arith.constant 0 : i32
    return %c0_i32, %arg0 : i32, i32
  }
  func.func @transform_3(%arg0: i32) -> (i32, i32) {
    %c0_i32 = arith.constant 0 : i32
    %c0_i32_0 = arith.constant 0 : i32
    return %arg0, %c0_i32 : i32, i32
  }
  func.func @transform_4(%arg0: i32) -> (i32, i32) {
    %c0_i32 = arith.constant 0 : i32
    %c0_i32_0 = arith.constant 0 : i32
    %c0_i32_1 = arith.constant 0 : i32
    return %c0_i32, %c0_i32_0 : i32, i32
  }
  func.func @transform_5(%arg0: i32) -> (i32, i32) {
    %c0_i32 = arith.constant 0 : i32
    %c0_i32_0 = arith.constant 0 : i32
    %c0_i32_1 = arith.constant 0 : i32
    return %c0_i32, %c0_i32_0 : i32, i32
  }
}

</mosaic_0001>

<bundles_post_ra>
// kernel: visual_q_forward.3
= control target key start
LH: loop header
LB: loop body
LE: loop exit
PB: predicated region body
PF: predicated region fallthrough
CT: control target
= control target key end

     0   :  { %10 = vsyncpa [#allocation4], 0  ;;  %s4553_s18 = smov 0   ;;  %s4555_s19 = smov 0   ;;  %s5946_s0 = inlined_call_operand.vmem [shape: f32[2,3136], index: 0, kind: input, shape index: {}]   ;;  %s5947_s1 = inlined_call_operand.vmem [shape: f32[3136,512], index: 1, kind: input, shape index: {}]   ;;  %s5948_s2 = inlined_call_operand.vmem [shape: f32[1,512], index: 2, kind: input, shape index: {}]   ;;  %s5949_s3 = inlined_call_operand.vmem [shape: f32[512,128], index: 3, kind: input, shape index: {}]   ;;  %s5950_s4 = inlined_call_operand.vmem [shape: f32[1,128], index: 4, kind: input, shape index: {}]   ;;  %s5951_s5 = inlined_call_operand.hbm [shape: f32[2,128], index: 5, kind: output, shape index: {}]  }
   0x1   :  { %s4557_s20 = smov 0  }
   0x2 LB: > { %s4569_s21 = sadd.s32 4294967295, %s4516_s20   ;;  %s4572_s22 = sadd.s32 1, %s4516_s20   ;;  %s4516_s20 = sphi %s4557_s20, %s5954_s20   ;;  %s4512_s19 = sphi %s4555_s19, %s5953_s19   ;;  %s4508_s18 = sphi %s4553_s18, %s5952_s18  }
   0x3   : > { %s41_s23 = ssub.s32 %s4516_s20, %s4572_s22  ;;  %s44_s24 = sadd.s32 1, %s4512_s19 }
   0x4   : > { %p42_p0 = scmp.eq.s32.totalorder %s41_s23, 0  ;;  %p51_p1 = scmp.ne.s32.totalorder %s4512_s19, %s4508_s18 }
   0x5   : > { %p52_p2 = scmp.eq.s32.totalorder %s4516_s20, 0  ;;  %p3486_p4 = scmp.ge.s32.totalorder %s4516_s20, 4 }
   0x6   : > { %s4581_s25 = scalar_select %p42_p0, %s4512_s19, %s44_s24  }
   0x7   : > { %p53_p3 = por %p52_p2, %p51_p1  ;;  %177 = sbr.rel (%p3486_p4) target bundleno = 410 (0x19a), region = 24 }
   0xe   : > { %180 = sbr.rel (!%p53_p3) target bundleno = 410 (0x19a), region = 28  ;;  %s182_s26 = sand.u32 (%p53_p3), 1, %s4512_s19  }
   0xf   : > { %s3487_s27 = sshll.u32 (%p53_p3), %s4516_s20, 3  ;;  %s4421_s28 = smul.u32 (%p53_p3), 3136, %s182_s26 }
  0x10   : > { %s4589_s6 = scalar_lea.vmem (%p53_p3), %s5947_s1, %s3487_s27 }
  0x11   : > { %v996_v0 = vld [vmem:[%s4589_s6] sm:$0xff] (%p53_p3)  ;;  %s4597_s7 = scalar_lea.vmem (%p53_p3), [#allocation2], %s4421_s28 }
  0x12   : > { %v998_v1 = vld [vmem:[%s4589_s6 + $0x20] sm:$0xff] (%p53_p3)  ;;  %997 = vst [vmem:[%s4597_s7] sm:$0xff] (%p53_p3), %v996_v0 }
  0x13   : > { %v1000_v2 = vld [vmem:[%s4589_s6 + $0x40] sm:$0xff] (%p53_p3)  ;;  %999 = vst [vmem:[%s4597_s7 + $0x8] sm:$0xff] (%p53_p3), %v998_v1 }
  0x14   : > { %v1002_v3 = vld [vmem:[%s4589_s6 + $0x60] sm:$0xff] (%p53_p3)  ;;  %1001 = vst [vmem:[%s4597_s7 + $0x10] sm:$0xff] (%p53_p3), %v1000_v2 }
  0x15   : > { %v1004_v4 = vld [vmem:[%s4589_s6 + $0x80] sm:$0xff]  ;;  %1003 = vst [vmem:[%s4597_s7 + $0x18] sm:$0xff] %v1002_v3 }
  0x16   : > { %v1006_v5 = vld [vmem:[%s4589_s6 + $0xa0] sm:$0xff]  ;;  %1005 = vst [vmem:[%s4597_s7 + $0x20] sm:$0xff] %v1004_v4 }
  0x17   : > { %1007 = vst [vmem:[%s4597_s7 + $0x28] sm:$0xff] %v1006_v5  ;;  %v1008_v6 = vld [vmem:[%s4589_s6 + $0xc0] sm:$0xff] }
  0x18   : > { %v1010_v7 = vld [vmem:[%s4589_s6 + $0xe0] sm:$0xff]  ;;  %1009 = vst [vmem:[%s4597_s7 + $0x30] sm:$0xff] %v1008_v6 }
  0x19   : > { %v1012_v8 = vld [vmem:[%s4589_s6 + $0x100] sm:$0xff]  ;;  %1011 = vst [vmem:[%s4597_s7 + $0x38] sm:$0xff] %v1010_v7 }
  0x1a   : > { %1013 = vst [vmem:[%s4597_s7 + $0x40] sm:$0xff] %v1012_v8  ;;  %v1014_v9 = vld [vmem:[%s4589_s6 + $0x120] sm:$0xff] }
  0x1b   : > { %v1016_v10 = vld [vmem:[%s4589_s6 + $0x140] sm:$0xff]  ;;  %1015 = vst [vmem:[%s4597_s7 + $0x48] sm:$0xff] %v1014_v9 }
  0x1c   : > { %v1018_v11 = vld [vmem:[%s4589_s6 + $0x160] sm:$0xff]  ;;  %1017 = vst [vmem:[%s4597_s7 + $0x50] sm:$0xff] %v1016_v10 }
  0x1d   : > { %1019 = vst [vmem:[%s4597_s7 + $0x58] sm:$0xff] %v1018_v11  ;;  %v1020_v12 = vld [vmem:[%s4589_s6 + $0x180] sm:$0xff] }
  0x1e   : > { %v1022_v13 = vld [vmem:[%s4589_s6 + $0x1a0] sm:$0xff]  ;;  %1021 = vst [vmem:[%s4597_s7 + $0x60] sm:$0xff] %v1020_v12 }
  0x1f   : > { %v1024_v14 = vld [vmem:[%s4589_s6 + $0x1c0] sm:$0xff]  ;;  %1023 = vst [vmem:[%s4597_s7 + $0x68] sm:$0xff] %v1022_v13 }
  0x20   : > { %1025 = vst [vmem:[%s4597_s7 + $0x70] sm:$0xff] %v1024_v14  ;;  %v1026_v15 = vld [vmem:[%s4589_s6 + $0x1e0] sm:$0xff] }
  0x21   : > { %v1028_v16 = vld [vmem:[%s4589_s6 + $0x200] sm:$0xff]  ;;  %1027 = vst [vmem:[%s4597_s7 + $0x78] sm:$0xff] %v1026_v15 }
  0x22   : > { %v1030_v17 = vld [vmem:[%s4589_s6 + $0x220] sm:$0xff]  ;;  %1029 = vst [vmem:[%s4597_s7 + $0x80] sm:$0xff] %v1028_v16 }
  0x23   : > { %1031 = vst [vmem:[%s4597_s7 + $0x88] sm:$0xff] %v1030_v17  ;;  %v1032_v18 = vld [vmem:[%s4589_s6 + $0x240] sm:$0xff] }
  0x24   : > { %v1034_v19 = vld [vmem:[%s4589_s6 + $0x260] sm:$0xff]  ;;  %1033 = vst [vmem:[%s4597_s7 + $0x90] sm:$0xff] %v1032_v18 }
  0x25   : > { %v1036_v20 = vld [vmem:[%s4589_s6 + $0x280] sm:$0xff]  ;;  %1035 = vst [vmem:[%s4597_s7 + $0x98] sm:$0xff] %v1034_v19 }
  0x26   : > { %1037 = vst [vmem:[%s4597_s7 + $0xa0] sm:$0xff] %v1036_v20  ;;  %v1038_v21 = vld [vmem:[%s4589_s6 + $0x2a0] sm:$0xff] }
  0x27   : > { %v1040_v22 = vld [vmem:[%s4589_s6 + $0x2c0] sm:$0xff]  ;;  %1039 = vst [vmem:[%s4597_s7 + $0xa8] sm:$0xff] %v1038_v21 }
  0x28   : > { %v1042_v23 = vld [vmem:[%s4589_s6 + $0x2e0] sm:$0xff]  ;;  %1041 = vst [vmem:[%s4597_s7 + $0xb0] sm:$0xff] %v1040_v22 }
  0x29   : > { %1043 = vst [vmem:[%s4597_s7 + $0xb8] sm:$0xff] %v1042_v23  ;;  %v1044_v24 = vld [vmem:[%s4589_s6 + $0x300] sm:$0xff] }
  0x2a   : > { %v1046_v25 = vld [vmem:[%s4589_s6 + $0x320] sm:$0xff]  ;;  %1045 = vst [vmem:[%s4597_s7 + $0xc0] sm:$0xff] %v1044_v24 }
  0x2b   : > { %v1048_v26 = vld [vmem:[%s4589_s6 + $0x340] sm:$0xff]  ;;  %1047 = vst [vmem:[%s4597_s7 + $0xc8] sm:$0xff] %v1046_v25 }
  0x2c   : > { %1049 = vst [vmem:[%s4597_s7 + $0xd0] sm:$0xff] %v1048_v26  ;;  %v1050_v27 = vld [vmem:[%s4589_s6 + $0x360] sm:$0xff] }
  0x2d   : > { %v1052_v28 = vld [vmem:[%s4589_s6 + $0x380] sm:$0xff]  ;;  %1051 = vst [vmem:[%s4597_s7 + $0xd8] sm:$0xff] %v1050_v27 }
  0x2e   : > { %v1054_v29 = vld [vmem:[%s4589_s6 + $0x3a0] sm:$0xff]  ;;  %1053 = vst [vmem:[%s4597_s7 + $0xe0] sm:$0xff] %v1052_v28 }
  0x2f   : > { %1055 = vst [vmem:[%s4597_s7 + $0xe8] sm:$0xff] %v1054_v29  ;;  %v1056_v30 = vld [vmem:[%s4589_s6 + $0x3c0] sm:$0xff] }
  0x30   : > { %v1058_v31 = vld [vmem:[%s4589_s6 + $0x3e0] sm:$0xff]  ;;  %1057 = vst [vmem:[%s4597_s7 + $0xf0] sm:$0xff] %v1056_v30 }
  0x31   : > { %v1060_v32 = vld [vmem:[%s4589_s6 + $0x400] sm:$0xff]  ;;  %1059 = vst [vmem:[%s4597_s7 + $0xf8] sm:$0xff] %v1058_v31 }
  0x32   : > { %1061 = vst [vmem:[%s4597_s7 + $0x100] sm:$0xff] %v1060_v32  ;;  %v1062_v33 = vld [vmem:[%s4589_s6 + $0x420] sm:$0xff] }
  0x33   : > { %v1064_v34 = vld [vmem:[%s4589_s6 + $0x440] sm:$0xff]  ;;  %1063 = vst [vmem:[%s4597_s7 + $0x108] sm:$0xff] %v1062_v33 }
  0x34   : > { %v1066_v35 = vld [vmem:[%s4589_s6 + $0x460] sm:$0xff]  ;;  %1065 = vst [vmem:[%s4597_s7 + $0x110] sm:$0xff] %v1064_v34 }
  0x35   : > { %1067 = vst [vmem:[%s4597_s7 + $0x118] sm:$0xff] %v1066_v35  ;;  %v1068_v36 = vld [vmem:[%s4589_s6 + $0x480] sm:$0xff] }
  0x36   : > { %v1070_v37 = vld [vmem:[%s4589_s6 + $0x4a0] sm:$0xff]  ;;  %1069 = vst [vmem:[%s4597_s7 + $0x120] sm:$0xff] %v1068_v36 }
  0x37   : > { %v1072_v38 = vld [vmem:[%s4589_s6 + $0x4c0] sm:$0xff]  ;;  %1071 = vst [vmem:[%s4597_s7 + $0x128] sm:$0xff] %v1070_v37 }
  0x38   : > { %1073 = vst [vmem:[%s4597_s7 + $0x130] sm:$0xff] %v1072_v38  ;;  %v1074_v39 = vld [vmem:[%s4589_s6 + $0x4e0] sm:$0xff] }
  0x39   : > { %v1076_v40 = vld [vmem:[%s4589_s6 + $0x500] sm:$0xff]  ;;  %1075 = vst [vmem:[%s4597_s7 + $0x138] sm:$0xff] %v1074_v39 }
  0x3a   : > { %v1078_v41 = vld [vmem:[%s4589_s6 + $0x520] sm:$0xff]  ;;  %1077 = vst [vmem:[%s4597_s7 + $0x140] sm:$0xff] %v1076_v40 }
  0x3b   : > { %1079 = vst [vmem:[%s4597_s7 + $0x148] sm:$0xff] %v1078_v41  ;;  %v1080_v42 = vld [vmem:[%s4589_s6 + $0x540] sm:$0xff] }
  0x3c   : > { %v1082_v43 = vld [vmem:[%s4589_s6 + $0x560] sm:$0xff]  ;;  %1081 = vst [vmem:[%s4597_s7 + $0x150] sm:$0xff] %v1080_v42 }
  0x3d   : > { %v1084_v44 = vld [vmem:[%s4589_s6 + $0x580] sm:$0xff]  ;;  %1083 = vst [vmem:[%s4597_s7 + $0x158] sm:$0xff] %v1082_v43 }
  0x3e   : > { %1085 = vst [vmem:[%s4597_s7 + $0x160] sm:$0xff] %v1084_v44  ;;  %v1086_v45 = vld [vmem:[%s4589_s6 + $0x5a0] sm:$0xff] }
  0x3f   : > { %v1088_v46 = vld [vmem:[%s4589_s6 + $0x5c0] sm:$0xff]  ;;  %1087 = vst [vmem:[%s4597_s7 + $0x168] sm:$0xff] %v1086_v45 }
  0x40   : > { %v1090_v47 = vld [vmem:[%s4589_s6 + $0x5e0] sm:$0xff]  ;;  %1089 = vst [vmem:[%s4597_s7 + $0x170] sm:$0xff] %v1088_v46 }
  0x41   : > { %1091 = vst [vmem:[%s4597_s7 + $0x178] sm:$0xff] %v1090_v47  ;;  %v1092_v48 = vld [vmem:[%s4589_s6 + $0x600] sm:$0xff] }
  0x42   : > { %v1094_v49 = vld [vmem:[%s4589_s6 + $0x620] sm:$0xff]  ;;  %1093 = vst [vmem:[%s4597_s7 + $0x180] sm:$0xff] %v1092_v48 }
  0x43   : > { %v1096_v50 = vld [vmem:[%s4589_s6 + $0x640] sm:$0xff]  ;;  %1095 = vst [vmem:[%s4597_s7 + $0x188] sm:$0xff] %v1094_v49 }
  0x44   : > { %1097 = vst [vmem:[%s4597_s7 + $0x190] sm:$0xff] %v1096_v50  ;;  %v1098_v51 = vld [vmem:[%s4589_s6 + $0x660] sm:$0xff] }
  0x45   : > { %v1100_v52 = vld [vmem:[%s4589_s6 + $0x680] sm:$0xff]  ;;  %1099 = vst [vmem:[%s4597_s7 + $0x198] sm:$0xff] %v1098_v51 }
  0x46   : > { %v1102_v53 = vld [vmem:[%s4589_s6 + $0x6a0] sm:$0xff]  ;;  %1101 = vst [vmem:[%s4597_s7 + $0x1a0] sm:$0xff] %v1100_v52 }
  0x47   : > { %1103 = vst [vmem:[%s4597_s7 + $0x1a8] sm:$0xff] %v1102_v53  ;;  %v1104_v54 = vld [vmem:[%s4589_s6 + $0x6c0] sm:$0xff] }
  0x48   : > { %v1106_v55 = vld [vmem:[%s4589_s6 + $0x6e0] sm:$0xff]  ;;  %1105 = vst [vmem:[%s4597_s7 + $0x1b0] sm:$0xff] %v1104_v54 }
  0x49   : > { %v1108_v56 = vld [vmem:[%s4589_s6 + $0x700] sm:$0xff]  ;;  %1107 = vst [vmem:[%s4597_s7 + $0x1b8] sm:$0xff] %v1106_v55 }
  0x4a   : > { %1109 = vst [vmem:[%s4597_s7 + $0x1c0] sm:$0xff] %v1108_v56  ;;  %v1110_v57 = vld [vmem:[%s4589_s6 + $0x720] sm:$0xff] }
  0x4b   : > { %v1112_v58 = vld [vmem:[%s4589_s6 + $0x740] sm:$0xff]  ;;  %1111 = vst [vmem:[%s4597_s7 + $0x1c8] sm:$0xff] %v1110_v57 }
  0x4c   : > { %v1114_v59 = vld [vmem:[%s4589_s6 + $0x760] sm:$0xff]  ;;  %1113 = vst [vmem:[%s4597_s7 + $0x1d0] sm:$0xff] %v1112_v58 }
  0x4d   : > { %1115 = vst [vmem:[%s4597_s7 + $0x1d8] sm:$0xff] %v1114_v59  ;;  %v1116_v60 = vld [vmem:[%s4589_s6 + $0x780] sm:$0xff] }
  0x4e   : > { %v1118_v61 = vld [vmem:[%s4589_s6 + $0x7a0] sm:$0xff]  ;;  %1117 = vst [vmem:[%s4597_s7 + $0x1e0] sm:$0xff] %v1116_v60 }
  0x4f   : > { %v1120_v62 = vld [vmem:[%s4589_s6 + $0x7c0] sm:$0xff]  ;;  %1119 = vst [vmem:[%s4597_s7 + $0x1e8] sm:$0xff] %v1118_v61 }
  0x50   : > { %1121 = vst [vmem:[%s4597_s7 + $0x1f0] sm:$0xff] %v1120_v62  ;;  %v1122_v63 = vld [vmem:[%s4589_s6 + $0x7e0] sm:$0xff] }
  0x51   : > { %v1124_v0 = vld [vmem:[%s4589_s6 + $0x800] sm:$0xff]  ;;  %1123 = vst [vmem:[%s4597_s7 + $0x1f8] sm:$0xff] %v1122_v63 }
  0x52   : > { %v1126_v1 = vld [vmem:[%s4589_s6 + $0x820] sm:$0xff]  ;;  %1125 = vst [vmem:[%s4597_s7 + $0x200] sm:$0xff] %v1124_v0 }
  0x53   : > { %1127 = vst [vmem:[%s4597_s7 + $0x208] sm:$0xff] %v1126_v1  ;;  %v1128_v2 = vld [vmem:[%s4589_s6 + $0x840] sm:$0xff] }
  0x54   : > { %v1130_v3 = vld [vmem:[%s4589_s6 + $0x860] sm:$0xff]  ;;  %1129 = vst [vmem:[%s4597_s7 + $0x210] sm:$0xff] %v1128_v2 }
  0x55   : > { %v1132_v4 = vld [vmem:[%s4589_s6 + $0x880] sm:$0xff]  ;;  %1131 = vst [vmem:[%s4597_s7 + $0x218] sm:$0xff] %v1130_v3 }
  0x56   : > { %1133 = vst [vmem:[%s4597_s7 + $0x220] sm:$0xff] %v1132_v4  ;;  %v1134_v5 = vld [vmem:[%s4589_s6 + $0x8a0] sm:$0xff] }
  0x57   : > { %v1136_v6 = vld [vmem:[%s4589_s6 + $0x8c0] sm:$0xff]  ;;  %1135 = vst [vmem:[%s4597_s7 + $0x228] sm:$0xff] %v1134_v5 }
  0x58   : > { %v1138_v7 = vld [vmem:[%s4589_s6 + $0x8e0] sm:$0xff]  ;;  %1137 = vst [vmem:[%s4597_s7 + $0x230] sm:$0xff] %v1136_v6 }
  0x59   : > { %1139 = vst [vmem:[%s4597_s7 + $0x238] sm:$0xff] %v1138_v7  ;;  %v1140_v8 = vld [vmem:[%s4589_s6 + $0x900] sm:$0xff] }
  0x5a   : > { %v1142_v9 = vld [vmem:[%s4589_s6 + $0x920] sm:$0xff]  ;;  %1141 = vst [vmem:[%s4597_s7 + $0x240] sm:$0xff] %v1140_v8 }
  0x5b   : > { %v1144_v10 = vld [vmem:[%s4589_s6 + $0x940] sm:$0xff]  ;;  %1143 = vst [vmem:[%s4597_s7 + $0x248] sm:$0xff] %v1142_v9 }
  0x5c   : > { %1145 = vst [vmem:[%s4597_s7 + $0x250] sm:$0xff] %v1144_v10  ;;  %v1146_v11 = vld [vmem:[%s4589_s6 + $0x960] sm:$0xff] }
  0x5d   : > { %v1148_v12 = vld [vmem:[%s4589_s6 + $0x980] sm:$0xff]  ;;  %1147 = vst [vmem:[%s4597_s7 + $0x258] sm:$0xff] %v1146_v11 }
  0x5e   : > { %v1150_v13 = vld [vmem:[%s4589_s6 + $0x9a0] sm:$0xff]  ;;  %1149 = vst [vmem:[%s4597_s7 + $0x260] sm:$0xff] %v1148_v12 }
  0x5f   : > { %1151 = vst [vmem:[%s4597_s7 + $0x268] sm:$0xff] %v1150_v13  ;;  %v1152_v14 = vld [vmem:[%s4589_s6 + $0x9c0] sm:$0xff] }
  0x60   : > { %v1154_v15 = vld [vmem:[%s4589_s6 + $0x9e0] sm:$0xff]  ;;  %1153 = vst [vmem:[%s4597_s7 + $0x270] sm:$0xff] %v1152_v14 }
  0x61   : > { %v1156_v16 = vld [vmem:[%s4589_s6 + $0xa00] sm:$0xff]  ;;  %1155 = vst [vmem:[%s4597_s7 + $0x278] sm:$0xff] %v1154_v15 }
  0x62   : > { %1157 = vst [vmem:[%s4597_s7 + $0x280] sm:$0xff] %v1156_v16  ;;  %v1158_v17 = vld [vmem:[%s4589_s6 + $0xa20] sm:$0xff] }
  0x63   : > { %v1160_v18 = vld [vmem:[%s4589_s6 + $0xa40] sm:$0xff]  ;;  %1159 = vst [vmem:[%s4597_s7 + $0x288] sm:$0xff] %v1158_v17 }
  0x64   : > { %v1162_v19 = vld [vmem:[%s4589_s6 + $0xa60] sm:$0xff]  ;;  %1161 = vst [vmem:[%s4597_s7 + $0x290] sm:$0xff] %v1160_v18 }
  0x65   : > { %1163 = vst [vmem:[%s4597_s7 + $0x298] sm:$0xff] %v1162_v19  ;;  %v1164_v20 = vld [vmem:[%s4589_s6 + $0xa80] sm:$0xff] }
  0x66   : > { %v1166_v21 = vld [vmem:[%s4589_s6 + $0xaa0] sm:$0xff]  ;;  %1165 = vst [vmem:[%s4597_s7 + $0x2a0] sm:$0xff] %v1164_v20 }
  0x67   : > { %v1168_v22 = vld [vmem:[%s4589_s6 + $0xac0] sm:$0xff]  ;;  %1167 = vst [vmem:[%s4597_s7 + $0x2a8] sm:$0xff] %v1166_v21 }
  0x68   : > { %1169 = vst [vmem:[%s4597_s7 + $0x2b0] sm:$0xff] %v1168_v22  ;;  %v1170_v23 = vld [vmem:[%s4589_s6 + $0xae0] sm:$0xff] }
  0x69   : > { %v1172_v24 = vld [vmem:[%s4589_s6 + $0xb00] sm:$0xff]  ;;  %1171 = vst [vmem:[%s4597_s7 + $0x2b8] sm:$0xff] %v1170_v23 }
  0x6a   : > { %v1174_v25 = vld [vmem:[%s4589_s6 + $0xb20] sm:$0xff]  ;;  %1173 = vst [vmem:[%s4597_s7 + $0x2c0] sm:$0xff] %v1172_v24 }
  0x6b   : > { %1175 = vst [vmem:[%s4597_s7 + $0x2c8] sm:$0xff] %v1174_v25  ;;  %v1176_v26 = vld [vmem:[%s4589_s6 + $0xb40] sm:$0xff] }
  0x6c   : > { %v1178_v27 = vld [vmem:[%s4589_s6 + $0xb60] sm:$0xff]  ;;  %1177 = vst [vmem:[%s4597_s7 + $0x2d0] sm:$0xff] %v1176_v26 }
  0x6d   : > { %v1180_v28 = vld [vmem:[%s4589_s6 + $0xb80] sm:$0xff]  ;;  %1179 = vst [vmem:[%s4597_s7 + $0x2d8] sm:$0xff] %v1178_v27 }
  0x6e   : > { %1181 = vst [vmem:[%s4597_s7 + $0x2e0] sm:$0xff] %v1180_v28  ;;  %v1182_v29 = vld [vmem:[%s4589_s6 + $0xba0] sm:$0xff] }
  0x6f   : > { %v1184_v30 = vld [vmem:[%s4589_s6 + $0xbc0] sm:$0xff]  ;;  %1183 = vst [vmem:[%s4597_s7 + $0x2e8] sm:$0xff] %v1182_v29 }
  0x70   : > { %v1186_v31 = vld [vmem:[%s4589_s6 + $0xbe0] sm:$0xff]  ;;  %1185 = vst [vmem:[%s4597_s7 + $0x2f0] sm:$0xff] %v1184_v30 }
  0x71   : > { %1187 = vst [vmem:[%s4597_s7 + $0x2f8] sm:$0xff] %v1186_v31  ;;  %v1188_v32 = vld [vmem:[%s4589_s6 + $0xc00] sm:$0xff] }
  0x72   : > { %v1190_v33 = vld [vmem:[%s4589_s6 + $0xc20] sm:$0xff]  ;;  %1189 = vst [vmem:[%s4597_s7 + $0x300] sm:$0xff] %v1188_v32 }
  0x73   : > { %v1192_v34 = vld [vmem:[%s4589_s6 + $0xc40] sm:$0xff]  ;;  %1191 = vst [vmem:[%s4597_s7 + $0x308] sm:$0xff] %v1190_v33 }
  0x74   : > { %1193 = vst [vmem:[%s4597_s7 + $0x310] sm:$0xff] %v1192_v34  ;;  %v1194_v35 = vld [vmem:[%s4589_s6 + $0xc60] sm:$0xff] }
  0x75   : > { %v1196_v36 = vld [vmem:[%s4589_s6 + $0xc80] sm:$0xff]  ;;  %1195 = vst [vmem:[%s4597_s7 + $0x318] sm:$0xff] %v1194_v35 }
  0x76   : > { %v1198_v37 = vld [vmem:[%s4589_s6 + $0xca0] sm:$0xff]  ;;  %1197 = vst [vmem:[%s4597_s7 + $0x320] sm:$0xff] %v1196_v36 }
  0x77   : > { %1199 = vst [vmem:[%s4597_s7 + $0x328] sm:$0xff] %v1198_v37  ;;  %v1200_v38 = vld [vmem:[%s4589_s6 + $0xcc0] sm:$0xff] }
  0x78   : > { %v1202_v39 = vld [vmem:[%s4589_s6 + $0xce0] sm:$0xff]  ;;  %1201 = vst [vmem:[%s4597_s7 + $0x330] sm:$0xff] %v1200_v38 }
  0x79   : > { %v1204_v40 = vld [vmem:[%s4589_s6 + $0xd00] sm:$0xff]  ;;  %1203 = vst [vmem:[%s4597_s7 + $0x338] sm:$0xff] %v1202_v39 }
  0x7a   : > { %1205 = vst [vmem:[%s4597_s7 + $0x340] sm:$0xff] %v1204_v40  ;;  %v1206_v41 = vld [vmem:[%s4589_s6 + $0xd20] sm:$0xff] }
  0x7b   : > { %v1208_v42 = vld [vmem:[%s4589_s6 + $0xd40] sm:$0xff]  ;;  %1207 = vst [vmem:[%s4597_s7 + $0x348] sm:$0xff] %v1206_v41 }
  0x7c   : > { %v1210_v43 = vld [vmem:[%s4589_s6 + $0xd60] sm:$0xff]  ;;  %1209 = vst [vmem:[%s4597_s7 + $0x350] sm:$0xff] %v1208_v42 }
  0x7d   : > { %1211 = vst [vmem:[%s4597_s7 + $0x358] sm:$0xff] %v1210_v43  ;;  %v1212_v44 = vld [vmem:[%s4589_s6 + $0xd80] sm:$0xff] }
  0x7e   : > { %v1214_v45 = vld [vmem:[%s4589_s6 + $0xda0] sm:$0xff]  ;;  %1213 = vst [vmem:[%s4597_s7 + $0x360] sm:$0xff] %v1212_v44 }
  0x7f   : > { %v1216_v46 = vld [vmem:[%s4589_s6 + $0xdc0] sm:$0xff]  ;;  %1215 = vst [vmem:[%s4597_s7 + $0x368] sm:$0xff] %v1214_v45 }
  0x80   : > { %1217 = vst [vmem:[%s4597_s7 + $0x370] sm:$0xff] %v1216_v46  ;;  %v1218_v47 = vld [vmem:[%s4589_s6 + $0xde0] sm:$0xff] }
  0x81   : > { %v1220_v48 = vld [vmem:[%s4589_s6 + $0xe00] sm:$0xff]  ;;  %1219 = vst [vmem:[%s4597_s7 + $0x378] sm:$0xff] %v1218_v47 }
  0x82   : > { %v1222_v49 = vld [vmem:[%s4589_s6 + $0xe20] sm:$0xff]  ;;  %1221 = vst [vmem:[%s4597_s7 + $0x380] sm:$0xff] %v1220_v48 }
  0x83   : > { %1223 = vst [vmem:[%s4597_s7 + $0x388] sm:$0xff] %v1222_v49  ;;  %v1224_v50 = vld [vmem:[%s4589_s6 + $0xe40] sm:$0xff] }
  0x84   : > { %v1226_v51 = vld [vmem:[%s4589_s6 + $0xe60] sm:$0xff]  ;;  %1225 = vst [vmem:[%s4597_s7 + $0x390] sm:$0xff] %v1224_v50 }
  0x85   : > { %v1228_v52 = vld [vmem:[%s4589_s6 + $0xe80] sm:$0xff]  ;;  %1227 = vst [vmem:[%s4597_s7 + $0x398] sm:$0xff] %v1226_v51 }
  0x86   : > { %1229 = vst [vmem:[%s4597_s7 + $0x3a0] sm:$0xff] %v1228_v52  ;;  %v1230_v53 = vld [vmem:[%s4589_s6 + $0xea0] sm:$0xff] }
  0x87   : > { %v1232_v54 = vld [vmem:[%s4589_s6 + $0xec0] sm:$0xff]  ;;  %1231 = vst [vmem:[%s4597_s7 + $0x3a8] sm:$0xff] %v1230_v53 }
  0x88   : > { %v1234_v55 = vld [vmem:[%s4589_s6 + $0xee0] sm:$0xff]  ;;  %1233 = vst [vmem:[%s4597_s7 + $0x3b0] sm:$0xff] %v1232_v54 }
  0x89   : > { %1235 = vst [vmem:[%s4597_s7 + $0x3b8] sm:$0xff] %v1234_v55  ;;  %v1236_v56 = vld [vmem:[%s4589_s6 + $0xf00] sm:$0xff] }
  0x8a   : > { %v1238_v57 = vld [vmem:[%s4589_s6 + $0xf20] sm:$0xff]  ;;  %1237 = vst [vmem:[%s4597_s7 + $0x3c0] sm:$0xff] %v1236_v56 }
  0x8b   : > { %v1240_v58 = vld [vmem:[%s4589_s6 + $0xf40] sm:$0xff]  ;;  %1239 = vst [vmem:[%s4597_s7 + $0x3c8] sm:$0xff] %v1238_v57 }
  0x8c   : > { %1241 = vst [vmem:[%s4597_s7 + $0x3d0] sm:$0xff] %v1240_v58  ;;  %v1242_v59 = vld [vmem:[%s4589_s6 + $0xf60] sm:$0xff] }
  0x8d   : > { %v1244_v60 = vld [vmem:[%s4589_s6 + $0xf80] sm:$0xff]  ;;  %1243 = vst [vmem:[%s4597_s7 + $0x3d8] sm:$0xff] %v1242_v59 }
  0x8e   : > { %v1246_v61 = vld [vmem:[%s4589_s6 + $0xfa0] sm:$0xff]  ;;  %1245 = vst [vmem:[%s4597_s7 + $0x3e0] sm:$0xff] %v1244_v60 }
  0x8f   : > { %1247 = vst [vmem:[%s4597_s7 + $0x3e8] sm:$0xff] %v1246_v61  ;;  %v1248_v62 = vld [vmem:[%s4589_s6 + $0xfc0] sm:$0xff] }
  0x90   : > { %v1250_v63 = vld [vmem:[%s4589_s6 + $0xfe0] sm:$0xff]  ;;  %1249 = vst [vmem:[%s4597_s7 + $0x3f0] sm:$0xff] %v1248_v62 }
  0x91   : > { %v1252_v0 = vld [vmem:[%s4589_s6 + $0x1000] sm:$0xff]  ;;  %1251 = vst [vmem:[%s4597_s7 + $0x3f8] sm:$0xff] %v1250_v63 }
  0x92   : > { %1253 = vst [vmem:[%s4597_s7 + $0x400] sm:$0xff] %v1252_v0  ;;  %v1254_v1 = vld [vmem:[%s4589_s6 + $0x1020] sm:$0xff] }
  0x93   : > { %v1256_v2 = vld [vmem:[%s4589_s6 + $0x1040] sm:$0xff]  ;;  %1255 = vst [vmem:[%s4597_s7 + $0x408] sm:$0xff] %v1254_v1 }
  0x94   : > { %v1258_v3 = vld [vmem:[%s4589_s6 + $0x1060] sm:$0xff]  ;;  %1257 = vst [vmem:[%s4597_s7 + $0x410] sm:$0xff] %v1256_v2 }
  0x95   : > { %1259 = vst [vmem:[%s4597_s7 + $0x418] sm:$0xff] %v1258_v3  ;;  %v1260_v4 = vld [vmem:[%s4589_s6 + $0x1080] sm:$0xff] }
  0x96   : > { %v1262_v5 = vld [vmem:[%s4589_s6 + $0x10a0] sm:$0xff]  ;;  %1261 = vst [vmem:[%s4597_s7 + $0x420] sm:$0xff] %v1260_v4 }
  0x97   : > { %v1264_v6 = vld [vmem:[%s4589_s6 + $0x10c0] sm:$0xff]  ;;  %1263 = vst [vmem:[%s4597_s7 + $0x428] sm:$0xff] %v1262_v5 }
  0x98   : > { %1265 = vst [vmem:[%s4597_s7 + $0x430] sm:$0xff] %v1264_v6  ;;  %v1266_v7 = vld [vmem:[%s4589_s6 + $0x10e0] sm:$0xff] }
  0x99   : > { %v1268_v8 = vld [vmem:[%s4589_s6 + $0x1100] sm:$0xff]  ;;  %1267 = vst [vmem:[%s4597_s7 + $0x438] sm:$0xff] %v1266_v7 }
  0x9a   : > { %v1270_v9 = vld [vmem:[%s4589_s6 + $0x1120] sm:$0xff]  ;;  %1269 = vst [vmem:[%s4597_s7 + $0x440] sm:$0xff] %v1268_v8 }
  0x9b   : > { %1271 = vst [vmem:[%s4597_s7 + $0x448] sm:$0xff] %v1270_v9  ;;  %v1272_v10 = vld [vmem:[%s4589_s6 + $0x1140] sm:$0xff] }
  0x9c   : > { %v1274_v11 = vld [vmem:[%s4589_s6 + $0x1160] sm:$0xff]  ;;  %1273 = vst [vmem:[%s4597_s7 + $0x450] sm:$0xff] %v1272_v10 }
  0x9d   : > { %v1276_v12 = vld [vmem:[%s4589_s6 + $0x1180] sm:$0xff]  ;;  %1275 = vst [vmem:[%s4597_s7 + $0x458] sm:$0xff] %v1274_v11 }
  0x9e   : > { %1277 = vst [vmem:[%s4597_s7 + $0x460] sm:$0xff] %v1276_v12  ;;  %v1278_v13 = vld [vmem:[%s4589_s6 + $0x11a0] sm:$0xff] }
  0x9f   : > { %v1280_v14 = vld [vmem:[%s4589_s6 + $0x11c0] sm:$0xff]  ;;  %1279 = vst [vmem:[%s4597_s7 + $0x468] sm:$0xff] %v1278_v13 }
  0xa0   : > { %v1282_v15 = vld [vmem:[%s4589_s6 + $0x11e0] sm:$0xff]  ;;  %1281 = vst [vmem:[%s4597_s7 + $0x470] sm:$0xff] %v1280_v14 }
  0xa1   : > { %1283 = vst [vmem:[%s4597_s7 + $0x478] sm:$0xff] %v1282_v15  ;;  %v1284_v16 = vld [vmem:[%s4589_s6 + $0x1200] sm:$0xff] }
  0xa2   : > { %v1286_v17 = vld [vmem:[%s4589_s6 + $0x1220] sm:$0xff]  ;;  %1285 = vst [vmem:[%s4597_s7 + $0x480] sm:$0xff] %v1284_v16 }
  0xa3   : > { %v1288_v18 = vld [vmem:[%s4589_s6 + $0x1240] sm:$0xff]  ;;  %1287 = vst [vmem:[%s4597_s7 + $0x488] sm:$0xff] %v1286_v17 }
  0xa4   : > { %1289 = vst [vmem:[%s4597_s7 + $0x490] sm:$0xff] %v1288_v18  ;;  %v1290_v19 = vld [vmem:[%s4589_s6 + $0x1260] sm:$0xff] }
  0xa5   : > { %v1292_v20 = vld [vmem:[%s4589_s6 + $0x1280] sm:$0xff]  ;;  %1291 = vst [vmem:[%s4597_s7 + $0x498] sm:$0xff] %v1290_v19 }
  0xa6   : > { %v1294_v21 = vld [vmem:[%s4589_s6 + $0x12a0] sm:$0xff]  ;;  %1293 = vst [vmem:[%s4597_s7 + $0x4a0] sm:$0xff] %v1292_v20 }
  0xa7   : > { %1295 = vst [vmem:[%s4597_s7 + $0x4a8] sm:$0xff] %v1294_v21  ;;  %v1296_v22 = vld [vmem:[%s4589_s6 + $0x12c0] sm:$0xff] }
  0xa8   : > { %v1298_v23 = vld [vmem:[%s4589_s6 + $0x12e0] sm:$0xff]  ;;  %1297 = vst [vmem:[%s4597_s7 + $0x4b0] sm:$0xff] %v1296_v22 }
  0xa9   : > { %v1300_v24 = vld [vmem:[%s4589_s6 + $0x1300] sm:$0xff]  ;;  %1299 = vst [vmem:[%s4597_s7 + $0x4b8] sm:$0xff] %v1298_v23 }
  0xaa   : > { %1301 = vst [vmem:[%s4597_s7 + $0x4c0] sm:$0xff] %v1300_v24  ;;  %v1302_v25 = vld [vmem:[%s4589_s6 + $0x1320] sm:$0xff] }
  0xab   : > { %v1304_v26 = vld [vmem:[%s4589_s6 + $0x1340] sm:$0xff]  ;;  %1303 = vst [vmem:[%s4597_s7 + $0x4c8] sm:$0xff] %v1302_v25 }
  0xac   : > { %v1306_v27 = vld [vmem:[%s4589_s6 + $0x1360] sm:$0xff]  ;;  %1305 = vst [vmem:[%s4597_s7 + $0x4d0] sm:$0xff] %v1304_v26 }
  0xad   : > { %1307 = vst [vmem:[%s4597_s7 + $0x4d8] sm:$0xff] %v1306_v27  ;;  %v1308_v28 = vld [vmem:[%s4589_s6 + $0x1380] sm:$0xff] }
  0xae   : > { %v1310_v29 = vld [vmem:[%s4589_s6 + $0x13a0] sm:$0xff]  ;;  %1309 = vst [vmem:[%s4597_s7 + $0x4e0] sm:$0xff] %v1308_v28 }
  0xaf   : > { %v1312_v30 = vld [vmem:[%s4589_s6 + $0x13c0] sm:$0xff]  ;;  %1311 = vst [vmem:[%s4597_s7 + $0x4e8] sm:$0xff] %v1310_v29 }
  0xb0   : > { %1313 = vst [vmem:[%s4597_s7 + $0x4f0] sm:$0xff] %v1312_v30  ;;  %v1314_v31 = vld [vmem:[%s4589_s6 + $0x13e0] sm:$0xff] }
  0xb1   : > { %v1316_v32 = vld [vmem:[%s4589_s6 + $0x1400] sm:$0xff]  ;;  %1315 = vst [vmem:[%s4597_s7 + $0x4f8] sm:$0xff] %v1314_v31 }
  0xb2   : > { %v1318_v33 = vld [vmem:[%s4589_s6 + $0x1420] sm:$0xff]  ;;  %1317 = vst [vmem:[%s4597_s7 + $0x500] sm:$0xff] %v1316_v32 }
  0xb3   : > { %1319 = vst [vmem:[%s4597_s7 + $0x508] sm:$0xff] %v1318_v33  ;;  %v1320_v34 = vld [vmem:[%s4589_s6 + $0x1440] sm:$0xff] }
  0xb4   : > { %v1322_v35 = vld [vmem:[%s4589_s6 + $0x1460] sm:$0xff]  ;;  %1321 = vst [vmem:[%s4597_s7 + $0x510] sm:$0xff] %v1320_v34 }
  0xb5   : > { %v1324_v36 = vld [vmem:[%s4589_s6 + $0x1480] sm:$0xff]  ;;  %1323 = vst [vmem:[%s4597_s7 + $0x518] sm:$0xff] %v1322_v35 }
  0xb6   : > { %1325 = vst [vmem:[%s4597_s7 + $0x520] sm:$0xff] %v1324_v36  ;;  %v1326_v37 = vld [vmem:[%s4589_s6 + $0x14a0] sm:$0xff] }
  0xb7   : > { %v1328_v38 = vld [vmem:[%s4589_s6 + $0x14c0] sm:$0xff]  ;;  %1327 = vst [vmem:[%s4597_s7 + $0x528] sm:$0xff] %v1326_v37 }
  0xb8   : > { %v1330_v39 = vld [vmem:[%s4589_s6 + $0x14e0] sm:$0xff]  ;;  %1329 = vst [vmem:[%s4597_s7 + $0x530] sm:$0xff] %v1328_v38 }
  0xb9   : > { %1331 = vst [vmem:[%s4597_s7 + $0x538] sm:$0xff] %v1330_v39  ;;  %v1332_v40 = vld [vmem:[%s4589_s6 + $0x1500] sm:$0xff] }
  0xba   : > { %v1334_v41 = vld [vmem:[%s4589_s6 + $0x1520] sm:$0xff]  ;;  %1333 = vst [vmem:[%s4597_s7 + $0x540] sm:$0xff] %v1332_v40 }
  0xbb   : > { %v1336_v42 = vld [vmem:[%s4589_s6 + $0x1540] sm:$0xff]  ;;  %1335 = vst [vmem:[%s4597_s7 + $0x548] sm:$0xff] %v1334_v41 }
  0xbc   : > { %1337 = vst [vmem:[%s4597_s7 + $0x550] sm:$0xff] %v1336_v42  ;;  %v1338_v43 = vld [vmem:[%s4589_s6 + $0x1560] sm:$0xff] }
  0xbd   : > { %v1340_v44 = vld [vmem:[%s4589_s6 + $0x1580] sm:$0xff]  ;;  %1339 = vst [vmem:[%s4597_s7 + $0x558] sm:$0xff] %v1338_v43 }
  0xbe   : > { %v1342_v45 = vld [vmem:[%s4589_s6 + $0x15a0] sm:$0xff]  ;;  %1341 = vst [vmem:[%s4597_s7 + $0x560] sm:$0xff] %v1340_v44 }
  0xbf   : > { %1343 = vst [vmem:[%s4597_s7 + $0x568] sm:$0xff] %v1342_v45  ;;  %v1344_v46 = vld [vmem:[%s4589_s6 + $0x15c0] sm:$0xff] }
  0xc0   : > { %v1346_v47 = vld [vmem:[%s4589_s6 + $0x15e0] sm:$0xff]  ;;  %1345 = vst [vmem:[%s4597_s7 + $0x570] sm:$0xff] %v1344_v46 }
  0xc1   : > { %v1348_v48 = vld [vmem:[%s4589_s6 + $0x1600] sm:$0xff]  ;;  %1347 = vst [vmem:[%s4597_s7 + $0x578] sm:$0xff] %v1346_v47 }
  0xc2   : > { %1349 = vst [vmem:[%s4597_s7 + $0x580] sm:$0xff] %v1348_v48  ;;  %v1350_v49 = vld [vmem:[%s4589_s6 + $0x1620] sm:$0xff] }
  0xc3   : > { %v1352_v50 = vld [vmem:[%s4589_s6 + $0x1640] sm:$0xff]  ;;  %1351 = vst [vmem:[%s4597_s7 + $0x588] sm:$0xff] %v1350_v49 }
  0xc4   : > { %v1354_v51 = vld [vmem:[%s4589_s6 + $0x1660] sm:$0xff]  ;;  %1353 = vst [vmem:[%s4597_s7 + $0x590] sm:$0xff] %v1352_v50 }
  0xc5   : > { %1355 = vst [vmem:[%s4597_s7 + $0x598] sm:$0xff] %v1354_v51  ;;  %v1356_v52 = vld [vmem:[%s4589_s6 + $0x1680] sm:$0xff] }
  0xc6   : > { %v1358_v53 = vld [vmem:[%s4589_s6 + $0x16a0] sm:$0xff]  ;;  %1357 = vst [vmem:[%s4597_s7 + $0x5a0] sm:$0xff] %v1356_v52 }
  0xc7   : > { %v1360_v54 = vld [vmem:[%s4589_s6 + $0x16c0] sm:$0xff]  ;;  %1359 = vst [vmem:[%s4597_s7 + $0x5a8] sm:$0xff] %v1358_v53 }
  0xc8   : > { %1361 = vst [vmem:[%s4597_s7 + $0x5b0] sm:$0xff] %v1360_v54  ;;  %v1362_v55 = vld [vmem:[%s4589_s6 + $0x16e0] sm:$0xff] }
  0xc9   : > { %v1364_v56 = vld [vmem:[%s4589_s6 + $0x1700] sm:$0xff]  ;;  %1363 = vst [vmem:[%s4597_s7 + $0x5b8] sm:$0xff] %v1362_v55 }
  0xca   : > { %v1366_v57 = vld [vmem:[%s4589_s6 + $0x1720] sm:$0xff]  ;;  %1365 = vst [vmem:[%s4597_s7 + $0x5c0] sm:$0xff] %v1364_v56 }
  0xcb   : > { %1367 = vst [vmem:[%s4597_s7 + $0x5c8] sm:$0xff] %v1366_v57  ;;  %v1368_v58 = vld [vmem:[%s4589_s6 + $0x1740] sm:$0xff] }
  0xcc   : > { %v1370_v59 = vld [vmem:[%s4589_s6 + $0x1760] sm:$0xff]  ;;  %1369 = vst [vmem:[%s4597_s7 + $0x5d0] sm:$0xff] %v1368_v58 }
  0xcd   : > { %v1372_v60 = vld [vmem:[%s4589_s6 + $0x1780] sm:$0xff]  ;;  %1371 = vst [vmem:[%s4597_s7 + $0x5d8] sm:$0xff] %v1370_v59 }
  0xce   : > { %1373 = vst [vmem:[%s4597_s7 + $0x5e0] sm:$0xff] %v1372_v60  ;;  %v1374_v61 = vld [vmem:[%s4589_s6 + $0x17a0] sm:$0xff] }
  0xcf   : > { %v1376_v62 = vld [vmem:[%s4589_s6 + $0x17c0] sm:$0xff]  ;;  %1375 = vst [vmem:[%s4597_s7 + $0x5e8] sm:$0xff] %v1374_v61 }
  0xd0   : > { %v1378_v63 = vld [vmem:[%s4589_s6 + $0x17e0] sm:$0xff]  ;;  %1377 = vst [vmem:[%s4597_s7 + $0x5f0] sm:$0xff] %v1376_v62 }
  0xd1   : > { %1379 = vst [vmem:[%s4597_s7 + $0x5f8] sm:$0xff] %v1378_v63  ;;  %v1380_v0 = vld [vmem:[%s4589_s6 + $0x1800] sm:$0xff] }
  0xd2   : > { %v1382_v1 = vld [vmem:[%s4589_s6 + $0x1820] sm:$0xff]  ;;  %1381 = vst [vmem:[%s4597_s7 + $0x600] sm:$0xff] %v1380_v0 }
  0xd3   : > { %v1384_v2 = vld [vmem:[%s4589_s6 + $0x1840] sm:$0xff]  ;;  %1383 = vst [vmem:[%s4597_s7 + $0x608] sm:$0xff] %v1382_v1 }
  0xd4   : > { %1385 = vst [vmem:[%s4597_s7 + $0x610] sm:$0xff] %v1384_v2  ;;  %v1386_v3 = vld [vmem:[%s4589_s6 + $0x1860] sm:$0xff] }
  0xd5   : > { %v1388_v4 = vld [vmem:[%s4589_s6 + $0x1880] sm:$0xff]  ;;  %1387 = vst [vmem:[%s4597_s7 + $0x618] sm:$0xff] %v1386_v3 }
  0xd6   : > { %v1390_v5 = vld [vmem:[%s4589_s6 + $0x18a0] sm:$0xff]  ;;  %1389 = vst [vmem:[%s4597_s7 + $0x620] sm:$0xff] %v1388_v4 }
  0xd7   : > { %1391 = vst [vmem:[%s4597_s7 + $0x628] sm:$0xff] %v1390_v5  ;;  %v1392_v6 = vld [vmem:[%s4589_s6 + $0x18c0] sm:$0xff] }
  0xd8   : > { %v1394_v7 = vld [vmem:[%s4589_s6 + $0x18e0] sm:$0xff]  ;;  %1393 = vst [vmem:[%s4597_s7 + $0x630] sm:$0xff] %v1392_v6 }
  0xd9   : > { %v1396_v8 = vld [vmem:[%s4589_s6 + $0x1900] sm:$0xff]  ;;  %1395 = vst [vmem:[%s4597_s7 + $0x638] sm:$0xff] %v1394_v7 }
  0xda   : > { %1397 = vst [vmem:[%s4597_s7 + $0x640] sm:$0xff] %v1396_v8  ;;  %v1398_v9 = vld [vmem:[%s4589_s6 + $0x1920] sm:$0xff] }
  0xdb   : > { %v1400_v10 = vld [vmem:[%s4589_s6 + $0x1940] sm:$0xff]  ;;  %1399 = vst [vmem:[%s4597_s7 + $0x648] sm:$0xff] %v1398_v9 }
  0xdc   : > { %v1402_v11 = vld [vmem:[%s4589_s6 + $0x1960] sm:$0xff]  ;;  %1401 = vst [vmem:[%s4597_s7 + $0x650] sm:$0xff] %v1400_v10 }
  0xdd   : > { %1403 = vst [vmem:[%s4597_s7 + $0x658] sm:$0xff] %v1402_v11  ;;  %v1404_v12 = vld [vmem:[%s4589_s6 + $0x1980] sm:$0xff] }
  0xde   : > { %v1406_v13 = vld [vmem:[%s4589_s6 + $0x19a0] sm:$0xff]  ;;  %1405 = vst [vmem:[%s4597_s7 + $0x660] sm:$0xff] %v1404_v12 }
  0xdf   : > { %v1408_v14 = vld [vmem:[%s4589_s6 + $0x19c0] sm:$0xff]  ;;  %1407 = vst [vmem:[%s4597_s7 + $0x668] sm:$0xff] %v1406_v13 }
  0xe0   : > { %1409 = vst [vmem:[%s4597_s7 + $0x670] sm:$0xff] %v1408_v14  ;;  %v1410_v15 = vld [vmem:[%s4589_s6 + $0x19e0] sm:$0xff] }
  0xe1   : > { %v1412_v16 = vld [vmem:[%s4589_s6 + $0x1a00] sm:$0xff]  ;;  %1411 = vst [vmem:[%s4597_s7 + $0x678] sm:$0xff] %v1410_v15 }
  0xe2   : > { %v1414_v17 = vld [vmem:[%s4589_s6 + $0x1a20] sm:$0xff]  ;;  %1413 = vst [vmem:[%s4597_s7 + $0x680] sm:$0xff] %v1412_v16 }
  0xe3   : > { %1415 = vst [vmem:[%s4597_s7 + $0x688] sm:$0xff] %v1414_v17  ;;  %v1416_v18 = vld [vmem:[%s4589_s6 + $0x1a40] sm:$0xff] }
  0xe4   : > { %v1418_v19 = vld [vmem:[%s4589_s6 + $0x1a60] sm:$0xff]  ;;  %1417 = vst [vmem:[%s4597_s7 + $0x690] sm:$0xff] %v1416_v18 }
  0xe5   : > { %v1420_v20 = vld [vmem:[%s4589_s6 + $0x1a80] sm:$0xff]  ;;  %1419 = vst [vmem:[%s4597_s7 + $0x698] sm:$0xff] %v1418_v19 }
  0xe6   : > { %1421 = vst [vmem:[%s4597_s7 + $0x6a0] sm:$0xff] %v1420_v20  ;;  %v1422_v21 = vld [vmem:[%s4589_s6 + $0x1aa0] sm:$0xff] }
  0xe7   : > { %v1424_v22 = vld [vmem:[%s4589_s6 + $0x1ac0] sm:$0xff]  ;;  %1423 = vst [vmem:[%s4597_s7 + $0x6a8] sm:$0xff] %v1422_v21 }
  0xe8   : > { %v1426_v23 = vld [vmem:[%s4589_s6 + $0x1ae0] sm:$0xff]  ;;  %1425 = vst [vmem:[%s4597_s7 + $0x6b0] sm:$0xff] %v1424_v22 }
  0xe9   : > { %1427 = vst [vmem:[%s4597_s7 + $0x6b8] sm:$0xff] %v1426_v23  ;;  %v1428_v24 = vld [vmem:[%s4589_s6 + $0x1b00] sm:$0xff] }
  0xea   : > { %v1430_v25 = vld [vmem:[%s4589_s6 + $0x1b20] sm:$0xff]  ;;  %1429 = vst [vmem:[%s4597_s7 + $0x6c0] sm:$0xff] %v1428_v24 }
  0xeb   : > { %v1432_v26 = vld [vmem:[%s4589_s6 + $0x1b40] sm:$0xff]  ;;  %1431 = vst [vmem:[%s4597_s7 + $0x6c8] sm:$0xff] %v1430_v25 }
  0xec   : > { %1433 = vst [vmem:[%s4597_s7 + $0x6d0] sm:$0xff] %v1432_v26  ;;  %v1434_v27 = vld [vmem:[%s4589_s6 + $0x1b60] sm:$0xff] }
  0xed   : > { %v1436_v28 = vld [vmem:[%s4589_s6 + $0x1b80] sm:$0xff]  ;;  %1435 = vst [vmem:[%s4597_s7 + $0x6d8] sm:$0xff] %v1434_v27 }
  0xee   : > { %v1438_v29 = vld [vmem:[%s4589_s6 + $0x1ba0] sm:$0xff]  ;;  %1437 = vst [vmem:[%s4597_s7 + $0x6e0] sm:$0xff] %v1436_v28 }
  0xef   : > { %1439 = vst [vmem:[%s4597_s7 + $0x6e8] sm:$0xff] %v1438_v29  ;;  %v1440_v30 = vld [vmem:[%s4589_s6 + $0x1bc0] sm:$0xff] }
  0xf0   : > { %v1442_v31 = vld [vmem:[%s4589_s6 + $0x1be0] sm:$0xff]  ;;  %1441 = vst [vmem:[%s4597_s7 + $0x6f0] sm:$0xff] %v1440_v30 }
  0xf1   : > { %v1444_v32 = vld [vmem:[%s4589_s6 + $0x1c00] sm:$0xff]  ;;  %1443 = vst [vmem:[%s4597_s7 + $0x6f8] sm:$0xff] %v1442_v31 }
  0xf2   : > { %1445 = vst [vmem:[%s4597_s7 + $0x700] sm:$0xff] %v1444_v32  ;;  %v1446_v33 = vld [vmem:[%s4589_s6 + $0x1c20] sm:$0xff] }
  0xf3   : > { %v1448_v34 = vld [vmem:[%s4589_s6 + $0x1c40] sm:$0xff]  ;;  %1447 = vst [vmem:[%s4597_s7 + $0x708] sm:$0xff] %v1446_v33 }
  0xf4   : > { %v1450_v35 = vld [vmem:[%s4589_s6 + $0x1c60] sm:$0xff]  ;;  %1449 = vst [vmem:[%s4597_s7 + $0x710] sm:$0xff] %v1448_v34 }
  0xf5   : > { %1451 = vst [vmem:[%s4597_s7 + $0x718] sm:$0xff] %v1450_v35  ;;  %v1452_v36 = vld [vmem:[%s4589_s6 + $0x1c80] sm:$0xff] }
  0xf6   : > { %v1454_v37 = vld [vmem:[%s4589_s6 + $0x1ca0] sm:$0xff]  ;;  %1453 = vst [vmem:[%s4597_s7 + $0x720] sm:$0xff] %v1452_v36 }
  0xf7   : > { %v1456_v38 = vld [vmem:[%s4589_s6 + $0x1cc0] sm:$0xff]  ;;  %1455 = vst [vmem:[%s4597_s7 + $0x728] sm:$0xff] %v1454_v37 }
  0xf8   : > { %1457 = vst [vmem:[%s4597_s7 + $0x730] sm:$0xff] %v1456_v38  ;;  %v1458_v39 = vld [vmem:[%s4589_s6 + $0x1ce0] sm:$0xff] }
  0xf9   : > { %v1460_v40 = vld [vmem:[%s4589_s6 + $0x1d00] sm:$0xff]  ;;  %1459 = vst [vmem:[%s4597_s7 + $0x738] sm:$0xff] %v1458_v39 }
  0xfa   : > { %v1462_v41 = vld [vmem:[%s4589_s6 + $0x1d20] sm:$0xff]  ;;  %1461 = vst [vmem:[%s4597_s7 + $0x740] sm:$0xff] %v1460_v40 }
  0xfb   : > { %1463 = vst [vmem:[%s4597_s7 + $0x748] sm:$0xff] %v1462_v41  ;;  %v1464_v42 = vld [vmem:[%s4589_s6 + $0x1d40] sm:$0xff] }
  0xfc   : > { %v1466_v43 = vld [vmem:[%s4589_s6 + $0x1d60] sm:$0xff]  ;;  %1465 = vst [vmem:[%s4597_s7 + $0x750] sm:$0xff] %v1464_v42 }
  0xfd   : > { %v1468_v44 = vld [vmem:[%s4589_s6 + $0x1d80] sm:$0xff]  ;;  %1467 = vst [vmem:[%s4597_s7 + $0x758] sm:$0xff] %v1466_v43 }
  0xfe   : > { %1469 = vst [vmem:[%s4597_s7 + $0x760] sm:$0xff] %v1468_v44  ;;  %v1470_v45 = vld [vmem:[%s4589_s6 + $0x1da0] sm:$0xff] }
  0xff   : > { %v1472_v46 = vld [vmem:[%s4589_s6 + $0x1dc0] sm:$0xff]  ;;  %1471 = vst [vmem:[%s4597_s7 + $0x768] sm:$0xff] %v1470_v45 }
 0x100   : > { %v1474_v47 = vld [vmem:[%s4589_s6 + $0x1de0] sm:$0xff]  ;;  %1473 = vst [vmem:[%s4597_s7 + $0x770] sm:$0xff] %v1472_v46 }
 0x101   : > { %1475 = vst [vmem:[%s4597_s7 + $0x778] sm:$0xff] %v1474_v47  ;;  %v1476_v48 = vld [vmem:[%s4589_s6 + $0x1e00] sm:$0xff] }
 0x102   : > { %v1478_v49 = vld [vmem:[%s4589_s6 + $0x1e20] sm:$0xff]  ;;  %1477 = vst [vmem:[%s4597_s7 + $0x780] sm:$0xff] %v1476_v48 }
 0x103   : > { %v1480_v50 = vld [vmem:[%s4589_s6 + $0x1e40] sm:$0xff]  ;;  %1479 = vst [vmem:[%s4597_s7 + $0x788] sm:$0xff] %v1478_v49 }
 0x104   : > { %1481 = vst [vmem:[%s4597_s7 + $0x790] sm:$0xff] %v1480_v50  ;;  %v1482_v51 = vld [vmem:[%s4589_s6 + $0x1e60] sm:$0xff] }
 0x105   : > { %v1484_v52 = vld [vmem:[%s4589_s6 + $0x1e80] sm:$0xff]  ;;  %1483 = vst [vmem:[%s4597_s7 + $0x798] sm:$0xff] %v1482_v51 }
 0x106   : > { %v1486_v53 = vld [vmem:[%s4589_s6 + $0x1ea0] sm:$0xff]  ;;  %1485 = vst [vmem:[%s4597_s7 + $0x7a0] sm:$0xff] %v1484_v52 }
 0x107   : > { %1487 = vst [vmem:[%s4597_s7 + $0x7a8] sm:$0xff] %v1486_v53  ;;  %v1488_v54 = vld [vmem:[%s4589_s6 + $0x1ec0] sm:$0xff] }
 0x108   : > { %v1490_v55 = vld [vmem:[%s4589_s6 + $0x1ee0] sm:$0xff]  ;;  %1489 = vst [vmem:[%s4597_s7 + $0x7b0] sm:$0xff] %v1488_v54 }
 0x109   : > { %v1492_v56 = vld [vmem:[%s4589_s6 + $0x1f00] sm:$0xff]  ;;  %1491 = vst [vmem:[%s4597_s7 + $0x7b8] sm:$0xff] %v1490_v55 }
 0x10a   : > { %1493 = vst [vmem:[%s4597_s7 + $0x7c0] sm:$0xff] %v1492_v56  ;;  %v1494_v57 = vld [vmem:[%s4589_s6 + $0x1f20] sm:$0xff] }
 0x10b   : > { %v1496_v58 = vld [vmem:[%s4589_s6 + $0x1f40] sm:$0xff]  ;;  %1495 = vst [vmem:[%s4597_s7 + $0x7c8] sm:$0xff] %v1494_v57 }
 0x10c   : > { %v1498_v59 = vld [vmem:[%s4589_s6 + $0x1f60] sm:$0xff]  ;;  %1497 = vst [vmem:[%s4597_s7 + $0x7d0] sm:$0xff] %v1496_v58 }
 0x10d   : > { %1499 = vst [vmem:[%s4597_s7 + $0x7d8] sm:$0xff] %v1498_v59  ;;  %v1500_v60 = vld [vmem:[%s4589_s6 + $0x1f80] sm:$0xff] }
 0x10e   : > { %v1502_v61 = vld [vmem:[%s4589_s6 + $0x1fa0] sm:$0xff]  ;;  %1501 = vst [vmem:[%s4597_s7 + $0x7e0] sm:$0xff] %v1500_v60 }
 0x10f   : > { %v1504_v62 = vld [vmem:[%s4589_s6 + $0x1fc0] sm:$0xff]  ;;  %1503 = vst [vmem:[%s4597_s7 + $0x7e8] sm:$0xff] %v1502_v61 }
 0x110   : > { %1505 = vst [vmem:[%s4597_s7 + $0x7f0] sm:$0xff] %v1504_v62  ;;  %v1506_v63 = vld [vmem:[%s4589_s6 + $0x1fe0] sm:$0xff] }
 0x111   : > { %v1508_v0 = vld [vmem:[%s4589_s6 + $0x2000] sm:$0xff]  ;;  %1507 = vst [vmem:[%s4597_s7 + $0x7f8] sm:$0xff] %v1506_v63 }
 0x112   : > { %v1510_v1 = vld [vmem:[%s4589_s6 + $0x2020] sm:$0xff]  ;;  %1509 = vst [vmem:[%s4597_s7 + $0x800] sm:$0xff] %v1508_v0 }
 0x113   : > { %1511 = vst [vmem:[%s4597_s7 + $0x808] sm:$0xff] %v1510_v1  ;;  %v1512_v2 = vld [vmem:[%s4589_s6 + $0x2040] sm:$0xff] }
 0x114   : > { %v1514_v3 = vld [vmem:[%s4589_s6 + $0x2060] sm:$0xff]  ;;  %1513 = vst [vmem:[%s4597_s7 + $0x810] sm:$0xff] %v1512_v2 }
 0x115   : > { %v1516_v4 = vld [vmem:[%s4589_s6 + $0x2080] sm:$0xff]  ;;  %1515 = vst [vmem:[%s4597_s7 + $0x818] sm:$0xff] %v1514_v3 }
 0x116   : > { %1517 = vst [vmem:[%s4597_s7 + $0x820] sm:$0xff] %v1516_v4  ;;  %v1518_v5 = vld [vmem:[%s4589_s6 + $0x20a0] sm:$0xff] }
 0x117   : > { %v1520_v6 = vld [vmem:[%s4589_s6 + $0x20c0] sm:$0xff]  ;;  %1519 = vst [vmem:[%s4597_s7 + $0x828] sm:$0xff] %v1518_v5 }
 0x118   : > { %v1522_v7 = vld [vmem:[%s4589_s6 + $0x20e0] sm:$0xff]  ;;  %1521 = vst [vmem:[%s4597_s7 + $0x830] sm:$0xff] %v1520_v6 }
 0x119   : > { %1523 = vst [vmem:[%s4597_s7 + $0x838] sm:$0xff] %v1522_v7  ;;  %v1524_v8 = vld [vmem:[%s4589_s6 + $0x2100] sm:$0xff] }
 0x11a   : > { %v1526_v9 = vld [vmem:[%s4589_s6 + $0x2120] sm:$0xff]  ;;  %1525 = vst [vmem:[%s4597_s7 + $0x840] sm:$0xff] %v1524_v8 }
 0x11b   : > { %v1528_v10 = vld [vmem:[%s4589_s6 + $0x2140] sm:$0xff]  ;;  %1527 = vst [vmem:[%s4597_s7 + $0x848] sm:$0xff] %v1526_v9 }
 0x11c   : > { %1529 = vst [vmem:[%s4597_s7 + $0x850] sm:$0xff] %v1528_v10  ;;  %v1530_v11 = vld [vmem:[%s4589_s6 + $0x2160] sm:$0xff] }
 0x11d   : > { %v1532_v12 = vld [vmem:[%s4589_s6 + $0x2180] sm:$0xff]  ;;  %1531 = vst [vmem:[%s4597_s7 + $0x858] sm:$0xff] %v1530_v11 }
 0x11e   : > { %v1534_v13 = vld [vmem:[%s4589_s6 + $0x21a0] sm:$0xff]  ;;  %1533 = vst [vmem:[%s4597_s7 + $0x860] sm:$0xff] %v1532_v12 }
 0x11f   : > { %1535 = vst [vmem:[%s4597_s7 + $0x868] sm:$0xff] %v1534_v13  ;;  %v1536_v14 = vld [vmem:[%s4589_s6 + $0x21c0] sm:$0xff] }
 0x120   : > { %v1538_v15 = vld [vmem:[%s4589_s6 + $0x21e0] sm:$0xff]  ;;  %1537 = vst [vmem:[%s4597_s7 + $0x870] sm:$0xff] %v1536_v14 }
 0x121   : > { %v1540_v16 = vld [vmem:[%s4589_s6 + $0x2200] sm:$0xff]  ;;  %1539 = vst [vmem:[%s4597_s7 + $0x878] sm:$0xff] %v1538_v15 }
 0x122   : > { %1541 = vst [vmem:[%s4597_s7 + $0x880] sm:$0xff] %v1540_v16  ;;  %v1542_v17 = vld [vmem:[%s4589_s6 + $0x2220] sm:$0xff] }
 0x123   : > { %v1544_v18 = vld [vmem:[%s4589_s6 + $0x2240] sm:$0xff]  ;;  %1543 = vst [vmem:[%s4597_s7 + $0x888] sm:$0xff] %v1542_v17 }
 0x124   : > { %v1546_v19 = vld [vmem:[%s4589_s6 + $0x2260] sm:$0xff]  ;;  %1545 = vst [vmem:[%s4597_s7 + $0x890] sm:$0xff] %v1544_v18 }
 0x125   : > { %1547 = vst [vmem:[%s4597_s7 + $0x898] sm:$0xff] %v1546_v19  ;;  %v1548_v20 = vld [vmem:[%s4589_s6 + $0x2280] sm:$0xff] }
 0x126   : > { %v1550_v21 = vld [vmem:[%s4589_s6 + $0x22a0] sm:$0xff]  ;;  %1549 = vst [vmem:[%s4597_s7 + $0x8a0] sm:$0xff] %v1548_v20 }
 0x127   : > { %v1552_v22 = vld [vmem:[%s4589_s6 + $0x22c0] sm:$0xff]  ;;  %1551 = vst [vmem:[%s4597_s7 + $0x8a8] sm:$0xff] %v1550_v21 }
 0x128   : > { %1553 = vst [vmem:[%s4597_s7 + $0x8b0] sm:$0xff] %v1552_v22  ;;  %v1554_v23 = vld [vmem:[%s4589_s6 + $0x22e0] sm:$0xff] }
 0x129   : > { %v1556_v24 = vld [vmem:[%s4589_s6 + $0x2300] sm:$0xff]  ;;  %1555 = vst [vmem:[%s4597_s7 + $0x8b8] sm:$0xff] %v1554_v23 }
 0x12a   : > { %v1558_v25 = vld [vmem:[%s4589_s6 + $0x2320] sm:$0xff]  ;;  %1557 = vst [vmem:[%s4597_s7 + $0x8c0] sm:$0xff] %v1556_v24 }
 0x12b   : > { %1559 = vst [vmem:[%s4597_s7 + $0x8c8] sm:$0xff] %v1558_v25  ;;  %v1560_v26 = vld [vmem:[%s4589_s6 + $0x2340] sm:$0xff] }
 0x12c   : > { %v1562_v27 = vld [vmem:[%s4589_s6 + $0x2360] sm:$0xff]  ;;  %1561 = vst [vmem:[%s4597_s7 + $0x8d0] sm:$0xff] %v1560_v26 }
 0x12d   : > { %v1564_v28 = vld [vmem:[%s4589_s6 + $0x2380] sm:$0xff]  ;;  %1563 = vst [vmem:[%s4597_s7 + $0x8d8] sm:$0xff] %v1562_v27 }
 0x12e   : > { %1565 = vst [vmem:[%s4597_s7 + $0x8e0] sm:$0xff] %v1564_v28  ;;  %v1566_v29 = vld [vmem:[%s4589_s6 + $0x23a0] sm:$0xff] }
 0x12f   : > { %v1568_v30 = vld [vmem:[%s4589_s6 + $0x23c0] sm:$0xff]  ;;  %1567 = vst [vmem:[%s4597_s7 + $0x8e8] sm:$0xff] %v1566_v29 }
 0x130   : > { %v1570_v31 = vld [vmem:[%s4589_s6 + $0x23e0] sm:$0xff]  ;;  %1569 = vst [vmem:[%s4597_s7 + $0x8f0] sm:$0xff] %v1568_v30 }
 0x131   : > { %1571 = vst [vmem:[%s4597_s7 + $0x8f8] sm:$0xff] %v1570_v31  ;;  %v1572_v32 = vld [vmem:[%s4589_s6 + $0x2400] sm:$0xff] }
 0x132   : > { %v1574_v33 = vld [vmem:[%s4589_s6 + $0x2420] sm:$0xff]  ;;  %1573 = vst [vmem:[%s4597_s7 + $0x900] sm:$0xff] %v1572_v32 }
 0x133   : > { %v1576_v34 = vld [vmem:[%s4589_s6 + $0x2440] sm:$0xff]  ;;  %1575 = vst [vmem:[%s4597_s7 + $0x908] sm:$0xff] %v1574_v33 }
 0x134   : > { %1577 = vst [vmem:[%s4597_s7 + $0x910] sm:$0xff] %v1576_v34  ;;  %v1578_v35 = vld [vmem:[%s4589_s6 + $0x2460] sm:$0xff] }
 0x135   : > { %v1580_v36 = vld [vmem:[%s4589_s6 + $0x2480] sm:$0xff]  ;;  %1579 = vst [vmem:[%s4597_s7 + $0x918] sm:$0xff] %v1578_v35 }
 0x136   : > { %v1582_v37 = vld [vmem:[%s4589_s6 + $0x24a0] sm:$0xff]  ;;  %1581 = vst [vmem:[%s4597_s7 + $0x920] sm:$0xff] %v1580_v36 }
 0x137   : > { %1583 = vst [vmem:[%s4597_s7 + $0x928] sm:$0xff] %v1582_v37  ;;  %v1584_v38 = vld [vmem:[%s4589_s6 + $0x24c0] sm:$0xff] }
 0x138   : > { %v1586_v39 = vld [vmem:[%s4589_s6 + $0x24e0] sm:$0xff]  ;;  %1585 = vst [vmem:[%s4597_s7 + $0x930] sm:$0xff] %v1584_v38 }
 0x139   : > { %v1588_v40 = vld [vmem:[%s4589_s6 + $0x2500] sm:$0xff]  ;;  %1587 = vst [vmem:[%s4597_s7 + $0x938] sm:$0xff] %v1586_v39 }
 0x13a   : > { %1589 = vst [vmem:[%s4597_s7 + $0x940] sm:$0xff] %v1588_v40  ;;  %v1590_v41 = vld [vmem:[%s4589_s6 + $0x2520] sm:$0xff] }
 0x13b   : > { %v1592_v42 = vld [vmem:[%s4589_s6 + $0x2540] sm:$0xff]  ;;  %1591 = vst [vmem:[%s4597_s7 + $0x948] sm:$0xff] %v1590_v41 }
 0x13c   : > { %v1594_v43 = vld [vmem:[%s4589_s6 + $0x2560] sm:$0xff]  ;;  %1593 = vst [vmem:[%s4597_s7 + $0x950] sm:$0xff] %v1592_v42 }
 0x13d   : > { %1595 = vst [vmem:[%s4597_s7 + $0x958] sm:$0xff] %v1594_v43  ;;  %v1596_v44 = vld [vmem:[%s4589_s6 + $0x2580] sm:$0xff] }
 0x13e   : > { %v1598_v45 = vld [vmem:[%s4589_s6 + $0x25a0] sm:$0xff]  ;;  %1597 = vst [vmem:[%s4597_s7 + $0x960] sm:$0xff] %v1596_v44 }
 0x13f   : > { %v1600_v46 = vld [vmem:[%s4589_s6 + $0x25c0] sm:$0xff]  ;;  %1599 = vst [vmem:[%s4597_s7 + $0x968] sm:$0xff] %v1598_v45 }
 0x140   : > { %1601 = vst [vmem:[%s4597_s7 + $0x970] sm:$0xff] %v1600_v46  ;;  %v1602_v47 = vld [vmem:[%s4589_s6 + $0x25e0] sm:$0xff] }
 0x141   : > { %v1604_v48 = vld [vmem:[%s4589_s6 + $0x2600] sm:$0xff]  ;;  %1603 = vst [vmem:[%s4597_s7 + $0x978] sm:$0xff] %v1602_v47 }
 0x142   : > { %v1606_v49 = vld [vmem:[%s4589_s6 + $0x2620] sm:$0xff]  ;;  %1605 = vst [vmem:[%s4597_s7 + $0x980] sm:$0xff] %v1604_v48 }
 0x143   : > { %1607 = vst [vmem:[%s4597_s7 + $0x988] sm:$0xff] %v1606_v49  ;;  %v1608_v50 = vld [vmem:[%s4589_s6 + $0x2640] sm:$0xff] }
 0x144   : > { %v1610_v51 = vld [vmem:[%s4589_s6 + $0x2660] sm:$0xff]  ;;  %1609 = vst [vmem:[%s4597_s7 + $0x990] sm:$0xff] %v1608_v50 }
 0x145   : > { %v1612_v52 = vld [vmem:[%s4589_s6 + $0x2680] sm:$0xff]  ;;  %1611 = vst [vmem:[%s4597_s7 + $0x998] sm:$0xff] %v1610_v51 }
 0x146   : > { %1613 = vst [vmem:[%s4597_s7 + $0x9a0] sm:$0xff] %v1612_v52  ;;  %v1614_v53 = vld [vmem:[%s4589_s6 + $0x26a0] sm:$0xff] }
 0x147   : > { %v1616_v54 = vld [vmem:[%s4589_s6 + $0x26c0] sm:$0xff]  ;;  %1615 = vst [vmem:[%s4597_s7 + $0x9a8] sm:$0xff] %v1614_v53 }
 0x148   : > { %v1618_v55 = vld [vmem:[%s4589_s6 + $0x26e0] sm:$0xff]  ;;  %1617 = vst [vmem:[%s4597_s7 + $0x9b0] sm:$0xff] %v1616_v54 }
 0x149   : > { %1619 = vst [vmem:[%s4597_s7 + $0x9b8] sm:$0xff] %v1618_v55  ;;  %v1620_v56 = vld [vmem:[%s4589_s6 + $0x2700] sm:$0xff] }
 0x14a   : > { %v1622_v57 = vld [vmem:[%s4589_s6 + $0x2720] sm:$0xff]  ;;  %1621 = vst [vmem:[%s4597_s7 + $0x9c0] sm:$0xff] %v1620_v56 }
 0x14b   : > { %v1624_v58 = vld [vmem:[%s4589_s6 + $0x2740] sm:$0xff]  ;;  %1623 = vst [vmem:[%s4597_s7 + $0x9c8] sm:$0xff] %v1622_v57 }
 0x14c   : > { %1625 = vst [vmem:[%s4597_s7 + $0x9d0] sm:$0xff] %v1624_v58  ;;  %v1626_v59 = vld [vmem:[%s4589_s6 + $0x2760] sm:$0xff] }
 0x14d   : > { %v1628_v60 = vld [vmem:[%s4589_s6 + $0x2780] sm:$0xff]  ;;  %1627 = vst [vmem:[%s4597_s7 + $0x9d8] sm:$0xff] %v1626_v59 }
 0x14e   : > { %v1630_v61 = vld [vmem:[%s4589_s6 + $0x27a0] sm:$0xff]  ;;  %1629 = vst [vmem:[%s4597_s7 + $0x9e0] sm:$0xff] %v1628_v60 }
 0x14f   : > { %1631 = vst [vmem:[%s4597_s7 + $0x9e8] sm:$0xff] %v1630_v61  ;;  %v1632_v62 = vld [vmem:[%s4589_s6 + $0x27c0] sm:$0xff] }
 0x150   : > { %v1634_v63 = vld [vmem:[%s4589_s6 + $0x27e0] sm:$0xff]  ;;  %1633 = vst [vmem:[%s4597_s7 + $0x9f0] sm:$0xff] %v1632_v62 }
 0x151   : > { %v1636_v0 = vld [vmem:[%s4589_s6 + $0x2800] sm:$0xff]  ;;  %1635 = vst [vmem:[%s4597_s7 + $0x9f8] sm:$0xff] %v1634_v63 }
 0x152   : > { %1637 = vst [vmem:[%s4597_s7 + $0xa00] sm:$0xff] %v1636_v0  ;;  %v1638_v1 = vld [vmem:[%s4589_s6 + $0x2820] sm:$0xff] }
 0x153   : > { %v1640_v2 = vld [vmem:[%s4589_s6 + $0x2840] sm:$0xff]  ;;  %1639 = vst [vmem:[%s4597_s7 + $0xa08] sm:$0xff] %v1638_v1 }
 0x154   : > { %v1642_v3 = vld [vmem:[%s4589_s6 + $0x2860] sm:$0xff]  ;;  %1641 = vst [vmem:[%s4597_s7 + $0xa10] sm:$0xff] %v1640_v2 }
 0x155   : > { %1643 = vst [vmem:[%s4597_s7 + $0xa18] sm:$0xff] %v1642_v3  ;;  %v1644_v4 = vld [vmem:[%s4589_s6 + $0x2880] sm:$0xff] }
 0x156   : > { %v1646_v5 = vld [vmem:[%s4589_s6 + $0x28a0] sm:$0xff]  ;;  %1645 = vst [vmem:[%s4597_s7 + $0xa20] sm:$0xff] %v1644_v4 }
 0x157   : > { %v1648_v6 = vld [vmem:[%s4589_s6 + $0x28c0] sm:$0xff]  ;;  %1647 = vst [vmem:[%s4597_s7 + $0xa28] sm:$0xff] %v1646_v5 }
 0x158   : > { %1649 = vst [vmem:[%s4597_s7 + $0xa30] sm:$0xff] %v1648_v6  ;;  %v1650_v7 = vld [vmem:[%s4589_s6 + $0x28e0] sm:$0xff] }
 0x159   : > { %v1652_v8 = vld [vmem:[%s4589_s6 + $0x2900] sm:$0xff]  ;;  %1651 = vst [vmem:[%s4597_s7 + $0xa38] sm:$0xff] %v1650_v7 }
 0x15a   : > { %v1654_v9 = vld [vmem:[%s4589_s6 + $0x2920] sm:$0xff]  ;;  %1653 = vst [vmem:[%s4597_s7 + $0xa40] sm:$0xff] %v1652_v8 }
 0x15b   : > { %1655 = vst [vmem:[%s4597_s7 + $0xa48] sm:$0xff] %v1654_v9  ;;  %v1656_v10 = vld [vmem:[%s4589_s6 + $0x2940] sm:$0xff] }
 0x15c   : > { %v1658_v11 = vld [vmem:[%s4589_s6 + $0x2960] sm:$0xff]  ;;  %1657 = vst [vmem:[%s4597_s7 + $0xa50] sm:$0xff] %v1656_v10 }
 0x15d   : > { %v1660_v12 = vld [vmem:[%s4589_s6 + $0x2980] sm:$0xff]  ;;  %1659 = vst [vmem:[%s4597_s7 + $0xa58] sm:$0xff] %v1658_v11 }
 0x15e   : > { %1661 = vst [vmem:[%s4597_s7 + $0xa60] sm:$0xff] %v1660_v12  ;;  %v1662_v13 = vld [vmem:[%s4589_s6 + $0x29a0] sm:$0xff] }
 0x15f   : > { %v1664_v14 = vld [vmem:[%s4589_s6 + $0x29c0] sm:$0xff]  ;;  %1663 = vst [vmem:[%s4597_s7 + $0xa68] sm:$0xff] %v1662_v13 }
 0x160   : > { %v1666_v15 = vld [vmem:[%s4589_s6 + $0x29e0] sm:$0xff]  ;;  %1665 = vst [vmem:[%s4597_s7 + $0xa70] sm:$0xff] %v1664_v14 }
 0x161   : > { %1667 = vst [vmem:[%s4597_s7 + $0xa78] sm:$0xff] %v1666_v15  ;;  %v1668_v16 = vld [vmem:[%s4589_s6 + $0x2a00] sm:$0xff] }
 0x162   : > { %v1670_v17 = vld [vmem:[%s4589_s6 + $0x2a20] sm:$0xff]  ;;  %1669 = vst [vmem:[%s4597_s7 + $0xa80] sm:$0xff] %v1668_v16 }
 0x163   : > { %v1672_v18 = vld [vmem:[%s4589_s6 + $0x2a40] sm:$0xff]  ;;  %1671 = vst [vmem:[%s4597_s7 + $0xa88] sm:$0xff] %v1670_v17 }
 0x164   : > { %1673 = vst [vmem:[%s4597_s7 + $0xa90] sm:$0xff] %v1672_v18  ;;  %v1674_v19 = vld [vmem:[%s4589_s6 + $0x2a60] sm:$0xff] }
 0x165   : > { %v1676_v20 = vld [vmem:[%s4589_s6 + $0x2a80] sm:$0xff]  ;;  %1675 = vst [vmem:[%s4597_s7 + $0xa98] sm:$0xff] %v1674_v19 }
 0x166   : > { %v1678_v21 = vld [vmem:[%s4589_s6 + $0x2aa0] sm:$0xff]  ;;  %1677 = vst [vmem:[%s4597_s7 + $0xaa0] sm:$0xff] %v1676_v20 }
 0x167   : > { %1679 = vst [vmem:[%s4597_s7 + $0xaa8] sm:$0xff] %v1678_v21  ;;  %v1680_v22 = vld [vmem:[%s4589_s6 + $0x2ac0] sm:$0xff] }
 0x168   : > { %v1682_v23 = vld [vmem:[%s4589_s6 + $0x2ae0] sm:$0xff]  ;;  %1681 = vst [vmem:[%s4597_s7 + $0xab0] sm:$0xff] %v1680_v22 }
 0x169   : > { %v1684_v24 = vld [vmem:[%s4589_s6 + $0x2b00] sm:$0xff]  ;;  %1683 = vst [vmem:[%s4597_s7 + $0xab8] sm:$0xff] %v1682_v23 }
 0x16a   : > { %1685 = vst [vmem:[%s4597_s7 + $0xac0] sm:$0xff] %v1684_v24  ;;  %v1686_v25 = vld [vmem:[%s4589_s6 + $0x2b20] sm:$0xff] }
 0x16b   : > { %v1688_v26 = vld [vmem:[%s4589_s6 + $0x2b40] sm:$0xff]  ;;  %1687 = vst [vmem:[%s4597_s7 + $0xac8] sm:$0xff] %v1686_v25 }
 0x16c   : > { %v1690_v27 = vld [vmem:[%s4589_s6 + $0x2b60] sm:$0xff]  ;;  %1689 = vst [vmem:[%s4597_s7 + $0xad0] sm:$0xff] %v1688_v26 }
 0x16d   : > { %1691 = vst [vmem:[%s4597_s7 + $0xad8] sm:$0xff] %v1690_v27  ;;  %v1692_v28 = vld [vmem:[%s4589_s6 + $0x2b80] sm:$0xff] }
 0x16e   : > { %v1694_v29 = vld [vmem:[%s4589_s6 + $0x2ba0] sm:$0xff]  ;;  %1693 = vst [vmem:[%s4597_s7 + $0xae0] sm:$0xff] %v1692_v28 }
 0x16f   : > { %v1696_v30 = vld [vmem:[%s4589_s6 + $0x2bc0] sm:$0xff]  ;;  %1695 = vst [vmem:[%s4597_s7 + $0xae8] sm:$0xff] %v1694_v29 }
 0x170   : > { %1697 = vst [vmem:[%s4597_s7 + $0xaf0] sm:$0xff] %v1696_v30  ;;  %v1698_v31 = vld [vmem:[%s4589_s6 + $0x2be0] sm:$0xff] }
 0x171   : > { %v1700_v32 = vld [vmem:[%s4589_s6 + $0x2c00] sm:$0xff]  ;;  %1699 = vst [vmem:[%s4597_s7 + $0xaf8] sm:$0xff] %v1698_v31 }
 0x172   : > { %v1702_v33 = vld [vmem:[%s4589_s6 + $0x2c20] sm:$0xff]  ;;  %1701 = vst [vmem:[%s4597_s7 + $0xb00] sm:$0xff] %v1700_v32 }
 0x173   : > { %1703 = vst [vmem:[%s4597_s7 + $0xb08] sm:$0xff] %v1702_v33  ;;  %v1704_v34 = vld [vmem:[%s4589_s6 + $0x2c40] sm:$0xff] }
 0x174   : > { %v1706_v35 = vld [vmem:[%s4589_s6 + $0x2c60] sm:$0xff]  ;;  %1705 = vst [vmem:[%s4597_s7 + $0xb10] sm:$0xff] %v1704_v34 }
 0x175   : > { %v1708_v36 = vld [vmem:[%s4589_s6 + $0x2c80] sm:$0xff]  ;;  %1707 = vst [vmem:[%s4597_s7 + $0xb18] sm:$0xff] %v1706_v35 }
 0x176   : > { %1709 = vst [vmem:[%s4597_s7 + $0xb20] sm:$0xff] %v1708_v36  ;;  %v1710_v37 = vld [vmem:[%s4589_s6 + $0x2ca0] sm:$0xff] }
 0x177   : > { %v1712_v38 = vld [vmem:[%s4589_s6 + $0x2cc0] sm:$0xff]  ;;  %1711 = vst [vmem:[%s4597_s7 + $0xb28] sm:$0xff] %v1710_v37 }
 0x178   : > { %v1714_v39 = vld [vmem:[%s4589_s6 + $0x2ce0] sm:$0xff]  ;;  %1713 = vst [vmem:[%s4597_s7 + $0xb30] sm:$0xff] %v1712_v38 }
 0x179   : > { %1715 = vst [vmem:[%s4597_s7 + $0xb38] sm:$0xff] %v1714_v39  ;;  %v1716_v40 = vld [vmem:[%s4589_s6 + $0x2d00] sm:$0xff] }
 0x17a   : > { %v1718_v41 = vld [vmem:[%s4589_s6 + $0x2d20] sm:$0xff]  ;;  %1717 = vst [vmem:[%s4597_s7 + $0xb40] sm:$0xff] %v1716_v40 }
 0x17b   : > { %v1720_v42 = vld [vmem:[%s4589_s6 + $0x2d40] sm:$0xff]  ;;  %1719 = vst [vmem:[%s4597_s7 + $0xb48] sm:$0xff] %v1718_v41 }
 0x17c   : > { %1721 = vst [vmem:[%s4597_s7 + $0xb50] sm:$0xff] %v1720_v42  ;;  %v1722_v43 = vld [vmem:[%s4589_s6 + $0x2d60] sm:$0xff] }
 0x17d   : > { %v1724_v44 = vld [vmem:[%s4589_s6 + $0x2d80] sm:$0xff]  ;;  %1723 = vst [vmem:[%s4597_s7 + $0xb58] sm:$0xff] %v1722_v43 }
 0x17e   : > { %v1726_v45 = vld [vmem:[%s4589_s6 + $0x2da0] sm:$0xff]  ;;  %1725 = vst [vmem:[%s4597_s7 + $0xb60] sm:$0xff] %v1724_v44 }
 0x17f   : > { %1727 = vst [vmem:[%s4597_s7 + $0xb68] sm:$0xff] %v1726_v45  ;;  %v1728_v46 = vld [vmem:[%s4589_s6 + $0x2dc0] sm:$0xff] }
 0x180   : > { %v1730_v47 = vld [vmem:[%s4589_s6 + $0x2de0] sm:$0xff]  ;;  %1729 = vst [vmem:[%s4597_s7 + $0xb70] sm:$0xff] %v1728_v46 }
 0x181   : > { %v1732_v48 = vld [vmem:[%s4589_s6 + $0x2e00] sm:$0xff]  ;;  %1731 = vst [vmem:[%s4597_s7 + $0xb78] sm:$0xff] %v1730_v47 }
 0x182   : > { %1733 = vst [vmem:[%s4597_s7 + $0xb80] sm:$0xff] %v1732_v48  ;;  %v1734_v49 = vld [vmem:[%s4589_s6 + $0x2e20] sm:$0xff] }
 0x183   : > { %v1736_v50 = vld [vmem:[%s4589_s6 + $0x2e40] sm:$0xff]  ;;  %1735 = vst [vmem:[%s4597_s7 + $0xb88] sm:$0xff] %v1734_v49 }
 0x184   : > { %v1738_v51 = vld [vmem:[%s4589_s6 + $0x2e60] sm:$0xff]  ;;  %1737 = vst [vmem:[%s4597_s7 + $0xb90] sm:$0xff] %v1736_v50 }
 0x185   : > { %1739 = vst [vmem:[%s4597_s7 + $0xb98] sm:$0xff] %v1738_v51  ;;  %v1740_v52 = vld [vmem:[%s4589_s6 + $0x2e80] sm:$0xff] }
 0x186   : > { %v1742_v53 = vld [vmem:[%s4589_s6 + $0x2ea0] sm:$0xff]  ;;  %1741 = vst [vmem:[%s4597_s7 + $0xba0] sm:$0xff] %v1740_v52 }
 0x187   : > { %v1744_v54 = vld [vmem:[%s4589_s6 + $0x2ec0] sm:$0xff]  ;;  %1743 = vst [vmem:[%s4597_s7 + $0xba8] sm:$0xff] %v1742_v53 }
 0x188   : > { %1745 = vst [vmem:[%s4597_s7 + $0xbb0] sm:$0xff] %v1744_v54  ;;  %v1746_v55 = vld [vmem:[%s4589_s6 + $0x2ee0] sm:$0xff] }
 0x189   : > { %v1748_v56 = vld [vmem:[%s4589_s6 + $0x2f00] sm:$0xff]  ;;  %1747 = vst [vmem:[%s4597_s7 + $0xbb8] sm:$0xff] %v1746_v55 }
 0x18a   : > { %v1750_v57 = vld [vmem:[%s4589_s6 + $0x2f20] sm:$0xff]  ;;  %1749 = vst [vmem:[%s4597_s7 + $0xbc0] sm:$0xff] %v1748_v56 }
 0x18b   : > { %1751 = vst [vmem:[%s4597_s7 + $0xbc8] sm:$0xff] %v1750_v57  ;;  %v1752_v58 = vld [vmem:[%s4589_s6 + $0x2f40] sm:$0xff] }
 0x18c   : > { %v1754_v59 = vld [vmem:[%s4589_s6 + $0x2f60] sm:$0xff]  ;;  %1753 = vst [vmem:[%s4597_s7 + $0xbd0] sm:$0xff] %v1752_v58 }
 0x18d   : > { %v1756_v60 = vld [vmem:[%s4589_s6 + $0x2f80] sm:$0xff]  ;;  %1755 = vst [vmem:[%s4597_s7 + $0xbd8] sm:$0xff] %v1754_v59 }
 0x18e   : > { %1757 = vst [vmem:[%s4597_s7 + $0xbe0] sm:$0xff] %v1756_v60  ;;  %v1758_v61 = vld [vmem:[%s4589_s6 + $0x2fa0] sm:$0xff] }
 0x18f   : > { %v1760_v62 = vld [vmem:[%s4589_s6 + $0x2fc0] sm:$0xff]  ;;  %1759 = vst [vmem:[%s4597_s7 + $0xbe8] sm:$0xff] %v1758_v61 }
 0x190   : > { %v1762_v63 = vld [vmem:[%s4589_s6 + $0x2fe0] sm:$0xff]  ;;  %1761 = vst [vmem:[%s4597_s7 + $0xbf0] sm:$0xff] %v1760_v62 }
 0x191   : > { %1763 = vst [vmem:[%s4597_s7 + $0xbf8] sm:$0xff] %v1762_v63  ;;  %v1764_v0 = vld [vmem:[%s4589_s6 + $0x3000] sm:$0xff] }
 0x192   : > { %v1766_v1 = vld [vmem:[%s4589_s6 + $0x3020] sm:$0xff]  ;;  %1765 = vst [vmem:[%s4597_s7 + $0xc00] sm:$0xff] %v1764_v0 }
 0x193   : > { %v1768_v2 = vld [vmem:[%s4589_s6 + $0x3040] sm:$0xff]  ;;  %1767 = vst [vmem:[%s4597_s7 + $0xc08] sm:$0xff] %v1766_v1 }
 0x194   : > { %1769 = vst [vmem:[%s4597_s7 + $0xc10] sm:$0xff] %v1768_v2  ;;  %v1770_v3 = vld [vmem:[%s4589_s6 + $0x3060] sm:$0xff] }
 0x195   : > { %v1772_v4 = vld [vmem:[%s4589_s6 + $0x3080] sm:$0xff]  ;;  %1771 = vst [vmem:[%s4597_s7 + $0xc18] sm:$0xff] %v1770_v3 }
 0x196   : > { %v1774_v5 = vld [vmem:[%s4589_s6 + $0x30a0] sm:$0xff]  ;;  %1773 = vst [vmem:[%s4597_s7 + $0xc20] sm:$0xff] %v1772_v4 }
 0x197   : > { %1775 = vst [vmem:[%s4597_s7 + $0xc28] sm:$0xff] %v1774_v5  ;;  %v1776_v6 = vld [vmem:[%s4589_s6 + $0x30c0] sm:$0xff] }
 0x198   : > { %v1778_v7 = vld [vmem:[%s4589_s6 + $0x30e0] sm:$0xff]  ;;  %1777 = vst [vmem:[%s4597_s7 + $0xc30] sm:$0xff] %v1776_v6 }
 0x199   : > { %1779 = vst [vmem:[%s4597_s7 + $0xc38] sm:$0xff] %v1778_v7 }
 0x19a PF: > { %p3488_p5 = scmp.ge.s32.totalorder %s4516_s20, 1  ;;  %p1799_p6 = scmp.lt.s32.totalorder %s4516_s20, 5 }
 0x19c   : > { %p1800_p7 = pnand %p3488_p5, %p1799_p6 }
 0x19d   : > { %s1806_s8 = sand.u32 (!%p1800_p7), 1, %s4508_s18   ;;  %v1845_v8 = vld [vmem:[%s5946_s0] sm:$0xff] (!%p1800_p7)  ;;  %v2262_v9 = vlaneseq (!%p1800_p7)  ;;  %v4518_v10 = vmov (!%p1800_p7), 1983009808   ;;  %vm4520_vm0 = vmmov (!%p1800_p7), 0   ;;  %vm2391_vm1 = vcmask (!%p1800_p7), 523264  }
 0x19e   : > { %1803 = sbr.rel (%p1800_p7) target bundleno = 1095 (0x447), region = 74  ;;  %v2260_v11 = vunpack.c.l.s4 (!%p1800_p7), %v4518_v10  ;;  %v2258_v14 = vcombine.high (!%p1800_p7), %v1845_v8, %v1845_v8  ;;  %p1836_p8 = scmp.lt.s32.totalorder (!%p1800_p7), %s4569_s21, 3 }
 0x19f   : > { %s4422_s11 = smul.u32 (!%p1800_p7), 3136, %s1806_s8  ;;  %v2263_v12 = vshrl.u32 (!%p1800_p7), %v2262_v9, 7  ;;  %s3489_s8 = sshll.u32 (!%p1800_p7), %s4569_s21, 4 }
 0x1a0   : > { %v2261_v13 = vunpack.c.0.s8 (!%p1800_p7), %v2260_v11  ;;  %p1840_p9 = scmp.lt.s32.totalorder (!%p1800_p7), %s3489_s8, 63  ;;  %p3494_p10 = scmp.ne.s32.totalorder (!%p1800_p7), %s4569_s21, 0 }
 0x1a1   : > { %s5383_s12 = scalar_lea.vmem (!%p1800_p7), [#allocation2], %s4422_s11 }
 0x1a2   : > { %v1868_v15 = vld [vmem:[%s5383_s12 + $0x80] sm:$0xff] (!%p1800_p7)  ;;  %v1869_v16 = vld [vmem:[%s5383_s12 + $0x88] sm:$0xff] (!%p1800_p7)  ;;  %v5391_v22 = vsub.s32 (!%p1800_p7), %v2261_v13, %v2263_v12  ;;  %v1870_v27 = vld [vmem:[%s5383_s12 + $0x90] sm:$0xff] (!%p1800_p7) }
 0x1a3   : > { %v1852_v17 = vld [vmem:[%s5383_s12] sm:$0xff] (!%p1800_p7)  ;;  %v4001_v18 = vpack.c.bf16 (!%p1800_p7), %v1869_v16, %v1868_v15  ;;  %v1853_v19 = vld [vmem:[%s5383_s12 + $0x8] sm:$0xff] (!%p1800_p7)  ;;  %v1871_v29 = vld [vmem:[%s5383_s12 + $0x98] sm:$0xff] (!%p1800_p7) }
 0x1a4   : > { %v1900_v20 = vld [vmem:[%s5383_s12 + $0x180] sm:$0xff] (!%p1800_p7)  ;;  %v1901_v21 = vld [vmem:[%s5383_s12 + $0x188] sm:$0xff] (!%p1800_p7)  ;;  %v4003_v23 = vpack.c.bf16 (!%p1800_p7), %v1853_v19, %v1852_v17  ;;  %v1854_v30 = vld [vmem:[%s5383_s12 + $0x10] sm:$0xff] (!%p1800_p7)  ;;  %v5400_v32 = vrot.slane (!%p1800_p7), %v1845_v8, %v5391_v22  ;;  %v5403_v33 = vrot.slane (!%p1800_p7), %v2258_v14, %v5391_v22  ;;  %v4005_v34 = vpack.c.bf16 (!%p1800_p7), %v1871_v29, %v1870_v27 }
 0x1a5   : > { %v4033_v24 = vpack.c.bf16 %v1901_v21, %v1900_v20  ;;  %v1884_v25 = vld [vmem:[%s5383_s12 + $0x100] sm:$0xff]  ;;  %v1885_v26 = vld [vmem:[%s5383_s12 + $0x108] sm:$0xff]  ;;  %4002 = vmatprep.subr.bf16.mxu0 %v4001_v18  ;;  %v1855_v31 = vld [vmem:[%s5383_s12 + $0x18] sm:$0xff]  ;;  %s1837_s29 = scalar_select %p1836_p8, %s4569_s21, 3 }
 0x1a6   : > { %v4035_v28 = vpack.c.bf16 %v1885_v26, %v1884_v25  ;;  %4004 = vmatpush3.bf16.msra.mxu0 %v4003_v23  ;;  %v4007_v35 = vpack.c.bf16 %v1855_v31, %v1854_v30  ;;  %v1902_v36 = vld [vmem:[%s5383_s12 + $0x190] sm:$0xff]  ;;  %v1903_v37 = vld [vmem:[%s5383_s12 + $0x198] sm:$0xff]  ;;  %v1872_v41 = vld [vmem:[%s5383_s12 + $0xa0] sm:$0xff]  ;;  %v2273_v43 = vcombine.high %v5400_v32, %v5400_v32  ;;  %v2274_v44 = vcombine.high %v5403_v33, %v5403_v33  ;;  %s5956_s8 = smov (!%p1840_p9, %s3489_s8), 63 }
 0x1a7   : > { %4034 = vmatprep.subr.bf16.mxu1 %v4033_v24  ;;  %v1886_v38 = vld [vmem:[%s5383_s12 + $0x110] sm:$0xff]  ;;  %v4037_v39 = vpack.c.bf16 %v1903_v37, %v1902_v36  ;;  %v1887_v40 = vld [vmem:[%s5383_s12 + $0x118] sm:$0xff]  ;;  %v1873_v42 = vld [vmem:[%s5383_s12 + $0xa8] sm:$0xff]  ;;  %4006 = vmatprep.subr.bf16.mxu0 %v4005_v34  ;;  %s1838_s7 = scalar_lea.vmem %s5948_s2, %s1837_s29  ;;  %s3490_s9 = sshll.u32 %s5956_s8, 3 }
 0x1a8   : > { %4036 = vmatpush3.bf16.msra.mxu1 %v4035_v28  ;;  %v4039_v45 = vpack.c.bf16 %v1887_v40, %v1886_v38  ;;  %v4009_v46 = vpack.c.bf16 %v1873_v42, %v1872_v41  ;;  %v1856_v47 = vld [vmem:[%s5383_s12 + $0x20] sm:$0xff]  ;;  %v1857_v48 = vld [vmem:[%s5383_s12 + $0x28] sm:$0xff]  ;;  %2458 = vmatprep.mubr.f32.mxu0 %v2273_v43  ;;  %v1874_v55 = vld [vmem:[%s5383_s12 + $0xb0] sm:$0xff] }
 0x1a9   : > { %v1904_v49 = vld [vmem:[%s5383_s12 + $0x1a0] sm:$0xff]  ;;  %4038 = vmatprep.subr.bf16.mxu1 %v4037_v39  ;;  %v1905_v50 = vld [vmem:[%s5383_s12 + $0x1a8] sm:$0xff]  ;;  %v4011_v53 = vpack.c.bf16 %v1857_v48, %v1856_v47  ;;  %v1875_v56 = vld [vmem:[%s5383_s12 + $0xb8] sm:$0xff]  ;;  %2528 = vmatprep.mubr.f32.mxu1 %v2274_v44 }
 0x1aa   : > { %v1888_v51 = vld [vmem:[%s5383_s12 + $0x120] sm:$0xff]  ;;  %v1889_v52 = vld [vmem:[%s5383_s12 + $0x128] sm:$0xff]  ;;  %4008 = vmatpush3.bf16.msra.mxu0 %v4007_v35  ;;  %v4041_v54 = vpack.c.bf16 %v1905_v50, %v1904_v49  ;;  %v1858_v57 = vld [vmem:[%s5383_s12 + $0x30] sm:$0xff]  ;;  %v4013_v59 = vpack.c.bf16 %v1875_v56, %v1874_v55 }
 0x1ab   : > { %4010 = vmatprep.subr.bf16.mxu0 %v4009_v46  ;;  %v4043_v58 = vpack.c.bf16 %v1889_v52, %v1888_v51  ;;  %v1859_v60 = vld [vmem:[%s5383_s12 + $0x38] sm:$0xff]  ;;  %v1906_v61 = vld [vmem:[%s5383_s12 + $0x1b0] sm:$0xff]  ;;  %v1876_v2 = vld [vmem:[%s5383_s12 + $0xc0] sm:$0xff] }
 0x1ac   : > { %4040 = vmatpush3.bf16.msra.mxu1 %v4039_v45  ;;  %v1907_v62 = vld [vmem:[%s5383_s12 + $0x1b8] sm:$0xff]  ;;  %v1890_v0 = vld [vmem:[%s5383_s12 + $0x130] sm:$0xff]  ;;  %v1877_v3 = vld [vmem:[%s5383_s12 + $0xc8] sm:$0xff]  ;;  %v4015_v4 = vpack.c.bf16 %v1859_v60, %v1858_v57 }
 0x1ad   : > { %4042 = vmatprep.subr.bf16.mxu1 %v4041_v54  ;;  %v4045_v63 = vpack.c.bf16 %v1907_v62, %v1906_v61  ;;  %v1891_v1 = vld [vmem:[%s5383_s12 + $0x138] sm:$0xff]  ;;  %v1908_v5 = vld [vmem:[%s5383_s12 + $0x1c0] sm:$0xff]  ;;  %v1909_v6 = vld [vmem:[%s5383_s12 + $0x1c8] sm:$0xff]  ;;  %v4017_v8 = vpack.c.bf16 %v1877_v3, %v1876_v2 }
 0x1ae   : > { %4012 = vmatpush3.bf16.msra.mxu0 %v4011_v53  ;;  %v4047_v7 = vpack.c.bf16 %v1891_v1, %v1890_v0  ;;  %v1860_v9 = vld [vmem:[%s5383_s12 + $0x40] sm:$0xff]  ;;  %v1861_v10 = vld [vmem:[%s5383_s12 + $0x48] sm:$0xff]  ;;  %v4049_v12 = vpack.c.bf16 %v1909_v6, %v1908_v5  ;;  %v1878_v14 = vld [vmem:[%s5383_s12 + $0xd0] sm:$0xff] }
 0x1af   : > { %4014 = vmatprep.subr.bf16.mxu0 %v4013_v59  ;;  %v1892_v11 = vld [vmem:[%s5383_s12 + $0x140] sm:$0xff]  ;;  %v1893_v13 = vld [vmem:[%s5383_s12 + $0x148] sm:$0xff]  ;;  %v1879_v15 = vld [vmem:[%s5383_s12 + $0xd8] sm:$0xff]  ;;  %v4019_v18 = vpack.c.bf16 %v1861_v10, %v1860_v9 }
 0x1b0   : > { %4044 = vmatpush3.bf16.msra.mxu1 %v4043_v58  ;;  %v1910_v16 = vld [vmem:[%s5383_s12 + $0x1d0] sm:$0xff]  ;;  %v1911_v17 = vld [vmem:[%s5383_s12 + $0x1d8] sm:$0xff]  ;;  %v4051_v19 = vpack.c.bf16 %v1893_v13, %v1892_v11  ;;  %v4021_v20 = vpack.c.bf16 %v1879_v15, %v1878_v14  ;;  %v1880_v27 = vld [vmem:[%s5383_s12 + $0xe0] sm:$0xff] }
 0x1b1   : > { %4046 = vmatprep.subr.bf16.mxu1 %v4045_v63  ;;  %v1862_v21 = vld [vmem:[%s5383_s12 + $0x50] sm:$0xff]  ;;  %v1863_v23 = vld [vmem:[%s5383_s12 + $0x58] sm:$0xff]  ;;  %v4053_v25 = vpack.c.bf16 %v1911_v17, %v1910_v16  ;;  %v1881_v28 = vld [vmem:[%s5383_s12 + $0xe8] sm:$0xff] }
 0x1b2   : > { %4016 = vmatpush3.bf16.msra.mxu0 %v4015_v4  ;;  %v1894_v24 = vld [vmem:[%s5383_s12 + $0x150] sm:$0xff]  ;;  %v1895_v26 = vld [vmem:[%s5383_s12 + $0x158] sm:$0xff]  ;;  %v1912_v29 = vld [vmem:[%s5383_s12 + $0x1e0] sm:$0xff]  ;;  %v4023_v31 = vpack.c.bf16 %v1863_v23, %v1862_v21  ;;  %v4025_v35 = vpack.c.bf16 %v1881_v28, %v1880_v27 }
 0x1b3   : > { %4018 = vmatprep.subr.bf16.mxu0 %v4017_v8  ;;  %v1913_v30 = vld [vmem:[%s5383_s12 + $0x1e8] sm:$0xff]  ;;  %v4055_v34 = vpack.c.bf16 %v1895_v26, %v1894_v24  ;;  %v1864_v36 = vld [vmem:[%s5383_s12 + $0x60] sm:$0xff]  ;;  %v1882_v41 = vld [vmem:[%s5383_s12 + $0xf0] sm:$0xff] }
 0x1b4   : > { %4048 = vmatpush3.bf16.msra.mxu1 %v4047_v7  ;;  %v1865_v37 = vld [vmem:[%s5383_s12 + $0x68] sm:$0xff]  ;;  %v1896_v38 = vld [vmem:[%s5383_s12 + $0x160] sm:$0xff]  ;;  %v4057_v39 = vpack.c.bf16 %v1913_v30, %v1912_v29  ;;  %v1883_v42 = vld [vmem:[%s5383_s12 + $0xf8] sm:$0xff] }
 0x1b5   : > { %4050 = vmatprep.subr.bf16.mxu1 %v4049_v12  ;;  %v1897_v40 = vld [vmem:[%s5383_s12 + $0x168] sm:$0xff]  ;;  %v1914_v43 = vld [vmem:[%s5383_s12 + $0x1f0] sm:$0xff]  ;;  %v1915_v44 = vld [vmem:[%s5383_s12 + $0x1f8] sm:$0xff]  ;;  %v4027_v45 = vpack.c.bf16 %v1865_v37, %v1864_v36  ;;  %v4029_v48 = vpack.c.bf16 %v1883_v42, %v1882_v41 }
 0x1b6   : > { %4020 = vmatpush3.bf16.msra.mxu0 %v4019_v18  ;;  %v1846_v46 = vld [vmem:[%s5946_s0 + $0x8] sm:$0xff]  ;;  %v4059_v47 = vpack.c.bf16 %v1897_v40, %v1896_v38  ;;  %v1866_v49 = vld [vmem:[%s5383_s12 + $0x70] sm:$0xff]  ;;  %v1867_v50 = vld [vmem:[%s5383_s12 + $0x78] sm:$0xff]  ;;  %v4061_v52 = vpack.c.bf16 %v1915_v44, %v1914_v43 }
 0x1b7   : > { %4022 = vmatprep.subr.bf16.mxu0 %v4021_v20  ;;  %v1898_v51 = vld [vmem:[%s5383_s12 + $0x170] sm:$0xff]  ;;  %v1899_v53 = vld [vmem:[%s5383_s12 + $0x178] sm:$0xff]  ;;  %v1932_v54 = vld [vmem:[%s5383_s12 + $0x280] sm:$0xff]  ;;  %v2275_v58 = vcombine.high %v1846_v46, %v1846_v46  ;;  %v4031_v59 = vpack.c.bf16 %v1867_v50, %v1866_v49  ;;  %v5475_v5 = vrot.slane %v1846_v46, %v5391_v22 }
 0x1b8   : > { %4052 = vmatpush3.bf16.msra.mxu1 %v4051_v19  ;;  %v1933_v55 = vld [vmem:[%s5383_s12 + $0x288] sm:$0xff]  ;;  %v1964_v56 = vld [vmem:[%s5383_s12 + $0x380] sm:$0xff]  ;;  %v4063_v60 = vpack.c.bf16 %v1899_v53, %v1898_v51  ;;  %v1934_v3 = vld [vmem:[%s5383_s12 + $0x290] sm:$0xff] }
 0x1b9   : > { %4054 = vmatprep.subr.bf16.mxu1 %v4053_v25  ;;  %v1965_v57 = vld [vmem:[%s5383_s12 + $0x388] sm:$0xff]  ;;  %v4065_v61 = vpack.c.bf16 %v1933_v55, %v1932_v54  ;;  %v1916_v62 = vld [vmem:[%s5383_s12 + $0x200] sm:$0xff]  ;;  %v1935_v4 = vld [vmem:[%s5383_s12 + $0x298] sm:$0xff]  ;;  %v5480_v8 = vrot.slane %v2275_v58, %v5391_v22  ;;  %v2290_v19 = vcombine.high %v5475_v5, %v5475_v5 }
 0x1ba   : > { %4024 = vmatpush3.bf16.msra.mxu0 %v4023_v31  ;;  %v1917_v63 = vld [vmem:[%s5383_s12 + $0x208] sm:$0xff]  ;;  %v1948_v0 = vld [vmem:[%s5383_s12 + $0x300] sm:$0xff]  ;;  %v4097_v1 = vpack.c.bf16 %v1965_v57, %v1964_v56  ;;  %v1966_v6 = vld [vmem:[%s5383_s12 + $0x390] sm:$0xff]  ;;  %v4069_v11 = vpack.c.bf16 %v1935_v4, %v1934_v3 }
 0x1bb   : > { %4026 = vmatprep.subr.bf16.mxu0 %v4025_v35  ;;  %v1949_v2 = vld [vmem:[%s5383_s12 + $0x308] sm:$0xff]  ;;  %v1967_v7 = vld [vmem:[%s5383_s12 + $0x398] sm:$0xff]  ;;  %v4067_v9 = vpack.c.bf16 %v1917_v63, %v1916_v62  ;;  %v1918_v12 = vld [vmem:[%s5383_s12 + $0x210] sm:$0xff]  ;;  %v2291_v23 = vcombine.high %v5480_v8, %v5480_v8 }
 0x1bc   : > { %4056 = vmatpush3.bf16.msra.mxu1 %v4055_v34  ;;  %v4099_v10 = vpack.c.bf16 %v1949_v2, %v1948_v0  ;;  %v1919_v13 = vld [vmem:[%s5383_s12 + $0x218] sm:$0xff]  ;;  %v1950_v14 = vld [vmem:[%s5383_s12 + $0x310] sm:$0xff]  ;;  %v4101_v15 = vpack.c.bf16 %v1967_v7, %v1966_v6  ;;  %v1936_v17 = vld [vmem:[%s5383_s12 + $0x2a0] sm:$0xff] }
 0x1bd   : > { %4058 = vmatprep.subr.bf16.mxu1 %v4057_v39  ;;  %v1951_v16 = vld [vmem:[%s5383_s12 + $0x318] sm:$0xff]  ;;  %v1937_v18 = vld [vmem:[%s5383_s12 + $0x2a8] sm:$0xff]  ;;  %v1968_v20 = vld [vmem:[%s5383_s12 + $0x3a0] sm:$0xff]  ;;  %v4071_v24 = vpack.c.bf16 %v1919_v13, %v1918_v12 }
 0x1be   : > { %4028 = vmatpush3.bf16.msra.mxu0 %v4027_v45  ;;  %v1969_v21 = vld [vmem:[%s5383_s12 + $0x3a8] sm:$0xff]  ;;  %v4103_v25 = vpack.c.bf16 %v1951_v16, %v1950_v14  ;;  %v4073_v26 = vpack.c.bf16 %v1937_v18, %v1936_v17  ;;  %v1920_v27 = vld [vmem:[%s5383_s12 + $0x220] sm:$0xff]  ;;  %v1938_v31 = vld [vmem:[%s5383_s12 + $0x2b0] sm:$0xff] }
 0x1bf   : > { %4030 = vmatprep.subr.bf16.mxu0 %v4029_v48  ;;  %v1952_v28 = vld [vmem:[%s5383_s12 + $0x320] sm:$0xff]  ;;  %v4105_v29 = vpack.c.bf16 %v1969_v21, %v1968_v20  ;;  %v1953_v30 = vld [vmem:[%s5383_s12 + $0x328] sm:$0xff]  ;;  %v1939_v34 = vld [vmem:[%s5383_s12 + $0x2b8] sm:$0xff] }
 0x1c0   : > { %4060 = vmatpush3.bf16.msra.mxu1 %v4059_v47  ;;  %v1971_v35 = vld [vmem:[%s5383_s12 + $0x3b8] sm:$0xff]  ;;  %v4107_v37 = vpack.c.bf16 %v1953_v30, %v1952_v28  ;;  %v4077_v38 = vpack.c.bf16 %v1939_v34, %v1938_v31  ;;  %v1922_v39 = vld [vmem:[%s5383_s12 + $0x230] sm:$0xff]  ;;  %v1940_v44 = vld [vmem:[%s5383_s12 + $0x2c0] sm:$0xff] }
 0x1c1   : > { %4062 = vmatprep.subr.bf16.mxu1 %v4061_v52  ;;  %v1923_v40 = vld [vmem:[%s5383_s12 + $0x238] sm:$0xff]  ;;  %v1954_v41 = vld [vmem:[%s5383_s12 + $0x330] sm:$0xff]  ;;  %v1941_v45 = vld [vmem:[%s5383_s12 + $0x2c8] sm:$0xff] }
 0x1c2   : > { %4032 = vmatpush3.bf16.msra.mxu0 %v4031_v59  ;;  %v1955_v43 = vld [vmem:[%s5383_s12 + $0x338] sm:$0xff]  ;;  %v1972_v46 = vld [vmem:[%s5383_s12 + $0x3c0] sm:$0xff]  ;;  %v1973_v47 = vld [vmem:[%s5383_s12 + $0x3c8] sm:$0xff]  ;;  %v4079_v48 = vpack.c.bf16 %v1923_v40, %v1922_v39  ;;  %v4081_v50 = vpack.c.bf16 %v1941_v45, %v1940_v44 }
 0x1c3   : > { %4066 = vmatprep.subr.bf16.mxu0 %v4065_v61  ;;  %v4111_v49 = vpack.c.bf16 %v1955_v43, %v1954_v41  ;;  %v1924_v51 = vld [vmem:[%s5383_s12 + $0x240] sm:$0xff]  ;;  %v1925_v52 = vld [vmem:[%s5383_s12 + $0x248] sm:$0xff]  ;;  %v4113_v54 = vpack.c.bf16 %v1973_v47, %v1972_v46  ;;  %v1942_v56 = vld [vmem:[%s5383_s12 + $0x2d0] sm:$0xff] }
 0x1c4   : > { %4064 = vmatpush3.bf16.msra.mxu1 %v4063_v60  ;;  %v1956_v53 = vld [vmem:[%s5383_s12 + $0x340] sm:$0xff]  ;;  %v1957_v55 = vld [vmem:[%s5383_s12 + $0x348] sm:$0xff]  ;;  %v1943_v57 = vld [vmem:[%s5383_s12 + $0x2d8] sm:$0xff]  ;;  %v4083_v60 = vpack.c.bf16 %v1925_v52, %v1924_v51 }
 0x1c5   : > { %4098 = vmatprep.subr.bf16.mxu1 %v4097_v1  ;;  %2459 = vmatmul.mubr.f32.vlgmr.msra.gmra.mrb[0].mxu0 %v5400_v32  ;;  %v1921_v32 = vld [vmem:[%s5383_s12 + $0x228] sm:$0xff]  ;;  %v1974_v58 = vld [vmem:[%s5383_s12 + $0x3d0] sm:$0xff]  ;;  %v1975_v59 = vld [vmem:[%s5383_s12 + $0x3d8] sm:$0xff]  ;;  %v4115_v61 = vpack.c.bf16 %v1957_v55, %v1956_v53  ;;  %v4085_v62 = vpack.c.bf16 %v1943_v57, %v1942_v56 }
 0x1c6   : > { %4068 = vmatpush3.bf16.msra.mxu0 %v4067_v9  ;;  %2598 = vmatprep.mubr.f32.mxu0 %v2290_v19  ;;  %v4075_v36 = vpack.c.bf16 %v1921_v32, %v1920_v27  ;;  %v1926_v63 = vld [vmem:[%s5383_s12 + $0x250] sm:$0xff]  ;;  %v1927_v0 = vld [vmem:[%s5383_s12 + $0x258] sm:$0xff]  ;;  %v4117_v2 = vpack.c.bf16 %v1975_v59, %v1974_v58  ;;  %v1944_v4 = vld [vmem:[%s5383_s12 + $0x2e0] sm:$0xff] }
 0x1c7   : > { %2529 = vmatmul.mubr.f32.vlgmr.msra.gmra.mrb[0].mxu1 %v5403_v33  ;;  %4070 = vmatprep.subr.bf16.mxu0 %v4069_v11  ;;  %v1970_v33 = vld [vmem:[%s5383_s12 + $0x3b0] sm:$0xff]  ;;  %v1959_v3 = vld [vmem:[%s5383_s12 + $0x358] sm:$0xff]  ;;  %v1945_v6 = vld [vmem:[%s5383_s12 + $0x2e8] sm:$0xff] }
 0x1c8   : > { %4100 = vmatpush3.bf16.msra.mxu1 %v4099_v10  ;;  %2668 = vmatprep.mubr.f32.mxu1 %v2291_v23  ;;  %v4109_v42 = vpack.c.bf16 %v1971_v35, %v1970_v33  ;;  %v1958_v1 = vld [vmem:[%s5383_s12 + $0x350] sm:$0xff]  ;;  %v1976_v7 = vld [vmem:[%s5383_s12 + $0x3e0] sm:$0xff]  ;;  %v1977_v9 = vld [vmem:[%s5383_s12 + $0x3e8] sm:$0xff]  ;;  %v4087_v10 = vpack.c.bf16 %v1927_v0, %v1926_v63  ;;  %v4089_v12 = vpack.c.bf16 %v1945_v6, %v1944_v4 }
 0x1c9   : > { %4102 = vmatprep.subr.bf16.mxu1 %v4101_v15  ;;  %v4119_v11 = vpack.c.bf16 %v1959_v3, %v1958_v1  ;;  %v1928_v13 = vld [vmem:[%s5383_s12 + $0x260] sm:$0xff]  ;;  %v1929_v14 = vld [vmem:[%s5383_s12 + $0x268] sm:$0xff]  ;;  %v4121_v16 = vpack.c.bf16 %v1977_v9, %v1976_v7  ;;  %v1946_v18 = vld [vmem:[%s5383_s12 + $0x2f0] sm:$0xff] }
 0x1ca   : > { %4072 = vmatpush3.bf16.msra.mxu0 %v4071_v24  ;;  %v1960_v15 = vld [vmem:[%s5383_s12 + $0x360] sm:$0xff]  ;;  %v1961_v17 = vld [vmem:[%s5383_s12 + $0x368] sm:$0xff]  ;;  %v1947_v19 = vld [vmem:[%s5383_s12 + $0x2f8] sm:$0xff]  ;;  %v4091_v23 = vpack.c.bf16 %v1929_v14, %v1928_v13 }
 0x1cb   : > { %4074 = vmatprep.subr.bf16.mxu0 %v4073_v26  ;;  %v1978_v20 = vld [vmem:[%s5383_s12 + $0x3f0] sm:$0xff]  ;;  %v1979_v21 = vld [vmem:[%s5383_s12 + $0x3f8] sm:$0xff]  ;;  %v4093_v26 = vpack.c.bf16 %v1947_v19, %v1946_v18  ;;  %v1996_v31 = vld [vmem:[%s5383_s12 + $0x480] sm:$0xff] }
 0x1cc   : > { %4104 = vmatpush3.bf16.msra.mxu1 %v4103_v25  ;;  %v1847_v24 = vld [vmem:[%s5946_s0 + $0x10] sm:$0xff]  ;;  %v4123_v25 = vpack.c.bf16 %v1961_v17, %v1960_v15  ;;  %v1931_v32 = vld [vmem:[%s5383_s12 + $0x278] sm:$0xff]  ;;  %v1997_v34 = vld [vmem:[%s5383_s12 + $0x488] sm:$0xff] }
 0x1cd   : > { %4106 = vmatprep.subr.bf16.mxu1 %v4105_v29  ;;  %v1930_v27 = vld [vmem:[%s5383_s12 + $0x270] sm:$0xff]  ;;  %v4125_v29 = vpack.c.bf16 %v1979_v21, %v1978_v20  ;;  %v1963_v30 = vld [vmem:[%s5383_s12 + $0x378] sm:$0xff]  ;;  %v2028_v33 = vld [vmem:[%s5383_s12 + $0x580] sm:$0xff]  ;;  %v4129_v39 = vpack.c.bf16 %v1997_v34, %v1996_v31  ;;  %v5554_v47 = vrot.slane %v1847_v24, %v5391_v22 }
 0x1ce   : > { %4076 = vmatpush3.bf16.msra.mxu0 %v4075_v36  ;;  %v1962_v28 = vld [vmem:[%s5383_s12 + $0x370] sm:$0xff]  ;;  %v2029_v35 = vld [vmem:[%s5383_s12 + $0x588] sm:$0xff]  ;;  %v2292_v36 = vcombine.high %v1847_v24, %v1847_v24  ;;  %v1980_v40 = vld [vmem:[%s5383_s12 + $0x400] sm:$0xff] }
 0x1cf   : > { %4078 = vmatprep.subr.bf16.mxu0 %v4077_v38  ;;  %v4127_v38 = vpack.c.bf16 %v1963_v30, %v1962_v28  ;;  %v1981_v41 = vld [vmem:[%s5383_s12 + $0x408] sm:$0xff]  ;;  %v4161_v43 = vpack.c.bf16 %v2029_v35, %v2028_v33  ;;  %v1998_v45 = vld [vmem:[%s5383_s12 + $0x490] sm:$0xff]  ;;  %v1999_v46 = vld [vmem:[%s5383_s12 + $0x498] sm:$0xff] }
 0x1d0   : > { %4108 = vmatpush3.bf16.msra.mxu1 %v4107_v37  ;;  %v4095_v37 = vpack.c.bf16 %v1931_v32, %v1930_v27  ;;  %v2013_v44 = vld [vmem:[%s5383_s12 + $0x508] sm:$0xff]  ;;  %v4131_v51 = vpack.c.bf16 %v1981_v41, %v1980_v40  ;;  %v4133_v53 = vpack.c.bf16 %v1999_v46, %v1998_v45  ;;  %v1983_v55 = vld [vmem:[%s5383_s12 + $0x418] sm:$0xff]  ;;  %v2014_v56 = vld [vmem:[%s5383_s12 + $0x510] sm:$0xff] }
 0x1d1   : > { %4110 = vmatprep.subr.bf16.mxu1 %v4109_v42  ;;  %v2012_v42 = vld [vmem:[%s5383_s12 + $0x500] sm:$0xff]  ;;  %v2015_v58 = vld [vmem:[%s5383_s12 + $0x518] sm:$0xff]  ;;  %v2033_v63 = vld [vmem:[%s5383_s12 + $0x5a8] sm:$0xff] }
 0x1d2   : > { %4080 = vmatpush3.bf16.msra.mxu0 %v4079_v48  ;;  %v2030_v48 = vld [vmem:[%s5383_s12 + $0x590] sm:$0xff]  ;;  %v4163_v52 = vpack.c.bf16 %v2013_v44, %v2012_v42  ;;  %v2000_v59 = vld [vmem:[%s5383_s12 + $0x4a0] sm:$0xff]  ;;  %v2017_v9 = vld [vmem:[%s5383_s12 + $0x528] sm:$0xff] }
 0x1d3   : > { %4082 = vmatprep.subr.bf16.mxu0 %v4081_v50  ;;  %v5559_v50 = vrot.slane %v2292_v36, %v5391_v22  ;;  %v1984_v4 = vld [vmem:[%s5383_s12 + $0x420] sm:$0xff]  ;;  %v1987_v17 = vld [vmem:[%s5383_s12 + $0x438] sm:$0xff]  ;;  %v2018_v18 = vld [vmem:[%s5383_s12 + $0x530] sm:$0xff] }
 0x1d4   : > { %4112 = vmatpush3.bf16.msra.mxu1 %v4111_v49  ;;  %v2031_v49 = vld [vmem:[%s5383_s12 + $0x598] sm:$0xff]  ;;  %v2016_v6 = vld [vmem:[%s5383_s12 + $0x520] sm:$0xff]  ;;  %v2021_v34 = vld [vmem:[%s5383_s12 + $0x548] sm:$0xff] }
 0x1d5   : > { %4114 = vmatprep.subr.bf16.mxu1 %v4113_v54  ;;  %v1982_v54 = vld [vmem:[%s5383_s12 + $0x410] sm:$0xff]  ;;  %v4165_v57 = vpack.c.bf16 %v2031_v49, %v2030_v48  ;;  %v2308_v0 = vcombine.high %v5559_v50, %v5559_v50  ;;  %v4171_v14 = vpack.c.bf16 %v2017_v9, %v2016_v6  ;;  %v2019_v20 = vld [vmem:[%s5383_s12 + $0x538] sm:$0xff]  ;;  %v2004_v21 = vld [vmem:[%s5383_s12 + $0x4c0] sm:$0xff] }
 0x1d6   : > { %4084 = vmatpush3.bf16.msra.mxu0 %v4083_v60  ;;  %v2001_v60 = vld [vmem:[%s5383_s12 + $0x4a8] sm:$0xff]  ;;  %v4135_v1 = vpack.c.bf16 %v1983_v55, %v1982_v54  ;;  %v2036_v24 = vld [vmem:[%s5383_s12 + $0x5c0] sm:$0xff]  ;;  %v4175_v27 = vpack.c.bf16 %v2019_v20, %v2018_v18  ;;  %v2006_v33 = vld [vmem:[%s5383_s12 + $0x4d0] sm:$0xff] }
 0x1d7   : > { %4086 = vmatprep.subr.bf16.mxu0 %v4085_v62  ;;  %v2032_v62 = vld [vmem:[%s5383_s12 + $0x5a0] sm:$0xff]  ;;  %v4137_v3 = vpack.c.bf16 %v2001_v60, %v2000_v59  ;;  %v2007_v35 = vld [vmem:[%s5383_s12 + $0x4d8] sm:$0xff]  ;;  %v2038_v36 = vld [vmem:[%s5383_s12 + $0x5d0] sm:$0xff] }
 0x1d8   : > { %4116 = vmatpush3.bf16.msra.mxu1 %v4115_v61  ;;  %v2307_v61 = vcombine.high %v5554_v47, %v5554_v47  ;;  %v4169_v7 = vpack.c.bf16 %v2033_v63, %v2032_v62  ;;  %v1988_v28 = vld [vmem:[%s5383_s12 + $0x440] sm:$0xff]  ;;  %v4149_v40 = vpack.c.bf16 %v2007_v35, %v2006_v33  ;;  %v1990_v41 = vld [vmem:[%s5383_s12 + $0x450] sm:$0xff]  ;;  %v1991_v42 = vld [vmem:[%s5383_s12 + $0x458] sm:$0xff] }
 0x1d9   : > { %4118 = vmatprep.subr.bf16.mxu1 %v4117_v2  ;;  %v4167_v2 = vpack.c.bf16 %v2015_v58, %v2014_v56  ;;  %v2020_v30 = vld [vmem:[%s5383_s12 + $0x540] sm:$0xff]  ;;  %v2023_v45 = vld [vmem:[%s5383_s12 + $0x558] sm:$0xff]  ;;  %v2009_v48 = vld [vmem:[%s5383_s12 + $0x4e8] sm:$0xff] }
 0x1da   : > { %4088 = vmatpush3.bf16.msra.mxu0 %v4087_v10  ;;  %v2002_v10 = vld [vmem:[%s5383_s12 + $0x4b0] sm:$0xff]  ;;  %v2008_v46 = vld [vmem:[%s5383_s12 + $0x4e0] sm:$0xff]  ;;  %v1993_v56 = vld [vmem:[%s5383_s12 + $0x468] sm:$0xff] }
 0x1db   : > { %4090 = vmatprep.subr.bf16.mxu0 %v4089_v12  ;;  %v2035_v12 = vld [vmem:[%s5383_s12 + $0x5b8] sm:$0xff]  ;;  %v2040_v49 = vld [vmem:[%s5383_s12 + $0x5e0] sm:$0xff]  ;;  %v4153_v54 = vpack.c.bf16 %v2009_v48, %v2008_v46  ;;  %v2025_v59 = vld [vmem:[%s5383_s12 + $0x568] sm:$0xff] }
 0x1dc   : > { %4120 = vmatpush3.bf16.msra.mxu1 %v4119_v11  ;;  %v2003_v11 = vld [vmem:[%s5383_s12 + $0x4b8] sm:$0xff]  ;;  %v1992_v55 = vld [vmem:[%s5383_s12 + $0x460] sm:$0xff]  ;;  %v2010_v60 = vld [vmem:[%s5383_s12 + $0x4f0] sm:$0xff] }
 0x1dd   : > { %4122 = vmatprep.subr.bf16.mxu1 %v4121_v16  ;;  %v4141_v15 = vpack.c.bf16 %v2003_v11, %v2002_v10  ;;  %v1986_v16 = vld [vmem:[%s5383_s12 + $0x430] sm:$0xff]  ;;  %v2043_v63 = vld [vmem:[%s5383_s12 + $0x5f8] sm:$0xff]  ;;  %v2060_v10 = vld [vmem:[%s5383_s12 + $0x680] sm:$0xff] }
 0x1de   : > { %4092 = vmatpush3.bf16.msra.mxu0 %v4091_v23  ;;  %v2005_v23 = vld [vmem:[%s5383_s12 + $0x4c8] sm:$0xff]  ;;  %v2042_v62 = vld [vmem:[%s5383_s12 + $0x5f0] sm:$0xff]  ;;  %v2027_v9 = vld [vmem:[%s5383_s12 + $0x578] sm:$0xff] }
 0x1df   : > { %4094 = vmatprep.subr.bf16.mxu0 %v4093_v26  ;;  %v4143_v26 = vpack.c.bf16 %v1987_v17, %v1986_v16  ;;  %v4145_v32 = vpack.c.bf16 %v2005_v23, %v2004_v21  ;;  %v2026_v6 = vld [vmem:[%s5383_s12 + $0x570] sm:$0xff]  ;;  %v2061_v11 = vld [vmem:[%s5383_s12 + $0x688] sm:$0xff]  ;;  %v2044_v17 = vld [vmem:[%s5383_s12 + $0x600] sm:$0xff] }
 0x1e0   : > { %4124 = vmatpush3.bf16.msra.mxu1 %v4123_v25  ;;  %v2037_v25 = vld [vmem:[%s5383_s12 + $0x5c8] sm:$0xff]  ;;  %v4193_v16 = vpack.c.bf16 %v2061_v11, %v2060_v10  ;;  %v2062_v23 = vld [vmem:[%s5383_s12 + $0x690] sm:$0xff]  ;;  %v2048_v46 = vld [vmem:[%s5383_s12 + $0x620] sm:$0xff] }
 0x1e1   : > { %4126 = vmatprep.subr.bf16.mxu1 %v4125_v29  ;;  %v1989_v29 = vld [vmem:[%s5383_s12 + $0x448] sm:$0xff]  ;;  %v4177_v31 = vpack.c.bf16 %v2037_v25, %v2036_v24  ;;  %v2063_v24 = vld [vmem:[%s5383_s12 + $0x698] sm:$0xff]  ;;  %v2078_v33 = vld [vmem:[%s5383_s12 + $0x710] sm:$0xff] }
 0x1e2   : > { %4096 = vmatpush3.bf16.msra.mxu0 %v4095_v37  ;;  %v2039_v37 = vld [vmem:[%s5383_s12 + $0x5d8] sm:$0xff]  ;;  %v2045_v18 = vld [vmem:[%s5383_s12 + $0x608] sm:$0xff]  ;;  %v2080_v48 = vld [vmem:[%s5383_s12 + $0x720] sm:$0xff] }
 0x1e3   : > { %4130 = vmatprep.subr.bf16.mxu0 %v4129_v39  ;;  %v4179_v39 = vpack.c.bf16 %v2021_v34, %v2020_v30  ;;  %v4181_v44 = vpack.c.bf16 %v2039_v37, %v2038_v36  ;;  %v2077_v21 = vld [vmem:[%s5383_s12 + $0x708] sm:$0xff]  ;;  %v4197_v30 = vpack.c.bf16 %v2063_v24, %v2062_v23  ;;  %v2047_v34 = vld [vmem:[%s5383_s12 + $0x618] sm:$0xff]  ;;  %v2064_v37 = vld [vmem:[%s5383_s12 + $0x6a0] sm:$0xff] }
 0x1e4   : > { %4128 = vmatpush3.bf16.msra.mxu1 %v4127_v38  ;;  %v4147_v38 = vpack.c.bf16 %v1989_v29, %v1988_v28  ;;  %v4195_v28 = vpack.c.bf16 %v2045_v18, %v2044_v17  ;;  %v2079_v36 = vld [vmem:[%s5383_s12 + $0x718] sm:$0xff]  ;;  %v2085_v11 = vld [vmem:[%s5383_s12 + $0x748] sm:$0xff]  ;;  %v2054_v18 = vld [vmem:[%s5383_s12 + $0x650] sm:$0xff] }
 0x1e5   : > { %4162 = vmatprep.subr.bf16.mxu1 %v4161_v43  ;;  %2599 = vmatmul.mubr.f32.vlgmr.msra.gmra.mrb[2].mxu0 %v5475_v5  ;;  %v1985_v5 = vld [vmem:[%s5383_s12 + $0x428] sm:$0xff]  ;;  %v2022_v43 = vld [vmem:[%s5383_s12 + $0x550] sm:$0xff]  ;;  %v2087_v23 = vld [vmem:[%s5383_s12 + $0x758] sm:$0xff] }
 0x1e6   : > { %4132 = vmatpush3.bf16.msra.mxu0 %v4131_v51  ;;  %2738 = vmatprep.mubr.f32.mxu0 %v2307_v61  ;;  %v4139_v13 = vpack.c.bf16 %v1985_v5, %v1984_v4  ;;  %v2041_v51 = vld [vmem:[%s5383_s12 + $0x5e8] sm:$0xff]  ;;  %v2011_v61 = vld [vmem:[%s5383_s12 + $0x4f8] sm:$0xff]  ;;  %v1994_v4 = vld [vmem:[%s5383_s12 + $0x470] sm:$0xff] }
 0x1e7   : > { %2669 = vmatmul.mubr.f32.vlgmr.msra.gmra.mrb[2].mxu1 %v5480_v8  ;;  %4134 = vmatprep.subr.bf16.mxu0 %v4133_v53  ;;  %v2034_v8 = vld [vmem:[%s5383_s12 + $0x5b0] sm:$0xff]  ;;  %v4183_v53 = vpack.c.bf16 %v2023_v45, %v2022_v43  ;;  %v4185_v58 = vpack.c.bf16 %v2041_v51, %v2040_v49  ;;  %v1995_v5 = vld [vmem:[%s5383_s12 + $0x478] sm:$0xff]  ;;  %v2081_v51 = vld [vmem:[%s5383_s12 + $0x728] sm:$0xff] }
 0x1e8   : > { %4164 = vmatpush3.bf16.msra.mxu1 %v4163_v52  ;;  %2808 = vmatprep.mubr.f32.mxu1 %v2308_v0  ;;  %v4173_v19 = vpack.c.bf16 %v2035_v12, %v2034_v8  ;;  %v4151_v52 = vpack.c.bf16 %v1991_v42, %v1990_v41  ;;  %v4155_v0 = vpack.c.bf16 %v1993_v56, %v1992_v55  ;;  %v2092_v8 = vld [vmem:[%s5383_s12 + $0x780] sm:$0xff]  ;;  %v2093_v12 = vld [vmem:[%s5383_s12 + $0x788] sm:$0xff] }
 0x1e9   : > { %4166 = vmatprep.subr.bf16.mxu1 %v4165_v57  ;;  %v2024_v57 = vld [vmem:[%s5383_s12 + $0x560] sm:$0xff]  ;;  %v4225_v20 = vpack.c.bf16 %v2093_v12, %v2092_v8  ;;  %v2097_v41 = vld [vmem:[%s5383_s12 + $0x7a8] sm:$0xff]  ;;  %v4235_v56 = vpack.c.bf16 %v2081_v51, %v2080_v48  ;;  %v2070_v8 = vld [vmem:[%s5383_s12 + $0x6d0] sm:$0xff] }
 0x1ea   : > { %4136 = vmatpush3.bf16.msra.mxu0 %v4135_v1  ;;  %v1848_v1 = vld [vmem:[%s5946_s0 + $0x18] sm:$0xff]  ;;  %v2072_v24 = vld [vmem:[%s5383_s12 + $0x6e0] sm:$0xff]  ;;  %v2090_v48 = vld [vmem:[%s5383_s12 + $0x770] sm:$0xff] }
 0x1eb   : > { %4138 = vmatprep.subr.bf16.mxu0 %v4137_v3  ;;  %v4157_v3 = vpack.c.bf16 %v2011_v61, %v2010_v60  ;;  %v5633_v25 = vrot.slane %v1848_v1, %v5391_v22  ;;  %v2082_v60 = vld [vmem:[%s5383_s12 + $0x730] sm:$0xff]  ;;  %v2071_v12 = vld [vmem:[%s5383_s12 + $0x6d8] sm:$0xff] }
 0x1ec   : > { %4168 = vmatpush3.bf16.msra.mxu1 %v4167_v2  ;;  %v4187_v2 = vpack.c.bf16 %v2025_v59, %v2024_v57  ;;  %v2051_v59 = vld [vmem:[%s5383_s12 + $0x638] sm:$0xff]  ;;  %v4213_v17 = vpack.c.bf16 %v2071_v12, %v2070_v8  ;;  %v2142_v8 = vld [vmem:[%s5383_s12 + $0x910] sm:$0xff] }
 0x1ed   : > { %4170 = vmatprep.subr.bf16.mxu1 %v4169_v7  ;;  %v4189_v7 = vpack.c.bf16 %v2043_v63, %v2042_v62  ;;  %v2083_v62 = vld [vmem:[%s5383_s12 + $0x738] sm:$0xff]  ;;  %v2068_v63 = vld [vmem:[%s5383_s12 + $0x6c0] sm:$0xff] }
 0x1ee   : > { %4140 = vmatpush3.bf16.msra.mxu0 %v4139_v13  ;;  %v2309_v13 = vcombine.high %v1848_v1, %v1848_v1  ;;  %v2100_v1 = vld [vmem:[%s5383_s12 + $0x7c0] sm:$0xff]  ;;  %v2091_v51 = vld [vmem:[%s5383_s12 + $0x778] sm:$0xff] }
 0x1ef   : > { %4142 = vmatprep.subr.bf16.mxu0 %v4141_v15  ;;  %v4191_v15 = vpack.c.bf16 %v2027_v9, %v2026_v6  ;;  %v2052_v6 = vld [vmem:[%s5383_s12 + $0x640] sm:$0xff] }
 0x1f0   : > { %4172 = vmatpush3.bf16.msra.mxu1 %v4171_v14  ;;  %v4159_v14 = vpack.c.bf16 %v1995_v5, %v1994_v4  ;;  %v4239_v4 = vpack.c.bf16 %v2083_v62, %v2082_v60  ;;  %v2084_v9 = vld [vmem:[%s5383_s12 + $0x740] sm:$0xff]  ;;  %v2109_v60 = vld [vmem:[%s5383_s12 + $0x808] sm:$0xff] }
 0x1f1   : > { %4174 = vmatprep.subr.bf16.mxu1 %v4173_v19  ;;  %v2076_v19 = vld [vmem:[%s5383_s12 + $0x700] sm:$0xff] }
 0x1f2   : > { %4144 = vmatpush3.bf16.msra.mxu0 %v4143_v26  ;;  %v2094_v26 = vld [vmem:[%s5383_s12 + $0x790] sm:$0xff]  ;;  %v4227_v29 = vpack.c.bf16 %v2077_v21, %v2076_v19  ;;  %v2055_v19 = vld [vmem:[%s5383_s12 + $0x658] sm:$0xff] }
 0x1f3   : > { %4146 = vmatprep.subr.bf16.mxu0 %v4145_v32  ;;  %v5638_v32 = vrot.slane %v2309_v13, %v5391_v22  ;;  %v2102_v13 = vld [vmem:[%s5383_s12 + $0x7d0] sm:$0xff] }
 0x1f4   : > { %4176 = vmatpush3.bf16.msra.mxu1 %v4175_v27  ;;  %v2095_v27 = vld [vmem:[%s5383_s12 + $0x798] sm:$0xff] }
 0x1f5   : > { %4178 = vmatprep.subr.bf16.mxu1 %v4177_v31  ;;  %v2046_v31 = vld [vmem:[%s5383_s12 + $0x610] sm:$0xff]  ;;  %v4229_v35 = vpack.c.bf16 %v2095_v27, %v2094_v26  ;;  %v2325_v42 = vcombine.high %v5638_v32, %v5638_v32  ;;  %v2073_v26 = vld [vmem:[%s5383_s12 + $0x6e8] sm:$0xff]  ;;  %v2104_v27 = vld [vmem:[%s5383_s12 + $0x7e0] sm:$0xff] }
 0x1f6   : > { %4148 = vmatpush3.bf16.msra.mxu0 %v4147_v38  ;;  %v2065_v38 = vld [vmem:[%s5383_s12 + $0x6a8] sm:$0xff]  ;;  %v4199_v43 = vpack.c.bf16 %v2047_v34, %v2046_v31  ;;  %v4217_v31 = vpack.c.bf16 %v2073_v26, %v2072_v24  ;;  %v2056_v34 = vld [vmem:[%s5383_s12 + $0x660] sm:$0xff] }
 0x1f7   : > { %4150 = vmatprep.subr.bf16.mxu0 %v4149_v40  ;;  %v2096_v40 = vld [vmem:[%s5383_s12 + $0x7a0] sm:$0xff]  ;;  %v4201_v45 = vpack.c.bf16 %v2065_v38, %v2064_v37  ;;  %v2089_v37 = vld [vmem:[%s5383_s12 + $0x768] sm:$0xff]  ;;  %v2074_v38 = vld [vmem:[%s5383_s12 + $0x6f0] sm:$0xff] }
 0x1f8   : > { %4180 = vmatpush3.bf16.msra.mxu1 %v4179_v39  ;;  %v2324_v39 = vcombine.high %v5633_v25, %v5633_v25  ;;  %v4233_v49 = vpack.c.bf16 %v2097_v41, %v2096_v40  ;;  %v2106_v40 = vld [vmem:[%s5383_s12 + $0x7f0] sm:$0xff]  ;;  %v2107_v41 = vld [vmem:[%s5383_s12 + $0x7f8] sm:$0xff]  ;;  %v2112_v24 = vld [vmem:[%s5383_s12 + $0x820] sm:$0xff] }
 0x1f9   : > { %4182 = vmatprep.subr.bf16.mxu1 %v4181_v44  ;;  %v4231_v44 = vpack.c.bf16 %v2079_v36, %v2078_v33  ;;  %v2057_v33 = vld [vmem:[%s5383_s12 + $0x668] sm:$0xff]  ;;  %v2144_v26 = vld [vmem:[%s5383_s12 + $0x920] sm:$0xff] }
 0x1fa   : > { %4152 = vmatpush3.bf16.msra.mxu0 %v4151_v52  ;;  %v2066_v52 = vld [vmem:[%s5383_s12 + $0x6b0] sm:$0xff] }
 0x1fb   : > { %4154 = vmatprep.subr.bf16.mxu0 %v4153_v54  ;;  %v2099_v54 = vld [vmem:[%s5383_s12 + $0x7b8] sm:$0xff] }
 0x1fc   : > { %4184 = vmatpush3.bf16.msra.mxu1 %v4183_v53  ;;  %v2067_v53 = vld [vmem:[%s5383_s12 + $0x6b8] sm:$0xff] }
 0x1fd   : > { %4186 = vmatprep.subr.bf16.mxu1 %v4185_v58  ;;  %v4205_v57 = vpack.c.bf16 %v2067_v53, %v2066_v52  ;;  %v2050_v58 = vld [vmem:[%s5383_s12 + $0x630] sm:$0xff]  ;;  %v2124_v52 = vld [vmem:[%s5383_s12 + $0x880] sm:$0xff]  ;;  %v2125_v53 = vld [vmem:[%s5383_s12 + $0x888] sm:$0xff] }
 0x1fe   : > { %4156 = vmatpush3.bf16.msra.mxu0 %v4155_v0  ;;  %v2069_v0 = vld [vmem:[%s5383_s12 + $0x6c8] sm:$0xff] }
 0x1ff   : > { %4158 = vmatprep.subr.bf16.mxu0 %v4157_v3  ;;  %v4207_v3 = vpack.c.bf16 %v2051_v59, %v2050_v58  ;;  %v4209_v5 = vpack.c.bf16 %v2069_v0, %v2068_v63  ;;  %v4257_v58 = vpack.c.bf16 %v2125_v53, %v2124_v52  ;;  %v2108_v59 = vld [vmem:[%s5383_s12 + $0x800] sm:$0xff]  ;;  %v2141_v63 = vld [vmem:[%s5383_s12 + $0x908] sm:$0xff]  ;;  %v2126_v0 = vld [vmem:[%s5383_s12 + $0x890] sm:$0xff] }
 0x200   : > { %4188 = vmatpush3.bf16.msra.mxu1 %v4187_v2  ;;  %v2101_v2 = vld [vmem:[%s5383_s12 + $0x7c8] sm:$0xff] }
 0x201   : > { %4190 = vmatprep.subr.bf16.mxu1 %v4189_v7  ;;  %v2053_v7 = vld [vmem:[%s5383_s12 + $0x648] sm:$0xff]  ;;  %v4241_v10 = vpack.c.bf16 %v2101_v2, %v2100_v1  ;;  %v2127_v1 = vld [vmem:[%s5383_s12 + $0x898] sm:$0xff] }
 0x202   : > { %4160 = vmatpush3.bf16.msra.mxu0 %v4159_v14  ;;  %v2103_v14 = vld [vmem:[%s5383_s12 + $0x7d8] sm:$0xff]  ;;  %v2149_v53 = vld [vmem:[%s5383_s12 + $0x948] sm:$0xff] }
 0x203   : > { %4194 = vmatprep.subr.bf16.mxu0 %v4193_v16  ;;  %v4243_v16 = vpack.c.bf16 %v2085_v11, %v2084_v9  ;;  %v4245_v21 = vpack.c.bf16 %v2103_v14, %v2102_v13  ;;  %v4261_v9 = vpack.c.bf16 %v2127_v1, %v2126_v0  ;;  %v2111_v11 = vld [vmem:[%s5383_s12 + $0x818] sm:$0xff]  ;;  %v2128_v14 = vld [vmem:[%s5383_s12 + $0x8a0] sm:$0xff] }
 0x204   : > { %4192 = vmatpush3.bf16.msra.mxu1 %v4191_v15  ;;  %v4211_v15 = vpack.c.bf16 %v2053_v7, %v2052_v6  ;;  %v4259_v6 = vpack.c.bf16 %v2109_v60, %v2108_v59  ;;  %v2143_v13 = vld [vmem:[%s5383_s12 + $0x918] sm:$0xff]  ;;  %v2118_v60 = vld [vmem:[%s5383_s12 + $0x850] sm:$0xff]  ;;  %v2136_v1 = vld [vmem:[%s5383_s12 + $0x8e0] sm:$0xff] }
 0x205   : > { %4226 = vmatprep.subr.bf16.mxu1 %v4225_v20  ;;  %2739 = vmatmul.mubr.f32.vlgmr.msra.gmra.mrb[4].mxu0 %v5554_v47  ;;  %v2049_v47 = vld [vmem:[%s5383_s12 + $0x628] sm:$0xff]  ;;  %v2086_v20 = vld [vmem:[%s5383_s12 + $0x750] sm:$0xff]  ;;  %v2151_v0 = vld [vmem:[%s5383_s12 + $0x958] sm:$0xff] }
 0x206   : > { %4196 = vmatpush3.bf16.msra.mxu0 %v4195_v28  ;;  %2878 = vmatprep.mubr.f32.mxu0 %v2324_v39  ;;  %v4203_v55 = vpack.c.bf16 %v2049_v47, %v2048_v46  ;;  %v2105_v28 = vld [vmem:[%s5383_s12 + $0x7e8] sm:$0xff]  ;;  %v2075_v39 = vld [vmem:[%s5383_s12 + $0x6f8] sm:$0xff]  ;;  %v2058_v46 = vld [vmem:[%s5383_s12 + $0x670] sm:$0xff] }
 0x207   : > { %2809 = vmatmul.mubr.f32.vlgmr.msra.gmra.mrb[4].mxu1 %v5559_v50  ;;  %4198 = vmatprep.subr.bf16.mxu0 %v4197_v30  ;;  %v2098_v50 = vld [vmem:[%s5383_s12 + $0x7b0] sm:$0xff]  ;;  %v4247_v30 = vpack.c.bf16 %v2087_v23, %v2086_v20  ;;  %v4249_v36 = vpack.c.bf16 %v2105_v28, %v2104_v27  ;;  %v2059_v47 = vld [vmem:[%s5383_s12 + $0x678] sm:$0xff]  ;;  %v2145_v28 = vld [vmem:[%s5383_s12 + $0x928] sm:$0xff] }
 0x208   : > { %4228 = vmatpush3.bf16.msra.mxu1 %v4227_v29  ;;  %2948 = vmatprep.mubr.f32.mxu1 %v2325_v42  ;;  %v4237_v61 = vpack.c.bf16 %v2099_v54, %v2098_v50  ;;  %v4215_v29 = vpack.c.bf16 %v2055_v19, %v2054_v18  ;;  %v4219_v42 = vpack.c.bf16 %v2057_v33, %v2056_v34  ;;  %v2156_v50 = vld [vmem:[%s5383_s12 + $0x980] sm:$0xff]  ;;  %v2157_v54 = vld [vmem:[%s5383_s12 + $0x988] sm:$0xff] }
 0x209   : > { %4230 = vmatprep.subr.bf16.mxu1 %v4229_v35  ;;  %v2088_v35 = vld [vmem:[%s5383_s12 + $0x760] sm:$0xff]  ;;  %v4289_v62 = vpack.c.bf16 %v2157_v54, %v2156_v50  ;;  %v2161_v18 = vld [vmem:[%s5383_s12 + $0x9a8] sm:$0xff]  ;;  %v4299_v33 = vpack.c.bf16 %v2145_v28, %v2144_v26  ;;  %v2134_v50 = vld [vmem:[%s5383_s12 + $0x8d0] sm:$0xff] }
 0x20a   : > { %4200 = vmatpush3.bf16.msra.mxu0 %v4199_v43  ;;  %v1849_v43 = vld [vmem:[%s5946_s0 + $0x20] sm:$0xff]  ;;  %v2135_v54 = vld [vmem:[%s5383_s12 + $0x8d8] sm:$0xff]  ;;  %v2154_v26 = vld [vmem:[%s5383_s12 + $0x970] sm:$0xff] }
 0x20b   : > { %4202 = vmatprep.subr.bf16.mxu0 %v4201_v45  ;;  %v4221_v45 = vpack.c.bf16 %v2075_v39, %v2074_v38  ;;  %v5712_v2 = vrot.slane %v1849_v43, %v5391_v22  ;;  %v2146_v38 = vld [vmem:[%s5383_s12 + $0x930] sm:$0xff]  ;;  %v4277_v59 = vpack.c.bf16 %v2135_v54, %v2134_v50  ;;  %v2155_v28 = vld [vmem:[%s5383_s12 + $0x978] sm:$0xff] }
 0x20c   : > { %4232 = vmatpush3.bf16.msra.mxu1 %v4231_v44  ;;  %v4251_v44 = vpack.c.bf16 %v2089_v37, %v2088_v35  ;;  %v2115_v37 = vld [vmem:[%s5383_s12 + $0x838] sm:$0xff]  ;;  %v2206_v50 = vld [vmem:[%s5383_s12 + $0xb10] sm:$0xff] }
 0x20d   : > { %4234 = vmatprep.subr.bf16.mxu1 %v4233_v49  ;;  %v4253_v49 = vpack.c.bf16 %v2107_v41, %v2106_v40  ;;  %v2147_v40 = vld [vmem:[%s5383_s12 + $0x938] sm:$0xff]  ;;  %v2132_v41 = vld [vmem:[%s5383_s12 + $0x8c0] sm:$0xff] }
 0x20e   : > { %4204 = vmatpush3.bf16.msra.mxu0 %v4203_v55  ;;  %v2326_v55 = vcombine.high %v1849_v43, %v1849_v43  ;;  %v2164_v43 = vld [vmem:[%s5383_s12 + $0x9c0] sm:$0xff] }
 0x20f   : > { %4206 = vmatprep.subr.bf16.mxu0 %v4205_v57  ;;  %v4255_v57 = vpack.c.bf16 %v2091_v51, %v2090_v48  ;;  %v2116_v48 = vld [vmem:[%s5383_s12 + $0x840] sm:$0xff] }
 0x210   : > { %4236 = vmatpush3.bf16.msra.mxu1 %v4235_v56  ;;  %v4223_v56 = vpack.c.bf16 %v2059_v47, %v2058_v46  ;;  %v4303_v46 = vpack.c.bf16 %v2147_v40, %v2146_v38  ;;  %v2148_v51 = vld [vmem:[%s5383_s12 + $0x940] sm:$0xff]  ;;  %v2173_v38 = vld [vmem:[%s5383_s12 + $0xa08] sm:$0xff] }
 0x211   : > { %4238 = vmatprep.subr.bf16.mxu1 %v4237_v61  ;;  %v2140_v61 = vld [vmem:[%s5383_s12 + $0x900] sm:$0xff] }
 0x212   : > { %4208 = vmatpush3.bf16.msra.mxu0 %v4207_v3  ;;  %v2158_v3 = vld [vmem:[%s5383_s12 + $0x990] sm:$0xff]  ;;  %v4291_v7 = vpack.c.bf16 %v2141_v63, %v2140_v61  ;;  %v2119_v61 = vld [vmem:[%s5383_s12 + $0x858] sm:$0xff] }
 0x213   : > { %4210 = vmatprep.subr.bf16.mxu0 %v4209_v5  ;;  %v5717_v5 = vrot.slane %v2326_v55, %v5391_v22  ;;  %v2166_v55 = vld [vmem:[%s5383_s12 + $0x9d0] sm:$0xff] }
 0x214   : > { %4240 = vmatpush3.bf16.msra.mxu1 %v4239_v4  ;;  %v2159_v4 = vld [vmem:[%s5383_s12 + $0x998] sm:$0xff] }
 0x215   : > { %4242 = vmatprep.subr.bf16.mxu1 %v4241_v10  ;;  %v2110_v10 = vld [vmem:[%s5383_s12 + $0x810] sm:$0xff]  ;;  %v4293_v12 = vpack.c.bf16 %v2159_v4, %v2158_v3  ;;  %v2342_v19 = vcombine.high %v5717_v5, %v5717_v5  ;;  %v2137_v3 = vld [vmem:[%s5383_s12 + $0x8e8] sm:$0xff]  ;;  %v2168_v4 = vld [vmem:[%s5383_s12 + $0x9e0] sm:$0xff] }
 0x216   : > { %4212 = vmatpush3.bf16.msra.mxu0 %v4211_v15  ;;  %v2129_v15 = vld [vmem:[%s5383_s12 + $0x8a8] sm:$0xff]  ;;  %v4263_v20 = vpack.c.bf16 %v2111_v11, %v2110_v10  ;;  %v4281_v10 = vpack.c.bf16 %v2137_v3, %v2136_v1  ;;  %v2120_v11 = vld [vmem:[%s5383_s12 + $0x860] sm:$0xff] }
 0x217   : > { %4214 = vmatprep.subr.bf16.mxu0 %v4213_v17  ;;  %v2160_v17 = vld [vmem:[%s5383_s12 + $0x9a0] sm:$0xff]  ;;  %v4265_v23 = vpack.c.bf16 %v2129_v15, %v2128_v14  ;;  %v2153_v14 = vld [vmem:[%s5383_s12 + $0x968] sm:$0xff]  ;;  %v2138_v15 = vld [vmem:[%s5383_s12 + $0x8f0] sm:$0xff] }
 0x218   : > { %4244 = vmatpush3.bf16.msra.mxu1 %v4243_v16  ;;  %v2341_v16 = vcombine.high %v5712_v2, %v5712_v2  ;;  %v4297_v27 = vpack.c.bf16 %v2161_v18, %v2160_v17  ;;  %v2170_v17 = vld [vmem:[%s5383_s12 + $0x9f0] sm:$0xff]  ;;  %v2171_v18 = vld [vmem:[%s5383_s12 + $0x9f8] sm:$0xff]  ;;  %v2208_v1 = vld [vmem:[%s5383_s12 + $0xb20] sm:$0xff] }
 0x219   : > { %4246 = vmatprep.subr.bf16.mxu1 %v4245_v21  ;;  %v4295_v21 = vpack.c.bf16 %v2143_v13, %v2142_v8  ;;  %v2121_v8 = vld [vmem:[%s5383_s12 + $0x868] sm:$0xff] }
 0x21a   : > { %4216 = vmatpush3.bf16.msra.mxu0 %v4215_v29  ;;  %v2130_v29 = vld [vmem:[%s5383_s12 + $0x8b0] sm:$0xff] }
 0x21b   : > { %4218 = vmatprep.subr.bf16.mxu0 %v4217_v31  ;;  %v2163_v31 = vld [vmem:[%s5383_s12 + $0x9b8] sm:$0xff] }
 0x21c   : > { %4248 = vmatpush3.bf16.msra.mxu1 %v4247_v30  ;;  %v2131_v30 = vld [vmem:[%s5383_s12 + $0x8b8] sm:$0xff] }
 0x21d   : > { %4250 = vmatprep.subr.bf16.mxu1 %v4249_v36  ;;  %v4269_v35 = vpack.c.bf16 %v2131_v30, %v2130_v29  ;;  %v2114_v36 = vld [vmem:[%s5383_s12 + $0x830] sm:$0xff]  ;;  %v2188_v29 = vld [vmem:[%s5383_s12 + $0xa80] sm:$0xff]  ;;  %v2189_v30 = vld [vmem:[%s5383_s12 + $0xa88] sm:$0xff] }
 0x21e   : > { %4220 = vmatpush3.bf16.msra.mxu0 %v4219_v42  ;;  %v2133_v42 = vld [vmem:[%s5383_s12 + $0x8c8] sm:$0xff] }
 0x21f   : > { %4222 = vmatprep.subr.bf16.mxu0 %v4221_v45  ;;  %v4271_v45 = vpack.c.bf16 %v2115_v37, %v2114_v36  ;;  %v4273_v47 = vpack.c.bf16 %v2133_v42, %v2132_v41  ;;  %v4321_v36 = vpack.c.bf16 %v2189_v30, %v2188_v29  ;;  %v2172_v37 = vld [vmem:[%s5383_s12 + $0xa00] sm:$0xff]  ;;  %v2205_v41 = vld [vmem:[%s5383_s12 + $0xb08] sm:$0xff]  ;;  %v2190_v42 = vld [vmem:[%s5383_s12 + $0xa90] sm:$0xff] }
 0x220   : > { %4252 = vmatpush3.bf16.msra.mxu1 %v4251_v44  ;;  %v2165_v44 = vld [vmem:[%s5383_s12 + $0x9c8] sm:$0xff]  ;;  %v2198_v30 = vld [vmem:[%s5383_s12 + $0xad0] sm:$0xff] }
 0x221   : > { %4254 = vmatprep.subr.bf16.mxu1 %v4253_v49  ;;  %v2117_v49 = vld [vmem:[%s5383_s12 + $0x848] sm:$0xff]  ;;  %v4305_v52 = vpack.c.bf16 %v2165_v44, %v2164_v43  ;;  %v2191_v43 = vld [vmem:[%s5383_s12 + $0xa98] sm:$0xff] }
 0x222   : > { %4224 = vmatpush3.bf16.msra.mxu0 %v4223_v56  ;;  %v2167_v56 = vld [vmem:[%s5383_s12 + $0x9d8] sm:$0xff]  ;;  %v2213_v29 = vld [vmem:[%s5383_s12 + $0xb48] sm:$0xff] }
 0x223   : > { %4258 = vmatprep.subr.bf16.mxu0 %v4257_v58  ;;  %v4307_v58 = vpack.c.bf16 %v2149_v53, %v2148_v51  ;;  %v4309_v63 = vpack.c.bf16 %v2167_v56, %v2166_v55  ;;  %v4325_v51 = vpack.c.bf16 %v2191_v43, %v2190_v42  ;;  %v2175_v53 = vld [vmem:[%s5383_s12 + $0xa18] sm:$0xff]  ;;  %v2192_v56 = vld [vmem:[%s5383_s12 + $0xaa0] sm:$0xff]  ;;  %v2201_v43 = vld [vmem:[%s5383_s12 + $0xae8] sm:$0xff] }
 0x224   : > { %4256 = vmatpush3.bf16.msra.mxu1 %v4255_v57  ;;  %v4275_v57 = vpack.c.bf16 %v2117_v49, %v2116_v48  ;;  %v4323_v48 = vpack.c.bf16 %v2173_v38, %v2172_v37  ;;  %v2207_v55 = vld [vmem:[%s5383_s12 + $0xb18] sm:$0xff]  ;;  %v2182_v37 = vld [vmem:[%s5383_s12 + $0xa50] sm:$0xff]  ;;  %v2200_v42 = vld [vmem:[%s5383_s12 + $0xae0] sm:$0xff] }
 0x225   : > { %4290 = vmatprep.subr.bf16.mxu1 %v4289_v62  ;;  %2879 = vmatmul.mubr.f32.vlgmr.msra.gmra.mrb[6].mxu0 %v5633_v25  ;;  %v2113_v25 = vld [vmem:[%s5383_s12 + $0x828] sm:$0xff]  ;;  %v2150_v62 = vld [vmem:[%s5383_s12 + $0x950] sm:$0xff]  ;;  %v2183_v38 = vld [vmem:[%s5383_s12 + $0xa58] sm:$0xff] }
 0x226   : > { %4260 = vmatpush3.bf16.msra.mxu0 %v4259_v6  ;;  %3018 = vmatprep.mubr.f32.mxu0 %v2341_v16  ;;  %v4267_v34 = vpack.c.bf16 %v2113_v25, %v2112_v24  ;;  %v2169_v6 = vld [vmem:[%s5383_s12 + $0x9e8] sm:$0xff]  ;;  %v2139_v16 = vld [vmem:[%s5383_s12 + $0x8f8] sm:$0xff]  ;;  %v2122_v24 = vld [vmem:[%s5383_s12 + $0x870] sm:$0xff] }
 0x227   : > { %2949 = vmatmul.mubr.f32.vlgmr.msra.gmra.mrb[6].mxu1 %v5638_v32  ;;  %4262 = vmatprep.subr.bf16.mxu0 %v4261_v9  ;;  %v2162_v32 = vld [vmem:[%s5383_s12 + $0x9b0] sm:$0xff]  ;;  %v4311_v9 = vpack.c.bf16 %v2151_v0, %v2150_v62  ;;  %v4313_v13 = vpack.c.bf16 %v2169_v6, %v2168_v4  ;;  %v2123_v25 = vld [vmem:[%s5383_s12 + $0x878] sm:$0xff]  ;;  %v4359_v62 = vpack.c.bf16 %v2207_v55, %v2206_v50  ;;  %v2176_v0 = vld [vmem:[%s5383_s12 + $0xa20] sm:$0xff] }
 0x228   : > { %4292 = vmatpush3.bf16.msra.mxu1 %v4291_v7  ;;  %3088 = vmatprep.mubr.f32.mxu1 %v2342_v19  ;;  %v4301_v39 = vpack.c.bf16 %v2163_v31, %v2162_v32  ;;  %v4279_v7 = vpack.c.bf16 %v2119_v61, %v2118_v60  ;;  %v4283_v19 = vpack.c.bf16 %v2121_v8, %v2120_v11  ;;  %v2220_v32 = vld [vmem:[%s5383_s12 + $0xb80] sm:$0xff]  ;;  %v2221_v31 = vld [vmem:[%s5383_s12 + $0xb88] sm:$0xff]  ;;  %v2194_v6 = vld [vmem:[%s5383_s12 + $0xab0] sm:$0xff] }
 0x229   : > { %4294 = vmatprep.subr.bf16.mxu1 %v4293_v12  ;;  %v2152_v12 = vld [vmem:[%s5383_s12 + $0x960] sm:$0xff]  ;;  %v4353_v40 = vpack.c.bf16 %v2221_v31, %v2220_v32  ;;  %v2209_v4 = vld [vmem:[%s5383_s12 + $0xb28] sm:$0xff]  ;;  %v2199_v32 = vld [vmem:[%s5383_s12 + $0xad8] sm:$0xff] }
 0x22a   : > { %4264 = vmatpush3.bf16.msra.mxu0 %v4263_v20  ;;  %v1850_v20 = vld [vmem:[%s5946_s0 + $0x28] sm:$0xff]  ;;  %v4363_v11 = vpack.c.bf16 %v2209_v4, %v2208_v1  ;;  %v2230_v31 = vld [vmem:[%s5383_s12 + $0xbd0] sm:$0xff]  ;;  %v2216_v50 = vld [vmem:[%s5383_s12 + $0xb60] sm:$0xff] }
 0x22b   : > { %4266 = vmatprep.subr.bf16.mxu0 %v4265_v23  ;;  %v4285_v23 = vpack.c.bf16 %v2139_v16, %v2138_v15  ;;  %v5791_v44 = vrot.slane %v1850_v20, %v5391_v22  ;;  %v2211_v16 = vld [vmem:[%s5383_s12 + $0xb38] sm:$0xff]  ;;  %v2217_v55 = vld [vmem:[%s5383_s12 + $0xb68] sm:$0xff] }
 0x22c   : > { %4296 = vmatpush3.bf16.msra.mxu1 %v4295_v21  ;;  %v4315_v21 = vpack.c.bf16 %v2153_v14, %v2152_v12  ;;  %v2178_v12 = vld [vmem:[%s5383_s12 + $0xa30] sm:$0xff]  ;;  %v2219_v1 = vld [vmem:[%s5383_s12 + $0xb78] sm:$0xff] }
 0x22d   : > { %4298 = vmatprep.subr.bf16.mxu1 %v4297_v27  ;;  %v4317_v27 = vpack.c.bf16 %v2171_v18, %v2170_v17  ;;  %v2210_v14 = vld [vmem:[%s5383_s12 + $0xb30] sm:$0xff]  ;;  %v2196_v17 = vld [vmem:[%s5383_s12 + $0xac0] sm:$0xff]  ;;  %v2197_v18 = vld [vmem:[%s5383_s12 + $0xac8] sm:$0xff] }
 0x22e   : > { %4268 = vmatpush3.bf16.msra.mxu0 %v4267_v34  ;;  %v2343_v34 = vcombine.high %v1850_v20, %v1850_v20  ;;  %v2229_v20 = vld [vmem:[%s5383_s12 + $0xbc8] sm:$0xff] }
 0x22f   : > { %4270 = vmatprep.subr.bf16.mxu0 %v4269_v35  ;;  %v4319_v35 = vpack.c.bf16 %v2155_v28, %v2154_v26  ;;  %v2181_v26 = vld [vmem:[%s5383_s12 + $0xa48] sm:$0xff] }
 0x230   : > { %4300 = vmatpush3.bf16.msra.mxu1 %v4299_v33  ;;  %v4287_v33 = vpack.c.bf16 %v2123_v25, %v2122_v24  ;;  %v4337_v24 = vpack.c.bf16 %v2197_v18, %v2196_v17  ;;  %v2180_v25 = vld [vmem:[%s5383_s12 + $0xa40] sm:$0xff] }
 0x231   : > { %4302 = vmatprep.subr.bf16.mxu1 %v4301_v39  ;;  %v2204_v39 = vld [vmem:[%s5383_s12 + $0xb00] sm:$0xff] }
 0x232   : > { %4272 = vmatpush3.bf16.msra.mxu0 %v4271_v45  ;;  %v2222_v45 = vld [vmem:[%s5383_s12 + $0xb90] sm:$0xff]  ;;  %v4355_v49 = vpack.c.bf16 %v2205_v41, %v2204_v39  ;;  %v2215_v41 = vld [vmem:[%s5383_s12 + $0xb58] sm:$0xff] }
 0x233   : > { %4274 = vmatprep.subr.bf16.mxu0 %v4273_v47  ;;  %v5796_v47 = vrot.slane %v2343_v34, %v5391_v22  ;;  %v2193_v22 = vld [vmem:[%s5383_s12 + $0xaa8] sm:$0xff]  ;;  %v2231_v34 = vld [vmem:[%s5383_s12 + $0xbd8] sm:$0xff]  ;;  %v2214_v39 = vld [vmem:[%s5383_s12 + $0xb50] sm:$0xff] }
 0x234   : > { %4304 = vmatpush3.bf16.msra.mxu1 %v4303_v46  ;;  %v2223_v46 = vld [vmem:[%s5383_s12 + $0xb98] sm:$0xff] }
 0x235   : > { %4306 = vmatprep.subr.bf16.mxu1 %v4305_v52  ;;  %v2174_v52 = vld [vmem:[%s5383_s12 + $0xa10] sm:$0xff]  ;;  %v4357_v54 = vpack.c.bf16 %v2223_v46, %v2222_v45  ;;  %v2359_v60 = vcombine.high %v5796_v47, %v5796_v47  ;;  %v2232_v45 = vld [vmem:[%s5383_s12 + $0xbe0] sm:$0xff]  ;;  %v2233_v46 = vld [vmem:[%s5383_s12 + $0xbe8] sm:$0xff] }
 0x236   : > { %4276 = vmatpush3.bf16.msra.mxu0 %v4275_v57  ;;  %v2358_v57 = vcombine.high %v5791_v44, %v5791_v44  ;;  %v4327_v61 = vpack.c.bf16 %v2175_v53, %v2174_v52  ;;  %v2184_v52 = vld [vmem:[%s5383_s12 + $0xa60] sm:$0xff]  ;;  %v2185_v53 = vld [vmem:[%s5383_s12 + $0xa68] sm:$0xff] }
 0x237   : > { %4278 = vmatprep.subr.bf16.mxu0 %v4277_v59  ;;  %v2225_v59 = vld [vmem:[%s5383_s12 + $0xba8] sm:$0xff] }
 0x238   : > { %4308 = vmatpush3.bf16.msra.mxu1 %v4307_v58  ;;  %v2224_v58 = vld [vmem:[%s5383_s12 + $0xba0] sm:$0xff] }
 0x239   : > { %4310 = vmatprep.subr.bf16.mxu1 %v4309_v63  ;;  %v4329_v63 = vpack.c.bf16 %v2193_v22, %v2192_v56  ;;  %v4361_v3 = vpack.c.bf16 %v2225_v59, %v2224_v58  ;;  %v2202_v56 = vld [vmem:[%s5383_s12 + $0xaf0] sm:$0xff]  ;;  %v2203_v22 = vld [vmem:[%s5383_s12 + $0xaf8] sm:$0xff]  ;;  %v4347_v59 = vpack.c.bf16 %v2185_v53, %v2184_v52 }
 0x23a   : > { %4280 = vmatpush3.bf16.msra.mxu0 %v4279_v7  ;;  %v2195_v7 = vld [vmem:[%s5383_s12 + $0xab8] sm:$0xff] }
 0x23b   : > { %4282 = vmatprep.subr.bf16.mxu0 %v4281_v10  ;;  %v4333_v8 = vpack.c.bf16 %v2195_v7, %v2194_v6  ;;  %v2235_v58 = vld [vmem:[%s5383_s12 + $0xbf8] sm:$0xff]  ;;  %v2236_v6 = vld [vmem:[%s5383_s12 + $0xc00] sm:$0xff]  ;;  %v2237_v7 = vld [vmem:[%s5383_s12 + $0xc08] sm:$0xff] }
 0x23c   : > { %4312 = vmatpush3.bf16.msra.mxu1 %v4311_v9  ;;  %v2227_v9 = vld [vmem:[%s5383_s12 + $0xbb8] sm:$0xff] }
 0x23d   : > { %4314 = vmatprep.subr.bf16.mxu1 %v4313_v13  ;;  %v2179_v13 = vld [vmem:[%s5383_s12 + $0xa38] sm:$0xff] }
 0x23e   : > { %4284 = vmatpush3.bf16.msra.mxu0 %v4283_v19  ;;  %v2228_v19 = vld [vmem:[%s5383_s12 + $0xbc0] sm:$0xff] }
 0x23f   : > { %4286 = vmatprep.subr.bf16.mxu0 %v4285_v23  ;;  %v4367_v23 = vpack.c.bf16 %v2211_v16, %v2210_v14  ;;  %v4369_v28 = vpack.c.bf16 %v2229_v20, %v2228_v19  ;;  %v4521_v14 = vmov 0.0   ;;  %v2242_v16 = vld [vmem:[%s5383_s12 + $0xc30] sm:$0xff]  ;;  %v3491_v19 = vld [vmem:[%s1838_s7] ss:$0 sm:$0xff] }
 0x240   : > { %4316 = vmatpush3.bf16.msra.mxu1 %v4315_v21  ;;  %v4335_v21 = vpack.c.bf16 %v2179_v13, %v2178_v12  ;;  %v2240_v12 = vld [vmem:[%s5383_s12 + $0xc20] sm:$0xff]  ;;  %v2241_v13 = vld [vmem:[%s5383_s12 + $0xc28] sm:$0xff] }
 0x241   : > { %4318 = vmatprep.subr.bf16.mxu1 %v4317_v27  ;;  %v2212_v27 = vld [vmem:[%s5383_s12 + $0xb40] sm:$0xff] }
 0x242   : > { %4288 = vmatpush3.bf16.msra.mxu0 %v4287_v33  ;;  %v4339_v33 = vpack.c.bf16 %v2181_v26, %v2180_v25 }
 0x243   : > { %4322 = vmatprep.subr.bf16.mxu0 %v4321_v36  ;;  %v4341_v36 = vpack.c.bf16 %v2199_v32, %v2198_v30 }
 0x244   : > { %4320 = vmatpush3.bf16.msra.mxu1 %v4319_v35  ;;  %v4371_v35 = vpack.c.bf16 %v2213_v29, %v2212_v27 }
 0x245   : > { %4354 = vmatprep.subr.bf16.mxu1 %v4353_v40  ;;  %3019 = vmatmul.mubr.f32.vlgmr.msra.gmra.mrb[8].mxu0 %v5712_v2  ;;  %v2177_v2 = vld [vmem:[%s5383_s12 + $0xa28] sm:$0xff]  ;;  %v4373_v40 = vpack.c.bf16 %v2231_v34, %v2230_v31 }
 0x246   : > { %4324 = vmatpush3.bf16.msra.mxu0 %v4323_v48  ;;  %3158 = vmatprep.mubr.f32.mxu0 %v2358_v57  ;;  %v4331_v10 = vpack.c.bf16 %v2177_v2, %v2176_v0  ;;  %v4343_v48 = vpack.c.bf16 %v2183_v38, %v2182_v37  ;;  %v2234_v57 = vld [vmem:[%s5383_s12 + $0xbf0] sm:$0xff] }
 0x247   : > { %3089 = vmatmul.mubr.f32.vlgmr.msra.gmra.mrb[8].mxu1 %v5717_v5  ;;  %4326 = vmatprep.subr.bf16.mxu0 %v4325_v51  ;;  %v2226_v5 = vld [vmem:[%s5383_s12 + $0xbb0] sm:$0xff]  ;;  %v4345_v51 = vpack.c.bf16 %v2201_v43, %v2200_v42  ;;  %v4381_v0 = vpack.c.bf16 %v2235_v58, %v2234_v57 }
 0x248   : > { %4356 = vmatpush3.bf16.msra.mxu1 %v4355_v49  ;;  %3228 = vmatprep.mubr.f32.mxu1 %v2359_v60  ;;  %v4365_v15 = vpack.c.bf16 %v2227_v9, %v2226_v5  ;;  %v4375_v49 = vpack.c.bf16 %v2215_v41, %v2214_v39  ;;  %v4379_v60 = vpack.c.bf16 %v2217_v55, %v2216_v50  ;;  %v2218_v2 = vld [vmem:[%s5383_s12 + $0xb70] sm:$0xff]  ;;  %v4519_v9 = vmov 0.0|0.0  }
 0x249   : > { %4358 = vmatprep.subr.bf16.mxu1 %v4357_v54  ;;  %v4377_v54 = vpack.c.bf16 %v2233_v46, %v2232_v45  ;;  %v4383_v4 = vpack.c.bf16 %v2219_v1, %v2218_v2  ;;  %v4386_v5 = vpack.c.bf16 %v2237_v7, %v2236_v6 }
 0x24a   : > { %4328 = vmatpush3.bf16.msra.mxu0 %v4327_v61  ;;  %v4349_v61 = vpack.c.bf16 %v2203_v22, %v2202_v56 }
 0x24b   : > { %4330 = vmatprep.subr.bf16.mxu0 %v4329_v63  ;;  %v2187_v63 = vld [vmem:[%s5383_s12 + $0xa78] sm:$0xff] }
 0x24c   : > { %4360 = vmatpush3.bf16.msra.mxu1 %v4359_v62  ;;  %v2186_v62 = vld [vmem:[%s5383_s12 + $0xa70] sm:$0xff] }
 0x24d   : > { %4362 = vmatprep.subr.bf16.mxu1 %v4361_v3  ;;  %v4351_v3 = vpack.c.bf16 %v2187_v63, %v2186_v62 }
 0x24e   : > { %4332 = vmatpush3.bf16.msra.mxu0 %v4331_v10  ;;  %v2238_v10 = vld [vmem:[%s5383_s12 + $0xc10] sm:$0xff] }
 0x24f   : > { %4334 = vmatprep.subr.bf16.mxu0 %v4333_v8 }
 0x250   : > { %4364 = vmatpush3.bf16.msra.mxu1 %v4363_v11  ;;  %v2239_v11 = vld [vmem:[%s5383_s12 + $0xc18] sm:$0xff] }
 0x251   : > { %4366 = vmatprep.subr.bf16.mxu1 %v4365_v15  ;;  %v4389_v8 = vpack.c.bf16 %v2239_v11, %v2238_v10  ;;  %v4392_v15 = vpack.c.bf16 %v2241_v13, %v2240_v12 }
 0x252   : > { %4336 = vmatpush3.bf16.msra.mxu0 %v4335_v21 }
 0x253   : > { %4338 = vmatprep.subr.bf16.mxu0 %v4337_v24 }
 0x254   : > { %4368 = vmatpush3.bf16.msra.mxu1 %v4367_v23 }
 0x255   : > { %4370 = vmatprep.subr.bf16.mxu1 %v4369_v28 }
 0x256   : > { %4340 = vmatpush3.bf16.msra.mxu0 %v4339_v33 }
 0x257   : > { %4342 = vmatprep.subr.bf16.mxu0 %v4341_v36 }
 0x258   : > { %4372 = vmatpush3.bf16.msra.mxu1 %v4371_v35 }
 0x259   : > { %4374 = vmatprep.subr.bf16.mxu1 %v4373_v40 }
 0x25a   : > { %4344 = vmatpush3.bf16.msra.mxu0 %v4343_v48 }
 0x25b   : > { %4346 = vmatprep.subr.bf16.mxu0 %v4345_v51 }
 0x25c   : > { %4376 = vmatpush3.bf16.msra.mxu1 %v4375_v49 }
 0x25d   : > { %4378 = vmatprep.subr.bf16.mxu1 %v4377_v54 }
 0x25e   : > { %4348 = vmatpush3.bf16.msra.mxu0 %v4347_v59 }
 0x25f   : > { %4350 = vmatprep.subr.bf16.mxu0 %v4349_v61 }
 0x260   : > { %4380 = vmatpush3.bf16.msra.mxu1 %v4379_v60 }
 0x261   : > { %4382 = vmatprep.subr.bf16.mxu1 %v4381_v0 }
 0x262   : > { %4352 = vmatpush3.bf16.msra.mxu0 %v4351_v3 }
 0x263   : > { %4385 = vmatprep.subr.bf16.mxu0 %v4519_v9 }
 0x264   : > { %4384 = vmatpush3.bf16.msra.mxu1 %v4383_v4 }
 0x265   : > { %4397 = vmatprep.subr.bf16.mxu1 %v4519_v9  ;;  %3159 = vmatmul.mubr.f32.vlgmr.msra.gmra.mrb[10].mxu0 %v5791_v44  ;;  %v2243_v44 = vld [vmem:[%s5383_s12 + $0xc38] sm:$0xff]  ;;  %s5883_s12 = scalar_lea.vmem %s5949_s3, %s3490_s9 }
 0x266   : > { %4387 = vmatpush3.bf16.msra.mxu0 %v4386_v5  ;;  %3963 = vmatprep.mubr.msk.f32.mxu0 %vm4520_vm0, %v4521_v14  ;;  %v4395_v17 = vpack.c.bf16 %v2243_v44, %v2242_v16  ;;  %v3305_v28 = vld [vmem:[%s5883_s12] sm:$0xff]  ;;  %v3306_v29 = vld [vmem:[%s5883_s12 + $0x8] sm:$0xff]  ;;  %v3307_v30 = vld [vmem:[%s5883_s12 + $0x10] sm:$0xff] }
 0x267   : > { %3229 = vmatmul.mubr.f32.vlgmr.msra.gmra.mrb[10].mxu1 %v5796_v47  ;;  %4388 = vmatprep.subr.bf16.mxu0 %v4519_v9  ;;  %v3492_v47 = vld.sshfl [vmem:[%s5946_s0 + $0x30] sm:$0x3 pattern:$0x76325410]  ;;  %v4398_v32 = vpack.c.bf16 %v3306_v29, %v3305_v28  ;;  %v3308_v31 = vld [vmem:[%s5883_s12 + $0x18] sm:$0xff]  ;;  %v3309_v33 = vld [vmem:[%s5883_s12 + $0x20] sm:$0xff] }
 0x268   : > { %3998 = vmatprep.mubr.msk.f32.mxu1 %vm4520_vm0, %v4521_v14  ;;  %v4401_v34 = vpack.c.bf16 %v3308_v31, %v3307_v30  ;;  %v3310_v35 = vld [vmem:[%s5883_s12 + $0x28] sm:$0xff]  ;;  %v3311_v37 = vld [vmem:[%s5883_s12 + $0x30] sm:$0xff]  ;;  %v3312_v38 = vld [vmem:[%s5883_s12 + $0x38] sm:$0xff] }
 0x269   : > { %4399 = vmatpush3.bf16.msra.mxu1 %v4398_v32  ;;  %v4404_v36 = vpack.c.bf16 %v3310_v35, %v3309_v33  ;;  %v4407_v40 = vpack.c.bf16 %v3312_v38, %v3311_v37  ;;  %v3313_v48 = vld [vmem:[%s5883_s12 + $0x40] sm:$0xff]  ;;  %v3314_v49 = vld [vmem:[%s5883_s12 + $0x48] sm:$0xff]  ;;  %v3315_v53 = vld [vmem:[%s5883_s12 + $0x50] sm:$0xff] }
 0x26a   : > { %4390 = vmatpush3.bf16.msra.mxu0 %v4389_v8  ;;  %4400 = vmatprep.subr.bf16.mxu1 %v4519_v9  ;;  %v4410_v52 = vpack.c.bf16 %v3314_v49, %v3313_v48  ;;  %v3316_v50 = vld [vmem:[%s5883_s12 + $0x58] sm:$0xff]  ;;  %v3317_v56 = vld [vmem:[%s5883_s12 + $0x60] sm:$0xff]  ;;  %v3318_v22 = vld [vmem:[%s5883_s12 + $0x68] sm:$0xff] }
 0x26b   : > { %4391 = vmatprep.subr.bf16.mxu0 %v4519_v9  ;;  %v4413_v55 = vpack.c.bf16 %v3316_v50, %v3315_v53  ;;  %v4416_v57 = vpack.c.bf16 %v3318_v22, %v3317_v56  ;;  %v3319_v58 = vld [vmem:[%s5883_s12 + $0x70] sm:$0xff]  ;;  %v3320_v59 = vld [vmem:[%s5883_s12 + $0x78] sm:$0xff]  ;;  %v3495_v33 = vld [vmem:[%s5950_s4] ss:$0 sm:$0xff] (!%p3494_p10) }
 0x26c   : > { %v4419_v60 = vpack.c.bf16 %v3320_v59, %v3319_v58 }
 0x26d   : > { %4402 = vmatpush3.bf16.msra.mxu1 %v4401_v34 }
 0x26e   : > { %4393 = vmatpush3.bf16.msra.mxu0 %v4392_v15  ;;  %4403 = vmatprep.subr.bf16.mxu1 %v4519_v9 }
 0x26f   : > { %4394 = vmatprep.subr.bf16.mxu0 %v4519_v9 }
 0x271   : > { %4405 = vmatpush3.bf16.msra.mxu1 %v4404_v36 }
 0x272   : > { %4396 = vmatpush3.bf16.msra.mxu0 %v4395_v17  ;;  %4406 = vmatprep.subr.bf16.mxu1 %v4519_v9 }
 0x275   : > { %3964 = vmatmul.mubr.msk.f32.vlgmr.msra.gmra.mrb[12].mxu0 %vm2391_vm1, %v3492_v47  ;;  %4408 = vmatpush3.bf16.msra.mxu1 %v4407_v40 }
 0x276   : > { %4409 = vmatprep.subr.bf16.mxu1 %v4519_v9 }
 0x279   : > { %4411 = vmatpush3.bf16.msra.mxu1 %v4410_v52 }
 0x27a   : > { %4412 = vmatprep.subr.bf16.mxu1 %v4519_v9 }
 0x27d   : > { %4414 = vmatpush3.bf16.msra.mxu1 %v4413_v55 }
 0x27e   : > { %4415 = vmatprep.subr.bf16.mxu1 %v4519_v9 }
 0x281   : > { %4417 = vmatpush3.bf16.msra.mxu1 %v4416_v57 }
 0x282   : > { %4418 = vmatprep.subr.bf16.mxu1 %v4519_v9 }
 0x285   : > { %4420 = vmatpush3.bf16.msra.mxu1 %v4419_v60 }
 0x298   : > { %v3533_v18 = vpop.f32.mrb[0].mxu0 }
 0x299   : > { %v3534_v20 = vpop.f32.mrb[1].mxu0 }
 0x29a   : > { %v3568_v21 = vpop.f32.mrb[0].mxu1  ;;  %v3535_v23 = vadd.f32 %v3534_v20, %v3533_v18 }
 0x29b   : > { %v3569_v24 = vpop.f32.mrb[1].mxu1 }
 0x29c   : > { %v3570_v25 = vadd.f32 %v3569_v24, %v3568_v21  ;;  %v2461_v26 = vadd.f32 %v3535_v23, %v3491_v19 }
 0x29e   : > { %v2531_v27 = vadd.f32 %v3570_v25, %v2461_v26 }
 0x2b8   : > { %v3603_v39 = vpop.f32.mrb[2].mxu0 }
 0x2b9   : > { %v3604_v41 = vpop.f32.mrb[3].mxu0 }
 0x2ba   : > { %v3638_v42 = vpop.f32.mrb[2].mxu1  ;;  %v3605_v43 = vadd.f32 %v3604_v41, %v3603_v39 }
 0x2bb   : > { %v3639_v45 = vpop.f32.mrb[3].mxu1 }
 0x2bc   : > { %v3640_v46 = vadd.f32 %v3639_v45, %v3638_v42  ;;  %v2601_v51 = vadd.f32 %v3605_v43, %v2531_v27 }
 0x2be   : > { %v2671_v54 = vadd.f32 %v3640_v46, %v2601_v51 }
 0x2d8   : > { %v3673_v61 = vpop.f32.mrb[4].mxu0 }
 0x2d9   : > { %v3674_v62 = vpop.f32.mrb[5].mxu0 }
 0x2da   : > { %v3708_v63 = vpop.f32.mrb[4].mxu1  ;;  %v3675_v0 = vadd.f32 %v3674_v62, %v3673_v61 }
 0x2db   : > { %v3709_v2 = vpop.f32.mrb[5].mxu1 }
 0x2dc   : > { %v3710_v1 = vadd.f32 %v3709_v2, %v3708_v63  ;;  %v2741_v3 = vadd.f32 %v3675_v0, %v2671_v54 }
 0x2de   : > { %v2811_v4 = vadd.f32 %v3710_v1, %v2741_v3 }
 0x2f8   : > { %v3743_v6 = vpop.f32.mrb[6].mxu0 }
 0x2f9   : > { %v3744_v7 = vpop.f32.mrb[7].mxu0 }
 0x2fa   : > { %v3778_v5 = vpop.f32.mrb[6].mxu1  ;;  %v3745_v10 = vadd.f32 %v3744_v7, %v3743_v6 }
 0x2fb   : > { %v3779_v11 = vpop.f32.mrb[7].mxu1 }
 0x2fc   : > { %v3780_v8 = vadd.f32 %v3779_v11, %v3778_v5  ;;  %v2881_v12 = vadd.f32 %v3745_v10, %v2811_v4 }
 0x2fe   : > { %v2951_v9 = vadd.f32 %v3780_v8, %v2881_v12 }
 0x318   : > { %v3813_v13 = vpop.f32.mrb[8].mxu0 }
 0x319   : > { %v3814_v14 = vpop.f32.mrb[9].mxu0 }
 0x31a   : > { %v3848_v15 = vpop.f32.mrb[8].mxu1  ;;  %v3815_v16 = vadd.f32 %v3814_v14, %v3813_v13 }
 0x31b   : > { %v3849_v44 = vpop.f32.mrb[9].mxu1 }
 0x31c   : > { %v3850_v17 = vadd.f32 %v3849_v44, %v3848_v15  ;;  %v3021_v47 = vadd.f32 %v3815_v16, %v2951_v9 }
 0x31e   : > { %v3091_v18 = vadd.f32 %v3850_v17, %v3021_v47 }
 0x338   : > { %v3883_v19 = vpop.f32.mrb[10].mxu0 }
 0x339   : > { %v3884_v20 = vpop.f32.mrb[11].mxu0 }
 0x33a   : > { %v3918_v21 = vpop.f32.mrb[10].mxu1  ;;  %v3885_v23 = vadd.f32 %v3884_v20, %v3883_v19 }
 0x33b   : > { %v3919_v24 = vpop.f32.mrb[11].mxu1 }
 0x33c   : > { %v3920_v25 = vadd.f32 %v3919_v24, %v3918_v21  ;;  %v3161_v26 = vadd.f32 %v3885_v23, %v3091_v18 }
 0x33e   : > { %v3231_v27 = vadd.f32 %v3920_v25, %v3161_v26 }
 0x348   : > { %v3300_v28 = vpop.f32.mrb[12].mxu0 }
 0x349   : > { %v3301_v29 = vadd.f32 %v3300_v28, %v3231_v27  ;;  %v3965_v30 = vpop.f32.mrb[13].mxu0 }
 0x34b   : > { %v3304_v32 = vmax.f32 %v3301_v29, 0.0 }
 0x34d   : > { %3999 = vmatmul.mubr.f32.vlgmr.msra.gmra.mrb[12].mxu1 %v3304_v32 }
 0x41b   : > { %3394 = sbr.rel (%p3494_p10) target bundleno = 1060 (0x424), region = 82 }
 0x420   : > { %v3387_v31 = vpop.f32.mrb[12].mxu1 }
 0x421   : > { %v4000_v34 = vpop.f32.mrb[13].mxu1  ;;  %v3402_v35 = vadd.f32 (!%p3494_p10), %v3495_v33, %v3387_v31 }
 0x423   : > { %3403 = vst [vmem:[#allocation3] sm:$0x3] %v3402_v35 }
 0x424 PF: > { %p3496_p11 = scmp.le.s32.totalorder %s4569_s21, 0 }
 0x426   : > { %3407 = sbr.rel (%p3496_p11) target bundleno = 1070 (0x42e), region = 86 }
 0x42a   : > { %v3408_v36 = vld [vmem:[#allocation3] sm:$0x3] (!%p3496_p11) }
 0x42b   : > { %v3409_v37 = vadd.f32 (!%p3496_p11), %v3408_v36, %v3387_v31 }
 0x42d   : > { %3410 = vst [vmem:[#allocation3] sm:$0x3] %v3409_v37 }
 0x42e PF: > { %p4427_p12 = scmp.eq.s32.totalorder %s4569_s21, 3  ;;  %s4522_s15 = smov [#allocation3]  }
 0x42f   : > { %s3418_s16 = sshll.u32 %s4522_s15, 4  ;;  %s3419_s16 = int_to_ptr.vmem [resolvable:$true] %s3418_s16 }
 0x430   : > { %s4464_s17 = scalar_lea.vmem %s3419_s16, 32  ;;  %p4471_p2 = scmp.lt.s32.totalorder %s3419_s16, %s3419_s16 }
 0x431   : > { %p4465_p13 = scmp.ne.s32.totalorder %s3419_s16, %s4464_s17  ;;  %p4472_p3 = scmp.lt.s32.totalorder %s4464_s17, %s4464_s17 }
 0x433   : > { %p4466_p0 = pnand %p4465_p13, %p4427_p12  ;;  %p4473_p4 = por %p4472_p3, %p4471_p2 }
 0x435   : > { %p4467_p1 = pneg %p4466_p0 }
 0x437   : > { %p4474_p5 = pnand %p4473_p4, %p4467_p1 }
 0x439   : > { %4477 = shalt.err (!%p4474_p5)
}
 0x43a   : > { %s4478_s23 = scalar_lea.hbm %s5951_s5, 32 }
 0x43b   : > { %p4479_p6 = scmp.ne.s32.totalorder %s5951_s5, %s4478_s23  ;;  %p4484_p9 = scmp.lt.u32.totalorder %s4478_s23, %s5951_s5 }
 0x43d   : > { %p4480_p7 = pnand %p4479_p6, %p4427_p12 }
 0x43f   : > { %p4481_p8 = pneg %p4480_p7 }
 0x441   : > { %p4486_p10 = pnand %p4484_p9, %p4481_p8 }
 0x443   : > { %4489 = shalt.err (!%p4486_p10)
}
 0x444   : > { %4424 = dma.vmem_to_hbm [thread:$0]  (%p4427_p12), %s3419_s16, 32, %s5951_s5, [#allocation4]  }
 0x445   : > { %4503 = dma.done.wait (%p4427_p12), [#allocation4], 32  }
 0x446   : > { %4505 = vsyncadd (%p4427_p12), [#allocation4], 4294967264 }
 0x447 PF: > { %p13_p11 = scmp.ge.s32.totalorder %s4572_s22, 6   ;;  %s5952_s18 = smov %s4512_s19 }
 0x448   : > { %s5953_s19 = smov %s4581_s25  ;;  %s5954_s20 = smov %s4572_s22 }
 0x449   :  { %15 = sbr.rel (!%p13_p11) target bundleno = 2 (0x2), region = 124 }
 0x450   :  { %3431 = vsyncpa [#allocation4], 1 }
 0x451   :  { %3433 = vsyncpa [#allocation4 + $0x1], 1 }

// kernel: visual_q_forward.2
= control target key start
LH: loop header
LB: loop body
LE: loop exit
PB: predicated region body
PF: predicated region fallthrough
CT: control target
= control target key end

     0   :  { %s3077_s24 = smov 0   ;;  %s4214_s0 = inlined_call_operand.vmem [shape: f32[2,416,256], index: 0, kind: input, shape index: {}]   ;;  %s4215_s1 = inlined_call_operand.vmem [shape: f32[256,32], index: 1, kind: input, shape index: {}]   ;;  %s4216_s2 = inlined_call_operand.vmem [shape: f32[1,32], index: 2, kind: input, shape index: {}]   ;;  %s4217_s3 = inlined_call_operand.vmem [shape: f32[512,64], index: 3, kind: input, shape index: {}]   ;;  %s4218_s4 = inlined_call_operand.vmem [shape: f32[1,64], index: 4, kind: input, shape index: {}]   ;;  %s4219_s5 = inlined_call_operand.vmem [shape: f32[576,64], index: 5, kind: input, shape index: {}]   ;;  %s4220_s6 = inlined_call_operand.vmem [shape: f32[1,64], index: 6, kind: input, shape index: {}]   ;;  %s4221_s7 = inlined_call_operand.vmem [shape: f32[2,49,64], index: 7, kind: output, shape index: {}]  }
   0x1 LB: > { %s2484_s25 = sadd.s32 4294967295, %s3029_s24   ;;  %p2488_p0 = scmp.ge.s32.totalorder %s3029_s24, 1  ;;  %s3029_s24 = sphi %s3077_s24, %s17_s24  }
   0x2   : > { %p237_p1 = scmp.lt.s32.totalorder %s3029_s24, 3 }
   0x4   : > { %p238_p2 = pnand %p2488_p0, %p237_p1 }
   0x5   : > { %v383_v0 = vld [vmem:[%s4215_s1] sm:$0xff] (!%p238_p2)  ;;  %v384_v1 = vld [vmem:[%s4215_s1 + $0x8] sm:$0xff] (!%p238_p2)  ;;  %v385_v2 = vld [vmem:[%s4215_s1 + $0x10] sm:$0xff] (!%p238_p2)  ;;  %p269_p3 = scmp.lt.s32.totalorder (!%p238_p2), %s2484_s25, 1  ;;  %v3031_v3 = vmov (!%p238_p2), 0.0|0.0   ;;  %vm799_vm0 = vcmask (!%p238_p2), 261120  }
   0x6   : > { %241 = sbr.rel (%p238_p2) target bundleno = 1323 (0x52b), region = 48  ;;  %2819 = vmatprep.subr.bf16.mxu0 (!%p238_p2), %v3031_v3  ;;  %v2820_v4 = vpack.c.bf16 (!%p238_p2), %v384_v1, %v383_v0  ;;  %v386_v5 = vld [vmem:[%s4215_s1 + $0x18] sm:$0xff] (!%p238_p2)  ;;  %v387_v7 = vld [vmem:[%s4215_s1 + $0x20] sm:$0xff] (!%p238_p2)  ;;  %v388_v8 = vld [vmem:[%s4215_s1 + $0x28] sm:$0xff] (!%p238_p2)  ;;  %s3033_s12 = smov (!%p238_p2), 64   ;;  %vm943_vm1 = vcmask (!%p238_p2), 523520  }
   0x7   : > { %v2823_v6 = vpack.c.bf16 (!%p238_p2), %v386_v5, %v385_v2  ;;  %v2826_v9 = vpack.c.bf16 (!%p238_p2), %v388_v8, %v387_v7  ;;  %v389_v10 = vld [vmem:[%s4215_s1 + $0x30] sm:$0xff] (!%p238_p2)  ;;  %v390_v11 = vld [vmem:[%s4215_s1 + $0x38] sm:$0xff] (!%p238_p2)  ;;  %v391_v14 = vld [vmem:[%s4215_s1 + $0x40] sm:$0xff] (!%p238_p2)  ;;  %s3034_s21 = smov (!%p238_p2), 96   ;;  %vm1022_vm2 = vcmask (!%p238_p2), 785920   ;;  %vm1101_vm3 = vcmask (!%p238_p2), 1048320  }
   0x8   : > { %2821 = vmatpush1.bf16.msra.mxu0 (!%p238_p2), %v2820_v4  ;;  %v2829_v13 = vpack.c.bf16 (!%p238_p2), %v390_v11, %v389_v10  ;;  %v392_v15 = vld [vmem:[%s4215_s1 + $0x48] sm:$0xff] (!%p238_p2)  ;;  %v393_v17 = vld [vmem:[%s4215_s1 + $0x50] sm:$0xff] (!%p238_p2)  ;;  %v394_v18 = vld [vmem:[%s4215_s1 + $0x58] sm:$0xff] (!%p238_p2)  ;;  %vm1592_vm4 = vcmask (!%p238_p2), 523264   ;;  %vm1623_vm5 = vcmask (!%p238_p2), 518144   ;;  %vm1604_vm6 = vcmask (!%p238_p2), 517120  }
   0x9   : > { %2822 = vmatprep.subr.bf16.mxu0 (!%p238_p2), %v3031_v3  ;;  %v2832_v16 = vpack.c.bf16 (!%p238_p2), %v392_v15, %v391_v14  ;;  %v2835_v19 = vpack.c.bf16 (!%p238_p2), %v394_v18, %v393_v17  ;;  %v395_v20 = vld [vmem:[%s4215_s1 + $0x60] sm:$0xff] (!%p238_p2)  ;;  %v396_v21 = vld [vmem:[%s4215_s1 + $0x68] sm:$0xff] (!%p238_p2)  ;;  %v397_v23 = vld [vmem:[%s4215_s1 + $0x70] sm:$0xff] (!%p238_p2)  ;;  %vm1670_vm7 = vcmask (!%p238_p2), 1048064   ;;  %vm1679_vm8 = vcmask (!%p238_p2), 1042944  }
   0xa   : > { %v2838_v22 = vpack.c.bf16 (!%p238_p2), %v396_v21, %v395_v20  ;;  %v398_v24 = vld [vmem:[%s4215_s1 + $0x78] sm:$0xff] (!%p238_p2)  ;;  %v399_v26 = vld [vmem:[%s4215_s1 + $0x80] sm:$0xff] (!%p238_p2)  ;;  %v400_v27 = vld [vmem:[%s4215_s1 + $0x88] sm:$0xff] (!%p238_p2)  ;;  %vm3035_vm9 = vmmov (!%p238_p2), 0   ;;  %vm2415_vm10 = vcmask (!%p238_p2), 522240  }
   0xb   : > { %v2841_v25 = vpack.c.bf16 (!%p238_p2), %v398_v24, %v397_v23  ;;  %v2844_v28 = vpack.c.bf16 (!%p238_p2), %v400_v27, %v399_v26  ;;  %v401_v29 = vld [vmem:[%s4215_s1 + $0x90] sm:$0xff] (!%p238_p2)  ;;  %v402_v30 = vld [vmem:[%s4215_s1 + $0x98] sm:$0xff] (!%p238_p2)  ;;  %v403_v32 = vld [vmem:[%s4215_s1 + $0xa0] sm:$0xff] (!%p238_p2) }
   0xc   : > { %2824 = vmatpush1.bf16.msra.mxu0 (!%p238_p2), %v2823_v6  ;;  %v2847_v31 = vpack.c.bf16 (!%p238_p2), %v402_v30, %v401_v29  ;;  %v404_v33 = vld [vmem:[%s4215_s1 + $0xa8] sm:$0xff] (!%p238_p2)  ;;  %v405_v35 = vld [vmem:[%s4215_s1 + $0xb0] sm:$0xff] (!%p238_p2)  ;;  %v406_v36 = vld [vmem:[%s4215_s1 + $0xb8] sm:$0xff] (!%p238_p2) }
   0xd   : > { %s4223_s25 = smov (!%p269_p3, %s2484_s25), 1  ;;  %2825 = vmatprep.subr.bf16.mxu0 %v3031_v3  ;;  %v2850_v34 = vpack.c.bf16 %v404_v33, %v403_v32  ;;  %v2853_v37 = vpack.c.bf16 %v406_v36, %v405_v35  ;;  %v407_v38 = vld [vmem:[%s4215_s1 + $0xc0] sm:$0xff]  ;;  %v408_v39 = vld [vmem:[%s4215_s1 + $0xc8] sm:$0xff]  ;;  %v409_v41 = vld [vmem:[%s4215_s1 + $0xd0] sm:$0xff] }
   0xe   : > { %s3007_s15 = smul.u32 832, %s4223_s25  ;;  %v2856_v40 = vpack.c.bf16 %v408_v39, %v407_v38  ;;  %v410_v42 = vld [vmem:[%s4215_s1 + $0xd8] sm:$0xff]  ;;  %v411_v44 = vld [vmem:[%s4215_s1 + $0xe0] sm:$0xff]  ;;  %v412_v45 = vld [vmem:[%s4215_s1 + $0xe8] sm:$0xff] }
   0xf   : > { %v2859_v43 = vpack.c.bf16 %v410_v42, %v409_v41  ;;  %v2862_v46 = vpack.c.bf16 %v412_v45, %v411_v44  ;;  %v413_v47 = vld [vmem:[%s4215_s1 + $0xf0] sm:$0xff]  ;;  %v414_v48 = vld [vmem:[%s4215_s1 + $0xf8] sm:$0xff]  ;;  %s3008_s8 = smul.u32 56, %s4223_s25 }
  0x10   : > { %s3111_s18 = scalar_lea.vmem %s4214_s0, %s3007_s15  ;;  %2827 = vmatpush1.bf16.msra.mxu0 %v2826_v9  ;;  %v2865_v49 = vpack.c.bf16 %v414_v48, %v413_v47 }
  0x11   : > { %v280_v12 = vld [vmem:[%s3111_s18 + $0x8] sm:$0xff]  ;;  %2828 = vmatprep.subr.bf16.mxu0 %v3031_v3  ;;  %v279_v50 = vld [vmem:[%s3111_s18] sm:$0xff]  ;;  %v282_v51 = vld [vmem:[%s3111_s18 + $0x18] sm:$0xff]  ;;  %s4188_s11 = scalar_lea.vmem %s4221_s7, %s3008_s8 }
  0x12   : > { %486 = vmatprep.mubr.f32.mxu0 %v280_v12  ;;  %v281_v52 = vld [vmem:[%s3111_s18 + $0x10] sm:$0xff]  ;;  %v284_v53 = vld [vmem:[%s3111_s18 + $0x28] sm:$0xff]  ;;  %v283_v54 = vld [vmem:[%s3111_s18 + $0x20] sm:$0xff] }
  0x13   : > { %v286_v55 = vld [vmem:[%s3111_s18 + $0x38] sm:$0xff]  ;;  %v285_v56 = vld [vmem:[%s3111_s18 + $0x30] sm:$0xff]  ;;  %v288_v57 = vld [vmem:[%s3111_s18 + $0x48] sm:$0xff] }
  0x14   : > { %2830 = vmatpush1.bf16.msra.mxu0 %v2829_v13  ;;  %v287_v58 = vld [vmem:[%s3111_s18 + $0x40] sm:$0xff]  ;;  %v290_v59 = vld [vmem:[%s3111_s18 + $0x58] sm:$0xff]  ;;  %v289_v60 = vld [vmem:[%s3111_s18 + $0x50] sm:$0xff] }
  0x15   : > { %2831 = vmatprep.subr.bf16.mxu0 %v3031_v3  ;;  %v292_v61 = vld [vmem:[%s3111_s18 + $0x68] sm:$0xff]  ;;  %v291_v62 = vld [vmem:[%s3111_s18 + $0x60] sm:$0xff]  ;;  %v294_v63 = vld [vmem:[%s3111_s18 + $0x78] sm:$0xff] }
  0x16   : > { %v293_v0 = vld [vmem:[%s3111_s18 + $0x70] sm:$0xff]  ;;  %v296_v1 = vld [vmem:[%s3111_s18 + $0x88] sm:$0xff]  ;;  %v295_v2 = vld [vmem:[%s3111_s18 + $0x80] sm:$0xff] }
  0x17   : > { %v298_v4 = vld [vmem:[%s3111_s18 + $0x98] sm:$0xff]  ;;  %v297_v5 = vld [vmem:[%s3111_s18 + $0x90] sm:$0xff]  ;;  %v300_v6 = vld [vmem:[%s3111_s18 + $0xa8] sm:$0xff] }
  0x18   : > { %2833 = vmatpush1.bf16.msra.mxu0 %v2832_v16  ;;  %v299_v7 = vld [vmem:[%s3111_s18 + $0xa0] sm:$0xff]  ;;  %v302_v8 = vld [vmem:[%s3111_s18 + $0xb8] sm:$0xff]  ;;  %v301_v9 = vld [vmem:[%s3111_s18 + $0xb0] sm:$0xff] }
  0x19   : > { %2834 = vmatprep.subr.bf16.mxu0 %v3031_v3  ;;  %v304_v10 = vld [vmem:[%s3111_s18 + $0xc8] sm:$0xff]  ;;  %v303_v11 = vld [vmem:[%s3111_s18 + $0xc0] sm:$0xff]  ;;  %v306_v12 = vld [vmem:[%s3111_s18 + $0xd8] sm:$0xff] }
  0x1a   : > { %v305_v13 = vld [vmem:[%s3111_s18 + $0xd0] sm:$0xff]  ;;  %v308_v14 = vld [vmem:[%s3111_s18 + $0xe8] sm:$0xff]  ;;  %v307_v15 = vld [vmem:[%s3111_s18 + $0xe0] sm:$0xff] }
  0x1b   : > { %v310_v16 = vld [vmem:[%s3111_s18 + $0xf8] sm:$0xff]  ;;  %v309_v17 = vld [vmem:[%s3111_s18 + $0xf0] sm:$0xff]  ;;  %v312_v18 = vld [vmem:[%s3111_s18 + $0x108] sm:$0xff] }
  0x1c   : > { %2836 = vmatpush1.bf16.msra.mxu0 %v2835_v19  ;;  %v311_v19 = vld [vmem:[%s3111_s18 + $0x100] sm:$0xff]  ;;  %v314_v20 = vld [vmem:[%s3111_s18 + $0x118] sm:$0xff]  ;;  %v313_v21 = vld [vmem:[%s3111_s18 + $0x110] sm:$0xff] }
  0x1d   : > { %2837 = vmatprep.subr.bf16.mxu0 %v3031_v3  ;;  %v315_v23 = vld [vmem:[%s3111_s18 + $0x120] sm:$0xff]  ;;  %v318_v24 = vld [vmem:[%s3111_s18 + $0x138] sm:$0xff]  ;;  %v320_v26 = vld [vmem:[%s3111_s18 + $0x148] sm:$0xff] }
  0x1e   : > { %v319_v27 = vld [vmem:[%s3111_s18 + $0x140] sm:$0xff]  ;;  %v321_v29 = vld [vmem:[%s3111_s18 + $0x150] sm:$0xff]  ;;  %v324_v30 = vld [vmem:[%s3111_s18 + $0x168] sm:$0xff] }
  0x1f   : > { %v326_v32 = vld [vmem:[%s3111_s18 + $0x178] sm:$0xff]  ;;  %v325_v33 = vld [vmem:[%s3111_s18 + $0x170] sm:$0xff]  ;;  %v327_v35 = vld [vmem:[%s3111_s18 + $0x180] sm:$0xff] }
  0x20   : > { %2839 = vmatpush1.bf16.msra.mxu0 %v2838_v22  ;;  %v316_v22 = vld [vmem:[%s3111_s18 + $0x128] sm:$0xff]  ;;  %v330_v36 = vld [vmem:[%s3111_s18 + $0x198] sm:$0xff]  ;;  %v331_v39 = vld [vmem:[%s3111_s18 + $0x1a0] sm:$0xff] }
  0x21   : > { %2840 = vmatprep.subr.bf16.mxu0 %v3031_v3  ;;  %v332_v38 = vld [vmem:[%s3111_s18 + $0x1a8] sm:$0xff]  ;;  %v333_v41 = vld [vmem:[%s3111_s18 + $0x1b0] sm:$0xff]  ;;  %v338_v44 = vld [vmem:[%s3111_s18 + $0x1d8] sm:$0xff] }
  0x22   : > { %v336_v42 = vld [vmem:[%s3111_s18 + $0x1c8] sm:$0xff]  ;;  %v337_v45 = vld [vmem:[%s3111_s18 + $0x1d0] sm:$0xff]  ;;  %v339_v47 = vld [vmem:[%s3111_s18 + $0x1e0] sm:$0xff] }
  0x23   : > { %v342_v48 = vld [vmem:[%s3111_s18 + $0x1f8] sm:$0xff] }
  0x24   : > { %2842 = vmatpush1.bf16.msra.mxu0 %v2841_v25  ;;  %v317_v25 = vld [vmem:[%s3111_s18 + $0x130] sm:$0xff] }
  0x25   : > { %2843 = vmatprep.subr.bf16.mxu0 %v3031_v3 }
  0x28   : > { %2845 = vmatpush1.bf16.msra.mxu0 %v2844_v28  ;;  %v322_v28 = vld [vmem:[%s3111_s18 + $0x158] sm:$0xff] }
  0x29   : > { %2846 = vmatprep.subr.bf16.mxu0 %v3031_v3 }
  0x2c   : > { %2848 = vmatpush1.bf16.msra.mxu0 %v2847_v31  ;;  %v323_v31 = vld [vmem:[%s3111_s18 + $0x160] sm:$0xff] }
  0x2d   : > { %2849 = vmatprep.subr.bf16.mxu0 %v3031_v3 }
  0x30   : > { %2851 = vmatpush1.bf16.msra.mxu0 %v2850_v34  ;;  %v328_v34 = vld [vmem:[%s3111_s18 + $0x188] sm:$0xff] }
  0x31   : > { %2852 = vmatprep.subr.bf16.mxu0 %v3031_v3 }
  0x34   : > { %2854 = vmatpush1.bf16.msra.mxu0 %v2853_v37  ;;  %v329_v37 = vld [vmem:[%s3111_s18 + $0x190] sm:$0xff] }
  0x35   : > { %2855 = vmatprep.subr.bf16.mxu0 %v3031_v3 }
  0x38   : > { %2857 = vmatpush1.bf16.msra.mxu0 %v2856_v40  ;;  %v334_v40 = vld [vmem:[%s3111_s18 + $0x1b8] sm:$0xff] }
  0x39   : > { %2858 = vmatprep.subr.bf16.mxu0 %v3031_v3 }
  0x3c   : > { %2860 = vmatpush1.bf16.msra.mxu0 %v2859_v43  ;;  %v335_v43 = vld [vmem:[%s3111_s18 + $0x1c0] sm:$0xff] }
  0x3d   : > { %2861 = vmatprep.subr.bf16.mxu0 %v3031_v3 }
  0x40   : > { %2863 = vmatpush1.bf16.msra.mxu0 %v2862_v46  ;;  %v340_v46 = vld [vmem:[%s3111_s18 + $0x1e8] sm:$0xff] }
  0x41   : > { %2864 = vmatprep.subr.bf16.mxu0 %v3031_v3 }
  0x44   : > { %2866 = vmatpush1.bf16.msra.mxu0 %v2865_v49  ;;  %v341_v49 = vld [vmem:[%s3111_s18 + $0x1f0] sm:$0xff] }
  0x47   : > { %487 = vmatmul.mubr.f32.vlgmr.msra.gmra.mrb[0].mxu0 %v279_v50  ;;  %v344_v50 = vld [vmem:[%s3111_s18 + $0x208] sm:$0xff] }
  0x48   : > { %491 = vmatprep.mubr.f32.mxu0 %v282_v51  ;;  %v343_v51 = vld [vmem:[%s3111_s18 + $0x200] sm:$0xff] }
  0x4b   : > { %492 = vmatmul.mubr.f32.gmra.mrb[2].mxu0 %v281_v52  ;;  %v346_v52 = vld [vmem:[%s3111_s18 + $0x218] sm:$0xff] }
  0x4c   : > { %496 = vmatprep.mubr.f32.mxu0 %v284_v53  ;;  %v345_v53 = vld [vmem:[%s3111_s18 + $0x210] sm:$0xff] }
  0x4f   : > { %497 = vmatmul.mubr.f32.gmra.mrb[4].mxu0 %v283_v54  ;;  %v348_v54 = vld [vmem:[%s3111_s18 + $0x228] sm:$0xff] }
  0x50   : > { %501 = vmatprep.mubr.f32.mxu0 %v286_v55  ;;  %v347_v55 = vld [vmem:[%s3111_s18 + $0x220] sm:$0xff] }
  0x53   : > { %502 = vmatmul.mubr.f32.gmra.mrb[6].mxu0 %v285_v56  ;;  %v350_v56 = vld [vmem:[%s3111_s18 + $0x238] sm:$0xff] }
  0x54   : > { %506 = vmatprep.mubr.f32.mxu0 %v288_v57  ;;  %v349_v57 = vld [vmem:[%s3111_s18 + $0x230] sm:$0xff] }
  0x57   : > { %507 = vmatmul.mubr.f32.gmra.mrb[8].mxu0 %v287_v58  ;;  %v352_v58 = vld [vmem:[%s3111_s18 + $0x248] sm:$0xff] }
  0x58   : > { %511 = vmatprep.mubr.f32.mxu0 %v290_v59  ;;  %v351_v59 = vld [vmem:[%s3111_s18 + $0x240] sm:$0xff] }
  0x5b   : > { %512 = vmatmul.mubr.f32.gmra.mrb[10].mxu0 %v289_v60  ;;  %v354_v60 = vld [vmem:[%s3111_s18 + $0x258] sm:$0xff] }
  0x5c   : > { %516 = vmatprep.mubr.f32.mxu0 %v292_v61  ;;  %v353_v61 = vld [vmem:[%s3111_s18 + $0x250] sm:$0xff] }
  0x5f   : > { %517 = vmatmul.mubr.f32.gmra.mrb[12].mxu0 %v291_v62  ;;  %v356_v62 = vld [vmem:[%s3111_s18 + $0x268] sm:$0xff] }
  0x60   : > { %521 = vmatprep.mubr.f32.mxu0 %v294_v63  ;;  %v355_v63 = vld [vmem:[%s3111_s18 + $0x260] sm:$0xff] }
  0x63   : > { %522 = vmatmul.mubr.f32.gmra.mrb[14].mxu0 %v293_v0  ;;  %v358_v0 = vld [vmem:[%s3111_s18 + $0x278] sm:$0xff] }
  0x64   : > { %526 = vmatprep.mubr.f32.mxu0 %v296_v1  ;;  %v357_v1 = vld [vmem:[%s3111_s18 + $0x270] sm:$0xff] }
  0x67   : > { %527 = vmatmul.mubr.f32.gmra.mrb[16].mxu0 %v295_v2  ;;  %v360_v2 = vld [vmem:[%s3111_s18 + $0x288] sm:$0xff] }
  0x68   : > { %531 = vmatprep.mubr.f32.mxu0 %v298_v4  ;;  %v359_v4 = vld [vmem:[%s3111_s18 + $0x280] sm:$0xff] }
  0x6b   : > { %532 = vmatmul.mubr.f32.gmra.mrb[18].mxu0 %v297_v5  ;;  %v362_v5 = vld [vmem:[%s3111_s18 + $0x298] sm:$0xff] }
  0x6c   : > { %536 = vmatprep.mubr.f32.mxu0 %v300_v6  ;;  %v361_v6 = vld [vmem:[%s3111_s18 + $0x290] sm:$0xff] }
  0x6f   : > { %537 = vmatmul.mubr.f32.gmra.mrb[20].mxu0 %v299_v7  ;;  %v364_v7 = vld [vmem:[%s3111_s18 + $0x2a8] sm:$0xff] }
  0x70   : > { %541 = vmatprep.mubr.f32.mxu0 %v302_v8  ;;  %v363_v8 = vld [vmem:[%s3111_s18 + $0x2a0] sm:$0xff] }
  0x73   : > { %542 = vmatmul.mubr.f32.gmra.mrb[22].mxu0 %v301_v9  ;;  %v366_v9 = vld [vmem:[%s3111_s18 + $0x2b8] sm:$0xff] }
  0x74   : > { %546 = vmatprep.mubr.f32.mxu0 %v304_v10  ;;  %v365_v10 = vld [vmem:[%s3111_s18 + $0x2b0] sm:$0xff] }
  0x77   : > { %547 = vmatmul.mubr.f32.gmra.mrb[24].mxu0 %v303_v11  ;;  %v368_v11 = vld [vmem:[%s3111_s18 + $0x2c8] sm:$0xff] }
  0x78   : > { %551 = vmatprep.mubr.f32.mxu0 %v306_v12  ;;  %v367_v12 = vld [vmem:[%s3111_s18 + $0x2c0] sm:$0xff] }
  0x7b   : > { %552 = vmatmul.mubr.f32.gmra.mrb[26].mxu0 %v305_v13  ;;  %v370_v13 = vld [vmem:[%s3111_s18 + $0x2d8] sm:$0xff] }
  0x7c   : > { %556 = vmatprep.mubr.f32.mxu0 %v308_v14  ;;  %v369_v14 = vld [vmem:[%s3111_s18 + $0x2d0] sm:$0xff] }
  0x7f   : > { %557 = vmatmul.mubr.f32.gmra.mrb[28].mxu0 %v307_v15  ;;  %v372_v15 = vld [vmem:[%s3111_s18 + $0x2e8] sm:$0xff] }
  0x80   : > { %561 = vmatprep.mubr.f32.mxu0 %v310_v16  ;;  %v371_v16 = vld [vmem:[%s3111_s18 + $0x2e0] sm:$0xff] }
  0x83   : > { %562 = vmatmul.mubr.f32.gmra.mrb[30].mxu0 %v309_v17  ;;  %v374_v17 = vld [vmem:[%s3111_s18 + $0x2f8] sm:$0xff] }
  0x84   : > { %566 = vmatprep.mubr.f32.mxu0 %v312_v18  ;;  %v373_v18 = vld [vmem:[%s3111_s18 + $0x2f0] sm:$0xff] }
  0x87   : > { %567 = vmatmul.mubr.f32.gmra.mrb[32].mxu0 %v311_v19  ;;  %v376_v19 = vld [vmem:[%s3111_s18 + $0x308] sm:$0xff] }
  0x88   : > { %571 = vmatprep.mubr.f32.mxu0 %v314_v20  ;;  %v375_v20 = vld [vmem:[%s3111_s18 + $0x300] sm:$0xff] }
  0x8b   : > { %572 = vmatmul.mubr.f32.gmra.mrb[34].mxu0 %v313_v21  ;;  %v378_v21 = vld [vmem:[%s3111_s18 + $0x318] sm:$0xff] }
  0x8c   : > { %576 = vmatprep.mubr.f32.mxu0 %v316_v22  ;;  %v377_v22 = vld [vmem:[%s3111_s18 + $0x310] sm:$0xff] }
  0x8f   : > { %577 = vmatmul.mubr.f32.gmra.mrb[36].mxu0 %v315_v23  ;;  %v380_v23 = vld [vmem:[%s3111_s18 + $0x328] sm:$0xff] }
  0x90   : > { %581 = vmatprep.mubr.f32.mxu0 %v318_v24  ;;  %v379_v24 = vld [vmem:[%s3111_s18 + $0x320] sm:$0xff] }
  0x93   : > { %582 = vmatmul.mubr.f32.gmra.mrb[38].mxu0 %v317_v25  ;;  %v382_v25 = vld [vmem:[%s3111_s18 + $0x338] sm:$0xff] }
  0x94   : > { %586 = vmatprep.mubr.f32.mxu0 %v320_v26  ;;  %v381_v26 = vld [vmem:[%s3111_s18 + $0x330] sm:$0xff]  ;;  %s3032_s18 = smov 32  }
  0x97   : > { %587 = vmatmul.mubr.f32.gmra.mrb[40].mxu0 %v319_v27  ;;  %v3312_v27 = vld [vmem:[%s4216_s2] ss:$0 sm:$0xff] }
  0x98   : > { %591 = vmatprep.mubr.f32.mxu0 %v322_v28 }
  0x9b   : > { %592 = vmatmul.mubr.f32.gmra.mrb[42].mxu0 %v321_v29 }
  0x9c   : > { %596 = vmatprep.mubr.f32.mxu0 %v324_v30 }
  0x9f   : > { %597 = vmatmul.mubr.f32.gmra.mrb[44].mxu0 %v323_v31 }
  0xa0   : > { %601 = vmatprep.mubr.f32.mxu0 %v326_v32 }
  0xa3   : > { %602 = vmatmul.mubr.f32.gmra.mrb[46].mxu0 %v325_v33 }
  0xa4   : > { %606 = vmatprep.mubr.f32.mxu0 %v328_v34 }
  0xa7   : > { %607 = vmatmul.mubr.f32.gmra.mrb[48].mxu0 %v327_v35 }
  0xa8   : > { %611 = vmatprep.mubr.f32.mxu0 %v330_v36 }
  0xab   : > { %612 = vmatmul.mubr.f32.gmra.mrb[50].mxu0 %v329_v37 }
  0xac   : > { %616 = vmatprep.mubr.f32.mxu0 %v332_v38 }
  0xaf   : > { %617 = vmatmul.mubr.f32.gmra.mrb[52].mxu0 %v331_v39 }
  0xb0   : > { %621 = vmatprep.mubr.f32.mxu0 %v334_v40 }
  0xb3   : > { %622 = vmatmul.mubr.f32.gmra.mrb[54].mxu0 %v333_v41 }
  0xb4   : > { %626 = vmatprep.mubr.f32.mxu0 %v336_v42 }
  0xb7   : > { %627 = vmatmul.mubr.f32.gmra.mrb[56].mxu0 %v335_v43 }
  0xb8   : > { %631 = vmatprep.mubr.f32.mxu0 %v338_v44 }
  0xbb   : > { %632 = vmatmul.mubr.f32.gmra.mrb[58].mxu0 %v337_v45 }
  0xbc   : > { %636 = vmatprep.mubr.f32.mxu0 %v340_v46 }
  0xbf   : > { %637 = vmatmul.mubr.f32.gmra.mrb[60].mxu0 %v339_v47 }
  0xc0   : > { %641 = vmatprep.mubr.f32.mxu0 %v342_v48 }
  0xc3   : > { %642 = vmatmul.mubr.f32.gmra.mrb[62].mxu0 %v341_v49 }
  0xc4   : > { %646 = vmatprep.mubr.f32.mxu0 %v344_v50 }
  0xc7   : > { %647 = vmatmul.mubr.f32.gmra.mrb[64].mxu0 %v343_v51 }
  0xc8   : > { %651 = vmatprep.mubr.f32.mxu0 %v346_v52 }
  0xcb   : > { %652 = vmatmul.mubr.f32.gmra.mrb[66].mxu0 %v345_v53 }
  0xcc   : > { %656 = vmatprep.mubr.f32.mxu0 %v348_v54 }
  0xcf   : > { %657 = vmatmul.mubr.f32.gmra.mrb[68].mxu0 %v347_v55 }
  0xd0   : > { %661 = vmatprep.mubr.f32.mxu0 %v350_v56 }
  0xd3   : > { %662 = vmatmul.mubr.f32.gmra.mrb[70].mxu0 %v349_v57 }
  0xd4   : > { %666 = vmatprep.mubr.f32.mxu0 %v352_v58 }
  0xd7   : > { %667 = vmatmul.mubr.f32.gmra.mrb[72].mxu0 %v351_v59 }
  0xd8   : > { %671 = vmatprep.mubr.f32.mxu0 %v354_v60 }
  0xdb   : > { %672 = vmatmul.mubr.f32.gmra.mrb[74].mxu0 %v353_v61 }
  0xdc   : > { %676 = vmatprep.mubr.f32.mxu0 %v356_v62 }
  0xdf   : > { %677 = vmatmul.mubr.f32.gmra.mrb[76].mxu0 %v355_v63 }
  0xe0   : > { %681 = vmatprep.mubr.f32.mxu0 %v358_v0 }
  0xe3   : > { %682 = vmatmul.mubr.f32.gmra.mrb[78].mxu0 %v357_v1 }
  0xe4   : > { %686 = vmatprep.mubr.f32.mxu0 %v360_v2 }
  0xe7   : > { %687 = vmatmul.mubr.f32.gmra.mrb[80].mxu0 %v359_v4 }
  0xe8   : > { %691 = vmatprep.mubr.f32.mxu0 %v362_v5 }
  0xeb   : > { %692 = vmatmul.mubr.f32.gmra.mrb[82].mxu0 %v361_v6 }
  0xec   : > { %696 = vmatprep.mubr.f32.mxu0 %v364_v7 }
  0xef   : > { %697 = vmatmul.mubr.f32.gmra.mrb[84].mxu0 %v363_v8 }
  0xf0   : > { %701 = vmatprep.mubr.f32.mxu0 %v366_v9 }
  0xf3   : > { %702 = vmatmul.mubr.f32.gmra.mrb[86].mxu0 %v365_v10 }
  0xf4   : > { %706 = vmatprep.mubr.f32.mxu0 %v368_v11 }
  0xf7   : > { %707 = vmatmul.mubr.f32.gmra.mrb[88].mxu0 %v367_v12 }
  0xf8   : > { %711 = vmatprep.mubr.f32.mxu0 %v370_v13 }
  0xfb   : > { %712 = vmatmul.mubr.f32.gmra.mrb[90].mxu0 %v369_v14 }
  0xfc   : > { %716 = vmatprep.mubr.f32.mxu0 %v372_v15 }
  0xff   : > { %717 = vmatmul.mubr.f32.gmra.mrb[92].mxu0 %v371_v16 }
 0x100   : > { %721 = vmatprep.mubr.f32.mxu0 %v374_v17 }
 0x103   : > { %722 = vmatmul.mubr.f32.gmra.mrb[94].mxu0 %v373_v18 }
 0x104   : > { %726 = vmatprep.mubr.f32.mxu0 %v376_v19 }
 0x107   : > { %727 = vmatmul.mubr.f32.gmra.mrb[96].mxu0 %v375_v20 }
 0x108   : > { %731 = vmatprep.mubr.f32.mxu0 %v378_v21 }
 0x10b   : > { %732 = vmatmul.mubr.f32.gmra.mrb[98].mxu0 %v377_v22 }
 0x10c   : > { %736 = vmatprep.mubr.f32.mxu0 %v380_v23 }
 0x10f   : > { %737 = vmatmul.mubr.f32.gmra.mrb[100].mxu0 %v379_v24 }
 0x110   : > { %741 = vmatprep.mubr.f32.mxu0 %v382_v25 }
 0x113   : > { %742 = vmatmul.mubr.f32.gmra.mrb[102].mxu0 %v381_v26 }
 0x11a   : > { %v488_v28 = vpop.f32.mrb[0].mxu0 }
 0x11b   : > { %v489_v29 = vadd.f32 %v3312_v27, %v488_v28  ;;  %v490_v30 = vpop.f32.mrb[1].mxu0 }
 0x11d   : > { %v747_v31 = vmax.f32 %v489_v29, 0.0 }
 0x11e   : > { %v493_v32 = vpop.f32.mrb[2].mxu0 }
 0x11f   : > { %800 = vst.msk [vmem:[#allocation2] sm:$0xff] %vm799_vm0, %v747_v31  ;;  %v494_v33 = vadd.f32 %v3312_v27, %v493_v32  ;;  %v495_v34 = vpop.f32.mrb[3].mxu0 }
 0x121   : > { %v748_v35 = vmax.f32 %v494_v33, 0.0 }
 0x122   : > { %v498_v36 = vpop.f32.mrb[4].mxu0 }
 0x123   : > { %801 = vst.msk [vmem:[#allocation2 + $0x8] sm:$0xff] %vm799_vm0, %v748_v35  ;;  %v499_v37 = vadd.f32 %v3312_v27, %v498_v36  ;;  %v500_v38 = vpop.f32.mrb[5].mxu0 }
 0x125   : > { %v749_v39 = vmax.f32 %v499_v37, 0.0 }
 0x126   : > { %v503_v40 = vpop.f32.mrb[6].mxu0  ;;  %v852_v41 = vld [vmem:[#allocation2] sm:$0xff] }
 0x127   : > { %802 = vst.msk [vmem:[#allocation2 + $0x10] sm:$0xff] %vm799_vm0, %v749_v39  ;;  %v504_v42 = vadd.f32 %v3312_v27, %v503_v40  ;;  %v505_v43 = vpop.f32.mrb[7].mxu0  ;;  %865 = vst.msk [vmem:[#allocation3] sm:$0xff] %vm799_vm0, %v852_v41 }
 0x129   : > { %v750_v44 = vmax.f32 %v504_v42, 0.0 }
 0x12a   : > { %v508_v45 = vpop.f32.mrb[8].mxu0  ;;  %v853_v46 = vld [vmem:[#allocation2 + $0x8] sm:$0xff] }
 0x12b   : > { %803 = vst.msk [vmem:[#allocation2 + $0x18] sm:$0xff] %vm799_vm0, %v750_v44  ;;  %v509_v47 = vadd.f32 %v3312_v27, %v508_v45  ;;  %v510_v48 = vpop.f32.mrb[9].mxu0  ;;  %866 = vst.msk [vmem:[#allocation3 + $0x8] sm:$0xff] %vm799_vm0, %v853_v46 }
 0x12d   : > { %v751_v49 = vmax.f32 %v509_v47, 0.0 }
 0x12e   : > { %v513_v50 = vpop.f32.mrb[10].mxu0  ;;  %v854_v51 = vld [vmem:[#allocation2 + $0x10] sm:$0xff] }
 0x12f   : > { %804 = vst.msk [vmem:[#allocation2 + $0x20] sm:$0xff] %vm799_vm0, %v751_v49  ;;  %v514_v52 = vadd.f32 %v3312_v27, %v513_v50  ;;  %v515_v53 = vpop.f32.mrb[11].mxu0  ;;  %867 = vst.msk [vmem:[#allocation3 + $0x10] sm:$0xff] %vm799_vm0, %v854_v51 }
 0x131   : > { %v752_v54 = vmax.f32 %v514_v52, 0.0 }
 0x132   : > { %v518_v55 = vpop.f32.mrb[12].mxu0  ;;  %v855_v56 = vld [vmem:[#allocation2 + $0x18] sm:$0xff] }
 0x133   : > { %805 = vst.msk [vmem:[#allocation2 + $0x28] sm:$0xff] %vm799_vm0, %v752_v54  ;;  %v519_v57 = vadd.f32 %v3312_v27, %v518_v55  ;;  %v520_v58 = vpop.f32.mrb[13].mxu0  ;;  %868 = vst.msk [vmem:[#allocation3 + $0x18] sm:$0xff] %vm799_vm0, %v855_v56 }
 0x135   : > { %v753_v59 = vmax.f32 %v519_v57, 0.0 }
 0x136   : > { %v523_v60 = vpop.f32.mrb[14].mxu0  ;;  %v856_v61 = vld [vmem:[#allocation2 + $0x20] sm:$0xff] }
 0x137   : > { %806 = vst.msk [vmem:[#allocation2 + $0x30] sm:$0xff] %vm799_vm0, %v753_v59  ;;  %v524_v62 = vadd.f32 %v3312_v27, %v523_v60  ;;  %v525_v63 = vpop.f32.mrb[15].mxu0  ;;  %869 = vst.msk [vmem:[#allocation3 + $0x20] sm:$0xff] %vm799_vm0, %v856_v61 }
 0x139   : > { %v754_v0 = vmax.f32 %v524_v62, 0.0 }
 0x13a   : > { %v528_v1 = vpop.f32.mrb[16].mxu0  ;;  %v857_v2 = vld [vmem:[#allocation2 + $0x28] sm:$0xff] }
 0x13b   : > { %807 = vst.msk [vmem:[#allocation2 + $0x38] sm:$0xff] %vm799_vm0, %v754_v0  ;;  %v529_v4 = vadd.f32 %v3312_v27, %v528_v1  ;;  %v530_v5 = vpop.f32.mrb[17].mxu0  ;;  %870 = vst.msk [vmem:[#allocation3 + $0x28] sm:$0xff] %vm799_vm0, %v857_v2 }
 0x13d   : > { %v755_v6 = vmax.f32 %v529_v4, 0.0 }
 0x13e   : > { %v533_v7 = vpop.f32.mrb[18].mxu0  ;;  %v858_v8 = vld [vmem:[#allocation2 + $0x30] sm:$0xff] }
 0x13f   : > { %808 = vst.msk [vmem:[#allocation2 + $0x40] sm:$0xff] %vm799_vm0, %v755_v6  ;;  %v534_v9 = vadd.f32 %v3312_v27, %v533_v7  ;;  %v535_v10 = vpop.f32.mrb[19].mxu0  ;;  %871 = vst.msk [vmem:[#allocation3 + $0x30] sm:$0xff] %vm799_vm0, %v858_v8 }
 0x141   : > { %v756_v11 = vmax.f32 %v534_v9, 0.0 }
 0x142   : > { %v538_v12 = vpop.f32.mrb[20].mxu0  ;;  %v859_v13 = vld [vmem:[#allocation2 + $0x38] sm:$0xff] }
 0x143   : > { %809 = vst.msk [vmem:[#allocation2 + $0x48] sm:$0xff] %vm799_vm0, %v756_v11  ;;  %v539_v14 = vadd.f32 %v3312_v27, %v538_v12  ;;  %v540_v15 = vpop.f32.mrb[21].mxu0  ;;  %872 = vst.msk [vmem:[#allocation3 + $0x38] sm:$0xff] %vm799_vm0, %v859_v13 }
 0x145   : > { %v757_v16 = vmax.f32 %v539_v14, 0.0 }
 0x146   : > { %v543_v17 = vpop.f32.mrb[22].mxu0  ;;  %v860_v18 = vld [vmem:[#allocation2 + $0x40] sm:$0xff] }
 0x147   : > { %810 = vst.msk [vmem:[#allocation2 + $0x50] sm:$0xff] %vm799_vm0, %v757_v16  ;;  %v544_v19 = vadd.f32 %v3312_v27, %v543_v17  ;;  %v545_v20 = vpop.f32.mrb[23].mxu0  ;;  %873 = vst.msk [vmem:[#allocation3 + $0x40] sm:$0xff] %vm799_vm0, %v860_v18 }
 0x149   : > { %v758_v21 = vmax.f32 %v544_v19, 0.0 }
 0x14a   : > { %v548_v22 = vpop.f32.mrb[24].mxu0  ;;  %v861_v23 = vld [vmem:[#allocation2 + $0x48] sm:$0xff] }
 0x14b   : > { %811 = vst.msk [vmem:[#allocation2 + $0x58] sm:$0xff] %vm799_vm0, %v758_v21  ;;  %v549_v24 = vadd.f32 %v3312_v27, %v548_v22  ;;  %v550_v25 = vpop.f32.mrb[25].mxu0  ;;  %874 = vst.msk [vmem:[#allocation3 + $0x48] sm:$0xff] %vm799_vm0, %v861_v23 }
 0x14d   : > { %v759_v26 = vmax.f32 %v549_v24, 0.0 }
 0x14e   : > { %v553_v28 = vpop.f32.mrb[26].mxu0  ;;  %v862_v29 = vld [vmem:[#allocation2 + $0x50] sm:$0xff] }
 0x14f   : > { %812 = vst.msk [vmem:[#allocation2 + $0x60] sm:$0xff] %vm799_vm0, %v759_v26  ;;  %v554_v30 = vadd.f32 %v3312_v27, %v553_v28  ;;  %v555_v31 = vpop.f32.mrb[27].mxu0  ;;  %875 = vst.msk [vmem:[#allocation3 + $0x50] sm:$0xff] %vm799_vm0, %v862_v29 }
 0x151   : > { %v760_v32 = vmax.f32 %v554_v30, 0.0 }
 0x152   : > { %v558_v33 = vpop.f32.mrb[28].mxu0  ;;  %v863_v34 = vld [vmem:[#allocation2 + $0x58] sm:$0xff] }
 0x153   : > { %813 = vst.msk [vmem:[#allocation2 + $0x68] sm:$0xff] %vm799_vm0, %v760_v32  ;;  %v559_v35 = vadd.f32 %v3312_v27, %v558_v33  ;;  %v560_v36 = vpop.f32.mrb[29].mxu0  ;;  %876 = vst.msk [vmem:[#allocation3 + $0x58] sm:$0xff] %vm799_vm0, %v863_v34 }
 0x155   : > { %v761_v37 = vmax.f32 %v559_v35, 0.0 }
 0x156   : > { %v563_v38 = vpop.f32.mrb[30].mxu0  ;;  %v864_v39 = vld [vmem:[#allocation2 + $0x60] sm:$0xff] }
 0x157   : > { %814 = vst.msk [vmem:[#allocation2 + $0x70] sm:$0xff] %vm799_vm0, %v761_v37  ;;  %v564_v40 = vadd.f32 %v3312_v27, %v563_v38  ;;  %v565_v41 = vpop.f32.mrb[31].mxu0  ;;  %877 = vst.msk [vmem:[#allocation3 + $0x60] sm:$0xff] %vm799_vm0, %v864_v39 }
 0x159   : > { %v762_v42 = vmax.f32 %v564_v40, 0.0 }
 0x15a   : > { %v568_v43 = vpop.f32.mrb[32].mxu0  ;;  %v878_v44 = vld [vmem:[#allocation2 + $0x68] sm:$0xff] }
 0x15b   : > { %815 = vst.msk [vmem:[#allocation2 + $0x78] sm:$0xff] %vm799_vm0, %v762_v42  ;;  %v569_v45 = vadd.f32 %v3312_v27, %v568_v43  ;;  %v570_v46 = vpop.f32.mrb[33].mxu0  ;;  %904 = vrot.lane.b32.xlu0 %v878_v44, %s3032_s18 }
 0x15d   : > { %v763_v47 = vmax.f32 %v569_v45, 0.0 }
 0x15e   : > { %v573_v48 = vpop.f32.mrb[34].mxu0  ;;  %v879_v49 = vld [vmem:[#allocation2 + $0x70] sm:$0xff] }
 0x15f   : > { %816 = vst.msk [vmem:[#allocation2 + $0x80] sm:$0xff] %vm799_vm0, %v763_v47  ;;  %v574_v50 = vadd.f32 %v3312_v27, %v573_v48  ;;  %v575_v51 = vpop.f32.mrb[35].mxu0  ;;  %906 = vrot.lane.b32.xlu0 %v879_v49, %s3032_s18 }
 0x161   : > { %v764_v52 = vmax.f32 %v574_v50, 0.0 }
 0x162   : > { %v578_v53 = vpop.f32.mrb[36].mxu0  ;;  %v880_v54 = vld [vmem:[#allocation2 + $0x78] sm:$0xff] }
 0x163   : > { %817 = vst.msk [vmem:[#allocation2 + $0x88] sm:$0xff] %vm799_vm0, %v764_v52  ;;  %v579_v55 = vadd.f32 %v3312_v27, %v578_v53  ;;  %v580_v56 = vpop.f32.mrb[37].mxu0  ;;  %908 = vrot.lane.b32.xlu0 %v880_v54, %s3032_s18 }
 0x165   : > { %v765_v57 = vmax.f32 %v579_v55, 0.0 }
 0x166   : > { %v583_v58 = vpop.f32.mrb[38].mxu0  ;;  %v881_v59 = vld [vmem:[#allocation2 + $0x80] sm:$0xff] }
 0x167   : > { %818 = vst.msk [vmem:[#allocation2 + $0x90] sm:$0xff] %vm799_vm0, %v765_v57  ;;  %v584_v60 = vadd.f32 %v3312_v27, %v583_v58  ;;  %v585_v61 = vpop.f32.mrb[39].mxu0  ;;  %910 = vrot.lane.b32.xlu1 %v881_v59, %s3032_s18  ;;  %v1275_v57 = vld [vmem:[%s4217_s3 + $0x80] sm:$0xff]  ;;  %v1276_v58 = vld [vmem:[%s4217_s3 + $0x88] sm:$0xff] }
 0x168   : > { %v2867_v61 = vpack.c.bf16 %v1276_v58, %v1275_v57 }
 0x169   : > { %v766_v62 = vmax.f32 %v584_v60, 0.0 }
 0x16a   : > { %v588_v63 = vpop.f32.mrb[40].mxu0  ;;  %v882_v0 = vld [vmem:[#allocation2 + $0x88] sm:$0xff]  ;;  %2868 = vmatprep.subr.bf16.mxu1 %v2867_v61 }
 0x16b   : > { %819 = vst.msk [vmem:[#allocation2 + $0x98] sm:$0xff] %vm799_vm0, %v766_v62  ;;  %v589_v1 = vadd.f32 %v3312_v27, %v588_v63  ;;  %v590_v2 = vpop.f32.mrb[41].mxu0  ;;  %912 = vrot.lane.b32.xlu0 %v882_v0, %s3032_s18  ;;  %v1259_v62 = vld [vmem:[%s4217_s3] sm:$0xff]  ;;  %v1260_v63 = vld [vmem:[%s4217_s3 + $0x8] sm:$0xff]  ;;  %v1277_v0 = vld [vmem:[%s4217_s3 + $0x90] sm:$0xff] }
 0x16c   : > { %v1278_v2 = vld [vmem:[%s4217_s3 + $0x98] sm:$0xff] }
 0x16d   : > { %v767_v4 = vmax.f32 %v589_v1, 0.0  ;;  %v2869_v1 = vpack.c.bf16 %v1260_v63, %v1259_v62 }
 0x16e   : > { %v593_v5 = vpop.f32.mrb[42].mxu0  ;;  %v883_v6 = vld [vmem:[#allocation2 + $0x90] sm:$0xff] }
 0x16f   : > { %820 = vst.msk [vmem:[#allocation2 + $0xa0] sm:$0xff] %vm799_vm0, %v767_v4  ;;  %v594_v7 = vadd.f32 %v3312_v27, %v593_v5  ;;  %v595_v8 = vpop.f32.mrb[43].mxu0  ;;  %914 = vrot.lane.b32.xlu1 %v883_v6, %s3032_s18  ;;  %v1261_v4 = vld [vmem:[%s4217_s3 + $0x10] sm:$0xff]  ;;  %v1262_v5 = vld [vmem:[%s4217_s3 + $0x18] sm:$0xff]  ;;  %2870 = vmatpush3.bf16.msra.mxu1 %v2869_v1  ;;  %v1287_v1 = vld [vmem:[%s4217_s3 + $0xe0] sm:$0xff] }
 0x170   : > { %v1279_v8 = vld [vmem:[%s4217_s3 + $0xa0] sm:$0xff] }
 0x171   : > { %v768_v9 = vmax.f32 %v594_v7, 0.0  ;;  %v2871_v7 = vpack.c.bf16 %v1278_v2, %v1277_v0  ;;  %v1288_v2 = vld [vmem:[%s4217_s3 + $0xe8] sm:$0xff] }
 0x172   : > { %v598_v10 = vpop.f32.mrb[44].mxu0  ;;  %v884_v11 = vld [vmem:[#allocation2 + $0x98] sm:$0xff] }
 0x173   : > { %821 = vst.msk [vmem:[#allocation2 + $0xa8] sm:$0xff] %vm799_vm0, %v768_v9  ;;  %v599_v12 = vadd.f32 %v3312_v27, %v598_v10  ;;  %v600_v13 = vpop.f32.mrb[45].mxu0  ;;  %916 = vrot.lane.b32.xlu0 %v884_v11, %s3032_s18  ;;  %v1280_v9 = vld [vmem:[%s4217_s3 + $0xa8] sm:$0xff]  ;;  %2872 = vmatprep.subr.bf16.mxu1 %v2871_v7 }
 0x174   : > { %v1272_v7 = vld [vmem:[%s4217_s3 + $0x68] sm:$0xff] }
 0x175   : > { %v769_v14 = vmax.f32 %v599_v12, 0.0  ;;  %v2873_v12 = vpack.c.bf16 %v1262_v5, %v1261_v4  ;;  %v2891_v5 = vpack.c.bf16 %v1288_v2, %v1287_v1 }
 0x176   : > { %v603_v15 = vpop.f32.mrb[46].mxu0 }
 0x177   : > { %822 = vst.msk [vmem:[#allocation2 + $0xb0] sm:$0xff] %vm799_vm0, %v769_v14  ;;  %v604_v16 = vadd.f32 %v3312_v27, %v603_v15  ;;  %v605_v17 = vpop.f32.mrb[47].mxu0  ;;  %v2875_v15 = vpack.c.bf16 %v1280_v9, %v1279_v8  ;;  %2874 = vmatpush3.bf16.msra.mxu1 %v2873_v12  ;;  %v1289_v12 = vld [vmem:[%s4217_s3 + $0xf0] sm:$0xff] }
 0x178   : > { %v1264_v17 = vld [vmem:[%s4217_s3 + $0x28] sm:$0xff] }
 0x179   : > { %v770_v18 = vmax.f32 %v604_v16, 0.0  ;;  %v1263_v16 = vld [vmem:[%s4217_s3 + $0x20] sm:$0xff]  ;;  %2876 = vmatprep.subr.bf16.mxu1 %v2875_v15 }
 0x17a   : > { %v608_v19 = vpop.f32.mrb[48].mxu0 }
 0x17b   : > { %823 = vst.msk [vmem:[#allocation2 + $0xb8] sm:$0xff] %vm799_vm0, %v770_v18  ;;  %v609_v20 = vadd.f32 %v3312_v27, %v608_v19  ;;  %v610_v21 = vpop.f32.mrb[49].mxu0 }
 0x17c   : > { %v2877_v21 = vpack.c.bf16 %v1264_v17, %v1263_v16  ;;  %v1273_v16 = vld [vmem:[%s4217_s3 + $0x70] sm:$0xff]  ;;  %v1274_v17 = vld [vmem:[%s4217_s3 + $0x78] sm:$0xff] }
 0x17d   : > { %v771_v22 = vmax.f32 %v609_v20, 0.0 }
 0x17e   : > { %v613_v23 = vpop.f32.mrb[50].mxu0  ;;  %2878 = vmatpush3.bf16.msra.mxu1 %v2877_v21  ;;  %v887_v1 = vld [vmem:[#allocation2 + $0xb0] sm:$0xff] }
 0x17f   : > { %824 = vst.msk [vmem:[#allocation2 + $0xc0] sm:$0xff] %vm799_vm0, %v771_v22  ;;  %v614_v24 = vadd.f32 %v3312_v27, %v613_v23  ;;  %v615_v25 = vpop.f32.mrb[51].mxu0 }
 0x181   : > { %v772_v26 = vmax.f32 %v614_v24, 0.0 }
 0x182   : > { %v618_v28 = vpop.f32.mrb[52].mxu0 }
 0x183   : > { %825 = vst.msk [vmem:[#allocation2 + $0xc8] sm:$0xff] %vm799_vm0, %v772_v26  ;;  %v619_v29 = vadd.f32 %v3312_v27, %v618_v28  ;;  %v620_v30 = vpop.f32.mrb[53].mxu0 }
 0x185   : > { %v773_v31 = vmax.f32 %v619_v29, 0.0 }
 0x186   : > { %v623_v32 = vpop.f32.mrb[54].mxu0 }
 0x187   : > { %826 = vst.msk [vmem:[#allocation2 + $0xd0] sm:$0xff] %vm799_vm0, %v773_v31  ;;  %v624_v33 = vadd.f32 %v3312_v27, %v623_v32  ;;  %v625_v34 = vpop.f32.mrb[55].mxu0 }
 0x188   : > { %v1281_v34 = vld [vmem:[%s4217_s3 + $0xb0] sm:$0xff] }
 0x189   : > { %v774_v35 = vmax.f32 %v624_v33, 0.0 }
 0x18a   : > { %v628_v36 = vpop.f32.mrb[56].mxu0 }
 0x18b   : > { %827 = vst.msk [vmem:[#allocation2 + $0xd8] sm:$0xff] %vm799_vm0, %v774_v35  ;;  %v629_v37 = vadd.f32 %v3312_v27, %v628_v36  ;;  %v630_v38 = vpop.f32.mrb[57].mxu0  ;;  %v1282_v35 = vld [vmem:[%s4217_s3 + $0xb8] sm:$0xff] }
 0x18c   : > { %v1265_v38 = vld [vmem:[%s4217_s3 + $0x30] sm:$0xff] }
 0x18d   : > { %v775_v39 = vmax.f32 %v629_v37, 0.0  ;;  %v2879_v37 = vpack.c.bf16 %v1282_v35, %v1281_v34  ;;  %v885_v34 = vld [vmem:[#allocation2 + $0xa0] sm:$0xff] }
 0x18e   : > { %v633_v40 = vpop.f32.mrb[58].mxu0  ;;  %v957_v41 = vld [vmem:[#allocation2 + $0xd0] sm:$0xff] }
 0x18f   : > { %828 = vst.msk [vmem:[#allocation2 + $0xe0] sm:$0xff] %vm799_vm0, %v775_v39  ;;  %v634_v42 = vadd.f32 %v3312_v27, %v633_v40  ;;  %v635_v43 = vpop.f32.mrb[59].mxu0  ;;  %983 = vrot.lane.b32.xlu1 %v957_v41, %s3033_s12  ;;  %v1266_v39 = vld [vmem:[%s4217_s3 + $0x38] sm:$0xff]  ;;  %2880 = vmatprep.subr.bf16.mxu1 %v2879_v37 }
 0x190   : > { %v2881_v41 = vpack.c.bf16 %v1266_v39, %v1265_v38 }
 0x191   : > { %v776_v44 = vmax.f32 %v634_v42, 0.0 }
 0x192   : > { %v638_v45 = vpop.f32.mrb[60].mxu0  ;;  %v958_v46 = vld [vmem:[#allocation2 + $0xd8] sm:$0xff]  ;;  %2882 = vmatpush3.bf16.msra.mxu1 %v2881_v41 }
 0x193   : > { %829 = vst.msk [vmem:[#allocation2 + $0xe8] sm:$0xff] %vm799_vm0, %v776_v44  ;;  %v639_v47 = vadd.f32 %v3312_v27, %v638_v45  ;;  %v640_v48 = vpop.f32.mrb[61].mxu0  ;;  %985 = vrot.lane.b32.xlu1 %v958_v46, %s3033_s12  ;;  %v1283_v44 = vld [vmem:[%s4217_s3 + $0xc0] sm:$0xff]  ;;  %v1284_v45 = vld [vmem:[%s4217_s3 + $0xc8] sm:$0xff] }
 0x194   : > { %v1267_v48 = vld [vmem:[%s4217_s3 + $0x40] sm:$0xff] }
 0x195   : > { %v777_v49 = vmax.f32 %v639_v47, 0.0  ;;  %v2883_v47 = vpack.c.bf16 %v1284_v45, %v1283_v44 }
 0x196   : > { %v643_v50 = vpop.f32.mrb[62].mxu0  ;;  %v959_v51 = vld [vmem:[#allocation2 + $0xe0] sm:$0xff] }
 0x197   : > { %830 = vst.msk [vmem:[#allocation2 + $0xf0] sm:$0xff] %vm799_vm0, %v777_v49  ;;  %v644_v52 = vadd.f32 %v3312_v27, %v643_v50  ;;  %v645_v53 = vpop.f32.mrb[63].mxu0  ;;  %987 = vrot.lane.b32.xlu1 %v959_v51, %s3033_s12  ;;  %v1268_v49 = vld [vmem:[%s4217_s3 + $0x48] sm:$0xff]  ;;  %2884 = vmatprep.subr.bf16.mxu1 %v2883_v47 }
 0x198   : > { %v2885_v51 = vpack.c.bf16 %v1268_v49, %v1267_v48 }
 0x199   : > { %v778_v54 = vmax.f32 %v644_v52, 0.0 }
 0x19a   : > { %v648_v55 = vpop.f32.mrb[64].mxu0  ;;  %v960_v56 = vld [vmem:[#allocation2 + $0xe8] sm:$0xff]  ;;  %2886 = vmatpush3.bf16.msra.mxu1 %v2885_v51 }
 0x19b   : > { %831 = vst.msk [vmem:[#allocation2 + $0xf8] sm:$0xff] %vm799_vm0, %v778_v54  ;;  %v649_v59 = vadd.f32 %v3312_v27, %v648_v55  ;;  %v650_v60 = vpop.f32.mrb[65].mxu0  ;;  %989 = vrot.lane.b32.xlu0 %v960_v56, %s3033_s12  ;;  %v1285_v55 = vld [vmem:[%s4217_s3 + $0xd0] sm:$0xff]  ;;  %v1286_v56 = vld [vmem:[%s4217_s3 + $0xd8] sm:$0xff] }
 0x19c   : > { %v2887_v58 = vpack.c.bf16 %v1286_v56, %v1285_v55  ;;  %v1270_v60 = vld [vmem:[%s4217_s3 + $0x58] sm:$0xff] }
 0x19d   : > { %v779_v6 = vmax.f32 %v649_v59, 0.0  ;;  %v1269_v59 = vld [vmem:[%s4217_s3 + $0x50] sm:$0xff] }
 0x19e   : > { %v653_v10 = vpop.f32.mrb[66].mxu0  ;;  %v961_v11 = vld [vmem:[#allocation2 + $0xf0] sm:$0xff]  ;;  %v2889_v63 = vpack.c.bf16 %v1270_v60, %v1269_v59  ;;  %2888 = vmatprep.subr.bf16.mxu1 %v2887_v58  ;;  %v886_v59 = vld [vmem:[#allocation2 + $0xa8] sm:$0xff] }
 0x19f   : > { %832 = vst.msk [vmem:[#allocation2 + $0x100] sm:$0xff] %vm799_vm0, %v779_v6  ;;  %v654_v13 = vadd.f32 %v3312_v27, %v653_v10  ;;  %v655_v14 = vpop.f32.mrb[67].mxu0  ;;  %991 = vrot.lane.b32.xlu1 %v961_v11, %s3033_s12  ;;  %v1271_v6 = vld [vmem:[%s4217_s3 + $0x60] sm:$0xff] }
 0x1a0   : > { %2890 = vmatpush3.bf16.msra.mxu1 %v2889_v63  ;;  %v2893_v10 = vpack.c.bf16 %v1272_v7, %v1271_v6 }
 0x1a1   : > { %v780_v18 = vmax.f32 %v654_v13, 0.0  ;;  %2892 = vmatprep.subr.bf16.mxu1 %v2891_v5  ;;  %v1290_v13 = vld [vmem:[%s4217_s3 + $0xf8] sm:$0xff] }
 0x1a2   : > { %v658_v19 = vpop.f32.mrb[68].mxu0  ;;  %v962_v20 = vld [vmem:[#allocation2 + $0xf8] sm:$0xff]  ;;  %v2895_v15 = vpack.c.bf16 %v1290_v13, %v1289_v12 }
 0x1a3   : > { %833 = vst.msk [vmem:[#allocation2 + $0x108] sm:$0xff] %vm799_vm0, %v780_v18  ;;  %v659_v22 = vadd.f32 %v3312_v27, %v658_v19  ;;  %v660_v23 = vpop.f32.mrb[69].mxu0  ;;  %993 = vrot.lane.b32.xlu0 %v962_v20, %s3033_s12  ;;  %v2897_v20 = vpack.c.bf16 %v1274_v17, %v1273_v16 }
 0x1a4   : > { %2894 = vmatpush3.bf16.msra.mxu1 %v2893_v10 }
 0x1a5   : > { %v781_v24 = vmax.f32 %v659_v22, 0.0  ;;  %2896 = vmatprep.subr.bf16.mxu1 %v2895_v15 }
 0x1a6   : > { %v663_v25 = vpop.f32.mrb[70].mxu0  ;;  %v963_v26 = vld [vmem:[#allocation2 + $0x100] sm:$0xff] }
 0x1a7   : > { %834 = vst.msk [vmem:[#allocation2 + $0x110] sm:$0xff] %vm799_vm0, %v781_v24  ;;  %v664_v28 = vadd.f32 %v3312_v27, %v663_v25  ;;  %v665_v29 = vpop.f32.mrb[71].mxu0  ;;  %995 = vrot.lane.b32.xlu1 %v963_v26, %s3033_s12 }
 0x1a8   : > { %2898 = vmatpush3.bf16.msra.mxu1 %v2897_v20 }
 0x1a9   : > { %v782_v30 = vmax.f32 %v664_v28, 0.0 }
 0x1aa   : > { %v668_v31 = vpop.f32.mrb[72].mxu0 }
 0x1ab   : > { %835 = vst.msk [vmem:[#allocation2 + $0x118] sm:$0xff] %vm799_vm0, %v782_v30  ;;  %v669_v32 = vadd.f32 %v3312_v27, %v668_v31  ;;  %v670_v33 = vpop.f32.mrb[73].mxu0 }
 0x1ad   : > { %v783_v36 = vmax.f32 %v669_v32, 0.0 }
 0x1ae   : > { %v673_v40 = vpop.f32.mrb[74].mxu0  ;;  %v965_v48 = vld [vmem:[#allocation2 + $0x110] sm:$0xff] }
 0x1af   : > { %836 = vst.msk [vmem:[#allocation2 + $0x120] sm:$0xff] %vm799_vm0, %v783_v36  ;;  %v674_v42 = vadd.f32 %v3312_v27, %v673_v40  ;;  %v675_v43 = vpop.f32.mrb[75].mxu0 }
 0x1b1   : > { %v784_v46 = vmax.f32 %v674_v42, 0.0  ;;  %v964_v42 = vld [vmem:[#allocation2 + $0x108] sm:$0xff] }
 0x1b2   : > { %v678_v50 = vpop.f32.mrb[76].mxu0  ;;  %v966_v10 = vld [vmem:[#allocation2 + $0x118] sm:$0xff] }
 0x1b3   : > { %837 = vst.msk [vmem:[#allocation2 + $0x128] sm:$0xff] %vm799_vm0, %v784_v46  ;;  %v679_v52 = vadd.f32 %v3312_v27, %v678_v50  ;;  %v680_v53 = vpop.f32.mrb[77].mxu0 }
 0x1b4   : > { %v1308_v53 = vld [vmem:[%s4217_s3 + $0x188] sm:$0xff] }
 0x1b5   : > { %v785_v54 = vmax.f32 %v679_v52, 0.0  ;;  %v1307_v52 = vld [vmem:[%s4217_s3 + $0x180] sm:$0xff] }
 0x1b6   : > { %v683_v57 = vpop.f32.mrb[78].mxu0  ;;  %v967_v16 = vld [vmem:[#allocation2 + $0x120] sm:$0xff] }
 0x1b7   : > { %838 = vst.msk [vmem:[#allocation2 + $0x130] sm:$0xff] %vm799_vm0, %v785_v54  ;;  %v684_v61 = vadd.f32 %v3312_v27, %v683_v57  ;;  %v685_v62 = vpop.f32.mrb[79].mxu0  ;;  %v2899_v54 = vpack.c.bf16 %v1308_v53, %v1307_v52  ;;  %v1293_v52 = vld [vmem:[%s4217_s3 + $0x110] sm:$0xff] }
 0x1b9   : > { %v786_v0 = vmax.f32 %v684_v61, 0.0  ;;  %2900 = vmatprep.subr.bf16.mxu1 %v2899_v54 }
 0x1ba   : > { %v688_v4 = vpop.f32.mrb[80].mxu0 }
 0x1bb   : > { %839 = vst.msk [vmem:[#allocation2 + $0x138] sm:$0xff] %vm799_vm0, %v786_v0  ;;  %v689_v8 = vadd.f32 %v3312_v27, %v688_v4  ;;  %v690_v9 = vpop.f32.mrb[81].mxu0 }
 0x1bd   : > { %v787_v11 = vmax.f32 %v689_v8, 0.0 }
 0x1be   : > { %v693_v14 = vpop.f32.mrb[82].mxu0 }
 0x1bf   : > { %840 = vst.msk [vmem:[#allocation2 + $0x140] sm:$0xff] %vm799_vm0, %v787_v11  ;;  %v694_v18 = vadd.f32 %v3312_v27, %v693_v14  ;;  %v695_v19 = vpop.f32.mrb[83].mxu0 }
 0x1c1   : > { %v788_v21 = vmax.f32 %v694_v18, 0.0 }
 0x1c2   : > { %v698_v22 = vpop.f32.mrb[84].mxu0  ;;  %v1036_v23 = vld [vmem:[#allocation2 + $0x138] sm:$0xff] }
 0x1c3   : > { %841 = vst.msk [vmem:[#allocation2 + $0x148] sm:$0xff] %vm799_vm0, %v788_v21  ;;  %v699_v24 = vadd.f32 %v3312_v27, %v698_v22  ;;  %v700_v25 = vpop.f32.mrb[85].mxu0  ;;  %1062 = vrot.lane.b32.xlu0 %v1036_v23, %s3034_s21  ;;  %v888_v23 = vld [vmem:[#allocation2 + $0xb8] sm:$0xff] }
 0x1c5   : > { %v789_v26 = vmax.f32 %v699_v24, 0.0 }
 0x1c6   : > { %v703_v28 = vpop.f32.mrb[86].mxu0  ;;  %v1037_v29 = vld [vmem:[#allocation2 + $0x140] sm:$0xff] }
 0x1c7   : > { %842 = vst.msk [vmem:[#allocation2 + $0x150] sm:$0xff] %vm799_vm0, %v789_v26  ;;  %v704_v30 = vadd.f32 %v3312_v27, %v703_v28  ;;  %v705_v31 = vpop.f32.mrb[87].mxu0  ;;  %1064 = vrot.lane.b32.xlu1 %v1037_v29, %s3034_s21  ;;  %v889_v29 = vld [vmem:[#allocation2 + $0xc0] sm:$0xff] }
 0x1c9   : > { %v790_v32 = vmax.f32 %v704_v30, 0.0 }
 0x1ca   : > { %v708_v33 = vpop.f32.mrb[88].mxu0  ;;  %v1038_v35 = vld [vmem:[#allocation2 + $0x148] sm:$0xff] }
 0x1cb   : > { %843 = vst.msk [vmem:[#allocation2 + $0x158] sm:$0xff] %vm799_vm0, %v790_v32  ;;  %v709_v36 = vadd.f32 %v3312_v27, %v708_v33  ;;  %v710_v37 = vpop.f32.mrb[89].mxu0  ;;  %918 = vrot.lane.b32.xlu1 %v885_v34, %s3032_s18  ;;  %1066 = vrot.lane.b32.xlu0 %v1038_v35, %s3034_s21  ;;  %v968_v32 = vld [vmem:[#allocation2 + $0x128] sm:$0xff]  ;;  %v969_v33 = vld [vmem:[#allocation2 + $0x130] sm:$0xff] }
 0x1cc   : > { %v890_v34 = vld [vmem:[#allocation2 + $0xc8] sm:$0xff] }
 0x1cd   : > { %v791_v38 = vmax.f32 %v709_v36, 0.0  ;;  %v905_v39 = vpop.permute.xlu0 %904 }
 0x1ce   : > { %944 = vst.msk [vmem:[#allocation3] sm:$0xff] %vm943_vm1, %v905_v39  ;;  %v713_v40 = vpop.f32.mrb[90].mxu0  ;;  %v1039_v41 = vld [vmem:[#allocation2 + $0x150] sm:$0xff] }
 0x1cf   : > { %844 = vst.msk [vmem:[#allocation2 + $0x160] sm:$0xff] %vm799_vm0, %v791_v38  ;;  %v714_v43 = vadd.f32 %v3312_v27, %v713_v40  ;;  %v715_v44 = vpop.f32.mrb[91].mxu0  ;;  %1068 = vrot.lane.b32.xlu1 %v1039_v41, %s3034_s21  ;;  %997 = vrot.lane.b32.xlu0 %v964_v42, %s3033_s12 }
 0x1d1   : > { %v792_v45 = vmax.f32 %v714_v43, 0.0  ;;  %v907_v46 = vpop.permute.xlu0 %906 }
 0x1d2   : > { %945 = vst.msk [vmem:[#allocation3 + $0x8] sm:$0xff] %vm943_vm1, %v907_v46  ;;  %v718_v47 = vpop.f32.mrb[92].mxu0  ;;  %v1040_v49 = vld [vmem:[#allocation2 + $0x158] sm:$0xff] }
 0x1d3   : > { %845 = vst.msk [vmem:[#allocation2 + $0x168] sm:$0xff] %vm799_vm0, %v792_v45  ;;  %v719_v50 = vadd.f32 %v3312_v27, %v718_v47  ;;  %v720_v51 = vpop.f32.mrb[93].mxu0  ;;  %999 = vrot.lane.b32.xlu1 %v965_v48, %s3033_s12  ;;  %1070 = vrot.lane.b32.xlu0 %v1040_v49, %s3034_s21  ;;  %v1291_v47 = vld [vmem:[%s4217_s3 + $0x100] sm:$0xff]  ;;  %v1292_v48 = vld [vmem:[%s4217_s3 + $0x108] sm:$0xff] }
 0x1d4   : > { %v1309_v49 = vld [vmem:[%s4217_s3 + $0x190] sm:$0xff]  ;;  %v2901_v51 = vpack.c.bf16 %v1292_v48, %v1291_v47  ;;  %v1303_v47 = vld [vmem:[%s4217_s3 + $0x160] sm:$0xff]  ;;  %v1304_v48 = vld [vmem:[%s4217_s3 + $0x168] sm:$0xff] }
 0x1d5   : > { %v793_v55 = vmax.f32 %v719_v50, 0.0  ;;  %v909_v56 = vpop.permute.xlu0 %908  ;;  %v1310_v50 = vld [vmem:[%s4217_s3 + $0x198] sm:$0xff] }
 0x1d6   : > { %946 = vst.msk [vmem:[#allocation3 + $0x10] sm:$0xff] %vm943_vm1, %v909_v56  ;;  %v723_v57 = vpop.f32.mrb[94].mxu0  ;;  %v1041_v58 = vld [vmem:[#allocation2 + $0x160] sm:$0xff] }
 0x1d7   : > { %846 = vst.msk [vmem:[#allocation2 + $0x170] sm:$0xff] %vm799_vm0, %v793_v55  ;;  %v724_v60 = vadd.f32 %v3312_v27, %v723_v57  ;;  %v725_v61 = vpop.f32.mrb[95].mxu0  ;;  %1072 = vrot.lane.b32.xlu1 %v1041_v58, %s3034_s21  ;;  %920 = vrot.lane.b32.xlu0 %v886_v59, %s3032_s18  ;;  %v2903_v57 = vpack.c.bf16 %v1310_v50, %v1309_v49  ;;  %v1294_v58 = vld [vmem:[%s4217_s3 + $0x118] sm:$0xff]  ;;  %v1311_v59 = vld [vmem:[%s4217_s3 + $0x1a0] sm:$0xff] }
 0x1d8   : > { %v2905_v61 = vpack.c.bf16 %v1294_v58, %v1293_v52  ;;  %v2925_v58 = vpack.c.bf16 %v1304_v48, %v1303_v47 }
 0x1d9   : > { %v794_v62 = vmax.f32 %v724_v60, 0.0  ;;  %v911_v63 = vpop.permute.xlu1 %910  ;;  %v1312_v60 = vld [vmem:[%s4217_s3 + $0x1a8] sm:$0xff] }
 0x1da   : > { %947 = vst.msk [vmem:[#allocation3 + $0x18] sm:$0xff] %vm943_vm1, %v911_v63  ;;  %v728_v0 = vpop.f32.mrb[96].mxu0  ;;  %v1042_v2 = vld [vmem:[#allocation2 + $0x168] sm:$0xff] }
 0x1db   : > { %847 = vst.msk [vmem:[#allocation2 + $0x178] sm:$0xff] %vm799_vm0, %v794_v62  ;;  %v729_v4 = vadd.f32 %v3312_v27, %v728_v0  ;;  %v730_v5 = vpop.f32.mrb[97].mxu0  ;;  %922 = vrot.lane.b32.xlu1 %v887_v1, %s3032_s18  ;;  %1074 = vrot.lane.b32.xlu0 %v1042_v2, %s3034_s21  ;;  %v1295_v62 = vld [vmem:[%s4217_s3 + $0x120] sm:$0xff]  ;;  %v1296_v63 = vld [vmem:[%s4217_s3 + $0x128] sm:$0xff] }
 0x1dd   : > { %v795_v6 = vmax.f32 %v729_v4, 0.0  ;;  %v913_v7 = vpop.permute.xlu0 %912 }
 0x1de   : > { %948 = vst.msk [vmem:[#allocation3 + $0x20] sm:$0xff] %vm943_vm1, %v913_v7  ;;  %v733_v8 = vpop.f32.mrb[98].mxu0  ;;  %v1043_v9 = vld [vmem:[#allocation2 + $0x170] sm:$0xff] }
 0x1df   : > { %848 = vst.msk [vmem:[#allocation2 + $0x180] sm:$0xff] %vm799_vm0, %v795_v6  ;;  %v734_v11 = vadd.f32 %v3312_v27, %v733_v8  ;;  %v735_v12 = vpop.f32.mrb[99].mxu0  ;;  %1076 = vrot.lane.b32.xlu1 %v1043_v9, %s3034_s21  ;;  %1001 = vrot.lane.b32.xlu0 %v966_v10, %s3033_s12  ;;  %v2907_v6 = vpack.c.bf16 %v1312_v60, %v1311_v59  ;;  %v1313_v8 = vld [vmem:[%s4217_s3 + $0x1b0] sm:$0xff]  ;;  %v1314_v9 = vld [vmem:[%s4217_s3 + $0x1b8] sm:$0xff] }
 0x1e0   : > { %v2909_v10 = vpack.c.bf16 %v1296_v63, %v1295_v62  ;;  %v1298_v12 = vld [vmem:[%s4217_s3 + $0x138] sm:$0xff]  ;;  %v1305_v59 = vld [vmem:[%s4217_s3 + $0x170] sm:$0xff] }
 0x1e1   : > { %v796_v13 = vmax.f32 %v734_v11, 0.0  ;;  %v915_v14 = vpop.permute.xlu1 %914  ;;  %v1297_v11 = vld [vmem:[%s4217_s3 + $0x130] sm:$0xff]  ;;  %v1306_v60 = vld [vmem:[%s4217_s3 + $0x178] sm:$0xff] }
 0x1e2   : > { %949 = vst.msk [vmem:[#allocation3 + $0x28] sm:$0xff] %vm943_vm1, %v915_v14  ;;  %v738_v15 = vpop.f32.mrb[100].mxu0  ;;  %v1044_v17 = vld [vmem:[#allocation2 + $0x178] sm:$0xff] }
 0x1e3   : > { %849 = vst.msk [vmem:[#allocation2 + $0x188] sm:$0xff] %vm799_vm0, %v796_v13  ;;  %v739_v18 = vadd.f32 %v3312_v27, %v738_v15  ;;  %v740_v19 = vpop.f32.mrb[101].mxu0  ;;  %1003 = vrot.lane.b32.xlu1 %v967_v16, %s3033_s12  ;;  %1078 = vrot.lane.b32.xlu0 %v1044_v17, %s3034_s21 }
 0x1e5   : > { %v797_v20 = vmax.f32 %v739_v18, 0.0  ;;  %v917_v21 = vpop.permute.xlu0 %916  ;;  %v2911_v18 = vpack.c.bf16 %v1314_v9, %v1313_v8 }
 0x1e6   : > { %950 = vst.msk [vmem:[#allocation3 + $0x30] sm:$0xff] %vm943_vm1, %v917_v21  ;;  %v1045_v22 = vld [vmem:[#allocation2 + $0x180] sm:$0xff]  ;;  %v743_v24 = vpop.f32.mrb[102].mxu0  ;;  %v1316_v21 = vld [vmem:[%s4217_s3 + $0x1c8] sm:$0xff] }
 0x1e7   : > { %850 = vst.msk [vmem:[#allocation2 + $0x190] sm:$0xff] %vm799_vm0, %v797_v20  ;;  %1080 = vrot.lane.b32.xlu1 %v1045_v22, %s3034_s21  ;;  %924 = vrot.lane.b32.xlu0 %v888_v23, %s3032_s18  ;;  %v744_v25 = vadd.f32 %v3312_v27, %v743_v24  ;;  %v745_v26 = vpop.f32.mrb[103].mxu0  ;;  %v1315_v20 = vld [vmem:[%s4217_s3 + $0x1c0] sm:$0xff]  ;;  %v2913_v22 = vpack.c.bf16 %v1298_v12, %v1297_v11  ;;  %v1300_v24 = vld [vmem:[%s4217_s3 + $0x148] sm:$0xff] }
 0x1e8   : > { %v1299_v23 = vld [vmem:[%s4217_s3 + $0x140] sm:$0xff] }
 0x1e9   : > { %v798_v28 = vmax.f32 %v744_v25, 0.0 }
 0x1ea   : > { %v1046_v30 = vld [vmem:[#allocation2 + $0x188] sm:$0xff] }
 0x1eb   : > { %851 = vst.msk [vmem:[#allocation2 + $0x198] sm:$0xff] %vm799_vm0, %v798_v28  ;;  %926 = vrot.lane.b32.xlu1 %v889_v29, %s3032_s18  ;;  %1082 = vrot.lane.b32.xlu0 %v1046_v30, %s3034_s21 }
 0x1ee   : > { %v1047_v31 = vld [vmem:[#allocation2 + $0x190] sm:$0xff] }
 0x1ef   : > { %1084 = vrot.lane.b32.xlu1 %v1047_v31, %s3034_s21  ;;  %1005 = vrot.lane.b32.xlu0 %v968_v32, %s3033_s12  ;;  %v2915_v31 = vpack.c.bf16 %v1316_v21, %v1315_v20 }
 0x1f2   : > { %v1048_v27 = vld [vmem:[#allocation2 + $0x198] sm:$0xff] }
 0x1f3   : > { %1007 = vrot.lane.b32.xlu1 %v969_v33, %s3033_s12  ;;  %928 = vrot.lane.b32.xlu0 %v890_v34, %s3032_s18  ;;  %v1317_v33 = vld [vmem:[%s4217_s3 + $0x1d0] sm:$0xff]  ;;  %v1318_v34 = vld [vmem:[%s4217_s3 + $0x1d8] sm:$0xff] }
 0x1f7   : > { %1086 = vrot.lane.b32.xlu0 %v1048_v27, %s3034_s21  ;;  %v2917_v27 = vpack.c.bf16 %v1300_v24, %v1299_v23 }
 0x201   : > { %v984_v35 = vpop.permute.xlu1 %983 }
 0x202   : > { %1023 = vst.msk [vmem:[#allocation3] sm:$0xff] %vm1022_vm2, %v984_v35  ;;  %v1301_v35 = vld [vmem:[%s4217_s3 + $0x150] sm:$0xff] }
 0x205   : > { %v986_v36 = vpop.permute.xlu1 %985 }
 0x206   : > { %1024 = vst.msk [vmem:[#allocation3 + $0x8] sm:$0xff] %vm1022_vm2, %v986_v36  ;;  %v1302_v36 = vld [vmem:[%s4217_s3 + $0x158] sm:$0xff] }
 0x209   : > { %v988_v37 = vpop.permute.xlu1 %987 }
 0x20a   : > { %1025 = vst.msk [vmem:[#allocation3 + $0x10] sm:$0xff] %vm1022_vm2, %v988_v37 }
 0x20d   : > { %v990_v38 = vpop.permute.xlu0 %989 }
 0x20e   : > { %1026 = vst.msk [vmem:[#allocation3 + $0x18] sm:$0xff] %vm1022_vm2, %v990_v38 }
 0x211   : > { %v992_v39 = vpop.permute.xlu1 %991 }
 0x212   : > { %1027 = vst.msk [vmem:[#allocation3 + $0x20] sm:$0xff] %vm1022_vm2, %v992_v39 }
 0x215   : > { %v994_v40 = vpop.permute.xlu0 %993 }
 0x216   : > { %1028 = vst.msk [vmem:[#allocation3 + $0x28] sm:$0xff] %vm1022_vm2, %v994_v40 }
 0x219   : > { %v996_v41 = vpop.permute.xlu1 %995 }
 0x21a   : > { %1029 = vst.msk [vmem:[#allocation3 + $0x30] sm:$0xff] %vm1022_vm2, %v996_v41 }
 0x235   : > { %v1063_v42 = vpop.permute.xlu0 %1062 }
 0x236   : > { %1102 = vst.msk [vmem:[#allocation3] sm:$0xff] %vm1101_vm3, %v1063_v42  ;;  %v2919_v42 = vpack.c.bf16 %v1318_v34, %v1317_v33 }
 0x239   : > { %v1065_v43 = vpop.permute.xlu1 %1064 }
 0x23a   : > { %1103 = vst.msk [vmem:[#allocation3 + $0x8] sm:$0xff] %vm1101_vm3, %v1065_v43 }
 0x23d   : > { %v1115_v44 = vld [vmem:[#allocation3] sm:$0xff]  ;;  %v919_v45 = vpop.permute.xlu1 %918  ;;  %v1067_v46 = vpop.permute.xlu0 %1066 }
 0x23e   : > { %951 = vst.msk [vmem:[#allocation3 + $0x38] sm:$0xff] %vm943_vm1, %v919_v45  ;;  %v1320_v45 = vld [vmem:[%s4217_s3 + $0x1e8] sm:$0xff] }
 0x23f   : > { %1104 = vst.msk [vmem:[#allocation3 + $0x10] sm:$0xff] %vm1101_vm3, %v1067_v46  ;;  %v2921_v46 = vpack.c.bf16 %v1302_v36, %v1301_v35 }
 0x241   : > { %v1116_v53 = vld [vmem:[#allocation3 + $0x8] sm:$0xff]  ;;  %v1069_v54 = vpop.permute.xlu1 %1068  ;;  %v998_v55 = vpop.permute.xlu0 %997 }
 0x242   : > { %v1139_v56 = vld [vmem:[#allocation3 + $0x1] sm:$0xff]  ;;  %1105 = vst.msk [vmem:[#allocation3 + $0x18] sm:$0xff] %vm1101_vm3, %v1069_v54 }
 0x243   : > { %1030 = vst.msk [vmem:[#allocation3 + $0x38] sm:$0xff] %vm1022_vm2, %v998_v55  ;;  %1394 = vmatprep.mubr.f32.mxu1 %v1139_v56  ;;  %v1321_v56 = vld [vmem:[%s4217_s3 + $0x1f0] sm:$0xff] }
 0x244   : > { %1395 = vmatmul.mubr.f32.vlgmr.msra.gmra.mrb[0].mxu1 %v1115_v44  ;;  %v1319_v44 = vld [vmem:[%s4217_s3 + $0x1e0] sm:$0xff] }
 0x245   : > { %2902 = vmatpush3.bf16.msra.mxu1 %v2901_v51  ;;  %v1000_v4 = vpop.permute.xlu1 %999  ;;  %v1071_v5 = vpop.permute.xlu0 %1070  ;;  %v2923_v54 = vpack.c.bf16 %v1320_v45, %v1319_v44 }
 0x246   : > { %v1117_v0 = vld [vmem:[#allocation3 + $0x10] sm:$0xff]  ;;  %2904 = vmatprep.subr.bf16.mxu1 %v2903_v57  ;;  %1106 = vst.msk [vmem:[#allocation3 + $0x20] sm:$0xff] %vm1101_vm3, %v1071_v5  ;;  %v1322_v57 = vld [vmem:[%s4217_s3 + $0x1f8] sm:$0xff] }
 0x247   : > { %v1140_v1 = vld [vmem:[#allocation3 + $0x9] sm:$0xff] }
 0x248   : > { %v3622_v2 = vld [vmem:[#allocation3 + $0xa] sm:$0xff]  ;;  %1399 = vmatprep.mubr.f32.mxu1 %v1140_v1 }
 0x249   : > { %v3624_v7 = vld [vmem:[#allocation3 + $0xb] sm:$0xff]  ;;  %1400 = vmatmul.mubr.f32.gmra.mrb[2].mxu1 %v1116_v53  ;;  %v1118_v13 = vld [vmem:[#allocation3 + $0x18] sm:$0xff]  ;;  %v1073_v16 = vpop.permute.xlu1 %1072  ;;  %v921_v17 = vpop.permute.xlu0 %920 }
 0x24a   : > { %2906 = vmatpush3.bf16.msra.mxu1 %v2905_v61  ;;  %v1141_v14 = vld [vmem:[#allocation3 + $0x11] sm:$0xff]  ;;  %1107 = vst.msk [vmem:[#allocation3 + $0x28] sm:$0xff] %vm1101_vm3, %v1073_v16 }
 0x24b   : > { %v3639_v15 = vld [vmem:[#allocation3 + $0x12] sm:$0xff]  ;;  %2908 = vmatprep.subr.bf16.mxu1 %v2907_v6  ;;  %952 = vst.msk [vmem:[#allocation3 + $0x40] sm:$0xff] %vm943_vm1, %v921_v17  ;;  %1404 = vmatprep.mubr.f32.mxu1 %v1141_v14  ;;  %v2929_v6 = vpack.c.bf16 %v1306_v60, %v1305_v59 }
 0x24c   : > { %v3641_v19 = vld [vmem:[#allocation3 + $0x13] sm:$0xff]  ;;  %1031 = vst.msk [vmem:[#allocation3 + $0x40] sm:$0xff] %vm1022_vm2, %v1000_v4  ;;  %v2927_v4 = vpack.c.bf16 %v1322_v57, %v1321_v56  ;;  %v1961_v57 = vld [vmem:[%s4219_s5 + $0x8] sm:$0xff] }
 0x24d   : > { %1405 = vmatmul.mubr.f32.gmra.mrb[4].mxu1 %v1117_v0  ;;  %v1119_v25 = vld [vmem:[#allocation3 + $0x20] sm:$0xff]  ;;  %v923_v29 = vpop.permute.xlu1 %922  ;;  %v1075_v30 = vpop.permute.xlu0 %1074  ;;  %v1979_v59 = vld [vmem:[%s4219_s5 + $0x98] sm:$0xff] }
 0x24e   : > { %2910 = vmatpush3.bf16.msra.mxu1 %v2909_v10  ;;  %v1142_v26 = vld [vmem:[#allocation3 + $0x19] sm:$0xff]  ;;  %953 = vst.msk [vmem:[#allocation3 + $0x48] sm:$0xff] %vm943_vm1, %v923_v29 }
 0x24f   : > { %v3658_v28 = vld [vmem:[#allocation3 + $0x1a] sm:$0xff]  ;;  %2912 = vmatprep.subr.bf16.mxu1 %v2911_v18  ;;  %1108 = vst.msk [vmem:[#allocation3 + $0x30] sm:$0xff] %vm1101_vm3, %v1075_v30  ;;  %1409 = vmatprep.mubr.f32.mxu1 %v1142_v26 }
 0x250   : > { %v3660_v32 = vld [vmem:[#allocation3 + $0x1b] sm:$0xff] }
 0x251   : > { %1410 = vmatmul.mubr.f32.gmra.mrb[6].mxu1 %v1118_v13  ;;  %v1120_v37 = vld [vmem:[#allocation3 + $0x28] sm:$0xff]  ;;  %v1077_v40 = vpop.permute.xlu1 %1076  ;;  %v1002_v41 = vpop.permute.xlu0 %1001 }
 0x252   : > { %2914 = vmatpush3.bf16.msra.mxu1 %v2913_v22  ;;  %v1143_v38 = vld [vmem:[#allocation3 + $0x21] sm:$0xff]  ;;  %1109 = vst.msk [vmem:[#allocation3 + $0x38] sm:$0xff] %vm1101_vm3, %v1077_v40 }
 0x253   : > { %v3676_v39 = vld [vmem:[#allocation3 + $0x22] sm:$0xff]  ;;  %2916 = vmatprep.subr.bf16.mxu1 %v2915_v31  ;;  %1032 = vst.msk [vmem:[#allocation3 + $0x48] sm:$0xff] %vm1022_vm2, %v1002_v41  ;;  %1414 = vmatprep.mubr.f32.mxu1 %v1143_v38 }
 0x254   : > { %v3678_v43 = vld [vmem:[#allocation3 + $0x23] sm:$0xff] }
 0x255   : > { %1415 = vmatmul.mubr.f32.gmra.mrb[8].mxu1 %v1119_v25  ;;  %v1004_v52 = vpop.permute.xlu1 %1003  ;;  %v1079_v53 = vpop.permute.xlu0 %1078 }
 0x256   : > { %2918 = vmatpush3.bf16.msra.mxu1 %v2917_v27  ;;  %v1121_v49 = vld [vmem:[#allocation3 + $0x30] sm:$0xff]  ;;  %1110 = vst.msk [vmem:[#allocation3 + $0x40] sm:$0xff] %vm1101_vm3, %v1079_v53  ;;  %v1977_v53 = vld [vmem:[%s4219_s5 + $0x88] sm:$0xff] }
 0x257   : > { %v1144_v50 = vld [vmem:[#allocation3 + $0x29] sm:$0xff]  ;;  %2920 = vmatprep.subr.bf16.mxu1 %v2919_v42 }
 0x258   : > { %v3694_v51 = vld [vmem:[#allocation3 + $0x2a] sm:$0xff]  ;;  %1419 = vmatprep.mubr.f32.mxu1 %v1144_v50 }
 0x259   : > { %v3696_v55 = vld [vmem:[#allocation3 + $0x2b] sm:$0xff]  ;;  %1420 = vmatmul.mubr.f32.gmra.mrb[10].mxu1 %v1120_v37  ;;  %v1122_v61 = vld [vmem:[#allocation3 + $0x38] sm:$0xff]  ;;  %v1081_v0 = vpop.permute.xlu1 %1080  ;;  %v925_v1 = vpop.permute.xlu0 %924 }
 0x25a   : > { %2922 = vmatpush3.bf16.msra.mxu1 %v2921_v46  ;;  %v1145_v62 = vld [vmem:[#allocation3 + $0x31] sm:$0xff]  ;;  %1111 = vst.msk [vmem:[#allocation3 + $0x48] sm:$0xff] %vm1101_vm3, %v1081_v0  ;;  %v1980_v0 = vld [vmem:[%s4219_s5 + $0xa0] sm:$0xff] }
 0x25b   : > { %v3711_v63 = vld [vmem:[#allocation3 + $0x32] sm:$0xff]  ;;  %2924 = vmatprep.subr.bf16.mxu1 %v2923_v54  ;;  %954 = vst.msk [vmem:[#allocation3 + $0x50] sm:$0xff] %vm943_vm1, %v925_v1  ;;  %1424 = vmatprep.mubr.f32.mxu1 %v1145_v62  ;;  %v1960_v54 = vld [vmem:[%s4219_s5] sm:$0xff] }
 0x25c   : > { %v3713_v5 = vld [vmem:[#allocation3 + $0x33] sm:$0xff]  ;;  %1033 = vst.msk [vmem:[#allocation3 + $0x50] sm:$0xff] %vm1022_vm2, %v1004_v52  ;;  %v1976_v52 = vld [vmem:[%s4219_s5 + $0x80] sm:$0xff]  ;;  %v2933_v60 = vpack.c.bf16 %v1961_v57, %v1960_v54 }
 0x25d   : > { %1425 = vmatmul.mubr.f32.gmra.mrb[12].mxu1 %v1121_v49  ;;  %v1123_v8 = vld [vmem:[#allocation3 + $0x40] sm:$0xff]  ;;  %v927_v11 = vpop.permute.xlu1 %926  ;;  %v1083_v12 = vpop.permute.xlu0 %1082  ;;  %v2931_v56 = vpack.c.bf16 %v1977_v53, %v1976_v52  ;;  %v1962_v62 = vld [vmem:[%s4219_s5 + $0x10] sm:$0xff] }
 0x25e   : > { %2926 = vmatpush3.bf16.msra.mxu1 %v2925_v58  ;;  %v1146_v9 = vld [vmem:[#allocation3 + $0x39] sm:$0xff]  ;;  %955 = vst.msk [vmem:[#allocation3 + $0x58] sm:$0xff] %vm943_vm1, %v927_v11  ;;  %v1978_v58 = vld [vmem:[%s4219_s5 + $0x90] sm:$0xff]  ;;  %v1965_v11 = vld [vmem:[%s4219_s5 + $0x28] sm:$0xff] }
 0x25f   : > { %v3718_v10 = vld [vmem:[#allocation3 + $0x3a] sm:$0xff]  ;;  %2928 = vmatprep.subr.bf16.mxu1 %v2927_v4  ;;  %1112 = vst.msk [vmem:[#allocation3 + $0x50] sm:$0xff] %vm1101_vm3, %v1083_v12  ;;  %1429 = vmatprep.mubr.f32.mxu1 %v1146_v9  ;;  %v1981_v4 = vld [vmem:[%s4219_s5 + $0xa8] sm:$0xff]  ;;  %v1982_v12 = vld [vmem:[%s4219_s5 + $0xb0] sm:$0xff] }
 0x260   : > { %v1193_v13 = vld [vmem:[#allocation3 + $0x3b] sm:$0xff]  ;;  %v2939_v9 = vpack.c.bf16 %v1981_v4, %v1980_v0  ;;  %v1989_v0 = vld [vmem:[%s4219_s5 + $0xe8] sm:$0xff] }
 0x261   : > { %1430 = vmatmul.mubr.f32.gmra.mrb[14].mxu1 %v1122_v61  ;;  %v1124_v14 = vld [vmem:[#allocation3 + $0x48] sm:$0xff]  ;;  %v1085_v18 = vpop.permute.xlu1 %1084  ;;  %v1006_v20 = vpop.permute.xlu0 %1005  ;;  %v2935_v61 = vpack.c.bf16 %v1979_v59, %v1978_v58 }
 0x262   : > { %2930 = vmatpush3.bf16.msra.mxu1 %v2929_v6  ;;  %v1147_v16 = vld [vmem:[#allocation3 + $0x41] sm:$0xff]  ;;  %1034 = vst.msk [vmem:[#allocation3 + $0x58] sm:$0xff] %vm1022_vm2, %v1006_v20 }
 0x263   : > { %v1170_v17 = vld [vmem:[#allocation3 + $0x42] sm:$0xff]  ;;  %1434 = vmatprep.mubr.f32.mxu1 %v1147_v16  ;;  %1113 = vst.msk [vmem:[#allocation3 + $0x58] sm:$0xff] %vm1101_vm3, %v1085_v18  ;;  %2932 = vmatprep.subr.bf16.mxu1 %v2931_v56 }
 0x264   : > { %v1194_v21 = vld [vmem:[#allocation3 + $0x43] sm:$0xff] }
 0x265   : > { %1435 = vmatmul.mubr.f32.gmra.mrb[16].mxu1 %v1123_v8  ;;  %v1008_v25 = vpop.permute.xlu1 %1007  ;;  %v929_v26 = vpop.permute.xlu0 %928 }
 0x266   : > { %v1125_v22 = vld [vmem:[#allocation3 + $0x50] sm:$0xff]  ;;  %956 = vst.msk [vmem:[#allocation3 + $0x60] sm:$0xff] %vm943_vm1, %v929_v26 }
 0x267   : > { %v1148_v23 = vld [vmem:[#allocation3 + $0x49] sm:$0xff]  ;;  %1035 = vst.msk [vmem:[#allocation3 + $0x60] sm:$0xff] %vm1022_vm2, %v1008_v25 }
 0x268   : > { %v1171_v24 = vld [vmem:[#allocation3 + $0x4a] sm:$0xff]  ;;  %1439 = vmatprep.mubr.f32.mxu1 %v1148_v23  ;;  %v1984_v23 = vld [vmem:[%s4219_s5 + $0xc0] sm:$0xff] }
 0x269   : > { %v1195_v29 = vld [vmem:[#allocation3 + $0x4b] sm:$0xff]  ;;  %1440 = vmatmul.mubr.f32.gmra.mrb[18].mxu1 %v1124_v14  ;;  %v1087_v30 = vpop.permute.xlu0 %1086 }
 0x26a   : > { %1114 = vst.msk [vmem:[#allocation3 + $0x60] sm:$0xff] %vm1101_vm3, %v1087_v30  ;;  %v1149_v31 = vld [vmem:[#allocation3 + $0x51] sm:$0xff]  ;;  %v1150_v33 = vld [vmem:[#allocation3 + $0x59] sm:$0x3] }
 0x26b   : > { %v1126_v34 = vld [vmem:[#allocation3 + $0x58] sm:$0x3]  ;;  %1444 = vmatprep.mubr.f32.mxu1 %v1149_v31  ;;  %1162 = vst [vmem:[#allocation4 + $0x168] sm:$0x3] %v1150_v33  ;;  %v1968_v33 = vld [vmem:[%s4219_s5 + $0x40] sm:$0xff] }
 0x26c   : > { %1138 = vst [vmem:[#allocation4 + $0x160] sm:$0x3] %v1126_v34  ;;  %v1196_v27 = vld [vmem:[#allocation3 + $0x53] sm:$0xff]  ;;  %v1969_v34 = vld [vmem:[%s4219_s5 + $0x48] sm:$0xff] }
 0x26d   : > { %v1172_v35 = vld [vmem:[#allocation3 + $0x52] sm:$0xff]  ;;  %1445 = vmatmul.mubr.f32.gmra.mrb[20].mxu1 %v1125_v22 }
 0x26e   : > { %v1967_v22 = vld [vmem:[%s4219_s5 + $0x38] sm:$0xff] }
 0x271   : > { %v1173_v36 = vld [vmem:[#allocation3 + $0x5a] sm:$0xff]  ;;  %v1174_v37 = vld [vmem:[#allocation3 + $0x62] sm:$0x3] }
 0x272   : > { %v1197_v38 = vld [vmem:[#allocation3 + $0x5b] sm:$0xff]  ;;  %v1198_v40 = vld [vmem:[#allocation3 + $0x63] sm:$0x3]  ;;  %1186 = vst [vmem:[#allocation4 + $0x170] sm:$0x3] %v1174_v37 }
 0x273   : > { %v1256_v41 = vld [vmem:[#allocation4 + $0x168] sm:$0x3]  ;;  %v1255_v42 = vld [vmem:[#allocation4 + $0x160] sm:$0x3]  ;;  %1210 = vst [vmem:[#allocation4 + $0x178] sm:$0x3] %v1198_v40 }
 0x274   : > { %1449 = vmatprep.mubr.f32.mxu1 %v1256_v41 }
 0x275   : > { %1450 = vmatmul.mubr.f32.gmra.mrb[22].mxu1 %v1255_v42  ;;  %v1970_v42 = vld [vmem:[%s4219_s5 + $0x50] sm:$0xff] }
 0x276   : > { %1519 = vmatprep.mubr.f32.mxu1 %v3624_v7 }
 0x279   : > { %1520 = vmatmul.mubr.f32.vlgmr.msra.gmra.mrb[24].mxu1 %v3622_v2  ;;  %v1257_v7 = vld [vmem:[#allocation4 + $0x170] sm:$0x3] }
 0x27a   : > { %1524 = vmatprep.mubr.f32.mxu1 %v3641_v19  ;;  %v1258_v2 = vld [vmem:[#allocation4 + $0x178] sm:$0x3]  ;;  %2934 = vmatpush3.bf16.msra.mxu1 %v2933_v60 }
 0x27b   : > { %2936 = vmatprep.subr.bf16.mxu1 %v2935_v61 }
 0x27d   : > { %1525 = vmatmul.mubr.f32.gmra.mrb[26].mxu1 %v3639_v15 }
 0x27e   : > { %1529 = vmatprep.mubr.f32.mxu1 %v3660_v32 }
 0x281   : > { %1530 = vmatmul.mubr.f32.gmra.mrb[28].mxu1 %v3658_v28 }
 0x282   : > { %1534 = vmatprep.mubr.f32.mxu1 %v3678_v43 }
 0x285   : > { %1535 = vmatmul.mubr.f32.gmra.mrb[30].mxu1 %v3676_v39 }
 0x286   : > { %1539 = vmatprep.mubr.f32.mxu1 %v3696_v55 }
 0x289   : > { %1540 = vmatmul.mubr.f32.gmra.mrb[32].mxu1 %v3694_v51 }
 0x28a   : > { %1544 = vmatprep.mubr.f32.mxu1 %v3713_v5 }
 0x28d   : > { %1545 = vmatmul.mubr.f32.gmra.mrb[34].mxu1 %v3711_v63  ;;  %v1963_v63 = vld [vmem:[%s4219_s5 + $0x18] sm:$0xff] }
 0x28e   : > { %1549 = vmatprep.mubr.f32.mxu1 %v1193_v13  ;;  %v2937_v6 = vpack.c.bf16 %v1963_v63, %v1962_v62  ;;  %v1983_v13 = vld [vmem:[%s4219_s5 + $0xb8] sm:$0xff]  ;;  %v1988_v63 = vld [vmem:[%s4219_s5 + $0xe0] sm:$0xff] }
 0x28f   : > { %v2943_v20 = vpack.c.bf16 %v1983_v13, %v1982_v12  ;;  %v1990_v13 = vld [vmem:[%s4219_s5 + $0xf0] sm:$0xff] }
 0x290   : > { %2938 = vmatpush3.bf16.msra.mxu1 %v2937_v6 }
 0x291   : > { %1550 = vmatmul.mubr.f32.gmra.mrb[36].mxu1 %v3718_v10  ;;  %v1964_v10 = vld [vmem:[%s4219_s5 + $0x20] sm:$0xff]  ;;  %2940 = vmatprep.subr.bf16.mxu1 %v2939_v9 }
 0x292   : > { %1554 = vmatprep.mubr.f32.mxu1 %v1194_v21  ;;  %v1966_v21 = vld [vmem:[%s4219_s5 + $0x30] sm:$0xff] }
 0x295   : > { %1555 = vmatmul.mubr.f32.gmra.mrb[38].mxu1 %v1170_v17  ;;  %v2941_v17 = vpack.c.bf16 %v1965_v11, %v1964_v10 }
 0x296   : > { %1559 = vmatprep.mubr.f32.mxu1 %v1195_v29  ;;  %v2945_v29 = vpack.c.bf16 %v1967_v22, %v1966_v21  ;;  %v1975_v21 = vld [vmem:[%s4219_s5 + $0x78] sm:$0xff] }
 0x297   : > { %2942 = vmatpush3.bf16.msra.mxu1 %v2941_v17 }
 0x298   : > { %2944 = vmatprep.subr.bf16.mxu1 %v2943_v20 }
 0x299   : > { %1560 = vmatmul.mubr.f32.gmra.mrb[40].mxu1 %v1171_v24  ;;  %v1985_v24 = vld [vmem:[%s4219_s5 + $0xc8] sm:$0xff] }
 0x29a   : > { %1564 = vmatprep.mubr.f32.mxu1 %v1196_v27  ;;  %v2947_v31 = vpack.c.bf16 %v1985_v24, %v1984_v23  ;;  %v1986_v27 = vld [vmem:[%s4219_s5 + $0xd0] sm:$0xff] }
 0x29b   : > { %2946 = vmatpush3.bf16.msra.mxu1 %v2945_v29 }
 0x29c   : > { %2948 = vmatprep.subr.bf16.mxu1 %v2947_v31 }
 0x29d   : > { %1565 = vmatmul.mubr.f32.gmra.mrb[42].mxu1 %v1172_v35  ;;  %v1987_v35 = vld [vmem:[%s4219_s5 + $0xd8] sm:$0xff] }
 0x29e   : > { %1569 = vmatprep.mubr.f32.mxu1 %v1197_v38  ;;  %v2949_v38 = vpack.c.bf16 %v1969_v34, %v1968_v33  ;;  %v2951_v41 = vpack.c.bf16 %v1987_v35, %v1986_v27 }
 0x2a0   : > { %2950 = vmatpush3.bf16.msra.mxu1 %v2949_v38 }
 0x2a1   : > { %1570 = vmatmul.mubr.f32.gmra.mrb[44].mxu1 %v1173_v36  ;;  %2952 = vmatprep.subr.bf16.mxu1 %v2951_v41 }
 0x2a2   : > { %1574 = vmatprep.mubr.f32.mxu1 %v1258_v2  ;;  %v1971_v2 = vld [vmem:[%s4219_s5 + $0x58] sm:$0xff] }
 0x2a5   : > { %1575 = vmatmul.mubr.f32.gmra.mrb[46].mxu1 %v1257_v7 }
 0x317   : > { %v2537_v15 = vpop.f32.mrb[0].mxu1 }
 0x318   : > { %v2538_v19 = vpop.f32.mrb[1].mxu1 }
 0x319   : > { %v3740_v28 = vadd.f32 %v2538_v19, %v2537_v15  ;;  %v2953_v19 = vpack.c.bf16 %v1971_v2, %v1970_v42  ;;  %v2008_v2 = vld [vmem:[%s4219_s5 + $0x180] sm:$0xff] }
 0x31b   : > { %2954 = vmatpush3.bf16.msra.mxu1 %v2953_v19 }
 0x31c   : > { %v2540_v32 = vpop.f32.mrb[2].mxu1 }
 0x31d   : > { %v2541_v39 = vpop.f32.mrb[3].mxu1 }
 0x31e   : > { %v3742_v43 = vadd.f32 %v2541_v39, %v2540_v32 }
 0x320   : > { %v2543_v44 = vpop.f32.mrb[4].mxu1 }
 0x321   : > { %v2544_v45 = vpop.f32.mrb[5].mxu1 }
 0x322   : > { %v3744_v46 = vadd.f32 %v2544_v45, %v2543_v44 }
 0x324   : > { %v2546_v47 = vpop.f32.mrb[6].mxu1 }
 0x325   : > { %v2547_v48 = vpop.f32.mrb[7].mxu1 }
 0x326   : > { %v3746_v49 = vadd.f32 %v2547_v48, %v2546_v47 }
 0x328   : > { %v2549_v50 = vpop.f32.mrb[8].mxu1 }
 0x329   : > { %v2550_v51 = vpop.f32.mrb[9].mxu1 }
 0x32a   : > { %v3757_v55 = vadd.f32 %v2550_v51, %v2549_v50  ;;  %v3839_v51 = vld [vmem:[%s4218_s4] ss:$0 sm:$0xff] }
 0x32b   : > { %v1397_v54 = vadd.f32 %v3740_v28, %v3839_v51  ;;  %v1402_v60 = vadd.f32 %v3742_v43, %v3839_v51  ;;  %v1972_v28 = vld [vmem:[%s4219_s5 + $0x60] sm:$0xff]  ;;  %v1973_v43 = vld [vmem:[%s4219_s5 + $0x68] sm:$0xff]  ;;  %v1407_v10 = vadd.f32 %v3744_v46, %v3839_v51  ;;  %v1412_v24 = vadd.f32 %v3746_v49, %v3839_v51 }
 0x32c   : > { %v2552_v1 = vpop.f32.mrb[10].mxu1  ;;  %v2957_v9 = vpack.c.bf16 %v1973_v43, %v1972_v28  ;;  %v1417_v27 = vadd.f32 %v3757_v55, %v3839_v51  ;;  %v2009_v55 = vld [vmem:[%s4219_s5 + $0x188] sm:$0xff] }
 0x32d   : > { %v2553_v5 = vpop.f32.mrb[11].mxu1 }
 0x32e   : > { %v3780_v8 = vadd.f32 %v2553_v5, %v2552_v1  ;;  %v2955_v5 = vpack.c.bf16 %v1989_v0, %v1988_v63 }
 0x330   : > { %v2555_v14 = vpop.f32.mrb[12].mxu1  ;;  %2956 = vmatprep.subr.bf16.mxu1 %v2955_v5  ;;  %v1422_v19 = vadd.f32 %v3780_v8, %v3839_v51 }
 0x331   : > { %v2556_v16 = vpop.f32.mrb[13].mxu1  ;;  %2958 = vmatpush3.bf16.msra.mxu1 %v2957_v9 }
 0x332   : > { %v3794_v18 = vadd.f32 %v2556_v16, %v2555_v14  ;;  %v1991_v14 = vld [vmem:[%s4219_s5 + $0xf8] sm:$0xff]  ;;  %v1974_v16 = vld [vmem:[%s4219_s5 + $0x70] sm:$0xff] }
 0x333   : > { %v2959_v20 = vpack.c.bf16 %v1991_v14, %v1990_v13  ;;  %v2961_v23 = vpack.c.bf16 %v1975_v21, %v1974_v16 }
 0x334   : > { %v2558_v25 = vpop.f32.mrb[14].mxu1 }
 0x335   : > { %v2559_v26 = vpop.f32.mrb[15].mxu1  ;;  %2960 = vmatprep.subr.bf16.mxu1 %v2959_v20 }
 0x336   : > { %v3808_v30 = vadd.f32 %v2559_v26, %v2558_v25  ;;  %2962 = vmatpush3.bf16.msra.mxu1 %v2961_v23 }
 0x338   : > { %v2561_v36 = vpop.f32.mrb[16].mxu1 }
 0x339   : > { %v2562_v37 = vpop.f32.mrb[17].mxu1 }
 0x33a   : > { %v3822_v40 = vadd.f32 %v2562_v37, %v2561_v36 }
 0x33c   : > { %v2564_v7 = vpop.f32.mrb[18].mxu1 }
 0x33d   : > { %v2565_v15 = vpop.f32.mrb[19].mxu1 }
 0x33e   : > { %v3830_v32 = vadd.f32 %v2565_v15, %v2564_v7  ;;  %v2963_v15 = vpack.c.bf16 %v2009_v55, %v2008_v2 }
 0x340   : > { %v2567_v39 = vpop.f32.mrb[20].mxu1  ;;  %2964 = vmatprep.subr.bf16.mxu1 %v2963_v15 }
 0x341   : > { %v2568_v44 = vpop.f32.mrb[21].mxu1 }
 0x342   : > { %v3832_v45 = vadd.f32 %v2568_v44, %v2567_v39 }
 0x344   : > { %v1447_v55 = vadd.f32 %v3832_v45, %v3839_v51 }
 0x348   : > { %v2570_v47 = vpop.f32.mrb[22].mxu1 }
 0x349   : > { %v2571_v48 = vpop.f32.mrb[23].mxu1 }
 0x34a   : > { %v3834_v50 = vadd.f32 %v2571_v48, %v2570_v47 }
 0x34c   : > { %v2605_v52 = vpop.f32.mrb[24].mxu1 }
 0x34d   : > { %v2606_v53 = vpop.f32.mrb[25].mxu1 }
 0x34e   : > { %v2607_v56 = vadd.f32 %v2606_v53, %v2605_v52 }
 0x350   : > { %v1522_v57 = vadd.f32 %v2607_v56, %v1397_v54  ;;  %v2608_v58 = vpop.f32.mrb[26].mxu1 }
 0x351   : > { %v2609_v59 = vpop.f32.mrb[27].mxu1 }
 0x352   : > { %v1580_v61 = vmax.f32 %v1522_v57, 0.0  ;;  %v2610_v62 = vadd.f32 %v2609_v59, %v2608_v58  ;;  %v1427_v57 = vadd.f32 %v3794_v18, %v3839_v51 }
 0x354   : > { %1593 = vst.msk [vmem:[#allocation5] sm:$0xff] %vm1592_vm4, %v1580_v61  ;;  %v1527_v1 = vadd.f32 %v2610_v62, %v1402_v60  ;;  %v2611_v4 = vpop.f32.mrb[28].mxu1 }
 0x355   : > { %v2612_v6 = vpop.f32.mrb[29].mxu1 }
 0x356   : > { %v1581_v11 = vmax.f32 %v1527_v1, 0.0  ;;  %v2613_v12 = vadd.f32 %v2612_v6, %v2611_v4  ;;  %v1432_v4 = vadd.f32 %v3808_v30, %v3839_v51 }
 0x358   : > { %1594 = vst.msk [vmem:[#allocation5 + $0x8] sm:$0xff] %vm1592_vm4, %v1581_v11  ;;  %v1532_v17 = vadd.f32 %v2613_v12, %v1407_v10  ;;  %v2614_v46 = vpop.f32.mrb[30].mxu1 }
 0x359   : > { %v2615_v22 = vpop.f32.mrb[31].mxu1 }
 0x35a   : > { %v1582_v25 = vmax.f32 %v1532_v17, 0.0  ;;  %v2616_v26 = vadd.f32 %v2615_v22, %v2614_v46  ;;  %v1437_v46 = vadd.f32 %v3822_v40, %v3839_v51 }
 0x35b   : > { %v1606_v29 = vld [vmem:[#allocation5] sm:$0xff] }
 0x35c   : > { %1595 = vst.msk [vmem:[#allocation5 + $0x10] sm:$0xff] %vm1592_vm4, %v1582_v25  ;;  %v1537_v31 = vadd.f32 %v2616_v26, %v1412_v24  ;;  %v2617_v33 = vpop.f32.mrb[32].mxu1  ;;  %1615 = vst.msk [vmem:[#allocation6] sm:$0xff] %vm1592_vm4, %v1606_v29 }
 0x35d   : > { %v2618_v34 = vpop.f32.mrb[33].mxu1 }
 0x35e   : > { %v1583_v35 = vmax.f32 %v1537_v31, 0.0  ;;  %v2619_v36 = vadd.f32 %v2618_v34, %v2617_v33  ;;  %v1442_v31 = vadd.f32 %v3830_v32, %v3839_v51 }
 0x35f   : > { %v1625_v37 = vld [vmem:[#allocation5 + $0x1] sm:$0xff] }
 0x360   : > { %v1681_v38 = vld [vmem:[#allocation5 + $0x2] sm:$0xff]  ;;  %1596 = vst.msk [vmem:[#allocation5 + $0x18] sm:$0xff] %vm1592_vm4, %v1583_v35  ;;  %v1542_v41 = vadd.f32 %v2619_v36, %v1417_v27  ;;  %v2620_v42 = vpop.f32.mrb[34].mxu1  ;;  %1643 = vrot.lane.b32.xlu0 %v1625_v37, %s3033_s12 }
 0x361   : > { %v1607_v49 = vld [vmem:[#allocation5 + $0x8] sm:$0xff]  ;;  %1690 = vst.msk [vmem:[#allocation6 + $0x8] sm:$0xff] %vm1592_vm4, %v1681_v38  ;;  %v2621_v7 = vpop.f32.mrb[35].mxu1 }
 0x362   : > { %1616 = vst.msk [vmem:[#allocation6 + $0x28] sm:$0xff] %vm1592_vm4, %v1607_v49  ;;  %v1584_v39 = vmax.f32 %v1542_v41, 0.0  ;;  %v2622_v44 = vadd.f32 %v2621_v7, %v2620_v42 }
 0x363   : > { %v1699_v47 = vld [vmem:[#allocation5 + $0xa] sm:$0xff] }
 0x364   : > { %v1626_v48 = vld [vmem:[#allocation5 + $0x9] sm:$0xff]  ;;  %1597 = vst.msk [vmem:[#allocation5 + $0x20] sm:$0xff] %vm1592_vm4, %v1584_v39  ;;  %v1547_v52 = vadd.f32 %v2622_v44, %v1422_v19  ;;  %v2623_v53 = vpop.f32.mrb[36].mxu1  ;;  %1717 = vrot.lane.b32.xlu1 %v1699_v47, %s3033_s12  ;;  %1691 = vst.msk [vmem:[#allocation6 + $0x30] sm:$0xff] %vm1592_vm4, %v1699_v47 }
 0x365   : > { %1645 = vrot.lane.b32.xlu0 %v1626_v48, %s3033_s12  ;;  %v1608_v54 = vld [vmem:[#allocation5 + $0x10] sm:$0xff]  ;;  %v2624_v56 = vpop.f32.mrb[37].mxu1 }
 0x366   : > { %1617 = vst.msk [vmem:[#allocation6 + $0x50] sm:$0xff] %vm1592_vm4, %v1608_v54  ;;  %v1753_v8 = vld [vmem:[#allocation5 + $0xb] sm:$0xff]  ;;  %v1585_v58 = vmax.f32 %v1547_v52, 0.0  ;;  %v2625_v59 = vadd.f32 %v2624_v56, %v2623_v53  ;;  %v1452_v54 = vadd.f32 %v3834_v50, %v3839_v51 }
 0x367   : > { %1762 = vst.msk [vmem:[#allocation6 + $0x10] sm:$0xff] %vm1592_vm4, %v1753_v8  ;;  %v1897_v60 = vld [vmem:[#allocation5 + $0x16] sm:$0xff] }
 0x368   : > { %v1700_v61 = vld [vmem:[#allocation5 + $0x12] sm:$0xff]  ;;  %1906 = vst.msk [vmem:[#allocation6 + $0x20] sm:$0xff] %vm1592_vm4, %v1897_v60  ;;  %1598 = vst.msk [vmem:[#allocation5 + $0x28] sm:$0xff] %vm1592_vm4, %v1585_v58  ;;  %v1552_v63 = vadd.f32 %v2625_v59, %v1427_v57  ;;  %v2626_v0 = vpop.f32.mrb[38].mxu1 }
 0x369   : > { %v1627_v62 = vld [vmem:[#allocation5 + $0x11] sm:$0xff]  ;;  %1719 = vrot.lane.b32.xlu1 %v1700_v61, %s3033_s12  ;;  %1692 = vst.msk [vmem:[#allocation6 + $0x58] sm:$0xff] %vm1592_vm4, %v1700_v61  ;;  %v2627_v1 = vpop.f32.mrb[39].mxu1 }
 0x36a   : > { %1647 = vrot.lane.b32.xlu0 %v1627_v62, %s3033_s12  ;;  %v3903_v28 = vld [vmem:[#allocation5 + $0x14] sm:$0xff]  ;;  %v1586_v5 = vmax.f32 %v1552_v63, 0.0  ;;  %v2628_v43 = vadd.f32 %v2627_v1, %v2626_v0 }
 0x36b   : > { %v1609_v18 = vld [vmem:[#allocation5 + $0x18] sm:$0xff]  ;;  %1834 = vst.msk [vmem:[#allocation6 + $0x18] sm:$0xff] %vm1592_vm4, %v3903_v28  ;;  %v1610_v30 = vld [vmem:[#allocation5 + $0x20] sm:$0xff] }
 0x36c   : > { %1618 = vst.msk [vmem:[#allocation6 + $0x78] sm:$0xff] %vm1592_vm4, %v1609_v18  ;;  %v1754_v6 = vld [vmem:[#allocation5 + $0x13] sm:$0xff]  ;;  %1599 = vst.msk [vmem:[#allocation5 + $0x30] sm:$0xff] %vm1592_vm4, %v1586_v5  ;;  %v1557_v11 = vadd.f32 %v2628_v43, %v1432_v4  ;;  %v2629_v12 = vpop.f32.mrb[40].mxu1  ;;  %v3915_v13 = vld [vmem:[#allocation5 + $0x1c] sm:$0xff] }
 0x36d   : > { %v1701_v9 = vld [vmem:[#allocation5 + $0x1a] sm:$0xff]  ;;  %1763 = vst.msk [vmem:[#allocation6 + $0x38] sm:$0xff] %vm1592_vm4, %v1754_v6  ;;  %v2630_v14 = vpop.f32.mrb[41].mxu1  ;;  %1619 = vst.msk [vmem:[#allocation6 + $0xa0] sm:$0xff] %vm1592_vm4, %v1610_v30 }
 0x36e   : > { %v1628_v10 = vld [vmem:[#allocation5 + $0x19] sm:$0xff]  ;;  %1721 = vrot.lane.b32.xlu1 %v1701_v9, %s3033_s12  ;;  %1693 = vst.msk [vmem:[#allocation6 + $0x80] sm:$0xff] %vm1592_vm4, %v1701_v9  ;;  %1835 = vst.msk [vmem:[#allocation6 + $0x40] sm:$0xff] %vm1592_vm4, %v3915_v13  ;;  %v1587_v20 = vmax.f32 %v1557_v11, 0.0  ;;  %v2631_v21 = vadd.f32 %v2630_v14, %v2629_v12  ;;  %v1771_v9 = vld [vmem:[#allocation5 + $0xc] sm:$0xff] }
 0x36f   : > { %1649 = vrot.lane.b32.xlu0 %v1628_v10, %s3033_s12  ;;  %v1755_v16 = vld [vmem:[#allocation5 + $0x1b] sm:$0xff]  ;;  %v3928_v26 = vld [vmem:[#allocation5 + $0x24] sm:$0xff] }
 0x370   : > { %v1898_v17 = vld [vmem:[#allocation5 + $0x1e] sm:$0xff]  ;;  %1764 = vst.msk [vmem:[#allocation6 + $0x60] sm:$0xff] %vm1592_vm4, %v1755_v16  ;;  %1600 = vst.msk [vmem:[#allocation5 + $0x38] sm:$0xff] %vm1592_vm4, %v1587_v20  ;;  %v1562_v24 = vadd.f32 %v2631_v21, %v1437_v46  ;;  %v2632_v25 = vpop.f32.mrb[42].mxu1  ;;  %v1611_v40 = vld [vmem:[#allocation5 + $0x28] sm:$0xff] }
 0x371   : > { %1907 = vst.msk [vmem:[#allocation6 + $0x48] sm:$0xff] %vm1592_vm4, %v1898_v17  ;;  %v1702_v22 = vld [vmem:[#allocation5 + $0x22] sm:$0xff]  ;;  %v2633_v29 = vpop.f32.mrb[43].mxu1  ;;  %1620 = vst.msk [vmem:[#allocation6 + $0xc8] sm:$0xff] %vm1592_vm4, %v1611_v40  ;;  %v1843_v16 = vld [vmem:[#allocation5 + $0x15] sm:$0xff] }
 0x372   : > { %v1629_v23 = vld [vmem:[#allocation5 + $0x21] sm:$0xff]  ;;  %1723 = vrot.lane.b32.xlu1 %v1702_v22, %s3033_s12  ;;  %1694 = vst.msk [vmem:[#allocation6 + $0xa8] sm:$0xff] %vm1592_vm4, %v1702_v22  ;;  %1836 = vst.msk [vmem:[#allocation6 + $0x68] sm:$0xff] %vm1592_vm4, %v3928_v26  ;;  %v1588_v33 = vmax.f32 %v1562_v24, 0.0  ;;  %v2634_v34 = vadd.f32 %v2633_v29, %v2632_v25 }
 0x373   : > { %1651 = vrot.lane.b32.xlu0 %v1629_v23, %s3033_s12  ;;  %v1756_v27 = vld [vmem:[#allocation5 + $0x23] sm:$0xff]  ;;  %v3941_v41 = vld [vmem:[#allocation5 + $0x2c] sm:$0xff] }
 0x374   : > { %v1899_v35 = vld [vmem:[#allocation5 + $0x26] sm:$0xff]  ;;  %1765 = vst.msk [vmem:[#allocation6 + $0x88] sm:$0xff] %vm1592_vm4, %v1756_v27  ;;  %1601 = vst.msk [vmem:[#allocation5 + $0x40] sm:$0xff] %vm1592_vm4, %v1588_v33  ;;  %v1567_v38 = vadd.f32 %v2634_v34, %v1442_v31  ;;  %v2635_v49 = vpop.f32.mrb[44].mxu1  ;;  %v1612_v32 = vld [vmem:[#allocation5 + $0x30] sm:$0xff] }
 0x375   : > { %v1703_v36 = vld [vmem:[#allocation5 + $0x2a] sm:$0xff]  ;;  %1908 = vst.msk [vmem:[#allocation6 + $0x70] sm:$0xff] %vm1592_vm4, %v1899_v35  ;;  %v2636_v42 = vpop.f32.mrb[45].mxu1  ;;  %1621 = vst.msk [vmem:[#allocation6 + $0xf0] sm:$0xff] %vm1592_vm4, %v1612_v32  ;;  %v1844_v46 = vld [vmem:[#allocation5 + $0x1d] sm:$0xff] }
 0x376   : > { %v1630_v37 = vld [vmem:[#allocation5 + $0x29] sm:$0xff]  ;;  %1725 = vrot.lane.b32.xlu1 %v1703_v36, %s3033_s12  ;;  %1695 = vst.msk [vmem:[#allocation6 + $0xd0] sm:$0xff] %vm1592_vm4, %v1703_v36  ;;  %1837 = vst.msk [vmem:[#allocation6 + $0x90] sm:$0xff] %vm1592_vm4, %v3941_v41  ;;  %v1589_v7 = vmax.f32 %v1567_v38, 0.0  ;;  %v2637_v15 = vadd.f32 %v2636_v42, %v2635_v49  ;;  %v1992_v34 = vld [vmem:[%s4219_s5 + $0x100] sm:$0xff] }
 0x377   : > { %1653 = vrot.lane.b32.xlu0 %v1630_v37, %s3033_s12  ;;  %v1757_v2 = vld [vmem:[#allocation5 + $0x2b] sm:$0xff]  ;;  %v3954_v52 = vld [vmem:[#allocation5 + $0x34] sm:$0xff]  ;;  %v1993_v27 = vld [vmem:[%s4219_s5 + $0x108] sm:$0xff] }
 0x378   : > { %1766 = vst.msk [vmem:[#allocation6 + $0xb0] sm:$0xff] %vm1592_vm4, %v1757_v2  ;;  %v1900_v19 = vld [vmem:[#allocation5 + $0x2e] sm:$0xff]  ;;  %1602 = vst.msk [vmem:[#allocation5 + $0x48] sm:$0xff] %vm1592_vm4, %v1589_v7  ;;  %v1572_v47 = vadd.f32 %v2637_v15, %v1447_v55  ;;  %v2638_v48 = vpop.f32.mrb[46].mxu1  ;;  %v1613_v45 = vld [vmem:[#allocation5 + $0x38] sm:$0xff]  ;;  %v2965_v37 = vpack.c.bf16 %v1993_v27, %v1992_v34 }
 0x379   : > { %v1704_v39 = vld [vmem:[#allocation5 + $0x32] sm:$0xff]  ;;  %1909 = vst.msk [vmem:[#allocation6 + $0x98] sm:$0xff] %vm1592_vm4, %v1900_v19  ;;  %v2639_v53 = vpop.f32.mrb[47].mxu1  ;;  %1622 = vst.msk [vmem:[#allocation6 + $0x118] sm:$0xff] %vm1592_vm4, %v1613_v45  ;;  %v1845_v20 = vld [vmem:[#allocation5 + $0x25] sm:$0xff] }
 0x37a   : > { %v1631_v44 = vld [vmem:[#allocation5 + $0x31] sm:$0xff]  ;;  %1727 = vrot.lane.b32.xlu1 %v1704_v39, %s3033_s12  ;;  %1696 = vst.msk [vmem:[#allocation6 + $0xf8] sm:$0xff] %vm1592_vm4, %v1704_v39  ;;  %1838 = vst.msk [vmem:[#allocation6 + $0xb8] sm:$0xff] %vm1592_vm4, %v3954_v52  ;;  %v1590_v56 = vmax.f32 %v1572_v47, 0.0  ;;  %v2640_v8 = vadd.f32 %v2639_v53, %v2638_v48  ;;  %v2010_v35 = vld [vmem:[%s4219_s5 + $0x190] sm:$0xff] }
 0x37b   : > { %1655 = vrot.lane.b32.xlu0 %v1631_v44, %s3033_s12  ;;  %v1758_v57 = vld [vmem:[#allocation5 + $0x33] sm:$0xff]  ;;  %v1777_v62 = vld [vmem:[#allocation5 + $0x3c] sm:$0xff]  ;;  %v1994_v42 = vld [vmem:[%s4219_s5 + $0x110] sm:$0xff] }
 0x37c   : > { %v1901_v58 = vld [vmem:[#allocation5 + $0x36] sm:$0xff]  ;;  %1767 = vst.msk [vmem:[#allocation6 + $0xd8] sm:$0xff] %vm1592_vm4, %v1758_v57  ;;  %1603 = vst.msk [vmem:[#allocation5 + $0x50] sm:$0xff] %vm1592_vm4, %v1590_v56  ;;  %v1577_v61 = vadd.f32 %v2640_v8, %v1452_v54  ;;  %v1614_v50 = vld [vmem:[#allocation5 + $0x40] sm:$0x7] }
 0x37d   : > { %v1705_v59 = vld [vmem:[#allocation5 + $0x3a] sm:$0xff]  ;;  %1910 = vst.msk [vmem:[#allocation6 + $0xc0] sm:$0xff] %vm1592_vm4, %v1901_v58  ;;  %v1689_v51 = vld [vmem:[#allocation5 + $0x42] sm:$0x7]  ;;  %1839 = vst.msk [vmem:[#allocation6 + $0xe0] sm:$0xff] %vm1592_vm4, %v1777_v62 }
 0x37e   : > { %v1632_v60 = vld [vmem:[#allocation5 + $0x39] sm:$0xff]  ;;  %1729 = vrot.lane.b32.xlu1 %v1705_v59, %s3033_s12  ;;  %1697 = vst.msk [vmem:[#allocation6 + $0x120] sm:$0xff] %vm1592_vm4, %v1705_v59  ;;  %v1591_v63 = vmax.f32 %v1577_v61, 0.0  ;;  %v1633_v1 = vld [vmem:[#allocation5 + $0x41] sm:$0x7]  ;;  %v1846_v21 = vld [vmem:[#allocation5 + $0x2d] sm:$0xff] }
 0x37f   : > { %1657 = vrot.lane.b32.xlu0 %v1632_v60, %s3033_s12  ;;  %1624 = vst.msk [vmem:[#allocation6 + $0x140] sm:$0x7] %vm1623_vm5, %v1614_v50  ;;  %1698 = vst.msk [vmem:[#allocation6 + $0x148] sm:$0x7] %vm1623_vm5, %v1689_v51  ;;  %v1759_v0 = vld [vmem:[#allocation5 + $0x3b] sm:$0xff]  ;;  %v1778_v4 = vld [vmem:[#allocation5 + $0x44] sm:$0xff] }
 0x380   : > { %v1706_v18 = vld [vmem:[#allocation5 + $0x42] sm:$0xff]  ;;  %1768 = vst.msk [vmem:[#allocation6 + $0x100] sm:$0xff] %vm1592_vm4, %v1759_v0  ;;  %1840 = vst.msk [vmem:[#allocation6 + $0x108] sm:$0xff] %vm1592_vm4, %v1778_v4  ;;  %v1761_v43 = vld [vmem:[#allocation5 + $0x4b] sm:$0x7] }
 0x381   : > { %1605 = vst.msk [vmem:[#allocation5 + $0x58] sm:$0x3] %vm1604_vm6, %v1591_v63  ;;  %v1760_v5 = vld [vmem:[#allocation5 + $0x43] sm:$0xff]  ;;  %v1779_v24 = vld [vmem:[#allocation5 + $0x4c] sm:$0x7]  ;;  %v2011_v36 = vld [vmem:[%s4219_s5 + $0x198] sm:$0xff] }
 0x382   : > { %1731 = vrot.lane.b32.xlu1 %v1706_v18, %s3033_s12  ;;  %v1707_v6 = vld [vmem:[#allocation5 + $0x4a] sm:$0x7]  ;;  %1769 = vst.msk [vmem:[#allocation6 + $0x128] sm:$0xff] %vm1592_vm4, %v1760_v5  ;;  %v1902_v12 = vld [vmem:[#allocation5 + $0x3e] sm:$0xff]  ;;  %v2967_v32 = vpack.c.bf16 %v2011_v36, %v2010_v35  ;;  %v1995_v2 = vld [vmem:[%s4219_s5 + $0x118] sm:$0xff] }
 0x383   : > { %1659 = vrot.lane.b32.xlu0 %v1633_v1, %s3033_s12  ;;  %v1832_v10 = vld [vmem:[#allocation5 + $0x4c] sm:$0xff]  ;;  %1770 = vst.msk [vmem:[#allocation6 + $0x150] sm:$0x7] %vm1623_vm5, %v1761_v43  ;;  %v1833_v11 = vld [vmem:[#allocation5 + $0x54] sm:$0x7]  ;;  %v1848_v22 = vld [vmem:[#allocation5 + $0x3d] sm:$0xff]  ;;  %v2969_v19 = vpack.c.bf16 %v1995_v2, %v1994_v42 }
 0x384   : > { %1841 = vst.msk [vmem:[#allocation6 + $0x130] sm:$0xff] %vm1592_vm4, %v1832_v10  ;;  %v1903_v30 = vld [vmem:[#allocation5 + $0x46] sm:$0xff]  ;;  %1911 = vst.msk [vmem:[#allocation6 + $0xe8] sm:$0xff] %vm1592_vm4, %v1902_v12  ;;  %v1904_v14 = vld [vmem:[#allocation5 + $0x4e] sm:$0xff] }
 0x385   : > { %1842 = vst.msk [vmem:[#allocation6 + $0x158] sm:$0x7] %vm1623_vm5, %v1833_v11  ;;  %v1850_v23 = vld [vmem:[#allocation5 + $0x4d] sm:$0xff]  ;;  %v1851_v25 = vld [vmem:[#allocation5 + $0x55] sm:$0x7]  ;;  %v2012_v7 = vld [vmem:[%s4219_s5 + $0x1a0] sm:$0xff] }
 0x386   : > { %1733 = vrot.lane.b32.xlu1 %v1707_v6, %s3033_s12  ;;  %1912 = vst.msk [vmem:[#allocation6 + $0x110] sm:$0xff] %vm1592_vm4, %v1903_v30  ;;  %1913 = vst.msk [vmem:[#allocation6 + $0x138] sm:$0xff] %vm1592_vm4, %v1904_v14  ;;  %v2013_v15 = vld [vmem:[%s4219_s5 + $0x1a8] sm:$0xff]  ;;  %v2014_v54 = vld [vmem:[%s4219_s5 + $0x1b0] sm:$0xff] }
 0x387   : > { %1789 = vrot.lane.b32.xlu0 %v1771_v9, %s3033_s12  ;;  %v2971_v48 = vpack.c.bf16 %v2013_v15, %v2012_v7  ;;  %v1997_v45 = vld [vmem:[%s4219_s5 + $0x128] sm:$0xff]  ;;  %v2015_v56 = vld [vmem:[%s4219_s5 + $0x1b8] sm:$0xff]  ;;  %v1998_v61 = vld [vmem:[%s4219_s5 + $0x130] sm:$0xff] }
 0x388   : > { %v1905_v17 = vld [vmem:[#allocation5 + $0x56] sm:$0x7]  ;;  %v2975_v60 = vpack.c.bf16 %v2015_v56, %v2014_v54  ;;  %v2017_v63 = vld [vmem:[%s4219_s5 + $0x1c8] sm:$0xff]  ;;  %v2018_v10 = vld [vmem:[%s4219_s5 + $0x1d0] sm:$0xff] }
 0x389   : > { %1914 = vst.msk [vmem:[#allocation6 + $0x160] sm:$0x7] %vm1623_vm5, %v1905_v17  ;;  %v2016_v51 = vld [vmem:[%s4219_s5 + $0x1c0] sm:$0xff]  ;;  %v2001_v6 = vld [vmem:[%s4219_s5 + $0x148] sm:$0xff]  ;;  %v2019_v11 = vld [vmem:[%s4219_s5 + $0x1d8] sm:$0xff] }
 0x38a   : > { %1861 = vrot.lane.b32.xlu1 %v1843_v16, %s3033_s12  ;;  %v2979_v5 = vpack.c.bf16 %v2017_v63, %v2016_v51  ;;  %v2000_v43 = vld [vmem:[%s4219_s5 + $0x140] sm:$0xff]  ;;  %v2983_v17 = vpack.c.bf16 %v2019_v11, %v2018_v10  ;;  %v2023_v34 = vld [vmem:[%s4219_s5 + $0x1f8] sm:$0xff]  ;;  %v2029_v51 = vld [vmem:[%s4219_s5 + $0x228] sm:$0xff] }
 0x38b   : > { %1791 = vrot.lane.b32.xlu0 %v3903_v28, %s3033_s12  ;;  %v1847_v28 = vld [vmem:[#allocation5 + $0x35] sm:$0xff]  ;;  %v2981_v12 = vpack.c.bf16 %v2001_v6, %v2000_v43 }
 0x38c   : > { %v2031_v43 = vld [vmem:[%s4219_s5 + $0x238] sm:$0xff] }
 0x38e   : > { %1863 = vrot.lane.b32.xlu1 %v1844_v46, %s3033_s12  ;;  %v2002_v46 = vld [vmem:[%s4219_s5 + $0x150] sm:$0xff] }
 0x38f   : > { %1793 = vrot.lane.b32.xlu0 %v3915_v13, %s3033_s12  ;;  %v1849_v13 = vld [vmem:[#allocation5 + $0x45] sm:$0xff] }
 0x392   : > { %1865 = vrot.lane.b32.xlu1 %v1845_v20, %s3033_s12  ;;  %v2003_v20 = vld [vmem:[%s4219_s5 + $0x158] sm:$0xff] }
 0x393   : > { %1795 = vrot.lane.b32.xlu0 %v3928_v26, %s3033_s12 }
 0x396   : > { %1867 = vrot.lane.b32.xlu1 %v1846_v21, %s3033_s12 }
 0x397   : > { %1797 = vrot.lane.b32.xlu0 %v3941_v41, %s3033_s12 }
 0x39a   : > { %1869 = vrot.lane.b32.xlu1 %v1847_v28, %s3033_s12  ;;  %v2020_v28 = vld [vmem:[%s4219_s5 + $0x1e0] sm:$0xff] }
 0x39b   : > { %1799 = vrot.lane.b32.xlu0 %v3954_v52, %s3033_s12  ;;  %v1996_v52 = vld [vmem:[%s4219_s5 + $0x120] sm:$0xff] }
 0x39c   : > { %v2973_v8 = vpack.c.bf16 %v1997_v45, %v1996_v52 }
 0x39e   : > { %1871 = vrot.lane.b32.xlu1 %v1848_v22, %s3033_s12  ;;  %v2021_v22 = vld [vmem:[%s4219_s5 + $0x1e8] sm:$0xff] }
 0x39f   : > { %1801 = vrot.lane.b32.xlu0 %v1777_v62, %s3033_s12  ;;  %v1999_v62 = vld [vmem:[%s4219_s5 + $0x138] sm:$0xff] }
 0x3a0   : > { %v2977_v0 = vpack.c.bf16 %v1999_v62, %v1998_v61 }
 0x3a2   : > { %1873 = vrot.lane.b32.xlu1 %v1849_v13, %s3033_s12  ;;  %v2985_v13 = vpack.c.bf16 %v2003_v20, %v2002_v46 }
 0x3a3   : > { %1803 = vrot.lane.b32.xlu0 %v1778_v4, %s3033_s12 }
 0x3a6   : > { %1875 = vrot.lane.b32.xlu1 %v1850_v23, %s3033_s12 }
 0x3a7   : > { %1805 = vrot.lane.b32.xlu0 %v1779_v24, %s3033_s12 }
 0x3aa   : > { %1877 = vrot.lane.b32.xlu1 %v1851_v25, %s3033_s12 }
 0x3d2   : > { %v1644_v26 = vpop.permute.xlu0 %1643 }
 0x3d3   : > { %1671 = vst.msk [vmem:[#allocation6] sm:$0xff] %vm1670_vm7, %v1644_v26  ;;  %v2987_v26 = vpack.c.bf16 %v2021_v22, %v2020_v28 }
 0x3d6   : > { %v1718_v40 = vpop.permute.xlu1 %1717 }
 0x3d7   : > { %v1646_v29 = vpop.permute.xlu0 %1645  ;;  %1744 = vst.msk [vmem:[#allocation6 + $0x8] sm:$0xff] %vm1670_vm7, %v1718_v40  ;;  %v2004_v40 = vld [vmem:[%s4219_s5 + $0x160] sm:$0xff] }
 0x3d8   : > { %1672 = vst.msk [vmem:[#allocation6 + $0x28] sm:$0xff] %vm1670_vm7, %v1646_v29  ;;  %v2005_v29 = vld [vmem:[%s4219_s5 + $0x168] sm:$0xff] }
 0x3d9   : > { %v2989_v27 = vpack.c.bf16 %v2005_v29, %v2004_v40  ;;  %v3036_v29 = vmov 0.0  }
 0x3da   : > { %v1915_v55 = vld [vmem:[#allocation6] sm:$0xff] }
 0x3db   : > { %v1720_v31 = vpop.permute.xlu1 %1719 }
 0x3dc   : > { %v1648_v33 = vpop.permute.xlu0 %1647  ;;  %1745 = vst.msk [vmem:[#allocation6 + $0x30] sm:$0xff] %vm1670_vm7, %v1720_v31 }
 0x3dd   : > { %1673 = vst.msk [vmem:[#allocation6 + $0x50] sm:$0xff] %vm1670_vm7, %v1648_v33  ;;  %v2022_v33 = vld [vmem:[%s4219_s5 + $0x1f0] sm:$0xff] }
 0x3de   : > { %v1916_v41 = vld [vmem:[#allocation6 + $0x8] sm:$0xff] }
 0x3df   : > { %2130 = vmatprep.mubr.f32.mxu1 %v1916_v41  ;;  %v1920_v53 = vld [vmem:[#allocation6 + $0x28] sm:$0xff]  ;;  %v2007_v41 = vld [vmem:[%s4219_s5 + $0x178] sm:$0xff] }
 0x3e0   : > { %v1722_v38 = vpop.permute.xlu1 %1721  ;;  %2131 = vmatmul.mubr.f32.vlgmr.msra.gmra.mrb[48].mxu1 %v1915_v55 }
 0x3e1   : > { %v1650_v49 = vpop.permute.xlu0 %1649  ;;  %1746 = vst.msk [vmem:[#allocation6 + $0x58] sm:$0xff] %vm1670_vm7, %v1722_v38  ;;  %2966 = vmatpush3.bf16.msra.mxu1 %v2965_v37  ;;  %v2991_v38 = vpack.c.bf16 %v2023_v34, %v2022_v33  ;;  %v1924_v33 = vld [vmem:[#allocation6 + $0x48] sm:$0xff]  ;;  %v1929_v34 = vld [vmem:[#allocation6 + $0x70] sm:$0xff] }
 0x3e2   : > { %1674 = vst.msk [vmem:[#allocation6 + $0x78] sm:$0xff] %vm1670_vm7, %v1650_v49  ;;  %2968 = vmatprep.subr.bf16.mxu1 %v2967_v32  ;;  %v2006_v49 = vld [vmem:[%s4219_s5 + $0x170] sm:$0xff] }
 0x3e3   : > { %v1921_v47 = vld [vmem:[#allocation6 + $0x30] sm:$0xff]  ;;  %v2993_v42 = vpack.c.bf16 %v2007_v41, %v2006_v49  ;;  %v1959_v49 = vld [vmem:[#allocation6 + $0x160] sm:$0x7] }
 0x3e4   : > { %v1724_v39 = vpop.permute.xlu1 %1723  ;;  %2135 = vmatprep.mubr.f32.mxu1 %v1921_v47  ;;  %v1925_v50 = vld [vmem:[#allocation6 + $0x50] sm:$0xff]  ;;  %v2024_v47 = vld [vmem:[%s4219_s5 + $0x200] sm:$0xff] }
 0x3e5   : > { %v1652_v44 = vpop.permute.xlu0 %1651  ;;  %1747 = vst.msk [vmem:[#allocation6 + $0x80] sm:$0xff] %vm1670_vm7, %v1724_v39  ;;  %2136 = vmatmul.mubr.f32.gmra.mrb[50].mxu1 %v1920_v53 }
 0x3e6   : > { %1675 = vst.msk [vmem:[#allocation6 + $0xa0] sm:$0xff] %vm1670_vm7, %v1652_v44  ;;  %2970 = vmatpush3.bf16.msra.mxu1 %v2969_v19 }
 0x3e7   : > { %2972 = vmatprep.subr.bf16.mxu1 %v2971_v48  ;;  %v2025_v48 = vld [vmem:[%s4219_s5 + $0x208] sm:$0xff] }
 0x3e8   : > { %v1726_v57 = vpop.permute.xlu1 %1725  ;;  %v1926_v59 = vld [vmem:[#allocation6 + $0x58] sm:$0xff]  ;;  %v2996_v45 = vpack.c.bf16 %v2025_v48, %v2024_v47 }
 0x3e9   : > { %v1654_v58 = vpop.permute.xlu0 %1653  ;;  %1748 = vst.msk [vmem:[#allocation6 + $0xa8] sm:$0xff] %vm1670_vm7, %v1726_v57  ;;  %2140 = vmatprep.mubr.f32.mxu1 %v1926_v59  ;;  %v1930_v9 = vld [vmem:[#allocation6 + $0x78] sm:$0xff]  ;;  %v2027_v57 = vld [vmem:[%s4219_s5 + $0x218] sm:$0xff] }
 0x3ea   : > { %1676 = vst.msk [vmem:[#allocation6 + $0xc8] sm:$0xff] %vm1670_vm7, %v1654_v58  ;;  %2141 = vmatmul.mubr.f32.gmra.mrb[52].mxu1 %v1925_v50  ;;  %v2028_v50 = vld [vmem:[%s4219_s5 + $0x220] sm:$0xff] }
 0x3eb   : > { %2974 = vmatpush3.bf16.msra.mxu1 %v2973_v8  ;;  %v2026_v8 = vld [vmem:[%s4219_s5 + $0x210] sm:$0xff] }
 0x3ec   : > { %v1728_v18 = vpop.permute.xlu1 %1727  ;;  %v1931_v4 = vld [vmem:[#allocation6 + $0x80] sm:$0xff]  ;;  %2976 = vmatprep.subr.bf16.mxu1 %v2975_v60  ;;  %v2999_v59 = vpack.c.bf16 %v2027_v57, %v2026_v8 }
 0x3ed   : > { %v1656_v1 = vpop.permute.xlu0 %1655  ;;  %1749 = vst.msk [vmem:[#allocation6 + $0xd0] sm:$0xff] %vm1670_vm7, %v1728_v18  ;;  %2145 = vmatprep.mubr.f32.mxu1 %v1931_v4  ;;  %v1935_v21 = vld [vmem:[#allocation6 + $0xa0] sm:$0xff] }
 0x3ee   : > { %1677 = vst.msk [vmem:[#allocation6 + $0xf0] sm:$0xff] %vm1670_vm7, %v1656_v1  ;;  %2146 = vmatmul.mubr.f32.gmra.mrb[54].mxu1 %v1930_v9 }
 0x3ef   : > { %2978 = vmatpush3.bf16.msra.mxu1 %v2977_v0  ;;  %v3002_v0 = vpack.c.bf16 %v2029_v51, %v2028_v50 }
 0x3f0   : > { %v1730_v30 = vpop.permute.xlu1 %1729  ;;  %v1936_v16 = vld [vmem:[#allocation6 + $0xa8] sm:$0xff]  ;;  %2980 = vmatprep.subr.bf16.mxu1 %v2979_v5 }
 0x3f1   : > { %v1658_v14 = vpop.permute.xlu0 %1657  ;;  %1750 = vst.msk [vmem:[#allocation6 + $0xf8] sm:$0xff] %vm1670_vm7, %v1730_v30  ;;  %2150 = vmatprep.mubr.f32.mxu1 %v1936_v16  ;;  %v1940_v31 = vld [vmem:[#allocation6 + $0xc8] sm:$0xff] }
 0x3f2   : > { %1678 = vst.msk [vmem:[#allocation6 + $0x118] sm:$0xff] %vm1670_vm7, %v1658_v14  ;;  %2151 = vmatmul.mubr.f32.gmra.mrb[56].mxu1 %v1935_v21  ;;  %v2030_v5 = vld [vmem:[%s4219_s5 + $0x230] sm:$0xff] }
 0x3f3   : > { %2982 = vmatpush3.bf16.msra.mxu1 %v2981_v12  ;;  %v3005_v9 = vpack.c.bf16 %v2031_v43, %v2030_v5 }
 0x3f4   : > { %v1732_v23 = vpop.permute.xlu1 %1731  ;;  %v1941_v25 = vld [vmem:[#allocation6 + $0xd0] sm:$0xff]  ;;  %2984 = vmatprep.subr.bf16.mxu1 %v2983_v17 }
 0x3f5   : > { %v1660_v24 = vpop.permute.xlu0 %1659  ;;  %1751 = vst.msk [vmem:[#allocation6 + $0x120] sm:$0xff] %vm1670_vm7, %v1732_v23  ;;  %2155 = vmatprep.mubr.f32.mxu1 %v1941_v25  ;;  %v1945_v32 = vld [vmem:[#allocation6 + $0xf0] sm:$0xff] }
 0x3f6   : > { %1680 = vst.msk [vmem:[#allocation6 + $0x140] sm:$0x7] %vm1679_vm8, %v1660_v24  ;;  %2156 = vmatmul.mubr.f32.gmra.mrb[58].mxu1 %v1940_v31  ;;  %v1919_v31 = vld [vmem:[#allocation6 + $0x20] sm:$0xff] }
 0x3f7   : > { %2986 = vmatpush3.bf16.msra.mxu1 %v2985_v13 }
 0x3f8   : > { %v1734_v35 = vpop.permute.xlu1 %1733  ;;  %v1946_v37 = vld [vmem:[#allocation6 + $0xf8] sm:$0xff]  ;;  %2988 = vmatprep.subr.bf16.mxu1 %v2987_v26 }
 0x3f9   : > { %v1790_v36 = vpop.permute.xlu0 %1789  ;;  %1752 = vst.msk [vmem:[#allocation6 + $0x148] sm:$0x7] %vm1679_vm8, %v1734_v35  ;;  %2160 = vmatprep.mubr.f32.mxu1 %v1946_v37  ;;  %v1950_v15 = vld [vmem:[#allocation6 + $0x118] sm:$0xff]  ;;  %v1939_v35 = vld [vmem:[#allocation6 + $0xc0] sm:$0xff]  ;;  %v1949_v37 = vld [vmem:[#allocation6 + $0x110] sm:$0xff] }
 0x3fa   : > { %1816 = vst.msk [vmem:[#allocation6 + $0x10] sm:$0xff] %vm1670_vm7, %v1790_v36  ;;  %2161 = vmatmul.mubr.f32.gmra.mrb[60].mxu1 %v1945_v32  ;;  %v1944_v36 = vld [vmem:[#allocation6 + $0xe8] sm:$0xff] }
 0x3fb   : > { %2990 = vmatpush3.bf16.msra.mxu1 %v2989_v27  ;;  %v1934_v27 = vld [vmem:[#allocation6 + $0x98] sm:$0xff] }
 0x3fc   : > { %v1862_v2 = vpop.permute.xlu1 %1861  ;;  %v1951_v7 = vld [vmem:[#allocation6 + $0x120] sm:$0xff]  ;;  %2992 = vmatprep.subr.bf16.mxu1 %v2991_v38  ;;  %v1954_v38 = vld [vmem:[#allocation6 + $0x138] sm:$0xff] }
 0x3fd   : > { %v1792_v55 = vpop.permute.xlu0 %1791  ;;  %1888 = vst.msk [vmem:[#allocation6 + $0x18] sm:$0xff] %vm1670_vm7, %v1862_v2  ;;  %2165 = vmatprep.mubr.f32.mxu1 %v1951_v7  ;;  %v1955_v52 = vld [vmem:[#allocation6 + $0x140] sm:$0x7] }
 0x3fe   : > { %1817 = vst.msk [vmem:[#allocation6 + $0x38] sm:$0xff] %vm1670_vm7, %v1792_v55  ;;  %2166 = vmatmul.mubr.f32.gmra.mrb[62].mxu1 %v1950_v15 }
 0x3ff   : > { %2994 = vmatpush3.bf16.msra.mxu1 %v2993_v42 }
 0x400   : > { %v1864_v19 = vpop.permute.xlu1 %1863  ;;  %v1956_v44 = vld [vmem:[#allocation6 + $0x148] sm:$0x7]  ;;  %2995 = vmatprep.subr.bf16.mxu1 %v3031_v3 }
 0x401   : > { %v1794_v39 = vpop.permute.xlu0 %1793  ;;  %1889 = vst.msk [vmem:[#allocation6 + $0x40] sm:$0xff] %vm1670_vm7, %v1864_v19  ;;  %2170 = vmatprep.mubr.f32.mxu1 %v1956_v44  ;;  %v1917_v58 = vld [vmem:[#allocation6 + $0x10] sm:$0xff] }
 0x402   : > { %1818 = vst.msk [vmem:[#allocation6 + $0x60] sm:$0xff] %vm1670_vm7, %v1794_v39  ;;  %2171 = vmatmul.mubr.f32.gmra.mrb[64].mxu1 %v1955_v52 }
 0x404   : > { %v1866_v53 = vpop.permute.xlu1 %1865  ;;  %v1918_v56 = vld [vmem:[#allocation6 + $0x18] sm:$0xff] }
 0x405   : > { %v1796_v54 = vpop.permute.xlu0 %1795  ;;  %1890 = vst.msk [vmem:[#allocation6 + $0x68] sm:$0xff] %vm1670_vm7, %v1866_v53  ;;  %2240 = vmatprep.mubr.f32.mxu1 %v1918_v56  ;;  %v1922_v63 = vld [vmem:[#allocation6 + $0x38] sm:$0xff] }
 0x406   : > { %1819 = vst.msk [vmem:[#allocation6 + $0x88] sm:$0xff] %vm1670_vm7, %v1796_v54  ;;  %2241 = vmatmul.mubr.f32.vlgmr.msra.gmra.mrb[66].mxu1 %v1917_v58 }
 0x407   : > { %2997 = vmatpush3.bf16.msra.mxu1 %v2996_v45 }
 0x408   : > { %v1868_v60 = vpop.permute.xlu1 %1867  ;;  %v1923_v62 = vld [vmem:[#allocation6 + $0x40] sm:$0xff]  ;;  %2998 = vmatprep.subr.bf16.mxu1 %v3031_v3 }
 0x409   : > { %v1798_v61 = vpop.permute.xlu0 %1797  ;;  %1891 = vst.msk [vmem:[#allocation6 + $0x90] sm:$0xff] %vm1670_vm7, %v1868_v60  ;;  %2245 = vmatprep.mubr.f32.mxu1 %v1923_v62  ;;  %v1927_v6 = vld [vmem:[#allocation6 + $0x60] sm:$0xff] }
 0x40a   : > { %1820 = vst.msk [vmem:[#allocation6 + $0xb0] sm:$0xff] %vm1670_vm7, %v1798_v61  ;;  %2246 = vmatmul.mubr.f32.gmra.mrb[68].mxu1 %v1922_v63 }
 0x40b   : > { %3000 = vmatpush3.bf16.msra.mxu1 %v2999_v59 }
 0x40c   : > { %v1870_v18 = vpop.permute.xlu1 %1869  ;;  %v1928_v4 = vld [vmem:[#allocation6 + $0x68] sm:$0xff]  ;;  %3001 = vmatprep.subr.bf16.mxu1 %v3031_v3 }
 0x40d   : > { %v1800_v1 = vpop.permute.xlu0 %1799  ;;  %1892 = vst.msk [vmem:[#allocation6 + $0xb8] sm:$0xff] %vm1670_vm7, %v1870_v18  ;;  %2250 = vmatprep.mubr.f32.mxu1 %v1928_v4  ;;  %v1932_v30 = vld [vmem:[#allocation6 + $0x88] sm:$0xff] }
 0x40e   : > { %1821 = vst.msk [vmem:[#allocation6 + $0xd8] sm:$0xff] %vm1670_vm7, %v1800_v1  ;;  %2251 = vmatmul.mubr.f32.gmra.mrb[70].mxu1 %v1927_v6 }
 0x40f   : > { %3003 = vmatpush3.bf16.msra.mxu1 %v3002_v0  ;;  %v2493_v0 = vld [vmem:[%s4220_s6] ss:$0 sm:$0xff] }
 0x410   : > { %v1872_v10 = vpop.permute.xlu1 %1871  ;;  %v1933_v12 = vld [vmem:[#allocation6 + $0x90] sm:$0xff]  ;;  %3004 = vmatprep.subr.bf16.mxu1 %v3031_v3 }
 0x411   : > { %v1802_v11 = vpop.permute.xlu0 %1801  ;;  %1893 = vst.msk [vmem:[#allocation6 + $0xe0] sm:$0xff] %vm1670_vm7, %v1872_v10  ;;  %2255 = vmatprep.mubr.f32.mxu1 %v1933_v12  ;;  %v1937_v46 = vld [vmem:[#allocation6 + $0xb0] sm:$0xff] }
 0x412   : > { %1822 = vst.msk [vmem:[#allocation6 + $0x100] sm:$0xff] %vm1670_vm7, %v1802_v11  ;;  %2256 = vmatmul.mubr.f32.gmra.mrb[72].mxu1 %v1932_v30 }
 0x413   : > { %3006 = vmatpush3.bf16.msra.mxu1 %v3005_v9 }
 0x414   : > { %v1874_v14 = vpop.permute.xlu1 %1873  ;;  %v1938_v17 = vld [vmem:[#allocation6 + $0xb8] sm:$0xff] }
 0x415   : > { %v1804_v16 = vpop.permute.xlu0 %1803  ;;  %1894 = vst.msk [vmem:[#allocation6 + $0x108] sm:$0xff] %vm1670_vm7, %v1874_v14  ;;  %2260 = vmatprep.mubr.f32.mxu1 %v1938_v17  ;;  %v1942_v28 = vld [vmem:[#allocation6 + $0xd8] sm:$0xff] }
 0x416   : > { %1823 = vst.msk [vmem:[#allocation6 + $0x128] sm:$0xff] %vm1670_vm7, %v1804_v16  ;;  %2261 = vmatmul.mubr.f32.gmra.mrb[74].mxu1 %v1937_v46 }
 0x418   : > { %v1876_v20 = vpop.permute.xlu1 %1875  ;;  %v1943_v21 = vld [vmem:[#allocation6 + $0xe0] sm:$0xff] }
 0x419   : > { %v1806_v3 = vpop.permute.xlu0 %1805  ;;  %1895 = vst.msk [vmem:[#allocation6 + $0x130] sm:$0xff] %vm1670_vm7, %v1876_v20  ;;  %2265 = vmatprep.mubr.f32.mxu1 %v1943_v21  ;;  %v1947_v23 = vld [vmem:[#allocation6 + $0x100] sm:$0xff] }
 0x41a   : > { %1824 = vst.msk [vmem:[#allocation6 + $0x150] sm:$0x7] %vm1679_vm8, %v1806_v3  ;;  %2266 = vmatmul.mubr.f32.gmra.mrb[76].mxu1 %v1942_v28 }
 0x41c   : > { %v1878_v22 = vpop.permute.xlu1 %1877  ;;  %v1948_v13 = vld [vmem:[#allocation6 + $0x108] sm:$0xff] }
 0x41d   : > { %1896 = vst.msk [vmem:[#allocation6 + $0x158] sm:$0x7] %vm1679_vm8, %v1878_v22  ;;  %2270 = vmatprep.mubr.f32.mxu1 %v1948_v13  ;;  %v1952_v25 = vld [vmem:[#allocation6 + $0x128] sm:$0xff] }
 0x41e   : > { %2271 = vmatmul.mubr.f32.gmra.mrb[78].mxu1 %v1947_v23 }
 0x420   : > { %v1953_v24 = vld [vmem:[#allocation6 + $0x130] sm:$0xff] }
 0x421   : > { %2275 = vmatprep.mubr.f32.mxu1 %v1953_v24  ;;  %v1957_v40 = vld [vmem:[#allocation6 + $0x150] sm:$0x7] }
 0x422   : > { %2276 = vmatmul.mubr.f32.gmra.mrb[80].mxu1 %v1952_v25 }
 0x424   : > { %v1958_v26 = vld [vmem:[#allocation6 + $0x158] sm:$0x7] }
 0x425   : > { %2280 = vmatprep.mubr.f32.mxu1 %v1958_v26 }
 0x426   : > { %2281 = vmatmul.mubr.f32.gmra.mrb[82].mxu1 %v1957_v40 }
 0x427   : > { %2792 = vmatprep.mubr.msk.f32.mxu1 %vm3035_vm9, %v3036_v29 }
 0x42a   : > { %2793 = vmatmul.mubr.msk.f32.vlgmr.msra.gmra.mrb[84].mxu1 %vm1592_vm4, %v1919_v31 }
 0x42b   : > { %2795 = vmatprep.mubr.msk.f32.mxu1 %vm3035_vm9, %v3036_v29 }
 0x42e   : > { %2796 = vmatmul.mubr.msk.f32.gmra.mrb[86].mxu1 %vm1592_vm4, %v1924_v33 }
 0x42f   : > { %2798 = vmatprep.mubr.msk.f32.mxu1 %vm3035_vm9, %v3036_v29 }
 0x432   : > { %2799 = vmatmul.mubr.msk.f32.gmra.mrb[88].mxu1 %vm1592_vm4, %v1929_v34 }
 0x433   : > { %2801 = vmatprep.mubr.msk.f32.mxu1 %vm3035_vm9, %v3036_v29 }
 0x436   : > { %2802 = vmatmul.mubr.msk.f32.gmra.mrb[90].mxu1 %vm1592_vm4, %v1934_v27 }
 0x437   : > { %2804 = vmatprep.mubr.msk.f32.mxu1 %vm3035_vm9, %v3036_v29 }
 0x43a   : > { %2805 = vmatmul.mubr.msk.f32.gmra.mrb[92].mxu1 %vm1592_vm4, %v1939_v35 }
 0x43b   : > { %2807 = vmatprep.mubr.msk.f32.mxu1 %vm3035_vm9, %v3036_v29 }
 0x43e   : > { %2808 = vmatmul.mubr.msk.f32.gmra.mrb[94].mxu1 %vm1592_vm4, %v1944_v36 }
 0x43f   : > { %2810 = vmatprep.mubr.msk.f32.mxu1 %vm3035_vm9, %v3036_v29 }
 0x442   : > { %2811 = vmatmul.mubr.msk.f32.gmra.mrb[96].mxu1 %vm1592_vm4, %v1949_v37 }
 0x443   : > { %2813 = vmatprep.mubr.msk.f32.mxu1 %vm3035_vm9, %v3036_v29 }
 0x446   : > { %2814 = vmatmul.mubr.msk.f32.gmra.mrb[98].mxu1 %vm1592_vm4, %v1954_v38 }
 0x447   : > { %2816 = vmatprep.mubr.msk.f32.mxu1 %vm3035_vm9, %v3036_v29 }
 0x44a   : > { %2817 = vmatmul.mubr.msk.f32.gmra.mrb[100].mxu1 %vm1592_vm4, %v1959_v49 }
 0x4b3   : > { %v2673_v41 = vpop.f32.mrb[48].mxu1 }
 0x4b4   : > { %v2674_v32 = vpop.f32.mrb[49].mxu1 }
 0x4b5   : > { %v2675_v42 = vadd.f32 %v2674_v32, %v2673_v41 }
 0x4b7   : > { %v2133_v4 = vadd.f32 %v2675_v42, %v2493_v0 }
 0x4b8   : > { %v2676_v2 = vpop.f32.mrb[50].mxu1 }
 0x4b9   : > { %v2677_v55 = vpop.f32.mrb[51].mxu1 }
 0x4ba   : > { %v2678_v7 = vadd.f32 %v2677_v55, %v2676_v2 }
 0x4bc   : > { %v2138_v10 = vadd.f32 %v2678_v7, %v2493_v0 }
 0x4bd   : > { %v2679_v15 = vpop.f32.mrb[52].mxu1 }
 0x4be   : > { %v2680_v19 = vpop.f32.mrb[53].mxu1 }
 0x4bf   : > { %v2681_v39 = vadd.f32 %v2680_v19, %v2679_v15 }
 0x4c1   : > { %v2682_v44 = vpop.f32.mrb[54].mxu1  ;;  %v2143_v16 = vadd.f32 %v2681_v39, %v2493_v0 }
 0x4c2   : > { %v2683_v47 = vpop.f32.mrb[55].mxu1 }
 0x4c3   : > { %v2684_v48 = vadd.f32 %v2683_v47, %v2682_v44 }
 0x4c5   : > { %v2685_v52 = vpop.f32.mrb[56].mxu1  ;;  %v2148_v21 = vadd.f32 %v2684_v48, %v2493_v0 }
 0x4c6   : > { %v2686_v45 = vpop.f32.mrb[57].mxu1 }
 0x4c7   : > { %v2687_v53 = vadd.f32 %v2686_v45, %v2685_v52 }
 0x4c9   : > { %v2688_v54 = vpop.f32.mrb[58].mxu1  ;;  %v2153_v24 = vadd.f32 %v2687_v53, %v2493_v0 }
 0x4ca   : > { %v2689_v56 = vpop.f32.mrb[59].mxu1 }
 0x4cb   : > { %v2690_v8 = vadd.f32 %v2689_v56, %v2688_v54 }
 0x4cd   : > { %v2691_v57 = vpop.f32.mrb[60].mxu1  ;;  %v2158_v31 = vadd.f32 %v2690_v8, %v2493_v0 }
 0x4ce   : > { %v2692_v58 = vpop.f32.mrb[61].mxu1 }
 0x4cf   : > { %v2693_v59 = vadd.f32 %v2692_v58, %v2691_v57 }
 0x4d1   : > { %v2694_v60 = vpop.f32.mrb[62].mxu1  ;;  %v2163_v36 = vadd.f32 %v2693_v59, %v2493_v0 }
 0x4d2   : > { %v2695_v61 = vpop.f32.mrb[63].mxu1 }
 0x4d3   : > { %v2696_v62 = vadd.f32 %v2695_v61, %v2694_v60 }
 0x4d5   : > { %v2697_v50 = vpop.f32.mrb[64].mxu1  ;;  %v2168_v32 = vadd.f32 %v2696_v62, %v2493_v0 }
 0x4d6   : > { %v2698_v51 = vpop.f32.mrb[65].mxu1 }
 0x4d7   : > { %v2699_v63 = vadd.f32 %v2698_v51, %v2697_v50 }
 0x4d9   : > { %v2732_v18 = vpop.f32.mrb[66].mxu1  ;;  %v2173_v15 = vadd.f32 %v2699_v63, %v2493_v0 }
 0x4da   : > { %v2733_v1 = vpop.f32.mrb[67].mxu1 }
 0x4db   : > { %v2734_v5 = vadd.f32 %v2733_v1, %v2732_v18 }
 0x4dd   : > { %v2735_v43 = vpop.f32.mrb[68].mxu1  ;;  %v2243_v6 = vadd.f32 %v2734_v5, %v2133_v4 }
 0x4de   : > { %v2736_v9 = vpop.f32.mrb[69].mxu1 }
 0x4df   : > { %v2737_v11 = vadd.f32 %v2736_v9, %v2735_v43 }
 0x4e1   : > { %v2738_v12 = vpop.f32.mrb[70].mxu1  ;;  %v2248_v30 = vadd.f32 %v2737_v11, %v2138_v10 }
 0x4e2   : > { %v2739_v14 = vpop.f32.mrb[71].mxu1 }
 0x4e3   : > { %v2740_v17 = vadd.f32 %v2739_v14, %v2738_v12 }
 0x4e5   : > { %v2741_v46 = vpop.f32.mrb[72].mxu1  ;;  %v2253_v20 = vadd.f32 %v2740_v17, %v2143_v16 }
 0x4e6   : > { %v2742_v3 = vpop.f32.mrb[73].mxu1 }
 0x4e7   : > { %v2743_v28 = vadd.f32 %v2742_v3, %v2741_v46 }
 0x4e9   : > { %v2744_v22 = vpop.f32.mrb[74].mxu1  ;;  %v2258_v13 = vadd.f32 %v2743_v28, %v2148_v21 }
 0x4ea   : > { %v2745_v23 = vpop.f32.mrb[75].mxu1 }
 0x4eb   : > { %v2746_v25 = vadd.f32 %v2745_v23, %v2744_v22 }
 0x4ed   : > { %v2747_v26 = vpop.f32.mrb[76].mxu1  ;;  %v2263_v40 = vadd.f32 %v2746_v25, %v2153_v24 }
 0x4ee   : > { %v2748_v29 = vpop.f32.mrb[77].mxu1 }
 0x4ef   : > { %v2749_v33 = vadd.f32 %v2748_v29, %v2747_v26 }
 0x4f1   : > { %v2750_v34 = vpop.f32.mrb[78].mxu1  ;;  %v2268_v27 = vadd.f32 %v2749_v33, %v2158_v31 }
 0x4f2   : > { %v2751_v35 = vpop.f32.mrb[79].mxu1 }
 0x4f3   : > { %v2752_v37 = vadd.f32 %v2751_v35, %v2750_v34 }
 0x4f5   : > { %v2753_v38 = vpop.f32.mrb[80].mxu1  ;;  %v2273_v49 = vadd.f32 %v2752_v37, %v2163_v36 }
 0x4f6   : > { %v2754_v41 = vpop.f32.mrb[81].mxu1 }
 0x4f7   : > { %v2755_v42 = vadd.f32 %v2754_v41, %v2753_v38 }
 0x4f9   : > { %v2756_v2 = vpop.f32.mrb[82].mxu1  ;;  %v2278_v55 = vadd.f32 %v2755_v42, %v2168_v32 }
 0x4fa   : > { %v2757_v7 = vpop.f32.mrb[83].mxu1 }
 0x4fb   : > { %v2758_v19 = vadd.f32 %v2757_v7, %v2756_v2 }
 0x4fd   : > { %v2352_v39 = vpop.f32.mrb[84].mxu1  ;;  %v2283_v44 = vadd.f32 %v2758_v19, %v2173_v15 }
 0x4fe   : > { %v2353_v47 = vadd.f32 %v2352_v39, %v2243_v6  ;;  %v2794_v48 = vpop.f32.mrb[85].mxu1 }
 0x500   : > { %v2396_v52 = vmax.f32 %v2353_v47, 0.0 }
 0x501   : > { %v2357_v45 = vpop.f32.mrb[86].mxu1 }
 0x502   : > { %2405 = vst.msk [vmem:[#allocation7] sm:$0xff] %vm1592_vm4, %v2396_v52  ;;  %v2358_v53 = vadd.f32 %v2357_v45, %v2248_v30  ;;  %v2797_v54 = vpop.f32.mrb[87].mxu1 }
 0x504   : > { %v2397_v56 = vmax.f32 %v2358_v53, 0.0 }
 0x505   : > { %v2362_v8 = vpop.f32.mrb[88].mxu1 }
 0x506   : > { %2406 = vst.msk [vmem:[#allocation7 + $0x8] sm:$0xff] %vm1592_vm4, %v2397_v56  ;;  %v2363_v57 = vadd.f32 %v2362_v8, %v2253_v20  ;;  %v2800_v58 = vpop.f32.mrb[89].mxu1 }
 0x508   : > { %v2398_v59 = vmax.f32 %v2363_v57, 0.0 }
 0x509   : > { %v2414_v60 = vld [vmem:[#allocation7] sm:$0x7f]  ;;  %v2367_v61 = vpop.f32.mrb[90].mxu1 }
 0x50a   : > { %2416 = vst.msk [vmem:[%s4188_s11] sm:$0x7f] %vm2415_vm10, %v2414_v60  ;;  %v2368_v62 = vadd.f32 %v2367_v61, %v2258_v13  ;;  %v2803_v50 = vpop.f32.mrb[91].mxu1 }
 0x50b   : > { %2407 = vst.msk [vmem:[#allocation7 + $0x10] sm:$0xff] %vm1592_vm4, %v2398_v59 }
 0x50c   : > { %v2399_v51 = vmax.f32 %v2368_v62, 0.0 }
 0x50d   : > { %v2372_v63 = vpop.f32.mrb[92].mxu1 }
 0x50e   : > { %2408 = vst.msk [vmem:[#allocation7 + $0x18] sm:$0xff] %vm1592_vm4, %v2399_v51  ;;  %v2373_v0 = vadd.f32 %v2372_v63, %v2263_v40  ;;  %v2806_v18 = vpop.f32.mrb[93].mxu1 }
 0x510   : > { %v2400_v1 = vmax.f32 %v2373_v0, 0.0 }
 0x511   : > { %v2377_v5 = vpop.f32.mrb[94].mxu1 }
 0x512   : > { %v2417_v4 = vld [vmem:[#allocation7 + $0xa] sm:$0x7f]  ;;  %2409 = vst.msk [vmem:[#allocation7 + $0x20] sm:$0xff] %vm1592_vm4, %v2400_v1  ;;  %v2378_v43 = vadd.f32 %v2377_v5, %v2268_v27  ;;  %v2809_v6 = vpop.f32.mrb[95].mxu1 }
 0x513   : > { %2418 = vst.msk [vmem:[%s4188_s11 + $0x7] sm:$0x7f] %vm2415_vm10, %v2417_v4 }
 0x514   : > { %v2401_v9 = vmax.f32 %v2378_v43, 0.0 }
 0x515   : > { %v2419_v10 = vld [vmem:[#allocation7 + $0x14] sm:$0x7f]  ;;  %v2382_v11 = vpop.f32.mrb[96].mxu1 }
 0x516   : > { %2420 = vst.msk [vmem:[%s4188_s11 + $0xe] sm:$0x7f] %vm2415_vm10, %v2419_v10  ;;  %v2383_v12 = vadd.f32 %v2382_v11, %v2273_v49  ;;  %v2812_v30 = vpop.f32.mrb[97].mxu1 }
 0x517   : > { %2410 = vst.msk [vmem:[#allocation7 + $0x28] sm:$0xff] %vm1592_vm4, %v2401_v9 }
 0x518   : > { %v2402_v14 = vmax.f32 %v2383_v12, 0.0 }
 0x519   : > { %v2421_v16 = vld [vmem:[#allocation7 + $0x1e] sm:$0x7f]  ;;  %v2387_v17 = vpop.f32.mrb[98].mxu1 }
 0x51a   : > { %2422 = vst.msk [vmem:[%s4188_s11 + $0x15] sm:$0x7f] %vm2415_vm10, %v2421_v16  ;;  %v2388_v46 = vadd.f32 %v2387_v17, %v2278_v55  ;;  %v2815_v20 = vpop.f32.mrb[99].mxu1 }
 0x51b   : > { %2411 = vst.msk [vmem:[#allocation7 + $0x30] sm:$0xff] %vm1592_vm4, %v2402_v14 }
 0x51c   : > { %v2403_v3 = vmax.f32 %v2388_v46, 0.0 }
 0x51d   : > { %v2392_v28 = vpop.f32.mrb[100].mxu1 }
 0x51e   : > { %v2423_v21 = vld [vmem:[#allocation7 + $0x28] sm:$0x7f]  ;;  %2412 = vst.msk [vmem:[#allocation7 + $0x38] sm:$0xff] %vm1592_vm4, %v2403_v3  ;;  %v2393_v22 = vadd.f32 %v2392_v28, %v2283_v44  ;;  %v2818_v13 = vpop.f32.mrb[101].mxu1 }
 0x51f   : > { %2424 = vst.msk [vmem:[%s4188_s11 + $0x1c] sm:$0x7f] %vm2415_vm10, %v2423_v21 }
 0x520   : > { %v2404_v23 = vmax.f32 %v2393_v22, 0.0 }
 0x522   : > { %2413 = vst.msk [vmem:[#allocation7 + $0x40] sm:$0x7] %vm1623_vm5, %v2404_v23 }
 0x525   : > { %v2425_v24 = vld [vmem:[#allocation7 + $0x32] sm:$0x7f] }
 0x526   : > { %2426 = vst.msk [vmem:[%s4188_s11 + $0x23] sm:$0x7f] %vm2415_vm10, %v2425_v24 }
 0x529   : > { %v2427_v25 = vld [vmem:[#allocation7 + $0x3c] sm:$0x7f] }
 0x52a   : > { %2428 = vst.msk [vmem:[%s4188_s11 + $0x2a] sm:$0x7f] %vm2415_vm10, %v2427_v25 }
 0x52b PF: > { %s17_s24 = sadd.s32 1, %s3029_s24  }
 0x52c   : > { %p14_p4 = scmp.ge.s32.totalorder %s17_s24, 4  }
 0x52e   :  { %16 = sbr.rel (!%p14_p4) target bundleno = 1 (0x1), region = 78 }

</bundles_post_ra>
